<compile_context>
chip_gen: v5e
topology: v5e:2x2
jax: 0.10.0
libtpu: 0.0.40
codegen_flags: <defaults>
</compile_context>

<pallas_src>
import jax
import jax.numpy as jnp
import numpy as np
from jax.experimental import pallas as pl
from jax.experimental.pallas import tpu as pltpu


def resblock_kernel(xbf_ref, xres_ref, w1_ref, b1_ref, w2_ref, b2_ref, o_ref):
    # xbf_ref : (1, BT*H, WC) bf16  lane-dense activations, images stacked along M
    # xres_ref: (BT, H, WC)   f32   same activations (exact residual add)
    # w*_ref  : (3, WC, WC)   bf16  banded conv weights (width-SAME baked in), resident
    # b*_ref  : (1, WC)       f32   bias tiled across width
    # o_ref   : (BT, H, WC)   f32   output block
    BT, H, WC = o_ref.shape

    def band_conv(lhs_flat, w_ref, b_ref):
        # lhs_flat: (BT*H, WC) bf16.  y[h] = b + x[h-1]@W0 + x[h]@W1 + x[h+1]@W2
        # (out-of-range rows are zero).  All three dots consume the same aligned
        # full buffer; the +-1 row taps are applied to the f32 results.
        zrow = jnp.zeros((BT, 1, WC), jnp.float32)

        v = jnp.dot(lhs_flat, w_ref[0],
                    preferred_element_type=jnp.float32).reshape(BT, H, WC)
        acc = b_ref[...][None] + jnp.concatenate([zrow, v[:, :H - 1, :]], axis=1)

        v = jnp.dot(lhs_flat, w_ref[1],
                    preferred_element_type=jnp.float32).reshape(BT, H, WC)
        acc = acc + v

        v = jnp.dot(lhs_flat, w_ref[2],
                    preferred_element_type=jnp.float32).reshape(BT, H, WC)
        acc = acc + jnp.concatenate([v[:, 1:, :], zrow], axis=1)
        return acc                      # (BT, H, WC) f32, conv + bias

    # conv1 + ReLU  (bf16 LHS straight from the input ref; f32 accumulation)
    y1 = band_conv(xbf_ref[0], w1_ref, b1_ref)
    # flatten while still f32 (free when H % 8 == 0), then pack to bf16 for conv2
    lhs2 = jnp.maximum(y1, 0.0).reshape(BT * H, WC).astype(jnp.bfloat16)

    # conv2 + exact f32 residual
    y2 = band_conv(lhs2, w2_ref, b2_ref)
    o_ref[...] = xres_ref[...] + y2


def make_banded_weights(wk, W):
    """(3, 3, Cin, Cout) conv weights -> (3, W*Cin, W*Cout) banded matmul weights.

    Block (wi, wo) of band ky equals wk[ky, wi - wo + 1] when |wi - wo| <= 1,
    i.e. width-direction SAME padding is baked into the weight matrix.
    """
    kh, kw, cin, cout = wk.shape
    bands = []
    for ky in range(kh):
        m = jnp.zeros((W * cin, W * cout), dtype=wk.dtype)
        for kx in range(kw):
            shift = jnp.eye(W, W, k=-(kx - kw // 2), dtype=wk.dtype)
            m = m + jnp.kron(shift, wk[ky, kx])
        bands.append(m)
    return jnp.stack(bands, axis=0)


def prepare_resblock_params(w1, b1, w2, b2, width):
    """Build the banded bf16 MXU weights + tiled biases ONCE (cache across calls)."""
    C = w1.shape[0]
    w1b = make_banded_weights(jnp.transpose(w1, (2, 3, 1, 0)), width).astype(jnp.bfloat16)
    w2b = make_banded_weights(jnp.transpose(w2, (2, 3, 1, 0)), width).astype(jnp.bfloat16)
    b1t = jnp.tile(b1.astype(jnp.float32), width).reshape(1, width * C)
    b2t = jnp.tile(b2.astype(jnp.float32), width).reshape(1, width * C)
    return w1b, b1t, w2b, b2t


def _pick_batch_tile(n, h, target_m=256, cap_m=1024):
    """Largest divisor of n such that bt*h <= cap_m, stopping once bt*h >= target_m."""
    best = 1
    for bt in range(1, n + 1):
        if n % bt != 0:
            continue
        if bt * h > cap_m:
            break
        best = bt
        if bt * h >= target_m:
            break
    return best


def residual_block_pallas(x_nchw, params):
    """x_nchw: (N, 32, H, W) f32; params from prepare_resblock_params()."""
    w1b, b1t, w2b, b2t = params
    N, C, H, W = x_nchw.shape
    WC = W * C
    BT = _pick_batch_tile(N, H)          # images per grid step (M = BT*H per dot)
    G = N // BT

    # NCHW -> lane-dense (N, H, W*C); bf16 copy for the MXU path (flat M layout),
    # f32 copy kept for the exact residual add.
    x_ld = jnp.transpose(x_nchw, (0, 2, 3, 1)).reshape(N, H, WC)
    x_bf = x_ld.astype(jnp.bfloat16).reshape(G, BT * H, WC)

    out = pl.pallas_call(
        resblock_kernel,
        out_shape=jax.ShapeDtypeStruct((N, H, WC), x_nchw.dtype),
        grid_spec=pltpu.PrefetchScalarGridSpec(
            num_scalar_prefetch=0,
            grid=(G,),
            in_specs=[
                pl.BlockSpec((1, BT * H, WC), lambda g: (g, 0, 0)),   # bf16 MXU operand
                pl.BlockSpec((BT, H, WC), lambda g: (g, 0, 0)),       # f32 residual
                pl.BlockSpec((3, WC, WC), lambda g: (0, 0, 0)),       # w1 band (resident)
                pl.BlockSpec((1, WC), lambda g: (0, 0)),              # b1
                pl.BlockSpec((3, WC, WC), lambda g: (0, 0, 0)),       # w2 band (resident)
                pl.BlockSpec((1, WC), lambda g: (0, 0)),              # b2
            ],
            out_specs=pl.BlockSpec((BT, H, WC), lambda g: (g, 0, 0)),
        ),
        compiler_params=pltpu.CompilerParams(
            # Note: near-zero effect on single-TC v5e/v6e; shards across v7x's 2 TCs.
            dimension_semantics=("parallel",),
            vmem_limit_bytes=32 * 1024 * 1024,
        ),
    )(x_bf, x_ld, w1b, b1t, w2b, b2t)

    # lane-dense (N, H, W*C) -> NCHW
    return jnp.transpose(out.reshape(N, H, W, C), (0, 3, 1, 2))


def residual_block_ref(x_nchw, w1, b1, w2, b2):
    dn = ("NCHW", "OIHW", "NCHW")
    h = jax.lax.conv_general_dilated(x_nchw, w1, (1, 1), "SAME",
                                     dimension_numbers=dn) + b1[None, :, None, None]
    h = jnp.maximum(h, 0.0)
    y = jax.lax.conv_general_dilated(h, w2, (1, 1), "SAME",
                                     dimension_numbers=dn) + b2[None, :, None, None]
    return x_nchw + y


if __name__ == "__main__":
    key = jax.random.PRNGKey(0)
    kx, k1, k2, k3, k4 = jax.random.split(key, 5)

    N, C, H, W = 2, 32, 16, 16                      # module hardcodes 32 channels
    x = jax.random.normal(kx, (N, C, H, W), dtype=jnp.float32)
    w1 = jax.random.normal(k1, (32, 32, 3, 3), dtype=jnp.float32) * 0.05
    b1 = jax.random.normal(k2, (32,), dtype=jnp.float32) * 0.05
    w2 = jax.random.normal(k3, (32, 32, 3, 3), dtype=jnp.float32) * 0.05
    b2 = jax.random.normal(k4, (32,), dtype=jnp.float32) * 0.05

    # Weight preprocessing is done once and reused across forwards (review item 8).
    params = jax.block_until_ready(prepare_resblock_params(w1, b1, w2, b2, W))

    out = jax.block_until_ready(residual_block_pallas(x, params))
    ref = jax.block_until_ready(residual_block_ref(x, w1, b1, w2, b2))

    # bf16 MXU inputs (f32 accumulation) -> looser tolerance than pure-f32 version
    np.testing.assert_allclose(np.asarray(out), np.asarray(ref), atol=5e-2, rtol=5e-2)
    print("KERNEL_OK")
</pallas_src>

<mosaic_0001>
module attributes {stable_mosaic.version = 11 : i64} {
  func.func @resblock_kernel(%arg0: i32, %arg1: memref<1x32x512xbf16, #tpu.memory_space<vmem>>, %arg2: memref<2x16x512xf32, #tpu.memory_space<vmem>>, %arg3: memref<3x512x512xbf16, #tpu.memory_space<vmem>>, %arg4: memref<1x512xf32, #tpu.memory_space<vmem>>, %arg5: memref<3x512x512xbf16, #tpu.memory_space<vmem>>, %arg6: memref<1x512xf32, #tpu.memory_space<vmem>>, %arg7: memref<2x16x512xf32, #tpu.memory_space<vmem>>) attributes {dimension_semantics = [#tpu.dimension_semantics<parallel>], iteration_bounds = array<i64: 1>, scalar_prefetch = 0 : i64, scratch_operands = 0 : i64, tpu.core_type = #tpu.core_type<tc>, window_params = [{transform_indices = @transform_0, window_bounds = array<i64: 1, 32, 512>}, {transform_indices = @transform_1, window_bounds = array<i64: 2, 16, 512>}, {pipeline_mode = #tpu.pipeline_mode<synchronous>, transform_indices = @transform_2, window_bounds = array<i64: 3, 512, 512>}, {pipeline_mode = #tpu.pipeline_mode<synchronous>, transform_indices = @transform_3, window_bounds = array<i64: 1, 512>}, {pipeline_mode = #tpu.pipeline_mode<synchronous>, transform_indices = @transform_4, window_bounds = array<i64: 3, 512, 512>}, {pipeline_mode = #tpu.pipeline_mode<synchronous>, transform_indices = @transform_5, window_bounds = array<i64: 1, 512>}, {transform_indices = @transform_6, window_bounds = array<i64: 2, 16, 512>}]} {
    %c0 = arith.constant 0 : index
    %c0_0 = arith.constant 0 : index
    %c0_1 = arith.constant 0 : index
    %0 = vector.load %arg1[%c0, %c0_0, %c0_1] : memref<1x32x512xbf16, #tpu.memory_space<vmem>>, vector<1x32x512xbf16>
    %1 = vector.shape_cast %0 : vector<1x32x512xbf16> to vector<32x512xbf16>
    %cst = arith.constant 0.000000e+00 : f32
    %2 = vector.broadcast %cst : f32 to vector<2x1x512xf32>
    %c0_2 = arith.constant 0 : index
    %c0_3 = arith.constant 0 : index
    %c0_4 = arith.constant 0 : index
    %3 = vector.load %arg3[%c0_2, %c0_3, %c0_4] : memref<3x512x512xbf16, #tpu.memory_space<vmem>>, vector<1x512x512xbf16>
    %4 = vector.shape_cast %3 : vector<1x512x512xbf16> to vector<512x512xbf16>
    %cst_5 = arith.constant dense<0.000000e+00> : vector<32x512xf32>
    %5 = tpu.matmul %1, %4, %cst_5 {dimension_numbers = #tpu.dot_dimension_numbers<[1], [0], [0], [1], [0, 0, 1, 1], [], []>} : vector<32x512xbf16>, vector<512x512xbf16>, vector<32x512xf32> -> vector<32x512xf32>
    %6 = vector.shape_cast %5 : vector<32x512xf32> to vector<2x16x512xf32>
    %c0_6 = arith.constant 0 : index
    %c0_7 = arith.constant 0 : index
    %7 = vector.load %arg4[%c0_6, %c0_7] : memref<1x512xf32, #tpu.memory_space<vmem>>, vector<1x512xf32>
    %8 = vector.shape_cast %7 : vector<1x512xf32> to vector<1x1x512xf32>
    %9 = vector.extract_strided_slice %6 {offsets = [0, 0, 0], sizes = [2, 15, 512], strides = [1, 1, 1]} : vector<2x16x512xf32> to vector<2x15x512xf32>
    %10 = tpu.concatenate %2, %9 in 1 : vector<2x1x512xf32>, vector<2x15x512xf32> -> vector<2x16x512xf32>
    %11 = vector.broadcast %8 : vector<1x1x512xf32> to vector<2x16x512xf32>
    %12 = arith.addf %11, %10 : vector<2x16x512xf32>
    %c1 = arith.constant 1 : index
    %c0_8 = arith.constant 0 : index
    %c0_9 = arith.constant 0 : index
    %13 = vector.load %arg3[%c1, %c0_8, %c0_9] : memref<3x512x512xbf16, #tpu.memory_space<vmem>>, vector<1x512x512xbf16>
    %14 = vector.shape_cast %13 : vector<1x512x512xbf16> to vector<512x512xbf16>
    %cst_10 = arith.constant dense<0.000000e+00> : vector<32x512xf32>
    %15 = tpu.matmul %1, %14, %cst_10 {dimension_numbers = #tpu.dot_dimension_numbers<[1], [0], [0], [1], [0, 0, 1, 1], [], []>} : vector<32x512xbf16>, vector<512x512xbf16>, vector<32x512xf32> -> vector<32x512xf32>
    %16 = vector.shape_cast %15 : vector<32x512xf32> to vector<2x16x512xf32>
    %17 = arith.addf %12, %16 : vector<2x16x512xf32>
    %c2 = arith.constant 2 : index
    %c0_11 = arith.constant 0 : index
    %c0_12 = arith.constant 0 : index
    %18 = vector.load %arg3[%c2, %c0_11, %c0_12] : memref<3x512x512xbf16, #tpu.memory_space<vmem>>, vector<1x512x512xbf16>
    %19 = vector.shape_cast %18 : vector<1x512x512xbf16> to vector<512x512xbf16>
    %cst_13 = arith.constant dense<0.000000e+00> : vector<32x512xf32>
    %20 = tpu.matmul %1, %19, %cst_13 {dimension_numbers = #tpu.dot_dimension_numbers<[1], [0], [0], [1], [0, 0, 1, 1], [], []>} : vector<32x512xbf16>, vector<512x512xbf16>, vector<32x512xf32> -> vector<32x512xf32>
    %21 = vector.shape_cast %20 : vector<32x512xf32> to vector<2x16x512xf32>
    %22 = vector.extract_strided_slice %21 {offsets = [0, 1, 0], sizes = [2, 15, 512], strides = [1, 1, 1]} : vector<2x16x512xf32> to vector<2x15x512xf32>
    %23 = tpu.concatenate %22, %2 in 1 : vector<2x15x512xf32>, vector<2x1x512xf32> -> vector<2x16x512xf32>
    %24 = arith.addf %17, %23 : vector<2x16x512xf32>
    %cst_14 = arith.constant 0.000000e+00 : f32
    %25 = vector.broadcast %cst_14 : f32 to vector<2x16x512xf32>
    %26 = arith.maximumf %24, %25 : vector<2x16x512xf32>
    %27 = vector.shape_cast %26 : vector<2x16x512xf32> to vector<32x512xf32>
    %28 = arith.truncf %27 : vector<32x512xf32> to vector<32x512xbf16>
    %cst_15 = arith.constant 0.000000e+00 : f32
    %29 = vector.broadcast %cst_15 : f32 to vector<2x1x512xf32>
    %c0_16 = arith.constant 0 : index
    %c0_17 = arith.constant 0 : index
    %c0_18 = arith.constant 0 : index
    %30 = vector.load %arg5[%c0_16, %c0_17, %c0_18] : memref<3x512x512xbf16, #tpu.memory_space<vmem>>, vector<1x512x512xbf16>
    %31 = vector.shape_cast %30 : vector<1x512x512xbf16> to vector<512x512xbf16>
    %cst_19 = arith.constant dense<0.000000e+00> : vector<32x512xf32>
    %32 = tpu.matmul %28, %31, %cst_19 {dimension_numbers = #tpu.dot_dimension_numbers<[1], [0], [0], [1], [0, 0, 1, 1], [], []>} : vector<32x512xbf16>, vector<512x512xbf16>, vector<32x512xf32> -> vector<32x512xf32>
    %33 = vector.shape_cast %32 : vector<32x512xf32> to vector<2x16x512xf32>
    %c0_20 = arith.constant 0 : index
    %c0_21 = arith.constant 0 : index
    %34 = vector.load %arg6[%c0_20, %c0_21] : memref<1x512xf32, #tpu.memory_space<vmem>>, vector<1x512xf32>
    %35 = vector.shape_cast %34 : vector<1x512xf32> to vector<1x1x512xf32>
    %36 = vector.extract_strided_slice %33 {offsets = [0, 0, 0], sizes = [2, 15, 512], strides = [1, 1, 1]} : vector<2x16x512xf32> to vector<2x15x512xf32>
    %37 = tpu.concatenate %29, %36 in 1 : vector<2x1x512xf32>, vector<2x15x512xf32> -> vector<2x16x512xf32>
    %38 = vector.broadcast %35 : vector<1x1x512xf32> to vector<2x16x512xf32>
    %39 = arith.addf %38, %37 : vector<2x16x512xf32>
    %c1_22 = arith.constant 1 : index
    %c0_23 = arith.constant 0 : index
    %c0_24 = arith.constant 0 : index
    %40 = vector.load %arg5[%c1_22, %c0_23, %c0_24] : memref<3x512x512xbf16, #tpu.memory_space<vmem>>, vector<1x512x512xbf16>
    %41 = vector.shape_cast %40 : vector<1x512x512xbf16> to vector<512x512xbf16>
    %cst_25 = arith.constant dense<0.000000e+00> : vector<32x512xf32>
    %42 = tpu.matmul %28, %41, %cst_25 {dimension_numbers = #tpu.dot_dimension_numbers<[1], [0], [0], [1], [0, 0, 1, 1], [], []>} : vector<32x512xbf16>, vector<512x512xbf16>, vector<32x512xf32> -> vector<32x512xf32>
    %43 = vector.shape_cast %42 : vector<32x512xf32> to vector<2x16x512xf32>
    %44 = arith.addf %39, %43 : vector<2x16x512xf32>
    %c2_26 = arith.constant 2 : index
    %c0_27 = arith.constant 0 : index
    %c0_28 = arith.constant 0 : index
    %45 = vector.load %arg5[%c2_26, %c0_27, %c0_28] : memref<3x512x512xbf16, #tpu.memory_space<vmem>>, vector<1x512x512xbf16>
    %46 = vector.shape_cast %45 : vector<1x512x512xbf16> to vector<512x512xbf16>
    %cst_29 = arith.constant dense<0.000000e+00> : vector<32x512xf32>
    %47 = tpu.matmul %28, %46, %cst_29 {dimension_numbers = #tpu.dot_dimension_numbers<[1], [0], [0], [1], [0, 0, 1, 1], [], []>} : vector<32x512xbf16>, vector<512x512xbf16>, vector<32x512xf32> -> vector<32x512xf32>
    %48 = vector.shape_cast %47 : vector<32x512xf32> to vector<2x16x512xf32>
    %49 = vector.extract_strided_slice %48 {offsets = [0, 1, 0], sizes = [2, 15, 512], strides = [1, 1, 1]} : vector<2x16x512xf32> to vector<2x15x512xf32>
    %50 = tpu.concatenate %49, %29 in 1 : vector<2x15x512xf32>, vector<2x1x512xf32> -> vector<2x16x512xf32>
    %51 = arith.addf %44, %50 : vector<2x16x512xf32>
    %c0_30 = arith.constant 0 : index
    %c0_31 = arith.constant 0 : index
    %c0_32 = arith.constant 0 : index
    %52 = vector.load %arg2[%c0_30, %c0_31, %c0_32] : memref<2x16x512xf32, #tpu.memory_space<vmem>>, vector<2x16x512xf32>
    %53 = arith.addf %52, %51 : vector<2x16x512xf32>
    %c0_33 = arith.constant 0 : index
    %c0_34 = arith.constant 0 : index
    %c0_35 = arith.constant 0 : index
    %54 = vector.load %arg7[%c0_33, %c0_34, %c0_35] : memref<2x16x512xf32, #tpu.memory_space<vmem>>, vector<2x16x512xf32>
    tpu.vector_store %arg7[%c0_33, %c0_34, %c0_35], %53 {strides = array<i32>} : memref<2x16x512xf32, #tpu.memory_space<vmem>>, vector<2x16x512xf32>,
    return
  }
  func.func @transform_0(%arg0: i32) -> (i32, i32, i32) {
    %c0_i32 = arith.constant 0 : i32
    %c0_i32_0 = arith.constant 0 : i32
    %c0_i32_1 = arith.constant 0 : i32
    return %arg0, %c0_i32, %c0_i32_0 : i32, i32, i32
  }
  func.func @transform_1(%arg0: i32) -> (i32, i32, i32) {
    %c0_i32 = arith.constant 0 : i32
    %c0_i32_0 = arith.constant 0 : i32
    %c0_i32_1 = arith.constant 0 : i32
    return %arg0, %c0_i32, %c0_i32_0 : i32, i32, i32
  }
  func.func @transform_2(%arg0: i32) -> (i32, i32, i32) {
    %c0_i32 = arith.constant 0 : i32
    %c0_i32_0 = arith.constant 0 : i32
    %c0_i32_1 = arith.constant 0 : i32
    %c0_i32_2 = arith.constant 0 : i32
    return %c0_i32, %c0_i32_0, %c0_i32_1 : i32, i32, i32
  }
  func.func @transform_3(%arg0: i32) -> (i32, i32) {
    %c0_i32 = arith.constant 0 : i32
    %c0_i32_0 = arith.constant 0 : i32
    %c0_i32_1 = arith.constant 0 : i32
    return %c0_i32, %c0_i32_0 : i32, i32
  }
  func.func @transform_4(%arg0: i32) -> (i32, i32, i32) {
    %c0_i32 = arith.constant 0 : i32
    %c0_i32_0 = arith.constant 0 : i32
    %c0_i32_1 = arith.constant 0 : i32
    %c0_i32_2 = arith.constant 0 : i32
    return %c0_i32, %c0_i32_0, %c0_i32_1 : i32, i32, i32
  }
  func.func @transform_5(%arg0: i32) -> (i32, i32) {
    %c0_i32 = arith.constant 0 : i32
    %c0_i32_0 = arith.constant 0 : i32
    %c0_i32_1 = arith.constant 0 : i32
    return %c0_i32, %c0_i32_0 : i32, i32
  }
  func.func @transform_6(%arg0: i32) -> (i32, i32, i32) {
    %c0_i32 = arith.constant 0 : i32
    %c0_i32_0 = arith.constant 0 : i32
    %c0_i32_1 = arith.constant 0 : i32
    return %arg0, %c0_i32, %c0_i32_0 : i32, i32, i32
  }
}

</mosaic_0001>

<bundles_post_ra>
// kernel: tpu_custom_call.1
= control target key start
LH: loop header
LB: loop body
LE: loop exit
PB: predicated region body
PF: predicated region fallthrough
CT: control target
= control target key end

     0   :  { %11 = vsyncpa [#allocation3], 0  ;;  %s12076_s0 = inlined_call_operand.hbm [shape: bf16[1,32,512], index: 0, kind: input, shape index: {}]   ;;  %s12077_s1 = inlined_call_operand.hbm [shape: f32[2,16,512], index: 1, kind: input, shape index: {}]   ;;  %s12078_s2 = inlined_call_operand.hbm [shape: bf16[3,512,512], index: 2, kind: input, shape index: {}]   ;;  %s12079_s3 = inlined_call_operand.hbm [shape: f32[1,512], index: 3, kind: input, shape index: {}]   ;;  %s12080_s4 = inlined_call_operand.hbm [shape: bf16[3,512,512], index: 4, kind: input, shape index: {}]   ;;  %s12081_s5 = inlined_call_operand.hbm [shape: f32[1,512], index: 5, kind: input, shape index: {}]   ;;  %s12082_s6 = inlined_call_operand.hbm [shape: f32[2,16,512], index: 6, kind: output, shape index: {}]  }
   0x1   :  { %12 = vsyncpa [#allocation6], 0 }
   0x2   :  { %13 = vsyncpa [#allocation9], 0 }
   0x3   :  { %14 = vsyncpa [#allocation12], 0  ;;  %s33_s23 = sshll.u32 %s12077_s1, 4  ;;  %s34_s23 = int_to_ptr.hbm [resolvable:$true] %s33_s23 }
   0x4   :  { %15 = vsyncpa [#allocation4], 0  ;;  %s11135_s24 = smov [#allocation5]   ;;  %s60_s28 = sshll.u32 %s12079_s3, 4  ;;  %s61_s28 = int_to_ptr.hbm [resolvable:$true] %s60_s28 }
   0x5   :  { %s35_s25 = sshll.u32 %s11135_s24, 4  ;;  %s11136_s29 = smov 512   ;;  %s36_s25 = int_to_ptr.vmem [resolvable:$true] %s35_s25 }
   0x6   :  { %s11137_s30 = smov 32   ;;  %s11138_s7 = smov [#allocation8]  }
   0x7   :  { %41 = dma.hbm_to_vmem [thread:$0]  %s34_s23, 2048, %s36_s25, [#allocation6], %s11136_s29, %s11136_s29, %s11137_s30  }
   0x8   :  { %s62_s8 = sshll.u32 %s11138_s7, 4  ;;  %s20_s10 = sshll.u32 %s12076_s0, 4  ;;  %s63_s8 = int_to_ptr.vmem [resolvable:$true] %s62_s8  ;;  %s21_s10 = int_to_ptr.hbm [resolvable:$true] %s20_s10 }
   0x9   :  { %65 = dma.hbm_to_vmem [thread:$0]  %s61_s28, 64, %s63_s8, [#allocation9]  }
   0xa   :  { %s11139_s11 = smov [#allocation2]   ;;  %s46_s14 = sshll.u32 %s12078_s2, 4  ;;  %s47_s14 = int_to_ptr.hbm [resolvable:$true] %s46_s14 }
   0xb   :  { %s22_s12 = sshll.u32 %s11139_s11, 4  ;;  %s11140_s15 = smov 256   ;;  %s23_s12 = int_to_ptr.vmem [resolvable:$true] %s22_s12 }
   0xc   :  { %s11141_s16 = smov 16   ;;  %s11142_s17 = smov [#allocation7]  }
   0xd   :  { %28 = dma.hbm_to_vmem [thread:$0]  %s21_s10, 1024, %s23_s12, [#allocation3], %s11140_s15, %s11140_s15, %s11141_s16  }
   0xe   :  { %s48_s18 = sshll.u32 %s11142_s17, 4  ;;  %s70_s0 = sshll.u32 %s12080_s4, 4  ;;  %s49_s18 = int_to_ptr.vmem [resolvable:$true] %s48_s18  ;;  %s71_s0 = int_to_ptr.hbm [resolvable:$true] %s70_s0 }
   0xf   :  { %54 = dma.hbm_to_vmem [thread:$0]  %s47_s14, 49152, %s49_s18, [#allocation6], %s11140_s15, %s11140_s15, %s11141_s16  }
  0x10   :  { %s84_s23 = sshll.u32 %s12081_s5, 4  ;;  %s11143_s24 = smov [#allocation10]   ;;  %s85_s23 = int_to_ptr.hbm [resolvable:$true] %s84_s23 }
  0x11   :  { %s72_s25 = sshll.u32 %s11143_s24, 4  ;;  %s11144_s2 = smov [#allocation11]   ;;  %s73_s25 = int_to_ptr.vmem [resolvable:$true] %s72_s25 }
  0x12   :  { %78 = dma.hbm_to_vmem [thread:$0]  %s71_s0, 49152, %s73_s25, [#allocation9], %s11140_s15, %s11140_s15, %s11141_s16  }
  0x13   :  { %s86_s26 = sshll.u32 %s11144_s2, 4  ;;  %s87_s26 = int_to_ptr.vmem [resolvable:$true] %s86_s26 }
  0x14   :  { %89 = dma.hbm_to_vmem [thread:$0]  %s85_s23, 64, %s87_s26, [#allocation12]  }
  0x15   :  { %11125 = dma.done.wait [#allocation3], 1024  }
  0x16   :  { %11126 = vsyncadd [#allocation3], 4294966272 }
  0x17   :  { %11127 = dma.done.wait [#allocation6], 51200  }
  0x18   :  { %11128 = vsyncadd [#allocation6], 4294916096 }
  0x19   :  { %11129 = dma.done.wait [#allocation9], 49216  }
  0x1a   :  { %11130 = vsyncadd [#allocation9], 4294918080 }
  0x1b   :  { %11131 = dma.done.wait [#allocation12], 64  }
  0x1c   :  { %11132 = vsyncadd [#allocation12], 4294967232  ;;  %v7212_v0 = vld [vmem:[#allocation7 + $0xe0] sm:$0xf]  ;;  %v10208_v1 = vld [vmem:[#allocation7 + $0xec] sm:$0xf0] }
  0x1d   :  { %v7340_v2 = vld [vmem:[#allocation7 + $0x1e0] sm:$0xf]  ;;  %v7213_v3 = vor.u32 %v10208_v1, %v7212_v0  ;;  %v10240_v4 = vld [vmem:[#allocation7 + $0x1ec] sm:$0xf0]  ;;  %vm1251_vm0 = vcmask 1040384   ;;  %vm3503_vm1 = vcmask 1046528  }
  0x1e   :  { %v7468_v5 = vld [vmem:[#allocation7 + $0x2e0] sm:$0xf]  ;;  %v10272_v6 = vld [vmem:[#allocation7 + $0x2ec] sm:$0xf0]  ;;  %v7341_v7 = vor.u32 %v10240_v4, %v7340_v2  ;;  %s11145_s4 = smov [#allocation13]   ;;  %s7050_s7 = sshll.u32 %s12082_s6, 4  ;;  %s7051_s7 = int_to_ptr.hbm [resolvable:$true] %s7050_s7 }
  0x1f   :  { %v7469_v8 = vor.u32 %v10272_v6, %v7468_v5  ;;  %v7596_v9 = vld [vmem:[#allocation7 + $0x3e0] sm:$0xf]  ;;  %v10304_v10 = vld [vmem:[#allocation7 + $0x3ec] sm:$0xf0]  ;;  %930 = vmatpush.bf16.msra.mxu0 %v7213_v3  ;;  %s7048_s5 = sshll.u32 %s11145_s4, 4  ;;  %s7049_s5 = int_to_ptr.vmem [resolvable:$true] %s7048_s5 }
  0x20   :  { %v7196_v11 = vld [vmem:[#allocation7 + $0xc0] sm:$0xf]  ;;  %v7597_v12 = vor.u32 %v10304_v10, %v7596_v9  ;;  %v10204_v13 = vld [vmem:[#allocation7 + $0xcc] sm:$0xf0]  ;;  %949 = vmatpush.bf16.msra.mxu1 %v7341_v7 }
  0x21   :  { %v7324_v14 = vld [vmem:[#allocation7 + $0x1c0] sm:$0xf]  ;;  %v10236_v15 = vld [vmem:[#allocation7 + $0x1cc] sm:$0xf0]  ;;  %968 = vmatpush.bf16.msra.mxu2 %v7469_v8  ;;  %v7197_v16 = vor.u32 %v10204_v13, %v7196_v11 }
  0x22   :  { %v7325_v17 = vor.u32 %v10236_v15, %v7324_v14  ;;  %v7452_v18 = vld [vmem:[#allocation7 + $0x2c0] sm:$0xf]  ;;  %v10268_v19 = vld [vmem:[#allocation7 + $0x2cc] sm:$0xf0]  ;;  %987 = vmatpush.bf16.msra.mxu3 %v7597_v12 }
  0x23   :  { %v7580_v20 = vld [vmem:[#allocation7 + $0x3c0] sm:$0xf]  ;;  %v7453_v21 = vor.u32 %v10268_v19, %v7452_v18  ;;  %v10300_v22 = vld [vmem:[#allocation7 + $0x3cc] sm:$0xf0]  ;;  %931 = vmatpush.bf16.msra.mxu0 %v7197_v16 }
  0x24   :  { %v7180_v23 = vld [vmem:[#allocation7 + $0xa0] sm:$0xf]  ;;  %v10200_v24 = vld [vmem:[#allocation7 + $0xac] sm:$0xf0]  ;;  %v7581_v25 = vor.u32 %v10300_v22, %v7580_v20  ;;  %950 = vmatpush.bf16.msra.mxu1 %v7325_v17 }
  0x25   :  { %v7308_v26 = vld [vmem:[#allocation7 + $0x1a0] sm:$0xf]  ;;  %v10232_v27 = vld [vmem:[#allocation7 + $0x1ac] sm:$0xf0]  ;;  %v7181_v29 = vor.u32 %v10200_v24, %v7180_v23  ;;  %969 = vmatpush.bf16.msra.mxu2 %v7453_v21 }
  0x26   :  { %v7436_v28 = vld [vmem:[#allocation7 + $0x2a0] sm:$0xf]  ;;  %v10264_v30 = vld [vmem:[#allocation7 + $0x2ac] sm:$0xf0]  ;;  %v7309_v33 = vor.u32 %v10232_v27, %v7308_v26  ;;  %988 = vmatpush.bf16.msra.mxu3 %v7581_v25 }
  0x27   :  { %v7564_v31 = vld [vmem:[#allocation7 + $0x3a0] sm:$0xf]  ;;  %v10296_v32 = vld [vmem:[#allocation7 + $0x3ac] sm:$0xf0]  ;;  %v7437_v34 = vor.u32 %v10264_v30, %v7436_v28  ;;  %932 = vmatpush.bf16.msra.mxu0 %v7181_v29  ;;  %v10170_v30 = vld [vmem:[#allocation2 + $0x4] sm:$0xf] }
  0x28   :  { %v7164_v35 = vld [vmem:[#allocation7 + $0x80] sm:$0xf]  ;;  %v10196_v36 = vld [vmem:[#allocation7 + $0x8c] sm:$0xf0]  ;;  %v7565_v38 = vor.u32 %v10296_v32, %v7564_v31  ;;  %951 = vmatpush.bf16.msra.mxu1 %v7309_v33  ;;  %v7070_v31 = vld [vmem:[#allocation2 + $0x10] sm:$0xf0] }
  0x29   :  { %v7292_v37 = vld [vmem:[#allocation7 + $0x180] sm:$0xf]  ;;  %v10228_v39 = vld [vmem:[#allocation7 + $0x18c] sm:$0xf0]  ;;  %v7165_v44 = vor.u32 %v10196_v36, %v7164_v35  ;;  %970 = vmatpush.bf16.msra.mxu2 %v7437_v34  ;;  %v10270_v32 = vld [vmem:[#allocation7 + $0x2e4] sm:$0xf] }
  0x2a   :  { %v7420_v40 = vld [vmem:[#allocation7 + $0x280] sm:$0xf]  ;;  %v10260_v41 = vld [vmem:[#allocation7 + $0x28c] sm:$0xf0]  ;;  %v7293_v45 = vor.u32 %v10228_v39, %v7292_v37  ;;  %989 = vmatpush.bf16.msra.mxu3 %v7565_v38  ;;  %v7470_v33 = vld [vmem:[#allocation7 + $0x2f0] sm:$0xf0] }
  0x2b   :  { %v7548_v42 = vld [vmem:[#allocation7 + $0x380] sm:$0xf]  ;;  %v10292_v43 = vld [vmem:[#allocation7 + $0x38c] sm:$0xf0]  ;;  %v7421_v46 = vor.u32 %v10260_v41, %v7420_v40  ;;  %933 = vmatpush.bf16.msra.mxu0 %v7165_v44  ;;  %v7076_v35 = vld [vmem:[#allocation2 + $0x8] sm:$0xf]  ;;  %v7473_v44 = vor.u32 %v10270_v32, %v7470_v33 }
  0x2c   :  { %v7148_v47 = vld [vmem:[#allocation7 + $0x60] sm:$0xf]  ;;  %v10192_v48 = vld [vmem:[#allocation7 + $0x6c] sm:$0xf0]  ;;  %v7549_v50 = vor.u32 %v10292_v43, %v7548_v42  ;;  %952 = vmatpush.bf16.msra.mxu1 %v7293_v45  ;;  %v10238_v36 = vld [vmem:[#allocation7 + $0x1e4] sm:$0xf] }
  0x2d   :  { %v7276_v49 = vld [vmem:[#allocation7 + $0x160] sm:$0xf]  ;;  %v10224_v51 = vld [vmem:[#allocation7 + $0x16c] sm:$0xf0]  ;;  %v7149_v56 = vor.u32 %v10192_v48, %v7148_v47  ;;  %971 = vmatpush.bf16.msra.mxu2 %v7421_v46  ;;  %v7342_v37 = vld [vmem:[#allocation7 + $0x1f0] sm:$0xf0] }
  0x2e   :  { %v7404_v52 = vld [vmem:[#allocation7 + $0x260] sm:$0xf]  ;;  %v10256_v53 = vld [vmem:[#allocation7 + $0x26c] sm:$0xf0]  ;;  %v7277_v57 = vor.u32 %v10224_v51, %v7276_v49  ;;  %990 = vmatpush.bf16.msra.mxu3 %v7549_v50  ;;  %v10173_v40 = vld [vmem:[#allocation2 + $0x14] sm:$0xf0]  ;;  %v7345_v49 = vor.u32 %v10238_v36, %v7342_v37 }
  0x2f   :  { %v7532_v54 = vld [vmem:[#allocation7 + $0x360] sm:$0xf]  ;;  %v10288_v55 = vld [vmem:[#allocation7 + $0x36c] sm:$0xf0]  ;;  %v7405_v58 = vor.u32 %v10256_v53, %v7404_v52  ;;  %934 = vmatpush.bf16.msra.mxu0 %v7149_v56  ;;  %v10171_v41 = vld [vmem:[#allocation2 + $0xc] sm:$0xf]  ;;  %v11204_v53 = vor.u32 %v10170_v30, %v7070_v31 }
  0x30   :  { %v7132_v59 = vld [vmem:[#allocation7 + $0x40] sm:$0xf]  ;;  %v10188_v60 = vld [vmem:[#allocation7 + $0x4c] sm:$0xf0]  ;;  %v7533_v62 = vor.u32 %v10288_v55, %v7532_v54  ;;  %953 = vmatpush.bf16.msra.mxu1 %v7277_v57  ;;  %v7078_v42 = vld [vmem:[#allocation2 + $0x18] sm:$0xf0]  ;;  %v11206_v54 = vor.u32 %v10173_v40, %v7076_v35 }
  0x31   :  { %v7260_v61 = vld [vmem:[#allocation7 + $0x140] sm:$0xf]  ;;  %v10220_v63 = vld [vmem:[#allocation7 + $0x14c] sm:$0xf0]  ;;  %v7133_v4 = vor.u32 %v10188_v60, %v7132_v59  ;;  %972 = vmatpush.bf16.msra.mxu2 %v7405_v58  ;;  %v10206_v45 = vld [vmem:[#allocation7 + $0xe4] sm:$0xf]  ;;  %v11208_v57 = vor.u32 %v10171_v41, %v7078_v42 }
  0x32   :  { %v7388_v0 = vld [vmem:[#allocation7 + $0x240] sm:$0xf]  ;;  %v10252_v1 = vld [vmem:[#allocation7 + $0x24c] sm:$0xf0]  ;;  %v7261_v5 = vor.u32 %v10220_v63, %v7260_v61  ;;  %991 = vmatpush.bf16.msra.mxu3 %v7533_v62  ;;  %v7214_v46 = vld [vmem:[#allocation7 + $0xf0] sm:$0xf0] }
  0x33   :  { %v7516_v2 = vld [vmem:[#allocation7 + $0x340] sm:$0xf]  ;;  %v10284_v3 = vld [vmem:[#allocation7 + $0x34c] sm:$0xf0]  ;;  %v7389_v6 = vor.u32 %v10252_v1, %v7388_v0  ;;  %935 = vmatpush.bf16.msra.mxu0 %v7133_v4  ;;  %v10302_v47 = vld [vmem:[#allocation7 + $0x3e4] sm:$0xf]  ;;  %v7217_v58 = vor.u32 %v10206_v45, %v7214_v46 }
  0x34   :  { %v7116_v7 = vld [vmem:[#allocation7 + $0x20] sm:$0xf]  ;;  %v10184_v8 = vld [vmem:[#allocation7 + $0x2c] sm:$0xf0]  ;;  %v7517_v10 = vor.u32 %v10284_v3, %v7516_v2  ;;  %954 = vmatpush.bf16.msra.mxu1 %v7261_v5  ;;  %v7598_v50 = vld [vmem:[#allocation7 + $0x3f0] sm:$0xf0] }
  0x35   :  { %v7244_v9 = vld [vmem:[#allocation7 + $0x120] sm:$0xf]  ;;  %v10216_v11 = vld [vmem:[#allocation7 + $0x12c] sm:$0xf0]  ;;  %v7117_v17 = vor.u32 %v10184_v8, %v7116_v7  ;;  %973 = vmatpush.bf16.msra.mxu2 %v7389_v6  ;;  %v10266_v51 = vld [vmem:[#allocation7 + $0x2c4] sm:$0xf]  ;;  %v7601_v59 = vor.u32 %v10302_v47, %v7598_v50 }
  0x36   :  { %v7372_v12 = vld [vmem:[#allocation7 + $0x220] sm:$0xf]  ;;  %v10248_v13 = vld [vmem:[#allocation7 + $0x22c] sm:$0xf0]  ;;  %v7245_v21 = vor.u32 %v10216_v11, %v7244_v9  ;;  %992 = vmatpush.bf16.msra.mxu3 %v7517_v10  ;;  %v7454_v52 = vld [vmem:[#allocation7 + $0x2d0] sm:$0xf0] }
  0x37   :  { %v7500_v14 = vld [vmem:[#allocation7 + $0x320] sm:$0xf]  ;;  %v10280_v15 = vld [vmem:[#allocation7 + $0x32c] sm:$0xf0]  ;;  %v7373_v22 = vor.u32 %v10248_v13, %v7372_v12  ;;  %936 = vmatpush.bf16.msra.mxu0 %v7117_v17  ;;  %v10234_v55 = vld [vmem:[#allocation7 + $0x1c4] sm:$0xf]  ;;  %v7457_v60 = vor.u32 %v10266_v51, %v7454_v52 }
  0x38   :  { %v7100_v16 = vld [vmem:[#allocation7] sm:$0xf]  ;;  %v10180_v18 = vld [vmem:[#allocation7 + $0xc] sm:$0xf0]  ;;  %v7501_v26 = vor.u32 %v10280_v15, %v7500_v14  ;;  %955 = vmatpush.bf16.msra.mxu1 %v7245_v21  ;;  %v7326_v56 = vld [vmem:[#allocation7 + $0x1d0] sm:$0xf0] }
  0x39   :  { %v7228_v19 = vld [vmem:[#allocation7 + $0x100] sm:$0xf]  ;;  %v10212_v20 = vld [vmem:[#allocation7 + $0x10c] sm:$0xf0]  ;;  %v7101_v34 = vor.u32 %v10180_v18, %v7100_v16  ;;  %974 = vmatpush.bf16.msra.mxu2 %v7373_v22  ;;  %v10202_v61 = vld [vmem:[#allocation7 + $0xc4] sm:$0xf]  ;;  %v7329_v0 = vor.u32 %v10234_v55, %v7326_v56 }
  0x3a   :  { %v7356_v23 = vld [vmem:[#allocation7 + $0x200] sm:$0xf]  ;;  %v10244_v24 = vld [vmem:[#allocation7 + $0x20c] sm:$0xf0]  ;;  %v7229_v38 = vor.u32 %v10212_v20, %v7228_v19  ;;  %993 = vmatpush.bf16.msra.mxu3 %v7501_v26  ;;  %v7198_v62 = vld [vmem:[#allocation7 + $0xd0] sm:$0xf0] }
  0x3b   :  { %v7484_v25 = vld [vmem:[#allocation7 + $0x300] sm:$0xf]  ;;  %v10276_v27 = vld [vmem:[#allocation7 + $0x30c] sm:$0xf0]  ;;  %v7357_v39 = vor.u32 %v10244_v24, %v7356_v23  ;;  %937 = vmatpush.bf16.msra.mxu0 %v7101_v34  ;;  %v10298_v63 = vld [vmem:[#allocation7 + $0x3c4] sm:$0xf]  ;;  %v7201_v6 = vor.u32 %v10202_v61, %v7198_v62 }
  0x3c   :  { %v7068_v28 = vld [vmem:[#allocation2] sm:$0xf]  ;;  %v10172_v29 = vld [vmem:[#allocation2 + $0xc] sm:$0xf0]  ;;  %v7485_v43 = vor.u32 %v10276_v27, %v7484_v25  ;;  %956 = vmatpush.bf16.msra.mxu1 %v7229_v38  ;;  %v7582_v1 = vld [vmem:[#allocation7 + $0x3d0] sm:$0xf0] }
  0x3d   :  { %v11202_v48 = vor.u32 %v10172_v29, %v7068_v28  ;;  %975 = vmatpush.bf16.msra.mxu2 %v7357_v39  ;;  %v10262_v2 = vld [vmem:[#allocation7 + $0x2a4] sm:$0xf]  ;;  %v7438_v3 = vld [vmem:[#allocation7 + $0x2b0] sm:$0xf0]  ;;  %v7585_v7 = vor.u32 %v10298_v63, %v7582_v1  ;;  %v7084_v25 = vld [vmem:[#allocation2 + $0x20] sm:$0xf] }
  0x3e   :  { %994 = vmatpush.bf16.msra.mxu3 %v7485_v43  ;;  %v10230_v4 = vld [vmem:[#allocation7 + $0x1a4] sm:$0xf]  ;;  %v7310_v5 = vld [vmem:[#allocation7 + $0x1b0] sm:$0xf0]  ;;  %v7441_v8 = vor.u32 %v10262_v2, %v7438_v3  ;;  %v10176_v26 = vld [vmem:[#allocation2 + $0x2c] sm:$0xf0] }
  0x3f   :  { %938 = vmatmul.bf16.vlgmr.msra.gmra.mxu0 %v11202_v48  ;;  %957 = vmatmul.bf16.vlgmr.msra.gmra.mxu1 %v11204_v53  ;;  %v10198_v9 = vld [vmem:[#allocation7 + $0xa4] sm:$0xf]  ;;  %v7182_v10 = vld [vmem:[#allocation7 + $0xb0] sm:$0xf0]  ;;  %v7313_v12 = vor.u32 %v10230_v4, %v7310_v5  ;;  %v7092_v32 = vld [vmem:[#allocation2 + $0x28] sm:$0xf] }
  0x40   :  { %1025 = vmatpush.bf16.msrb.mxu1 %v7345_v49  ;;  %976 = vmatmul.bf16.vlgmr.msra.gmra.mxu2 %v11206_v54  ;;  %v10294_v11 = vld [vmem:[#allocation7 + $0x3a4] sm:$0xf]  ;;  %v7566_v13 = vld [vmem:[#allocation7 + $0x3b0] sm:$0xf0]  ;;  %v7185_v18 = vor.u32 %v10198_v9, %v7182_v10  ;;  %v10177_v36 = vld [vmem:[#allocation2 + $0x34] sm:$0xf0] }
  0x41   :  { %1044 = vmatpush.bf16.msrb.mxu2 %v7473_v44  ;;  %995 = vmatmul.bf16.vlgmr.msra.gmra.mxu3 %v11208_v57  ;;  %v10258_v14 = vld [vmem:[#allocation7 + $0x284] sm:$0xf]  ;;  %v7422_v15 = vld [vmem:[#allocation7 + $0x290] sm:$0xf0]  ;;  %v7569_v22 = vor.u32 %v10294_v11, %v7566_v13  ;;  %v10175_v37 = vld [vmem:[#allocation2 + $0x2c] sm:$0xf]  ;;  %v11214_v44 = vor.u32 %v10176_v26, %v7084_v25  ;;  %v11218_v51 = vor.u32 %v10177_v36, %v7092_v32 }
  0x42   :  { %1006 = vmatpush.bf16.msrb.mxu0 %v7217_v58  ;;  %1063 = vmatpush.bf16.msrb.mxu3 %v7601_v59  ;;  %v10226_v16 = vld [vmem:[#allocation7 + $0x184] sm:$0xf]  ;;  %v7294_v17 = vld [vmem:[#allocation7 + $0x190] sm:$0xf0]  ;;  %v7425_v23 = vor.u32 %v10258_v14, %v7422_v15  ;;  %v7094_v38 = vld [vmem:[#allocation2 + $0x38] sm:$0xf0] }
  0x43   :  { %v10194_v19 = vld [vmem:[#allocation7 + $0x84] sm:$0xf]  ;;  %v7166_v20 = vld [vmem:[#allocation7 + $0x90] sm:$0xf0]  ;;  %v7297_v27 = vor.u32 %v10226_v16, %v7294_v17  ;;  %v11220_v56 = vor.u32 %v10175_v37, %v7094_v38  ;;  %v10209_v32 = vld [vmem:[#allocation7 + $0xf4] sm:$0xf0] }
  0x44   :  { %1026 = vmatpush.bf16.msrb.mxu1 %v7329_v0  ;;  %v10290_v21 = vld [vmem:[#allocation7 + $0x384] sm:$0xf]  ;;  %v7550_v24 = vld [vmem:[#allocation7 + $0x390] sm:$0xf0]  ;;  %v7169_v35 = vor.u32 %v10194_v19, %v7166_v20  ;;  %v10273_v19 = vld [vmem:[#allocation7 + $0x2f4] sm:$0xf0] }
  0x45   :  { %1045 = vmatpush.bf16.msrb.mxu2 %v7457_v60  ;;  %v10174_v28 = vld [vmem:[#allocation2 + $0x24] sm:$0xf]  ;;  %v7086_v29 = vld [vmem:[#allocation2 + $0x30] sm:$0xf0]  ;;  %v7553_v39 = vor.u32 %v10290_v21, %v7550_v24  ;;  %v7460_v36 = vld [vmem:[#allocation7 + $0x2c8] sm:$0xf] }
  0x46   :  { %1007 = vmatpush.bf16.msrb.mxu0 %v7201_v6  ;;  %1064 = vmatpush.bf16.msrb.mxu3 %v7585_v7  ;;  %v10254_v30 = vld [vmem:[#allocation7 + $0x264] sm:$0xf]  ;;  %v7406_v31 = vld [vmem:[#allocation7 + $0x270] sm:$0xf0]  ;;  %v11216_v50 = vor.u32 %v10174_v28, %v7086_v29  ;;  %v10269_v37 = vld [vmem:[#allocation7 + $0x2d4] sm:$0xf0] }
  0x47   :  { %v10222_v33 = vld [vmem:[#allocation7 + $0x164] sm:$0xf]  ;;  %v7278_v34 = vld [vmem:[#allocation7 + $0x170] sm:$0xf0]  ;;  %v7409_v40 = vor.u32 %v10254_v30, %v7406_v31  ;;  %v7220_v31 = vld [vmem:[#allocation7 + $0xe8] sm:$0xf] }
  0x48   :  { %1027 = vmatpush.bf16.msrb.mxu1 %v7313_v12  ;;  %v10190_v41 = vld [vmem:[#allocation7 + $0x64] sm:$0xf]  ;;  %v7150_v42 = vld [vmem:[#allocation7 + $0x70] sm:$0xf0]  ;;  %v7281_v45 = vor.u32 %v10222_v33, %v7278_v34  ;;  %v7604_v33 = vld [vmem:[#allocation7 + $0x3e8] sm:$0xf] }
  0x49   :  { %1046 = vmatpush.bf16.msrb.mxu2 %v7441_v8  ;;  %v10286_v43 = vld [vmem:[#allocation7 + $0x364] sm:$0xf]  ;;  %v7534_v46 = vld [vmem:[#allocation7 + $0x370] sm:$0xf0]  ;;  %v7153_v58 = vor.u32 %v10190_v41, %v7150_v42  ;;  %v7204_v41 = vld [vmem:[#allocation7 + $0xc8] sm:$0xf] }
  0x4a   :  { %1008 = vmatpush.bf16.msrb.mxu0 %v7185_v18  ;;  %1065 = vmatpush.bf16.msrb.mxu3 %v7569_v22  ;;  %v10250_v47 = vld [vmem:[#allocation7 + $0x244] sm:$0xf]  ;;  %v7390_v49 = vld [vmem:[#allocation7 + $0x250] sm:$0xf0]  ;;  %v7537_v59 = vor.u32 %v10286_v43, %v7534_v46  ;;  %v7476_v18 = vld [vmem:[#allocation7 + $0x2e8] sm:$0xf] }
  0x4b   :  { %v10218_v52 = vld [vmem:[#allocation7 + $0x144] sm:$0xf]  ;;  %v7262_v55 = vld [vmem:[#allocation7 + $0x150] sm:$0xf0]  ;;  %v7393_v60 = vor.u32 %v10250_v47, %v7390_v49  ;;  %v7348_v22 = vld [vmem:[#allocation7 + $0x1e8] sm:$0xf]  ;;  %v7477_v30 = vor.u32 %v10273_v19, %v7476_v18 }
  0x4c   :  { %1028 = vmatpush.bf16.msrb.mxu1 %v7297_v27  ;;  %v10186_v61 = vld [vmem:[#allocation7 + $0x44] sm:$0xf]  ;;  %v7134_v62 = vld [vmem:[#allocation7 + $0x50] sm:$0xf0]  ;;  %v7265_v0 = vor.u32 %v10218_v52, %v7262_v55  ;;  %v10205_v42 = vld [vmem:[#allocation7 + $0xd4] sm:$0xf0] }
  0x4d   :  { %1047 = vmatpush.bf16.msrb.mxu2 %v7425_v23  ;;  %v10282_v63 = vld [vmem:[#allocation7 + $0x344] sm:$0xf]  ;;  %v7518_v1 = vld [vmem:[#allocation7 + $0x350] sm:$0xf0]  ;;  %v7137_v6 = vor.u32 %v10186_v61, %v7134_v62  ;;  %v10241_v23 = vld [vmem:[#allocation7 + $0x1f4] sm:$0xf0] }
  0x4e   :  { %1009 = vmatpush.bf16.msrb.mxu0 %v7169_v35  ;;  %1066 = vmatpush.bf16.msrb.mxu3 %v7553_v39  ;;  %v10246_v2 = vld [vmem:[#allocation7 + $0x224] sm:$0xf]  ;;  %v7374_v3 = vld [vmem:[#allocation7 + $0x230] sm:$0xf0]  ;;  %v7521_v8 = vor.u32 %v10282_v63, %v7518_v1  ;;  %v7349_v34 = vor.u32 %v10241_v23, %v7348_v22  ;;  %v10305_v35 = vld [vmem:[#allocation7 + $0x3f4] sm:$0xf0] }
  0x4f   :  { %943 = vmatmul.bf16.gmra.mxu0 %v11214_v44  ;;  %962 = vmatmul.bf16.gmra.mxu1 %v11216_v50  ;;  %v10214_v4 = vld [vmem:[#allocation7 + $0x124] sm:$0xf]  ;;  %v7246_v5 = vld [vmem:[#allocation7 + $0x130] sm:$0xf0]  ;;  %v7377_v9 = vor.u32 %v10246_v2, %v7374_v3  ;;  %v7605_v43 = vor.u32 %v10305_v35, %v7604_v33  ;;  %v7332_v46 = vld [vmem:[#allocation7 + $0x1c8] sm:$0xf] }
  0x50   :  { %1029 = vmatpush.bf16.msrb.mxu1 %v7281_v45  ;;  %981 = vmatmul.bf16.gmra.mxu2 %v11218_v51  ;;  %v10182_v7 = vld [vmem:[#allocation7 + $0x24] sm:$0xf]  ;;  %v7118_v10 = vld [vmem:[#allocation7 + $0x30] sm:$0xf0]  ;;  %v7249_v13 = vor.u32 %v10214_v4, %v7246_v5  ;;  %v7461_v45 = vor.u32 %v10269_v37, %v7460_v36  ;;  %v10237_v47 = vld [vmem:[#allocation7 + $0x1d4] sm:$0xf0] }
  0x51   :  { %1048 = vmatpush.bf16.msrb.mxu2 %v7409_v40  ;;  %1000 = vmatmul.bf16.gmra.mxu3 %v11220_v56  ;;  %v10278_v11 = vld [vmem:[#allocation7 + $0x324] sm:$0xf]  ;;  %v7502_v12 = vld [vmem:[#allocation7 + $0x330] sm:$0xf0]  ;;  %v7121_v20 = vor.u32 %v10182_v7, %v7118_v10  ;;  %v7221_v40 = vor.u32 %v10209_v32, %v7220_v31  ;;  %v7588_v49 = vld [vmem:[#allocation7 + $0x3c8] sm:$0xf] }
  0x52   :  { %1010 = vmatpush.bf16.msrb.mxu0 %v7153_v58  ;;  %1067 = vmatpush.bf16.msrb.mxu3 %v7537_v59  ;;  %v10242_v14 = vld [vmem:[#allocation7 + $0x204] sm:$0xf]  ;;  %v7358_v15 = vld [vmem:[#allocation7 + $0x210] sm:$0xf0]  ;;  %v7505_v24 = vor.u32 %v10278_v11, %v7502_v12  ;;  %v10301_v52 = vld [vmem:[#allocation7 + $0x3d4] sm:$0xf0]  ;;  %v7205_v59 = vor.u32 %v10205_v42, %v7204_v41 }
  0x53   :  { %v10210_v16 = vld [vmem:[#allocation7 + $0x104] sm:$0xf]  ;;  %v7230_v17 = vld [vmem:[#allocation7 + $0x110] sm:$0xf0]  ;;  %v7361_v25 = vor.u32 %v10242_v14, %v7358_v15  ;;  %v7444_v55 = vld [vmem:[#allocation7 + $0x2a8] sm:$0xf]  ;;  %v7589_v63 = vor.u32 %v10301_v52, %v7588_v49 }
  0x54   :  { %1030 = vmatpush.bf16.msrb.mxu1 %v7265_v0  ;;  %v10178_v21 = vld [vmem:[#allocation7 + $0x4] sm:$0xf]  ;;  %v7102_v26 = vld [vmem:[#allocation7 + $0x10] sm:$0xf0]  ;;  %v7233_v29 = vor.u32 %v10210_v16, %v7230_v17  ;;  %v10265_v58 = vld [vmem:[#allocation7 + $0x2b4] sm:$0xf0] }
  0x55   :  { %1049 = vmatpush.bf16.msrb.mxu2 %v7393_v60  ;;  %v10274_v27 = vld [vmem:[#allocation7 + $0x304] sm:$0xf]  ;;  %v7486_v28 = vld [vmem:[#allocation7 + $0x310] sm:$0xf0]  ;;  %v7105_v38 = vor.u32 %v10178_v21, %v7102_v26  ;;  %v7333_v60 = vor.u32 %v10237_v47, %v7332_v46  ;;  %v7188_v61 = vld [vmem:[#allocation7 + $0xa8] sm:$0xf]  ;;  %v7445_v0 = vor.u32 %v10265_v58, %v7444_v55 }
  0x56   :  { %1011 = vmatpush.bf16.msrb.mxu0 %v7137_v6  ;;  %1068 = vmatpush.bf16.msrb.mxu3 %v7521_v8  ;;  %v7489_v39 = vor.u32 %v10274_v27, %v7486_v28  ;;  %v10201_v62 = vld [vmem:[#allocation7 + $0xb4] sm:$0xf0]  ;;  %v7316_v1 = vld [vmem:[#allocation7 + $0x1a8] sm:$0xf] }
  0x57   :  { %v10233_v2 = vld [vmem:[#allocation7 + $0x1b4] sm:$0xf0]  ;;  %v7572_v3 = vld [vmem:[#allocation7 + $0x3a8] sm:$0xf]  ;;  %v7189_v7 = vor.u32 %v10201_v62, %v7188_v61 }
  0x58   :  { %1031 = vmatpush.bf16.msrb.mxu1 %v7249_v13  ;;  %v10297_v4 = vld [vmem:[#allocation7 + $0x3b4] sm:$0xf0]  ;;  %v7428_v5 = vld [vmem:[#allocation7 + $0x288] sm:$0xf]  ;;  %v7317_v8 = vor.u32 %v10233_v2, %v7316_v1 }
  0x59   :  { %1050 = vmatpush.bf16.msrb.mxu2 %v7377_v9  ;;  %v10261_v6 = vld [vmem:[#allocation7 + $0x294] sm:$0xf0]  ;;  %v7172_v9 = vld [vmem:[#allocation7 + $0x88] sm:$0xf]  ;;  %v7573_v11 = vor.u32 %v10297_v4, %v7572_v3 }
  0x5a   :  { %1012 = vmatpush.bf16.msrb.mxu0 %v7121_v20  ;;  %1069 = vmatpush.bf16.msrb.mxu3 %v7505_v24  ;;  %v10197_v10 = vld [vmem:[#allocation7 + $0x94] sm:$0xf0]  ;;  %v7429_v12 = vor.u32 %v10261_v6, %v7428_v5  ;;  %v7300_v13 = vld [vmem:[#allocation7 + $0x188] sm:$0xf] }
  0x5b   :  { %v10229_v14 = vld [vmem:[#allocation7 + $0x194] sm:$0xf0]  ;;  %v7556_v15 = vld [vmem:[#allocation7 + $0x388] sm:$0xf]  ;;  %v7173_v19 = vor.u32 %v10197_v10, %v7172_v9 }
  0x5c   :  { %1032 = vmatpush.bf16.msrb.mxu1 %v7233_v29  ;;  %v10293_v16 = vld [vmem:[#allocation7 + $0x394] sm:$0xf0]  ;;  %v7412_v17 = vld [vmem:[#allocation7 + $0x268] sm:$0xf]  ;;  %v7301_v20 = vor.u32 %v10229_v14, %v7300_v13  ;;  %v7222_v13 = vld [vmem:[#allocation7 + $0xf8] sm:$0xf0] }
  0x5d   :  { %1051 = vmatpush.bf16.msrb.mxu2 %v7361_v25  ;;  %v10257_v18 = vld [vmem:[#allocation7 + $0x274] sm:$0xf0]  ;;  %v7156_v21 = vld [vmem:[#allocation7 + $0x68] sm:$0xf]  ;;  %v7557_v23 = vor.u32 %v10293_v16, %v7556_v15  ;;  %v10239_v14 = vld [vmem:[#allocation7 + $0x1ec] sm:$0xf] }
  0x5e   :  { %1013 = vmatpush.bf16.msrb.mxu0 %v7105_v38  ;;  %1070 = vmatpush.bf16.msrb.mxu3 %v7489_v39  ;;  %v10193_v22 = vld [vmem:[#allocation7 + $0x74] sm:$0xf0]  ;;  %v7413_v24 = vor.u32 %v10257_v18, %v7412_v17  ;;  %v7284_v25 = vld [vmem:[#allocation7 + $0x168] sm:$0xf]  ;;  %v7350_v15 = vld [vmem:[#allocation7 + $0x1f8] sm:$0xf0] }
  0x5f   :  { %1033 = vmatmul.bf16.vlgmr.msrb.gmra.mxu1 %v11204_v53  ;;  %v10225_v26 = vld [vmem:[#allocation7 + $0x174] sm:$0xf0]  ;;  %v7540_v27 = vld [vmem:[#allocation7 + $0x368] sm:$0xf]  ;;  %v7157_v31 = vor.u32 %v10193_v22, %v7156_v21  ;;  %v10303_v16 = vld [vmem:[#allocation7 + $0x3ec] sm:$0xf] }
  0x60   :  { %1101 = vmatpush.bf16.msra.mxu1 %v7349_v34  ;;  %1052 = vmatmul.bf16.vlgmr.msrb.gmra.mxu2 %v11206_v54  ;;  %v10289_v28 = vld [vmem:[#allocation7 + $0x374] sm:$0xf0]  ;;  %v7396_v29 = vld [vmem:[#allocation7 + $0x248] sm:$0xf]  ;;  %v7285_v32 = vor.u32 %v10225_v26, %v7284_v25  ;;  %v7606_v17 = vld [vmem:[#allocation7 + $0x3f8] sm:$0xf0] }
  0x61   :  { %1120 = vmatpush.bf16.msra.mxu2 %v7477_v30  ;;  %1014 = vmatmul.bf16.vlgmr.msrb.gmra.mxu0 %v11202_v48  ;;  %v10253_v30 = vld [vmem:[#allocation7 + $0x254] sm:$0xf0]  ;;  %v7140_v33 = vld [vmem:[#allocation7 + $0x48] sm:$0xf]  ;;  %v7541_v35 = vor.u32 %v10289_v28, %v7540_v27  ;;  %v7462_v21 = vld [vmem:[#allocation7 + $0x2d8] sm:$0xf0]  ;;  %v7609_v25 = vor.u32 %v10303_v16, %v7606_v17 }
  0x62   :  { %1082 = vmatpush.bf16.msra.mxu0 %v7221_v40  ;;  %1139 = vmatpush.bf16.msra.mxu3 %v7605_v43  ;;  %v10189_v34 = vld [vmem:[#allocation7 + $0x54] sm:$0xf0]  ;;  %v7397_v36 = vor.u32 %v10253_v30, %v7396_v29  ;;  %v7268_v37 = vld [vmem:[#allocation7 + $0x148] sm:$0xf]  ;;  %v10203_v26 = vld [vmem:[#allocation7 + $0xcc] sm:$0xf] }
  0x63   :  { %1071 = vmatmul.bf16.vlgmr.msrb.gmra.mxu3 %v11208_v57  ;;  %v10221_v38 = vld [vmem:[#allocation7 + $0x154] sm:$0xf0]  ;;  %v7524_v39 = vld [vmem:[#allocation7 + $0x348] sm:$0xf]  ;;  %v7141_v43 = vor.u32 %v10189_v34, %v7140_v33  ;;  %v7206_v27 = vld [vmem:[#allocation7 + $0xd8] sm:$0xf0] }
  0x64   :  { %1102 = vmatpush.bf16.msra.mxu1 %v7333_v60  ;;  %v10285_v40 = vld [vmem:[#allocation7 + $0x354] sm:$0xf0]  ;;  %v7380_v41 = vld [vmem:[#allocation7 + $0x228] sm:$0xf]  ;;  %v10235_v29 = vld [vmem:[#allocation7 + $0x1cc] sm:$0xf] }
  0x65   :  { %1121 = vmatpush.bf16.msra.mxu2 %v7461_v45  ;;  %v10249_v42 = vld [vmem:[#allocation7 + $0x234] sm:$0xf0]  ;;  %v7269_v45 = vor.u32 %v10221_v38, %v7268_v37  ;;  %v7124_v46 = vld [vmem:[#allocation7 + $0x28] sm:$0xf]  ;;  %v7525_v49 = vor.u32 %v10285_v40, %v7524_v39  ;;  %v7334_v30 = vld [vmem:[#allocation7 + $0x1d8] sm:$0xf0] }
  0x66   :  { %1083 = vmatpush.bf16.msra.mxu0 %v7205_v59  ;;  %1140 = vmatpush.bf16.msra.mxu3 %v7589_v63  ;;  %v10185_v47 = vld [vmem:[#allocation7 + $0x34] sm:$0xf0]  ;;  %v7381_v52 = vor.u32 %v10249_v42, %v7380_v41  ;;  %v7252_v55 = vld [vmem:[#allocation7 + $0x128] sm:$0xf]  ;;  %v10271_v63 = vld [vmem:[#allocation7 + $0x2ec] sm:$0xf]  ;;  %v7337_v38 = vor.u32 %v10235_v29, %v7334_v30 }
  0x67   :  { %v10217_v58 = vld [vmem:[#allocation7 + $0x134] sm:$0xf0]  ;;  %v7508_v59 = vld [vmem:[#allocation7 + $0x328] sm:$0xf]  ;;  %v7125_v1 = vor.u32 %v10185_v47, %v7124_v46  ;;  %v7590_v33 = vld [vmem:[#allocation7 + $0x3d8] sm:$0xf0] }
  0x68   :  { %1103 = vmatpush.bf16.msra.mxu1 %v7317_v8  ;;  %v10281_v60 = vld [vmem:[#allocation7 + $0x334] sm:$0xf0]  ;;  %v7364_v61 = vld [vmem:[#allocation7 + $0x208] sm:$0xf]  ;;  %v7253_v2 = vor.u32 %v10217_v58, %v7252_v55  ;;  %v10263_v34 = vld [vmem:[#allocation7 + $0x2ac] sm:$0xf] }
  0x69   :  { %1122 = vmatpush.bf16.msra.mxu2 %v7445_v0  ;;  %v10245_v62 = vld [vmem:[#allocation7 + $0x214] sm:$0xf0]  ;;  %v7478_v0 = vld [vmem:[#allocation7 + $0x2f8] sm:$0xf0]  ;;  %v7108_v3 = vld [vmem:[#allocation7 + $0x8] sm:$0xf]  ;;  %v7509_v6 = vor.u32 %v10281_v60, %v7508_v59 }
  0x6a   :  { %1084 = vmatpush.bf16.msra.mxu0 %v7189_v7  ;;  %1141 = vmatpush.bf16.msra.mxu3 %v7573_v11  ;;  %v10181_v4 = vld [vmem:[#allocation7 + $0x14] sm:$0xf0]  ;;  %v7236_v5 = vld [vmem:[#allocation7 + $0x108] sm:$0xf]  ;;  %v7365_v7 = vor.u32 %v10245_v62, %v7364_v61  ;;  %v7481_v11 = vor.u32 %v10271_v63, %v7478_v0  ;;  %v7190_v37 = vld [vmem:[#allocation7 + $0xb8] sm:$0xf0] }
  0x6b   :  { %v10213_v8 = vld [vmem:[#allocation7 + $0x114] sm:$0xf0]  ;;  %v7492_v9 = vld [vmem:[#allocation7 + $0x308] sm:$0xf]  ;;  %v7109_v18 = vor.u32 %v10181_v4, %v7108_v3  ;;  %v10231_v40 = vld [vmem:[#allocation7 + $0x1ac] sm:$0xf] }
  0x6c   :  { %1104 = vmatpush.bf16.msra.mxu1 %v7301_v20  ;;  %v10277_v10 = vld [vmem:[#allocation7 + $0x314] sm:$0xf0]  ;;  %v10267_v20 = vld [vmem:[#allocation7 + $0x2cc] sm:$0xf]  ;;  %v7318_v41 = vld [vmem:[#allocation7 + $0x1b8] sm:$0xf0] }
  0x6d   :  { %1123 = vmatpush.bf16.msra.mxu2 %v7429_v12  ;;  %v10207_v12 = vld [vmem:[#allocation7 + $0xec] sm:$0xf]  ;;  %v7493_v22 = vor.u32 %v10277_v10, %v7492_v9  ;;  %v7465_v28 = vor.u32 %v10267_v20, %v7462_v21  ;;  %v7574_v46 = vld [vmem:[#allocation7 + $0x3b8] sm:$0xf0]  ;;  %v7321_v58 = vor.u32 %v10231_v40, %v7318_v41 }
  0x6e   :  { %1085 = vmatpush.bf16.msra.mxu0 %v7173_v19  ;;  %1142 = vmatpush.bf16.msra.mxu3 %v7557_v23  ;;  %v7237_v19 = vor.u32 %v10213_v8, %v7236_v5  ;;  %v7225_v23 = vor.u32 %v10207_v12, %v7222_v13  ;;  %v10259_v47 = vld [vmem:[#allocation7 + $0x28c] sm:$0xf]  ;;  %v7174_v55 = vld [vmem:[#allocation7 + $0x98] sm:$0xf0] }
  0x6f   :  { %1038 = vmatmul.bf16.gmra.mxu1 %v11216_v50  ;;  %v10227_v60 = vld [vmem:[#allocation7 + $0x18c] sm:$0xf]  ;;  %v7302_v61 = vld [vmem:[#allocation7 + $0x198] sm:$0xf0] }
  0x70   :  { %1105 = vmatpush.bf16.msra.mxu1 %v7285_v32  ;;  %1057 = vmatmul.bf16.gmra.mxu2 %v11218_v51  ;;  %v10299_v32 = vld [vmem:[#allocation7 + $0x3cc] sm:$0xf]  ;;  %v7414_v3 = vld [vmem:[#allocation7 + $0x278] sm:$0xf0] }
  0x71   :  { %1124 = vmatpush.bf16.msra.mxu2 %v7413_v24  ;;  %1019 = vmatmul.bf16.gmra.mxu0 %v11214_v44  ;;  %v7353_v24 = vor.u32 %v10239_v14, %v7350_v15  ;;  %v7593_v39 = vor.u32 %v10299_v32, %v7590_v33  ;;  %v10291_v0 = vld [vmem:[#allocation7 + $0x38c] sm:$0xf]  ;;  %v7158_v5 = vld [vmem:[#allocation7 + $0x78] sm:$0xf0] }
  0x72   :  { %1086 = vmatpush.bf16.msra.mxu0 %v7157_v31  ;;  %1143 = vmatpush.bf16.msra.mxu3 %v7541_v35  ;;  %v7209_v31 = vor.u32 %v10203_v26, %v7206_v27  ;;  %v7446_v35 = vld [vmem:[#allocation7 + $0x2b8] sm:$0xf0]  ;;  %v10191_v4 = vld [vmem:[#allocation7 + $0x6c] sm:$0xf] }
  0x73   :  { %1076 = vmatmul.bf16.gmra.mxu3 %v11220_v56  ;;  %v7449_v42 = vor.u32 %v10263_v34, %v7446_v35  ;;  %v10223_v8 = vld [vmem:[#allocation7 + $0x16c] sm:$0xf]  ;;  %v7286_v9 = vld [vmem:[#allocation7 + $0x178] sm:$0xf0] }
  0x74   :  { %1106 = vmatpush.bf16.msra.mxu1 %v7269_v45  ;;  %v10295_v45 = vld [vmem:[#allocation7 + $0x3ac] sm:$0xf]  ;;  %v7542_v13 = vld [vmem:[#allocation7 + $0x378] sm:$0xf0] }
  0x75   :  { %1125 = vmatpush.bf16.msra.mxu2 %v7397_v36  ;;  %v10199_v36 = vld [vmem:[#allocation7 + $0xac] sm:$0xf]  ;;  %v7577_v59 = vor.u32 %v10295_v45, %v7574_v46  ;;  %v7398_v15 = vld [vmem:[#allocation7 + $0x258] sm:$0xf0]  ;;  %v7724_v45 = vld [vmem:[#allocation7 + $0x4e0] sm:$0xf] }
  0x76   :  { %1087 = vmatpush.bf16.msra.mxu0 %v7141_v43  ;;  %1144 = vmatpush.bf16.msra.mxu3 %v7525_v49  ;;  %v7193_v43 = vor.u32 %v10199_v36, %v7190_v37  ;;  %v7430_v49 = vld [vmem:[#allocation7 + $0x298] sm:$0xf0]  ;;  %v10287_v12 = vld [vmem:[#allocation7 + $0x36c] sm:$0xf]  ;;  %v10336_v46 = vld [vmem:[#allocation7 + $0x4ec] sm:$0xf0] }
  0x77   :  { %v7433_v62 = vor.u32 %v10259_v47, %v7430_v49  ;;  %v10251_v14 = vld [vmem:[#allocation7 + $0x24c] sm:$0xf]  ;;  %v7142_v17 = vld [vmem:[#allocation7 + $0x58] sm:$0xf0] }
  0x78   :  { %1107 = vmatpush.bf16.msra.mxu1 %v7253_v2  ;;  %v10255_v2 = vld [vmem:[#allocation7 + $0x26c] sm:$0xf]  ;;  %v7270_v21 = vld [vmem:[#allocation7 + $0x158] sm:$0xf0] }
  0x79   :  { %1126 = vmatpush.bf16.msra.mxu2 %v7381_v52  ;;  %v10195_v52 = vld [vmem:[#allocation7 + $0x8c] sm:$0xf]  ;;  %v7417_v10 = vor.u32 %v10255_v2, %v7414_v3  ;;  %v7382_v27 = vld [vmem:[#allocation7 + $0x238] sm:$0xf0]  ;;  %v8108_v2 = vld [vmem:[#allocation7 + $0x7e0] sm:$0xf] }
  0x7a   :  { %1088 = vmatpush.bf16.msra.mxu0 %v7125_v1  ;;  %1145 = vmatpush.bf16.msra.mxu3 %v7509_v6  ;;  %v7177_v63 = vor.u32 %v10195_v52, %v7174_v55  ;;  %v7558_v1 = vld [vmem:[#allocation7 + $0x398] sm:$0xf0]  ;;  %v7305_v6 = vor.u32 %v10227_v60, %v7302_v61  ;;  %v10187_v16 = vld [vmem:[#allocation7 + $0x4c] sm:$0xf]  ;;  %v10432_v3 = vld [vmem:[#allocation7 + $0x7ec] sm:$0xf0] }
  0x7b   :  { %v10219_v20 = vld [vmem:[#allocation7 + $0x14c] sm:$0xf]  ;;  %v7126_v29 = vld [vmem:[#allocation7 + $0x38] sm:$0xf0] }
  0x7c   :  { %1108 = vmatpush.bf16.msra.mxu1 %v7237_v19  ;;  %v7545_v19 = vor.u32 %v10287_v12, %v7542_v13  ;;  %v10247_v26 = vld [vmem:[#allocation7 + $0x22c] sm:$0xf]  ;;  %v7273_v30 = vor.u32 %v10219_v20, %v7270_v21  ;;  %v7254_v33 = vld [vmem:[#allocation7 + $0x138] sm:$0xf0]  ;;  %v7836_v12 = vld [vmem:[#allocation7 + $0x5c0] sm:$0xf] }
  0x7d   :  { %1127 = vmatpush.bf16.msra.mxu2 %v7365_v7  ;;  %v7561_v7 = vor.u32 %v10291_v0, %v7558_v1  ;;  %v10215_v32 = vld [vmem:[#allocation7 + $0x12c] sm:$0xf]  ;;  %v7385_v35 = vor.u32 %v10247_v26, %v7382_v27  ;;  %v7510_v37 = vld [vmem:[#allocation7 + $0x338] sm:$0xf0]  ;;  %v7725_v1 = vor.u32 %v10336_v46, %v7724_v45  ;;  %v8076_v26 = vld [vmem:[#allocation7 + $0x7a0] sm:$0xf] }
  0x7e   :  { %1089 = vmatpush.bf16.msra.mxu0 %v7109_v18  ;;  %1146 = vmatpush.bf16.msra.mxu3 %v7493_v22  ;;  %v7289_v18 = vor.u32 %v10223_v8, %v7286_v9  ;;  %v7401_v22 = vor.u32 %v10251_v14, %v7398_v15  ;;  %v10279_v34 = vld [vmem:[#allocation7 + $0x32c] sm:$0xf]  ;;  %v7110_v41 = vld [vmem:[#allocation7 + $0x18] sm:$0xf0]  ;;  %v7257_v47 = vor.u32 %v10215_v32, %v7254_v33  ;;  %v10364_v15 = vld [vmem:[#allocation7 + $0x5cc] sm:$0xf0] }
  0x7f   :  { %1109 = vmatmul.bf16.vlgmr.msra.gmra.mxu1 %v11204_v53  ;;  %v10179_v40 = vld [vmem:[#allocation7 + $0xc] sm:$0xf]  ;;  %v7513_v49 = vor.u32 %v10279_v34, %v7510_v37  ;;  %v7238_v55 = vld [vmem:[#allocation7 + $0x118] sm:$0xf0]  ;;  %v7837_v20 = vor.u32 %v10364_v15, %v7836_v12  ;;  %v10424_v27 = vld [vmem:[#allocation7 + $0x7ac] sm:$0xf0] }
  0x80   :  { %1177 = vmatpush.bf16.msrb.mxu1 %v7353_v24  ;;  %1128 = vmatmul.bf16.vlgmr.msra.gmra.mxu2 %v11206_v54  ;;  %v10283_v24 = vld [vmem:[#allocation7 + $0x34c] sm:$0xf]  ;;  %v7113_v60 = vor.u32 %v10179_v40, %v7110_v41  ;;  %v7494_v61 = vld [vmem:[#allocation7 + $0x318] sm:$0xf0]  ;;  %v8077_v33 = vor.u32 %v10424_v27, %v8076_v26  ;;  %v7676_v34 = vld [vmem:[#allocation7 + $0x480] sm:$0xf] }
  0x81   :  { %1196 = vmatpush.bf16.msrb.mxu2 %v7481_v11  ;;  %1090 = vmatmul.bf16.vlgmr.msra.gmra.mxu0 %v11202_v48  ;;  %v7161_v11 = vor.u32 %v10191_v4, %v7158_v5  ;;  %v10211_v52 = vld [vmem:[#allocation7 + $0x10c] sm:$0xf]  ;;  %v7964_v4 = vld [vmem:[#allocation7 + $0x6c0] sm:$0xf]  ;;  %v10396_v5 = vld [vmem:[#allocation7 + $0x6cc] sm:$0xf0] }
  0x82   :  { %1158 = vmatpush.bf16.msrb.mxu0 %v7225_v23  ;;  %1215 = vmatpush.bf16.msrb.mxu3 %v7609_v25  ;;  %v7145_v23 = vor.u32 %v10187_v16, %v7142_v17  ;;  %v7526_v25 = vld [vmem:[#allocation7 + $0x358] sm:$0xf0]  ;;  %v7241_v8 = vor.u32 %v10211_v52, %v7238_v55  ;;  %v7965_v13 = vor.u32 %v10396_v5, %v7964_v4  ;;  %v8092_v16 = vld [vmem:[#allocation7 + $0x7c0] sm:$0xf]  ;;  %v10428_v17 = vld [vmem:[#allocation7 + $0x7cc] sm:$0xf0] }
  0x83   :  { %1147 = vmatmul.bf16.vlgmr.msra.gmra.mxu3 %v11208_v57  ;;  %v8093_v21 = vor.u32 %v10428_v17, %v8092_v16  ;;  %v10356_v37 = vld [vmem:[#allocation7 + $0x58c] sm:$0xf0]  ;;  %v7788_v52 = vld [vmem:[#allocation7 + $0x560] sm:$0xf] }
  0x84   :  { %1178 = vmatpush.bf16.msrb.mxu1 %v7337_v38  ;;  %v10243_v38 = vld [vmem:[#allocation7 + $0x20c] sm:$0xf]  ;;  %v10352_v55 = vld [vmem:[#allocation7 + $0x56c] sm:$0xf0]  ;;  %v7772_v4 = vld [vmem:[#allocation7 + $0x540] sm:$0xf] }
  0x85   :  { %1197 = vmatpush.bf16.msrb.mxu2 %v7465_v28  ;;  %v10183_v28 = vld [vmem:[#allocation7 + $0x2c] sm:$0xf]  ;;  %v10348_v5 = vld [vmem:[#allocation7 + $0x54c] sm:$0xf0]  ;;  %v7756_v16 = vld [vmem:[#allocation7 + $0x520] sm:$0xf] }
  0x86   :  { %1159 = vmatpush.bf16.msrb.mxu0 %v7209_v31  ;;  %1216 = vmatpush.bf16.msrb.mxu3 %v7593_v39  ;;  %v7529_v31 = vor.u32 %v10283_v24, %v7526_v25  ;;  %v7129_v36 = vor.u32 %v10183_v28, %v7126_v29  ;;  %v7366_v39 = vld [vmem:[#allocation7 + $0x218] sm:$0xf0]  ;;  %v7820_v24 = vld [vmem:[#allocation7 + $0x5a0] sm:$0xf]  ;;  %v10360_v25 = vld [vmem:[#allocation7 + $0x5ac] sm:$0xf0]  ;;  %v7773_v12 = vor.u32 %v10348_v5, %v7772_v4 }
  0x87   :  { %v7821_v32 = vor.u32 %v10360_v25, %v7820_v24  ;;  %v10312_v15 = vld [vmem:[#allocation7 + $0x42c] sm:$0xf0]  ;;  %v7612_v24 = vld [vmem:[#allocation7 + $0x400] sm:$0xf]  ;;  %v10390_v4 = vld [vmem:[#allocation7 + $0x6a4] sm:$0xf] }
  0x88   :  { %1179 = vmatpush.bf16.msrb.mxu1 %v7321_v58  ;;  %v10275_v58 = vld [vmem:[#allocation7 + $0x30c] sm:$0xf]  ;;  %v10344_v17 = vld [vmem:[#allocation7 + $0x52c] sm:$0xf0]  ;;  %v7950_v5 = vld [vmem:[#allocation7 + $0x6b0] sm:$0xf0] }
  0x89   :  { %1198 = vmatpush.bf16.msrb.mxu2 %v7449_v42  ;;  %v7980_v42 = vld [vmem:[#allocation7 + $0x6e0] sm:$0xf]  ;;  %v7497_v9 = vor.u32 %v10275_v58, %v7494_v61  ;;  %v10308_v25 = vld [vmem:[#allocation7 + $0x40c] sm:$0xf0]  ;;  %v7757_v26 = vor.u32 %v10344_v17, %v7756_v16  ;;  %v10386_v17 = vld [vmem:[#allocation7 + $0x684] sm:$0xf] }
  0x8a   :  { %1160 = vmatpush.bf16.msrb.mxu0 %v7193_v43  ;;  %1217 = vmatpush.bf16.msrb.mxu3 %v7577_v59  ;;  %v10400_v43 = vld [vmem:[#allocation7 + $0x6ec] sm:$0xf0]  ;;  %v7369_v59 = vor.u32 %v10243_v38, %v7366_v39  ;;  %v8060_v38 = vld [vmem:[#allocation7 + $0x780] sm:$0xf] }
  0x8b   :  { %v7981_v0 = vor.u32 %v10400_v43, %v7980_v42  ;;  %v10420_v39 = vld [vmem:[#allocation7 + $0x78c] sm:$0xf0]  ;;  %v7916_v42 = vld [vmem:[#allocation7 + $0x660] sm:$0xf] }
  0x8c   :  { %1180 = vmatpush.bf16.msrb.mxu1 %v7305_v6  ;;  %v7708_v6 = vld [vmem:[#allocation7 + $0x4c0] sm:$0xf]  ;;  %v10384_v43 = vld [vmem:[#allocation7 + $0x66c] sm:$0xf0]  ;;  %v8061_v46 = vor.u32 %v10420_v39, %v8060_v38  ;;  %v7613_v38 = vor.u32 %v10308_v25, %v7612_v24  ;;  %v7854_v39 = vld [vmem:[#allocation7 + $0x5f0] sm:$0xf0] }
  0x8d   :  { %1199 = vmatpush.bf16.msrb.mxu2 %v7433_v62  ;;  %v7852_v62 = vld [vmem:[#allocation7 + $0x5e0] sm:$0xf]  ;;  %v7806_v24 = vld [vmem:[#allocation7 + $0x590] sm:$0xf0]  ;;  %v10418_v25 = vld [vmem:[#allocation7 + $0x784] sm:$0xf] }
  0x8e   :  { %1161 = vmatpush.bf16.msrb.mxu0 %v7177_v63  ;;  %1218 = vmatpush.bf16.msrb.mxu3 %v7561_v7  ;;  %v10368_v63 = vld [vmem:[#allocation7 + $0x5ec] sm:$0xf0]  ;;  %v8044_v58 = vld [vmem:[#allocation7 + $0x760] sm:$0xf] }
  0x8f   :  { %1114 = vmatmul.bf16.gmra.mxu1 %v11216_v50  ;;  %v10332_v7 = vld [vmem:[#allocation7 + $0x4cc] sm:$0xf0] }
  0x90   :  { %1181 = vmatpush.bf16.msrb.mxu1 %v7289_v18  ;;  %1133 = vmatmul.bf16.gmra.mxu2 %v11218_v51  ;;  %v7709_v14 = vor.u32 %v10332_v7, %v7708_v6  ;;  %v7948_v18 = vld [vmem:[#allocation7 + $0x6a0] sm:$0xf]  ;;  %v10412_v7 = vld [vmem:[#allocation7 + $0x74c] sm:$0xf0] }
  0x91   :  { %1200 = vmatpush.bf16.msrb.mxu2 %v7417_v10  ;;  %1095 = vmatmul.bf16.gmra.mxu0 %v11214_v44  ;;  %v7853_v10 = vor.u32 %v10368_v63, %v7852_v62  ;;  %v7900_v62 = vld [vmem:[#allocation7 + $0x640] sm:$0xf]  ;;  %v10380_v63 = vld [vmem:[#allocation7 + $0x64c] sm:$0xf0] }
  0x92   :  { %1162 = vmatpush.bf16.msrb.mxu0 %v7161_v11  ;;  %1219 = vmatpush.bf16.msrb.mxu3 %v7545_v19  ;;  %v8109_v11 = vor.u32 %v10432_v3, %v8108_v2  ;;  %v10392_v19 = vld [vmem:[#allocation7 + $0x6ac] sm:$0xf0]  ;;  %v7644_v2 = vld [vmem:[#allocation7 + $0x440] sm:$0xf] }
  0x93   :  { %1152 = vmatmul.bf16.gmra.mxu3 %v11220_v56  ;;  %v7949_v28 = vor.u32 %v10392_v19, %v7948_v18  ;;  %v10316_v3 = vld [vmem:[#allocation7 + $0x44c] sm:$0xf0]  ;;  %v8028_v6 = vld [vmem:[#allocation7 + $0x740] sm:$0xf] }
  0x94   :  { %1182 = vmatpush.bf16.msrb.mxu1 %v7273_v30  ;;  %v7932_v30 = vld [vmem:[#allocation7 + $0x680] sm:$0xf]  ;;  %v10408_v19 = vld [vmem:[#allocation7 + $0x72c] sm:$0xf0] }
  0x95   :  { %1201 = vmatpush.bf16.msrb.mxu2 %v7401_v22  ;;  %v7692_v22 = vld [vmem:[#allocation7 + $0x4a0] sm:$0xf] }
  0x96   :  { %1163 = vmatpush.bf16.msrb.mxu0 %v7145_v23  ;;  %1220 = vmatpush.bf16.msrb.mxu3 %v7529_v31  ;;  %v10328_v23 = vld [vmem:[#allocation7 + $0x4ac] sm:$0xf0]  ;;  %v8012_v18 = vld [vmem:[#allocation7 + $0x720] sm:$0xf] }
  0x97   :  { %v7693_v29 = vor.u32 %v10328_v23, %v7692_v22  ;;  %v10388_v31 = vld [vmem:[#allocation7 + $0x68c] sm:$0xf0]  ;;  %v8013_v27 = vor.u32 %v10408_v19, %v8012_v18  ;;  %v7934_v18 = vld [vmem:[#allocation7 + $0x690] sm:$0xf0] }
  0x98   :  { %1183 = vmatpush.bf16.msrb.mxu1 %v7257_v47  ;;  %v7933_v40 = vor.u32 %v10388_v31, %v7932_v30  ;;  %v7660_v47 = vld [vmem:[#allocation7 + $0x460] sm:$0xf]  ;;  %v10372_v23 = vld [vmem:[#allocation7 + $0x60c] sm:$0xf0] }
  0x99   :  { %1202 = vmatpush.bf16.msrb.mxu2 %v7385_v35  ;;  %v10324_v35 = vld [vmem:[#allocation7 + $0x48c] sm:$0xf0]  ;;  %v7996_v30 = vld [vmem:[#allocation7 + $0x700] sm:$0xf] }
  0x9a   :  { %1164 = vmatpush.bf16.msrb.mxu0 %v7129_v36  ;;  %1221 = vmatpush.bf16.msrb.mxu3 %v7513_v49  ;;  %v7804_v36 = vld [vmem:[#allocation7 + $0x580] sm:$0xf]  ;;  %v7677_v41 = vor.u32 %v10324_v35, %v7676_v34  ;;  %v10320_v49 = vld [vmem:[#allocation7 + $0x46c] sm:$0xf0]  ;;  %v10334_v34 = vld [vmem:[#allocation7 + $0x4e4] sm:$0xf] }
  0x9b   :  { %v7805_v45 = vor.u32 %v10356_v37, %v7804_v36  ;;  %v7661_v61 = vor.u32 %v10320_v49, %v7660_v47  ;;  %v10404_v31 = vld [vmem:[#allocation7 + $0x70c] sm:$0xf0]  ;;  %v7726_v35 = vld [vmem:[#allocation7 + $0x4f0] sm:$0xf0]  ;;  %v10366_v36 = vld [vmem:[#allocation7 + $0x5e4] sm:$0xf] }
  0x9c   :  { %1184 = vmatpush.bf16.msrb.mxu1 %v7241_v8  ;;  %v7901_v8 = vor.u32 %v10380_v63, %v7900_v62  ;;  %v10394_v47 = vld [vmem:[#allocation7 + $0x6c4] sm:$0xf]  ;;  %v7966_v49 = vld [vmem:[#allocation7 + $0x6d0] sm:$0xf0] }
  0x9d   :  { %1203 = vmatpush.bf16.msrb.mxu2 %v7369_v59  ;;  %v10416_v59 = vld [vmem:[#allocation7 + $0x76c] sm:$0xf0]  ;;  %v10426_v62 = vld [vmem:[#allocation7 + $0x7c4] sm:$0xf]  ;;  %v8094_v63 = vld [vmem:[#allocation7 + $0x7d0] sm:$0xf0] }
  0x9e   :  { %1165 = vmatpush.bf16.msrb.mxu0 %v7113_v60  ;;  %1222 = vmatpush.bf16.msrb.mxu3 %v7497_v9  ;;  %v7917_v60 = vor.u32 %v10384_v43, %v7916_v42  ;;  %v7645_v9 = vor.u32 %v10316_v3, %v7644_v2  ;;  %v7997_v43 = vor.u32 %v10404_v31, %v7996_v30  ;;  %v7918_v30 = vld [vmem:[#allocation7 + $0x670] sm:$0xf0] }
  0x9f   :  { %1185 = vmatmul.bf16.vlgmr.msrb.gmra.mxu1 %v11204_v53  ;;  %v8097_v3 = vor.u32 %v10426_v62, %v8094_v63  ;;  %v10346_v62 = vld [vmem:[#allocation7 + $0x544] sm:$0xf]  ;;  %v7774_v63 = vld [vmem:[#allocation7 + $0x550] sm:$0xf0] }
  0xa0   :  { %2113 = vmatpush.bf16.msra.mxu1 %v7853_v10  ;;  %1204 = vmatmul.bf16.vlgmr.msrb.gmra.mxu2 %v11206_v54  ;;  %v7884_v10 = vld [vmem:[#allocation7 + $0x620] sm:$0xf] }
  0xa1   :  { %2132 = vmatpush.bf16.msra.mxu2 %v7981_v0  ;;  %1166 = vmatmul.bf16.vlgmr.msrb.gmra.mxu0 %v11202_v48  ;;  %v7789_v0 = vor.u32 %v10352_v55, %v7788_v52  ;;  %v7857_v52 = vor.u32 %v10366_v36, %v7854_v39  ;;  %v10350_v36 = vld [vmem:[#allocation7 + $0x564] sm:$0xf] }
  0xa2   :  { %2094 = vmatpush.bf16.msra.mxu0 %v7725_v1  ;;  %2151 = vmatpush.bf16.msra.mxu3 %v8109_v11  ;;  %v8045_v1 = vor.u32 %v10416_v59, %v8044_v58  ;;  %v10376_v11 = vld [vmem:[#allocation7 + $0x62c] sm:$0xf0]  ;;  %v10330_v58 = vld [vmem:[#allocation7 + $0x4c4] sm:$0xf]  ;;  %v7710_v59 = vld [vmem:[#allocation7 + $0x4d0] sm:$0xf0] }
  0xa3   :  { %1223 = vmatmul.bf16.vlgmr.msrb.gmra.mxu3 %v11208_v57 }
  0xa4   :  { %2114 = vmatpush.bf16.msra.mxu1 %v7837_v20  ;;  %v7868_v20 = vld [vmem:[#allocation7 + $0x600] sm:$0xf] }
  0xa5   :  { %2133 = vmatpush.bf16.msra.mxu2 %v7965_v13  ;;  %v8029_v13 = vor.u32 %v10412_v7, %v8028_v6  ;;  %v7869_v37 = vor.u32 %v10372_v23, %v7868_v20  ;;  %v10326_v6 = vld [vmem:[#allocation7 + $0x4a4] sm:$0xf]  ;;  %v7694_v7 = vld [vmem:[#allocation7 + $0x4b0] sm:$0xf0] }
  0xa6   :  { %2095 = vmatpush.bf16.msra.mxu0 %v7709_v14  ;;  %2152 = vmatpush.bf16.msra.mxu3 %v8093_v21  ;;  %v7628_v14 = vld [vmem:[#allocation7 + $0x420] sm:$0xf]  ;;  %v7885_v21 = vor.u32 %v10376_v11, %v7884_v10  ;;  %v7822_v10 = vld [vmem:[#allocation7 + $0x5b0] sm:$0xf0]  ;;  %v10422_v11 = vld [vmem:[#allocation7 + $0x7a4] sm:$0xf]  ;;  %v7697_v16 = vor.u32 %v10326_v6, %v7694_v7  ;;  %v7777_v7 = vor.u32 %v10346_v62, %v7774_v63 }
  0xa7   :  { %v7629_v22 = vor.u32 %v10312_v15, %v7628_v14  ;;  %v7953_v15 = vor.u32 %v10390_v4, %v7950_v5  ;;  %v10354_v23 = vld [vmem:[#allocation7 + $0x584] sm:$0xf]  ;;  %v7886_v5 = vld [vmem:[#allocation7 + $0x630] sm:$0xf0]  ;;  %v7972_v63 = vld [vmem:[#allocation7 + $0x6c8] sm:$0xf] }
  0xa8   :  { %2115 = vmatpush.bf16.msra.mxu1 %v7821_v32  ;;  %v10398_v32 = vld [vmem:[#allocation7 + $0x6e4] sm:$0xf] }
  0xa9   :  { %2134 = vmatpush.bf16.msra.mxu2 %v7949_v28  ;;  %v7740_v28 = vld [vmem:[#allocation7 + $0x500] sm:$0xf]  ;;  %v10374_v4 = vld [vmem:[#allocation7 + $0x624] sm:$0xf] }
  0xaa   :  { %2096 = vmatpush.bf16.msra.mxu0 %v7693_v29  ;;  %2153 = vmatpush.bf16.msra.mxu3 %v8077_v33  ;;  %v10340_v29 = vld [vmem:[#allocation7 + $0x50c] sm:$0xf0]  ;;  %v7982_v33 = vld [vmem:[#allocation7 + $0x6f0] sm:$0xf0] }
  0xab   :  { %v7741_v42 = vor.u32 %v10340_v29, %v7740_v28  ;;  %v10382_v29 = vld [vmem:[#allocation7 + $0x664] sm:$0xf] }
  0xac   :  { %2116 = vmatpush.bf16.msra.mxu1 %v7805_v45  ;;  %v7985_v45 = vor.u32 %v10398_v32, %v7982_v33  ;;  %v7809_v32 = vor.u32 %v10354_v23, %v7806_v24 }
  0xad   :  { %2135 = vmatpush.bf16.msra.mxu2 %v7933_v40  ;;  %v10430_v40 = vld [vmem:[#allocation7 + $0x7e4] sm:$0xf] }
  0xae   :  { %2097 = vmatpush.bf16.msra.mxu0 %v7677_v41  ;;  %2154 = vmatpush.bf16.msra.mxu3 %v8061_v46  ;;  %v8110_v41 = vld [vmem:[#allocation7 + $0x7f0] sm:$0xf0]  ;;  %v7729_v46 = vor.u32 %v10334_v34, %v7726_v35  ;;  %v10318_v34 = vld [vmem:[#allocation7 + $0x464] sm:$0xf] }
  0xaf   :  { %1190 = vmatmul.bf16.gmra.mxu1 %v11216_v50  ;;  %v8113_v55 = vor.u32 %v10430_v40, %v8110_v41  ;;  %v7662_v35 = vld [vmem:[#allocation7 + $0x470] sm:$0xf0]  ;;  %v10414_v41 = vld [vmem:[#allocation7 + $0x764] sm:$0xf] }
  0xb0   :  { %2117 = vmatpush.bf16.msra.mxu1 %v7789_v0  ;;  %1209 = vmatmul.bf16.gmra.mxu2 %v11218_v51  ;;  %v7969_v0 = vor.u32 %v10394_v47, %v7966_v49  ;;  %v7790_v40 = vld [vmem:[#allocation7 + $0x570] sm:$0xf0]  ;;  %v7665_v49 = vor.u32 %v10318_v34, %v7662_v35  ;;  %v7988_v35 = vld [vmem:[#allocation7 + $0x6e8] sm:$0xf] }
  0xb1   :  { %2136 = vmatpush.bf16.msra.mxu2 %v7917_v60  ;;  %1171 = vmatmul.bf16.gmra.mxu0 %v11214_v44  ;;  %v10362_v60 = vld [vmem:[#allocation7 + $0x5c4] sm:$0xf] }
  0xb2   :  { %2098 = vmatpush.bf16.msra.mxu0 %v7661_v61  ;;  %2155 = vmatpush.bf16.msra.mxu3 %v8045_v1  ;;  %v7838_v61 = vld [vmem:[#allocation7 + $0x5d0] sm:$0xf0]  ;;  %v7713_v1 = vor.u32 %v10330_v58, %v7710_v59  ;;  %v7793_v58 = vor.u32 %v10350_v36, %v7790_v40  ;;  %v10401_v36 = vld [vmem:[#allocation7 + $0x6f4] sm:$0xf0] }
  0xb3   :  { %1228 = vmatmul.bf16.gmra.mxu3 %v11220_v56  ;;  %v7841_v2 = vor.u32 %v10362_v60, %v7838_v61  ;;  %v10314_v60 = vld [vmem:[#allocation7 + $0x444] sm:$0xf]  ;;  %v7646_v61 = vld [vmem:[#allocation7 + $0x450] sm:$0xf0] }
  0xb4   :  { %2118 = vmatpush.bf16.msra.mxu1 %v7773_v12  ;;  %v8078_v12 = vld [vmem:[#allocation7 + $0x7b0] sm:$0xf0] }
  0xb5   :  { %2137 = vmatpush.bf16.msra.mxu2 %v7901_v8  ;;  %v10358_v8 = vld [vmem:[#allocation7 + $0x5a4] sm:$0xf]  ;;  %v8081_v20 = vor.u32 %v10422_v11, %v8078_v12 }
  0xb6   :  { %2099 = vmatpush.bf16.msra.mxu0 %v7645_v9  ;;  %2156 = vmatpush.bf16.msra.mxu3 %v8029_v13  ;;  %v7825_v19 = vor.u32 %v10358_v8, %v7822_v10  ;;  %v7630_v10 = vld [vmem:[#allocation7 + $0x430] sm:$0xf0]  ;;  %v10342_v11 = vld [vmem:[#allocation7 + $0x524] sm:$0xf] }
  0xb8   :  { %2119 = vmatpush.bf16.msra.mxu1 %v7757_v26  ;;  %v8062_v26 = vld [vmem:[#allocation7 + $0x790] sm:$0xf0] }
  0xb9   :  { %2138 = vmatpush.bf16.msra.mxu2 %v7885_v21  ;;  %v10322_v21 = vld [vmem:[#allocation7 + $0x484] sm:$0xf]  ;;  %v8065_v33 = vor.u32 %v10418_v25, %v8062_v26  ;;  %v7614_v26 = vld [vmem:[#allocation7 + $0x410] sm:$0xf0] }
  0xba   :  { %2100 = vmatpush.bf16.msra.mxu0 %v7629_v22  ;;  %2157 = vmatpush.bf16.msra.mxu3 %v8013_v27  ;;  %v7678_v22 = vld [vmem:[#allocation7 + $0x490] sm:$0xf0]  ;;  %v7937_v27 = vor.u32 %v10386_v17, %v7934_v18  ;;  %v10306_v25 = vld [vmem:[#allocation7 + $0x404] sm:$0xf] }
  0xbb   :  { %v7681_v28 = vor.u32 %v10322_v21, %v7678_v22  ;;  %v8014_v17 = vld [vmem:[#allocation7 + $0x730] sm:$0xf0] }
  0xbc   :  { %2120 = vmatpush.bf16.msra.mxu1 %v7741_v42  ;;  %v939_v9 = vpop.f32.mrf.mxu0  ;;  %v958_v13 = vpop.f32.mrf.mxu1  ;;  %v8046_v42 = vld [vmem:[#allocation7 + $0x770] sm:$0xf0] }
  0xbd   :  { %2139 = vmatpush.bf16.msra.mxu2 %v7869_v37  ;;  %v959_v14 = vadd.f32 %v958_v13, %v939_v9  ;;  %v8049_v59 = vor.u32 %v10414_v41, %v8046_v42  ;;  %v10310_v9 = vld [vmem:[#allocation7 + $0x424] sm:$0xf]  ;;  %v7870_v21 = vld [vmem:[#allocation7 + $0x610] sm:$0xf0]  ;;  %v7617_v41 = vor.u32 %v10306_v25, %v7614_v26  ;;  %v10369_v42 = vld [vmem:[#allocation7 + $0x5f4] sm:$0xf0] }
  0xbe   :  { %2101 = vmatpush.bf16.msra.mxu0 %v7613_v38  ;;  %2158 = vmatpush.bf16.msra.mxu3 %v7997_v43  ;;  %v7633_v24 = vor.u32 %v10310_v9, %v7630_v10  ;;  %v10365_v9 = vld [vmem:[#allocation7 + $0x5d4] sm:$0xf0]  ;;  %v8100_v10 = vld [vmem:[#allocation7 + $0x7c8] sm:$0xf] }
  0xbf   :  { %2121 = vmatmul.bf16.vlgmr.msra.gmra.mxu1 %v11204_v53  ;;  %v8084_v25 = vld [vmem:[#allocation7 + $0x7a8] sm:$0xf]  ;;  %v10425_v26 = vld [vmem:[#allocation7 + $0x7b4] sm:$0xf0] }
  0xc0   :  { %2189 = vmatpush.bf16.msrb.mxu1 %v7857_v52  ;;  %2140 = vmatmul.bf16.vlgmr.msra.gmra.mxu2 %v11206_v54  ;;  %v10378_v52 = vld [vmem:[#allocation7 + $0x644] sm:$0xf] }
  0xc1   :  { %2208 = vmatpush.bf16.msrb.mxu2 %v7985_v45  ;;  %2102 = vmatmul.bf16.vlgmr.msra.gmra.mxu0 %v11202_v48  ;;  %v7921_v45 = vor.u32 %v10382_v29, %v7918_v30  ;;  %v7742_v30 = vld [vmem:[#allocation7 + $0x510] sm:$0xf0] }
  0xc2   :  { %2170 = vmatpush.bf16.msrb.mxu0 %v7729_v46  ;;  %2227 = vmatpush.bf16.msrb.mxu3 %v8113_v55  ;;  %v7902_v55 = vld [vmem:[#allocation7 + $0x650] sm:$0xf0] }
  0xc3   :  { %2159 = vmatmul.bf16.vlgmr.msra.gmra.mxu3 %v11208_v57  ;;  %v977_v31 = vpop.f32.mrf.mxu2 }
  0xc4   :  { %2190 = vmatpush.bf16.msrb.mxu1 %v7841_v2  ;;  %v978_v37 = vadd.f32 %v977_v31, %v959_v14  ;;  %v996_v38 = vpop.f32.mrf.mxu3  ;;  %v941_v39 = vpop.f32.mrf.mxu0  ;;  %v7905_v2 = vor.u32 %v10378_v52, %v7902_v55  ;;  %v10402_v31 = vld [vmem:[#allocation7 + $0x704] sm:$0xf] }
  0xc5   :  { %2209 = vmatpush.bf16.msrb.mxu2 %v7969_v0  ;;  %v960_v43 = vpop.f32.mrf.mxu1  ;;  %v10410_v0 = vld [vmem:[#allocation7 + $0x744] sm:$0xf] }
  0xc6   :  { %2171 = vmatpush.bf16.msrb.mxu0 %v7713_v1  ;;  %2228 = vmatpush.bf16.msrb.mxu3 %v8097_v3  ;;  %v11254_v46 = vadd.f32 %v996_v38, %v978_v37  ;;  %v961_v47 = vadd.f32 %v960_v43, %v941_v39  ;;  %v8030_v1 = vld [vmem:[#allocation7 + $0x750] sm:$0xf0]  ;;  %v7649_v3 = vor.u32 %v10314_v60, %v7646_v61  ;;  %v7732_v37 = vld [vmem:[#allocation7 + $0x4e8] sm:$0xf]  ;;  %v10337_v38 = vld [vmem:[#allocation7 + $0x4f4] sm:$0xf0] }
  0xc7   :  { %v8033_v8 = vor.u32 %v10410_v0, %v8030_v1  ;;  %v7860_v39 = vld [vmem:[#allocation7 + $0x5e8] sm:$0xf]  ;;  %v7989_v61 = vor.u32 %v10401_v36, %v7988_v35  ;;  %v7733_v62 = vor.u32 %v10337_v38, %v7732_v37  ;;  %v10397_v0 = vld [vmem:[#allocation7 + $0x6d4] sm:$0xf0]  ;;  %v8085_v38 = vor.u32 %v10425_v26, %v8084_v25 }
  0xc8   :  { %2191 = vmatpush.bf16.msrb.mxu1 %v7825_v19  ;;  %v7889_v19 = vor.u32 %v10374_v4, %v7886_v5  ;;  %v8116_v43 = vld [vmem:[#allocation7 + $0x7e8] sm:$0xf]  ;;  %v10333_v5 = vld [vmem:[#allocation7 + $0x4d4] sm:$0xf0] }
  0xc9   :  { %2210 = vmatpush.bf16.msrb.mxu2 %v7953_v15  ;;  %v7758_v15 = vld [vmem:[#allocation7 + $0x530] sm:$0xf0]  ;;  %v7716_v4 = vld [vmem:[#allocation7 + $0x4c8] sm:$0xf]  ;;  %v10389_v35 = vld [vmem:[#allocation7 + $0x694] sm:$0xf0] }
  0xca   :  { %2172 = vmatpush.bf16.msrb.mxu0 %v7697_v16  ;;  %2229 = vmatpush.bf16.msrb.mxu3 %v8081_v20  ;;  %v10406_v16 = vld [vmem:[#allocation7 + $0x724] sm:$0xf]  ;;  %v7684_v36 = vld [vmem:[#allocation7 + $0x488] sm:$0xf] }
  0xcb   :  { %v979_v6 = vpop.f32.mrf.mxu2  ;;  %v10370_v20 = vld [vmem:[#allocation7 + $0x604] sm:$0xf]  ;;  %v8017_v29 = vor.u32 %v10406_v16, %v8014_v17  ;;  %v7956_v16 = vld [vmem:[#allocation7 + $0x6a8] sm:$0xf]  ;;  %v10393_v17 = vld [vmem:[#allocation7 + $0x6b4] sm:$0xf0] }
  0xcc   :  { %2192 = vmatpush.bf16.msrb.mxu1 %v7809_v32  ;;  %v980_v12 = vadd.f32 %v979_v6, %v961_v47  ;;  %v998_v13 = vpop.f32.mrf.mxu3  ;;  %v944_v14 = vpop.f32.mrf.mxu0  ;;  %v7998_v32 = vld [vmem:[#allocation7 + $0x710] sm:$0xf0]  ;;  %v7873_v40 = vor.u32 %v10370_v20, %v7870_v21  ;;  %v7844_v6 = vld [vmem:[#allocation7 + $0x5c8] sm:$0xf]  ;;  %v10329_v20 = vld [vmem:[#allocation7 + $0x4b4] sm:$0xf0] }
  0xcd   :  { %2211 = vmatpush.bf16.msrb.mxu2 %v7937_v27  ;;  %v963_v18 = vpop.f32.mrf.mxu1  ;;  %v10338_v27 = vld [vmem:[#allocation7 + $0x504] sm:$0xf]  ;;  %v8001_v55 = vor.u32 %v10402_v31, %v7998_v32  ;;  %v7828_v21 = vld [vmem:[#allocation7 + $0x5a8] sm:$0xf]  ;;  %v7957_v31 = vor.u32 %v10393_v17, %v7956_v16 }
  0xce   :  { %2173 = vmatpush.bf16.msrb.mxu0 %v7681_v28  ;;  %2230 = vmatpush.bf16.msrb.mxu3 %v8065_v33  ;;  %v999_v22 = vadd.f32 %v998_v13, %v980_v12  ;;  %v964_v23 = vadd.f32 %v963_v18, %v944_v14  ;;  %v7761_v28 = vor.u32 %v10342_v11, %v7758_v15  ;;  %v1252_v33 = vrot.slane %v11254_v46, 7  ;;  %v10429_v11 = vld [vmem:[#allocation7 + $0x7d4] sm:$0xf0] }
  0xcf   :  { %2126 = vmatmul.bf16.gmra.mxu1 %v11216_v50  ;;  %v7745_v52 = vor.u32 %v10338_v27, %v7742_v30  ;;  %v7973_v12 = vor.u32 %v10397_v0, %v7972_v63  ;;  %v7717_v13 = vor.u32 %v10333_v5, %v7716_v4  ;;  %v7845_v14 = vor.u32 %v10365_v9, %v7844_v6  ;;  %v7668_v63 = vld [vmem:[#allocation7 + $0x468] sm:$0xf]  ;;  %v10321_v0 = vld [vmem:[#allocation7 + $0x474] sm:$0xf0] }
  0xd0   :  { %2193 = vmatpush.bf16.msrb.mxu1 %v7793_v58  ;;  %v1256_v34 = vrot.slane %v999_v22, 7  ;;  %2145 = vmatmul.bf16.gmra.mxu2 %v11218_v51  ;;  %v8101_v15 = vor.u32 %v10429_v11, %v8100_v10  ;;  %v10353_v4 = vld [vmem:[#allocation7 + $0x574] sm:$0xf0]  ;;  %v8052_v5 = vld [vmem:[#allocation7 + $0x768] sm:$0xf] }
  0xd1   :  { %2212 = vmatpush.bf16.msrb.mxu2 %v7921_v45  ;;  %2107 = vmatmul.bf16.gmra.mxu0 %v11214_v44  ;;  %v10433_v45 = vld [vmem:[#allocation7 + $0x7f4] sm:$0xf0] }
  0xd2   :  { %2174 = vmatpush.bf16.msrb.mxu0 %v7665_v49  ;;  %2231 = vmatpush.bf16.msrb.mxu3 %v8049_v59  ;;  %v11264_v47 = vsel %vm1251_vm0, %v1252_v33, %v1256_v34  ;;  %v7940_v34 = vld [vmem:[#allocation7 + $0x688] sm:$0xf]  ;;  %v10417_v6 = vld [vmem:[#allocation7 + $0x774] sm:$0xf0] }
  0xd3   :  { %2164 = vmatmul.bf16.gmra.mxu3 %v11220_v56  ;;  %v982_v49 = vpop.f32.mrf.mxu2 }
  0xd4   :  { %2194 = vmatpush.bf16.msrb.mxu1 %v7777_v7  ;;  %v983_v58 = vadd.f32 %v982_v49, %v964_v23  ;;  %v1001_v59 = vpop.f32.mrf.mxu3  ;;  %v946_v60 = vpop.f32.mrf.mxu0  ;;  %v10421_v49 = vld [vmem:[#allocation7 + $0x794] sm:$0xf0] }
  0xd5   :  { %2213 = vmatpush.bf16.msrb.mxu2 %v7905_v2  ;;  %v965_v1 = vpop.f32.mrf.mxu1  ;;  %v7861_v2 = vor.u32 %v10369_v42, %v7860_v39  ;;  %v10325_v39 = vld [vmem:[#allocation7 + $0x494] sm:$0xf0] }
  0xd6   :  { %2175 = vmatpush.bf16.msrb.mxu0 %v7649_v3  ;;  %2232 = vmatpush.bf16.msrb.mxu3 %v8033_v8  ;;  %v8117_v3 = vor.u32 %v10433_v45, %v8116_v43  ;;  %v11266_v7 = vadd.f32 %v1001_v59, %v983_v58  ;;  %v966_v8 = vadd.f32 %v965_v1, %v946_v60  ;;  %v8068_v45 = vld [vmem:[#allocation7 + $0x788] sm:$0xf]  ;;  %v10385_v59 = vld [vmem:[#allocation7 + $0x674] sm:$0xf0] }
  0xd7   :  { %v7924_v58 = vld [vmem:[#allocation7 + $0x668] sm:$0xf] }
  0xd8   :  { %2195 = vmatpush.bf16.msrb.mxu1 %v7761_v28  ;;  %v1264_v42 = vrot.slane %v11266_v7, 7  ;;  %v7796_v1 = vld [vmem:[#allocation7 + $0x568] sm:$0xf]  ;;  %v10493_v7 = vld [vmem:[#allocation7 + $0x9d4] sm:$0xf0] }
  0xd9   :  { %2214 = vmatpush.bf16.msrb.mxu2 %v7889_v19  ;;  %v7700_v19 = vld [vmem:[#allocation7 + $0x4a8] sm:$0xf]  ;;  %v7797_v17 = vor.u32 %v10353_v4, %v7796_v1  ;;  %v10405_v4 = vld [vmem:[#allocation7 + $0x714] sm:$0xf0] }
  0xda   :  { %2176 = vmatpush.bf16.msrb.mxu0 %v7633_v24  ;;  %2233 = vmatpush.bf16.msrb.mxu3 %v8017_v29  ;;  %v10361_v24 = vld [vmem:[#allocation7 + $0x5b4] sm:$0xf0]  ;;  %v7701_v32 = vor.u32 %v10329_v20, %v7700_v19  ;;  %v7652_v19 = vld [vmem:[#allocation7 + $0x448] sm:$0xf] }
  0xdb   :  { %v984_v18 = vpop.f32.mrf.mxu2  ;;  %v7829_v37 = vor.u32 %v10361_v24, %v7828_v21  ;;  %v10317_v20 = vld [vmem:[#allocation7 + $0x454] sm:$0xf0]  ;;  %v7780_v21 = vld [vmem:[#allocation7 + $0x548] sm:$0xf] }
  0xdc   :  { %2196 = vmatpush.bf16.msrb.mxu1 %v7745_v52  ;;  %v985_v22 = vadd.f32 %v984_v18, %v966_v8  ;;  %v1003_v23 = vpop.f32.mrf.mxu3  ;;  %v7941_v52 = vor.u32 %v10389_v35, %v7940_v34  ;;  %v8053_v18 = vor.u32 %v10417_v6, %v8052_v5  ;;  %v10413_v24 = vld [vmem:[#allocation7 + $0x754] sm:$0xf0]  ;;  %v7653_v26 = vor.u32 %v10317_v20, %v7652_v19  ;;  %v7764_v34 = vld [vmem:[#allocation7 + $0x528] sm:$0xf]  ;;  %v10399_v5 = vld [vmem:[#allocation7 + $0x6ec] sm:$0xf] }
  0xdd   :  { %2215 = vmatpush.bf16.msrb.mxu2 %v7873_v40  ;;  %v1034_v28 = vpop.f32.mrf.mxu1  ;;  %v7812_v40 = vld [vmem:[#allocation7 + $0x588] sm:$0xf]  ;;  %v7990_v6 = vld [vmem:[#allocation7 + $0x6f8] sm:$0xf0] }
  0xde   :  { %2177 = vmatpush.bf16.msrb.mxu0 %v7617_v41  ;;  %2234 = vmatpush.bf16.msrb.mxu3 %v8001_v55  ;;  %v1015_v27 = vpop.f32.mrf.mxu0  ;;  %v1004_v29 = vadd.f32 %v1003_v23, %v985_v22  ;;  %v10357_v41 = vld [vmem:[#allocation7 + $0x594] sm:$0xf0]  ;;  %v7685_v55 = vor.u32 %v10325_v39, %v7684_v36  ;;  %v8036_v23 = vld [vmem:[#allocation7 + $0x748] sm:$0xf] }
  0xdf   :  { %v1035_v30 = vadd.f32 %v1034_v28, %v1015_v27  ;;  %2197 = vmatmul.bf16.vlgmr.msrb.gmra.mxu1 %v11204_v53  ;;  %v10349_v22 = vld [vmem:[#allocation7 + $0x554] sm:$0xf0]  ;;  %v7892_v27 = vld [vmem:[#allocation7 + $0x628] sm:$0xf] }
  0xe0   :  { %2265 = vmatpush.bf16.msra.mxu1 %v7861_v2  ;;  %v1268_v43 = vrot.slane %v1004_v29, 7  ;;  %2216 = vmatmul.bf16.vlgmr.msrb.gmra.mxu2 %v11206_v54  ;;  %v10377_v28 = vld [vmem:[#allocation7 + $0x634] sm:$0xf0]  ;;  %v7781_v29 = vor.u32 %v10349_v22, %v7780_v21 }
  0xe1   :  { %2284 = vmatpush.bf16.msra.mxu2 %v7989_v61  ;;  %2178 = vmatmul.bf16.vlgmr.msrb.gmra.mxu0 %v11202_v48  ;;  %v7813_v61 = vor.u32 %v10357_v41, %v7812_v40  ;;  %v10409_v39 = vld [vmem:[#allocation7 + $0x734] sm:$0xf0] }
  0xe2   :  { %2246 = vmatpush.bf16.msra.mxu0 %v7733_v62  ;;  %2303 = vmatpush.bf16.msra.mxu3 %v8117_v3  ;;  %v11276_v60 = vsel %vm1251_vm0, %v1264_v42, %v1268_v43  ;;  %v8069_v62 = vor.u32 %v10421_v49, %v8068_v45  ;;  %v7876_v45 = vld [vmem:[#allocation7 + $0x608] sm:$0xf]  ;;  %v10373_v49 = vld [vmem:[#allocation7 + $0x614] sm:$0xf0] }
  0xe3   :  { %2235 = vmatmul.bf16.vlgmr.msrb.gmra.mxu3 %v11208_v57  ;;  %v1053_v2 = vpop.f32.mrf.mxu2 }
  0xe4   :  { %2266 = vmatpush.bf16.msra.mxu1 %v7845_v14  ;;  %v1054_v8 = vadd.f32 %v1053_v2, %v1035_v30  ;;  %v7908_v14 = vld [vmem:[#allocation7 + $0x648] sm:$0xf]  ;;  %v8037_v30 = vor.u32 %v10413_v24, %v8036_v23  ;;  %v10341_v2 = vld [vmem:[#allocation7 + $0x514] sm:$0xf0]  ;;  %v7993_v24 = vor.u32 %v10399_v5, %v7990_v6 }
  0xe5   :  { %2285 = vmatpush.bf16.msra.mxu2 %v7973_v12  ;;  %v1036_v10 = vpop.f32.mrf.mxu1  ;;  %v7925_v12 = vor.u32 %v10385_v59, %v7924_v58  ;;  %v7620_v59 = vld [vmem:[#allocation7 + $0x408] sm:$0xf] }
  0xe6   :  { %2247 = vmatpush.bf16.msra.mxu0 %v7717_v13  ;;  %2304 = vmatpush.bf16.msra.mxu3 %v8101_v15  ;;  %v1072_v3 = vpop.f32.mrf.mxu3  ;;  %v1017_v9 = vpop.f32.mrf.mxu0  ;;  %v7669_v13 = vor.u32 %v10321_v0, %v7668_v63  ;;  %v10381_v15 = vld [vmem:[#allocation7 + $0x654] sm:$0xf0] }
  0xe7   :  { %v1037_v11 = vadd.f32 %v1036_v10, %v1017_v9  ;;  %v11278_v16 = vadd.f32 %v1072_v3, %v1054_v8  ;;  %v7909_v25 = vor.u32 %v10381_v15, %v7908_v14  ;;  %v8004_v3 = vld [vmem:[#allocation7 + $0x708] sm:$0xf]  ;;  %v10335_v8 = vld [vmem:[#allocation7 + $0x4ec] sm:$0xf]  ;;  %v7862_v15 = vld [vmem:[#allocation7 + $0x5f8] sm:$0xf0] }
  0xe8   :  { %2267 = vmatpush.bf16.msra.mxu1 %v7829_v37  ;;  %v10345_v37 = vld [vmem:[#allocation7 + $0x534] sm:$0xf0]  ;;  %v8005_v20 = vor.u32 %v10405_v4, %v8004_v3  ;;  %v8086_v3 = vld [vmem:[#allocation7 + $0x7b8] sm:$0xf0] }
  0xe9   :  { %2286 = vmatpush.bf16.msra.mxu2 %v7957_v31  ;;  %v7636_v31 = vld [vmem:[#allocation7 + $0x428] sm:$0xf]  ;;  %v7765_v0 = vor.u32 %v10345_v37, %v7764_v34  ;;  %v1253_v9 = vrot.slane %v11278_v16, 7  ;;  %v10331_v34 = vld [vmem:[#allocation7 + $0x4cc] sm:$0xf] }
  0xea   :  { %2248 = vmatpush.bf16.msra.mxu0 %v7701_v32  ;;  %2305 = vmatpush.bf16.msra.mxu3 %v8085_v38  ;;  %v10313_v32 = vld [vmem:[#allocation7 + $0x434] sm:$0xf0]  ;;  %v8020_v38 = vld [vmem:[#allocation7 + $0x728] sm:$0xf] }
  0xeb   :  { %v1055_v35 = vpop.f32.mrf.mxu2  ;;  %v7637_v58 = vor.u32 %v10313_v32, %v7636_v31  ;;  %v8021_v1 = vor.u32 %v10409_v39, %v8020_v38  ;;  %v7846_v38 = vld [vmem:[#allocation7 + $0x5d8] sm:$0xf0]  ;;  %v10427_v39 = vld [vmem:[#allocation7 + $0x7cc] sm:$0xf]  ;;  %v10545_v16 = vld [vmem:[#allocation7 + $0xb74] sm:$0xf0] }
  0xec   :  { %2268 = vmatpush.bf16.msra.mxu1 %v7813_v61  ;;  %v1056_v40 = vadd.f32 %v1055_v35, %v1037_v11  ;;  %v10309_v61 = vld [vmem:[#allocation7 + $0x414] sm:$0xf0]  ;;  %v7734_v11 = vld [vmem:[#allocation7 + $0x4f8] sm:$0xf0] }
  0xed   :  { %2287 = vmatpush.bf16.msra.mxu2 %v7941_v52  ;;  %v1039_v43 = vpop.f32.mrf.mxu1  ;;  %v7621_v14 = vor.u32 %v10309_v61, %v7620_v59  ;;  %v7718_v35 = vld [vmem:[#allocation7 + $0x4d8] sm:$0xf0]  ;;  %v10327_v59 = vld [vmem:[#allocation7 + $0x4ac] sm:$0xf] }
  0xee   :  { %2249 = vmatpush.bf16.msra.mxu0 %v7685_v55  ;;  %2306 = vmatpush.bf16.msra.mxu3 %v8069_v62  ;;  %v1074_v36 = vpop.f32.mrf.mxu3  ;;  %v1020_v41 = vpop.f32.mrf.mxu0  ;;  %v7893_v55 = vor.u32 %v10377_v28, %v7892_v27  ;;  %v7748_v62 = vld [vmem:[#allocation7 + $0x508] sm:$0xf]  ;;  %v7974_v27 = vld [vmem:[#allocation7 + $0x6d8] sm:$0xf0] }
  0xef   :  { %v1040_v52 = vadd.f32 %v1039_v43, %v1020_v41  ;;  %v1075_v63 = vadd.f32 %v1074_v36, %v1056_v40  ;;  %2202 = vmatmul.bf16.gmra.mxu1 %v11216_v50  ;;  %v7749_v19 = vor.u32 %v10341_v2, %v7748_v62  ;;  %v10363_v36 = vld [vmem:[#allocation7 + $0x5cc] sm:$0xf]  ;;  %v8102_v40 = vld [vmem:[#allocation7 + $0x7d8] sm:$0xf0] }
  0xf0   :  { %2269 = vmatpush.bf16.msra.mxu1 %v7797_v17  ;;  %2221 = vmatmul.bf16.gmra.mxu2 %v11218_v51  ;;  %v10431_v17 = vld [vmem:[#allocation7 + $0x7ec] sm:$0xf]  ;;  %v7702_v61 = vld [vmem:[#allocation7 + $0x4b8] sm:$0xf0] }
  0xf1   :  { %2288 = vmatpush.bf16.msra.mxu2 %v7925_v12  ;;  %2183 = vmatmul.bf16.gmra.mxu0 %v11214_v44  ;;  %v1258_v10 = vrot.slane %v1075_v63, 7  ;;  %v10367_v12 = vld [vmem:[#allocation7 + $0x5ec] sm:$0xf] }
  0xf2   :  { %2250 = vmatpush.bf16.msra.mxu0 %v7669_v13  ;;  %2307 = vmatpush.bf16.msra.mxu3 %v8053_v18  ;;  %v7877_v13 = vor.u32 %v10373_v49, %v7876_v45  ;;  %v8118_v18 = vld [vmem:[#allocation7 + $0x7f8] sm:$0xf0]  ;;  %v7865_v31 = vor.u32 %v10367_v12, %v7862_v15  ;;  %v7721_v45 = vor.u32 %v10331_v34, %v7718_v35  ;;  %v10359_v62 = vld [vmem:[#allocation7 + $0x5ac] sm:$0xf] }
  0xf3   :  { %2240 = vmatmul.bf16.gmra.mxu3 %v11220_v56  ;;  %v11288_v21 = vsel %vm1251_vm0, %v1253_v9, %v1258_v10  ;;  %v1058_v22 = vpop.f32.mrf.mxu2  ;;  %v8121_v32 = vor.u32 %v10431_v17, %v8118_v18  ;;  %v7849_v49 = vor.u32 %v10363_v36, %v7846_v38  ;;  %v10423_v2 = vld [vmem:[#allocation7 + $0x7ac] sm:$0xf]  ;;  %v7670_v35 = vld [vmem:[#allocation7 + $0x478] sm:$0xf0] }
  0xf4   :  { %2270 = vmatpush.bf16.msra.mxu1 %v7781_v29  ;;  %v1059_v28 = vadd.f32 %v1058_v22, %v1040_v52  ;;  %v8105_v52 = vor.u32 %v10427_v39, %v8102_v40  ;;  %v10387_v12 = vld [vmem:[#allocation7 + $0x68c] sm:$0xf]  ;;  %v8089_v17 = vor.u32 %v10423_v2, %v8086_v3  ;;  %v7814_v22 = vld [vmem:[#allocation7 + $0x598] sm:$0xf0] }
  0xf5   :  { %2289 = vmatpush.bf16.msra.mxu2 %v7909_v25  ;;  %v7737_v25 = vor.u32 %v10335_v8, %v7734_v11  ;;  %v7705_v11 = vor.u32 %v10327_v59, %v7702_v61  ;;  %v10323_v18 = vld [vmem:[#allocation7 + $0x48c] sm:$0xf]  ;;  %v7798_v40 = vld [vmem:[#allocation7 + $0x578] sm:$0xf0] }
  0xf6   :  { %2251 = vmatpush.bf16.msra.mxu0 %v7653_v26  ;;  %2308 = vmatpush.bf16.msra.mxu3 %v8037_v30  ;;  %v1077_v23 = vpop.f32.mrf.mxu3  ;;  %v10395_v26 = vld [vmem:[#allocation7 + $0x6cc] sm:$0xf]  ;;  %v1022_v29 = vpop.f32.mrf.mxu0 }
  0xf7   :  { %v1041_v30 = vpop.f32.mrf.mxu1  ;;  %v11290_v41 = vadd.f32 %v1077_v23, %v1059_v28  ;;  %v7977_v43 = vor.u32 %v10395_v26, %v7974_v27  ;;  %v10419_v23 = vld [vmem:[#allocation7 + $0x78c] sm:$0xf] }
  0xf8   :  { %2271 = vmatpush.bf16.msra.mxu1 %v7765_v0  ;;  %v1042_v37 = vadd.f32 %v1041_v30, %v1022_v29  ;;  %v10383_v29 = vld [vmem:[#allocation7 + $0x66c] sm:$0xf]  ;;  %v7926_v30 = vld [vmem:[#allocation7 + $0x678] sm:$0xf0] }
  0xf9   :  { %2290 = vmatpush.bf16.msra.mxu2 %v7893_v55  ;;  %v10391_v55 = vld [vmem:[#allocation7 + $0x6ac] sm:$0xf]  ;;  %v7929_v59 = vor.u32 %v10383_v29, %v7926_v30 }
  0xfa   :  { %2252 = vmatpush.bf16.msra.mxu0 %v7637_v58  ;;  %2309 = vmatpush.bf16.msra.mxu3 %v8021_v1  ;;  %v7958_v58 = vld [vmem:[#allocation7 + $0x6b8] sm:$0xf0]  ;;  %v10319_v34 = vld [vmem:[#allocation7 + $0x46c] sm:$0xf] }
  0xfb   :  { %v1060_v63 = vpop.f32.mrf.mxu2  ;;  %v7830_v1 = vld [vmem:[#allocation7 + $0x5b8] sm:$0xf0]  ;;  %v7961_v10 = vor.u32 %v10391_v55, %v7958_v58  ;;  %v10351_v36 = vld [vmem:[#allocation7 + $0x56c] sm:$0xf]  ;;  %v7673_v61 = vor.u32 %v10319_v34, %v7670_v35 }
  0xfc   :  { %2272 = vmatpush.bf16.msra.mxu1 %v7749_v19  ;;  %v1061_v4 = vadd.f32 %v1060_v63, %v1042_v37  ;;  %v7833_v15 = vor.u32 %v10359_v62, %v7830_v1  ;;  %v7686_v19 = vld [vmem:[#allocation7 + $0x498] sm:$0xf0]  ;;  %v10379_v62 = vld [vmem:[#allocation7 + $0x64c] sm:$0xf]  ;;  %v7801_v1 = vor.u32 %v10351_v36, %v7798_v40 }
  0xfd   :  { %2291 = vmatpush.bf16.msra.mxu2 %v7877_v13  ;;  %v7942_v13 = vld [vmem:[#allocation7 + $0x698] sm:$0xf0]  ;;  %v7689_v28 = vor.u32 %v10323_v18, %v7686_v19  ;;  %v10315_v3 = vld [vmem:[#allocation7 + $0x44c] sm:$0xf] }
  0xfe   :  { %2253 = vmatpush.bf16.msra.mxu0 %v7621_v14  ;;  %2310 = vmatpush.bf16.msra.mxu3 %v8005_v20  ;;  %v1079_v0 = vpop.f32.mrf.mxu3  ;;  %v1091_v5 = vpop.f32.mrf.mxu0  ;;  %v10355_v20 = vld [vmem:[#allocation7 + $0x58c] sm:$0xf]  ;;  %v7945_v27 = vor.u32 %v10387_v12, %v7942_v13  ;;  %v7910_v63 = vld [vmem:[#allocation7 + $0x658] sm:$0xf0] }
  0xff   :  { %v1110_v6 = vpop.f32.mrf.mxu1  ;;  %v1080_v14 = vadd.f32 %v1079_v0, %v1061_v4  ;;  %2273 = vmatmul.bf16.vlgmr.msra.gmra.mxu1 %v11204_v53  ;;  %v7654_v4 = vld [vmem:[#allocation7 + $0x458] sm:$0xf0]  ;;  %v10375_v13 = vld [vmem:[#allocation7 + $0x62c] sm:$0xf] }
 0x100   :  { %2341 = vmatpush.bf16.msrb.mxu1 %v7865_v31  ;;  %v1111_v8 = vadd.f32 %v1110_v6, %v1091_v5  ;;  %2292 = vmatmul.bf16.vlgmr.msra.gmra.mxu2 %v11206_v54  ;;  %v7817_v31 = vor.u32 %v10355_v20, %v7814_v22  ;;  %v10347_v5 = vld [vmem:[#allocation7 + $0x54c] sm:$0xf]  ;;  %v7782_v6 = vld [vmem:[#allocation7 + $0x558] sm:$0xf0]  ;;  %v7657_v12 = vor.u32 %v10315_v3, %v7654_v4  ;;  %v8364_v3 = vld [vmem:[#allocation7 + $0x9e0] sm:$0xf] }
 0x101   :  { %2360 = vmatpush.bf16.msrb.mxu2 %v7993_v24  ;;  %2254 = vmatmul.bf16.vlgmr.msra.gmra.mxu0 %v11202_v48  ;;  %v8070_v24 = vld [vmem:[#allocation7 + $0x798] sm:$0xf0]  ;;  %v1270_v26 = vrot.slane %v1080_v14, 7  ;;  %v10311_v18 = vld [vmem:[#allocation7 + $0x42c] sm:$0xf] }
 0x102   :  { %2322 = vmatpush.bf16.msrb.mxu0 %v7737_v25  ;;  %2379 = vmatpush.bf16.msrb.mxu3 %v8121_v32  ;;  %v1265_v25 = vrot.slane %v11290_v41, 7  ;;  %v8073_v32 = vor.u32 %v10419_v23, %v8070_v24  ;;  %v7894_v14 = vld [vmem:[#allocation7 + $0x638] sm:$0xf0]  ;;  %v10343_v20 = vld [vmem:[#allocation7 + $0x52c] sm:$0xf] }
 0x103   :  { %2311 = vmatmul.bf16.vlgmr.msra.gmra.mxu3 %v11208_v57  ;;  %v1129_v38 = vpop.f32.mrf.mxu2  ;;  %v7638_v19 = vld [vmem:[#allocation7 + $0x438] sm:$0xf0]  ;;  %v7897_v35 = vor.u32 %v10375_v13, %v7894_v14  ;;  %v10339_v40 = vld [vmem:[#allocation7 + $0x50c] sm:$0xf] }
 0x104   :  { %2342 = vmatpush.bf16.msrb.mxu1 %v7849_v49  ;;  %v11300_v37 = vsel %vm1251_vm0, %v1265_v25, %v1270_v26  ;;  %v1130_v49 = vadd.f32 %v1129_v38, %v1111_v8  ;;  %v10411_v8 = vld [vmem:[#allocation7 + $0x74c] sm:$0xf]  ;;  %v7766_v24 = vld [vmem:[#allocation7 + $0x538] sm:$0xf0]  ;;  %v7641_v36 = vor.u32 %v10311_v18, %v7638_v19  ;;  %v8476_v19 = vld [vmem:[#allocation7 + $0xac0] sm:$0xf] }
 0x105   :  { %2361 = vmatpush.bf16.msrb.mxu2 %v7977_v43  ;;  %v10415_v43 = vld [vmem:[#allocation7 + $0x76c] sm:$0xf]  ;;  %v8358_v41 = vld [vmem:[#allocation7 + $0x9d8] sm:$0xf0] }
 0x106   :  { %2323 = vmatpush.bf16.msrb.mxu0 %v7721_v45  ;;  %2380 = vmatpush.bf16.msrb.mxu3 %v8105_v52  ;;  %v1148_v39 = vpop.f32.mrf.mxu3  ;;  %v8054_v45 = vld [vmem:[#allocation7 + $0x778] sm:$0xf0]  ;;  %v1093_v52 = vpop.f32.mrf.mxu0  ;;  %v10407_v26 = vld [vmem:[#allocation7 + $0x72c] sm:$0xf] }
 0x107   :  { %v1112_v55 = vpop.f32.mrf.mxu1  ;;  %v11302_v0 = vadd.f32 %v1148_v39, %v1130_v49  ;;  %v8057_v2 = vor.u32 %v10415_v43, %v8054_v45  ;;  %v10307_v38 = vld [vmem:[#allocation7 + $0x40c] sm:$0xf]  ;;  %v7622_v39 = vld [vmem:[#allocation7 + $0x418] sm:$0xf0]  ;;  %v7769_v45 = vor.u32 %v10343_v20, %v7766_v24  ;;  %v10524_v20 = vld [vmem:[#allocation7 + $0xacc] sm:$0xf0] }
 0x108   :  { %2343 = vmatpush.bf16.msrb.mxu1 %v7833_v15  ;;  %v1113_v58 = vadd.f32 %v1112_v55, %v1093_v52  ;;  %v7785_v15 = vor.u32 %v10347_v5, %v7782_v6  ;;  %v7750_v52 = vld [vmem:[#allocation7 + $0x518] sm:$0xf0]  ;;  %v10403_v55 = vld [vmem:[#allocation7 + $0x70c] sm:$0xf]  ;;  %v7625_v5 = vor.u32 %v10307_v38, %v7622_v39  ;;  %v10496_v6 = vld [vmem:[#allocation7 + $0x9ec] sm:$0xf0] }
 0x109   :  { %2362 = vmatpush.bf16.msrb.mxu2 %v7961_v10  ;;  %v8038_v10 = vld [vmem:[#allocation7 + $0x758] sm:$0xf0] }
 0x10a   :  { %2324 = vmatpush.bf16.msrb.mxu0 %v7705_v11  ;;  %2381 = vmatpush.bf16.msrb.mxu3 %v8089_v17  ;;  %v7913_v11 = vor.u32 %v10379_v62, %v7910_v63  ;;  %v8041_v17 = vor.u32 %v10411_v8, %v8038_v10  ;;  %v8236_v62 = vld [vmem:[#allocation7 + $0x8e0] sm:$0xf]  ;;  %v1254_v63 = vrot.slane %v11302_v0, 7  ;;  %v10560_v10 = vld [vmem:[#allocation7 + $0xbec] sm:$0xf0] }
 0x10b   :  { %v1131_v22 = vpop.f32.mrf.mxu2  ;;  %v8620_v8 = vld [vmem:[#allocation7 + $0xbe0] sm:$0xf] }
 0x10c   :  { %2344 = vmatpush.bf16.msrb.mxu1 %v7817_v31  ;;  %v10371_v31 = vld [vmem:[#allocation7 + $0x60c] sm:$0xf] }
 0x10d   :  { %2363 = vmatpush.bf16.msrb.mxu2 %v7945_v27  ;;  %v8022_v27 = vld [vmem:[#allocation7 + $0x738] sm:$0xf0] }
 0x10e   :  { %2325 = vmatpush.bf16.msrb.mxu0 %v7689_v28  ;;  %2382 = vmatpush.bf16.msrb.mxu3 %v8073_v32  ;;  %v1150_v23 = vpop.f32.mrf.mxu3  ;;  %v1132_v28 = vadd.f32 %v1131_v22, %v1113_v58  ;;  %v1096_v29 = vpop.f32.mrf.mxu0  ;;  %v7878_v32 = vld [vmem:[#allocation7 + $0x618] sm:$0xf0]  ;;  %v8025_v49 = vor.u32 %v10407_v26, %v8022_v27  ;;  %v8365_v26 = vor.u32 %v10496_v6, %v8364_v3 }
 0x10f   :  { %v1115_v30 = vpop.f32.mrf.mxu1  ;;  %v8006_v58 = vld [vmem:[#allocation7 + $0x718] sm:$0xf0]  ;;  %2278 = vmatmul.bf16.gmra.mxu1 %v11216_v50  ;;  %v7881_v4 = vor.u32 %v10371_v31, %v7878_v32  ;;  %v8621_v27 = vor.u32 %v10560_v10, %v8620_v8  ;;  %v10492_v32 = vld [vmem:[#allocation7 + $0x9cc] sm:$0xf0] }
 0x110   :  { %2345 = vmatpush.bf16.msrb.mxu1 %v7801_v1  ;;  %v1116_v34 = vadd.f32 %v1115_v30, %v1096_v29  ;;  %v1151_v43 = vadd.f32 %v1150_v23, %v1132_v28  ;;  %2297 = vmatmul.bf16.gmra.mxu2 %v11218_v51  ;;  %v8220_v28 = vld [vmem:[#allocation7 + $0x8c0] sm:$0xf]  ;;  %v10460_v29 = vld [vmem:[#allocation7 + $0x8cc] sm:$0xf0] }
 0x111   :  { %2364 = vmatpush.bf16.msrb.mxu2 %v7929_v59  ;;  %2259 = vmatmul.bf16.gmra.mxu0 %v11214_v44  ;;  %v8492_v59 = vld [vmem:[#allocation7 + $0xae0] sm:$0xf]  ;;  %v8221_v39 = vor.u32 %v10460_v29, %v8220_v28 }
 0x112   :  { %2326 = vmatpush.bf16.msrb.mxu0 %v7673_v61  ;;  %2383 = vmatpush.bf16.msrb.mxu3 %v8057_v2  ;;  %v10528_v61 = vld [vmem:[#allocation7 + $0xaec] sm:$0xf0]  ;;  %v1260_v1 = vrot.slane %v1151_v43, 7  ;;  %v8348_v30 = vld [vmem:[#allocation7 + $0x9c0] sm:$0xf] }
 0x113   :  { %2316 = vmatmul.bf16.gmra.mxu3 %v11220_v56  ;;  %v10464_v2 = vld [vmem:[#allocation7 + $0x8ec] sm:$0xf0]  ;;  %v1134_v14 = vpop.f32.mrf.mxu2 }
 0x114   :  { %2346 = vmatpush.bf16.msrb.mxu1 %v7785_v15  ;;  %v11312_v13 = vsel %vm1251_vm0, %v1254_v63, %v1260_v1  ;;  %v8237_v18 = vor.u32 %v10464_v2, %v8236_v62  ;;  %v1135_v22 = vadd.f32 %v1134_v14, %v1116_v34  ;;  %v8477_v34 = vor.u32 %v10524_v20, %v8476_v19  ;;  %v10488_v62 = vld [vmem:[#allocation7 + $0x9ac] sm:$0xf0]  ;;  %v8588_v1 = vld [vmem:[#allocation7 + $0xba0] sm:$0xf] }
 0x115   :  { %2365 = vmatpush.bf16.msrb.mxu2 %v7913_v11  ;;  %v7753_v11 = vor.u32 %v10339_v40, %v7750_v52  ;;  %v8349_v40 = vor.u32 %v10492_v32, %v8348_v30  ;;  %v8204_v52 = vld [vmem:[#allocation7 + $0x8a0] sm:$0xf]  ;;  %v10552_v2 = vld [vmem:[#allocation7 + $0xbac] sm:$0xf0] }
 0x116   :  { %2327 = vmatpush.bf16.msrb.mxu0 %v7657_v12  ;;  %2384 = vmatpush.bf16.msrb.mxu3 %v8041_v17  ;;  %v8009_v12 = vor.u32 %v10403_v55, %v8006_v58  ;;  %v1153_v15 = vpop.f32.mrf.mxu3  ;;  %v8493_v17 = vor.u32 %v10528_v61, %v8492_v59  ;;  %v1098_v23 = vpop.f32.mrf.mxu0  ;;  %v10456_v55 = vld [vmem:[#allocation7 + $0x8ac] sm:$0xf0]  ;;  %v8332_v58 = vld [vmem:[#allocation7 + $0x9a0] sm:$0xf] }
 0x117   :  { %v1117_v24 = vpop.f32.mrf.mxu1  ;;  %v11314_v38 = vadd.f32 %v1153_v15, %v1135_v22  ;;  %v8205_v10 = vor.u32 %v10456_v55, %v8204_v52  ;;  %v8333_v15 = vor.u32 %v10488_v62, %v8332_v58  ;;  %v10452_v19 = vld [vmem:[#allocation7 + $0x88c] sm:$0xf0]  ;;  %v8316_v20 = vld [vmem:[#allocation7 + $0x980] sm:$0xf] }
 0x118   :  { %2347 = vmatpush.bf16.msrb.mxu1 %v7769_v45  ;;  %v1118_v31 = vadd.f32 %v1117_v24, %v1098_v23  ;;  %v8460_v45 = vld [vmem:[#allocation7 + $0xaa0] sm:$0xf]  ;;  %v10484_v22 = vld [vmem:[#allocation7 + $0x98c] sm:$0xf0] }
 0x119   :  { %2366 = vmatpush.bf16.msrb.mxu2 %v7897_v35  ;;  %v8604_v35 = vld [vmem:[#allocation7 + $0xbc0] sm:$0xf]  ;;  %v10548_v24 = vld [vmem:[#allocation7 + $0xb8c] sm:$0xf0]  ;;  %v8317_v32 = vor.u32 %v10484_v22, %v8316_v20 }
 0x11a   :  { %2328 = vmatpush.bf16.msrb.mxu0 %v7641_v36  ;;  %2385 = vmatpush.bf16.msrb.mxu3 %v8025_v49  ;;  %v10556_v36 = vld [vmem:[#allocation7 + $0xbcc] sm:$0xf0]  ;;  %v8572_v23 = vld [vmem:[#allocation7 + $0xb80] sm:$0xf] }
 0x11b   :  { %v8605_v43 = vor.u32 %v10556_v36, %v8604_v35  ;;  %v10520_v49 = vld [vmem:[#allocation7 + $0xaac] sm:$0xf0]  ;;  %v1136_v59 = vpop.f32.mrf.mxu2  ;;  %v8428_v30 = vld [vmem:[#allocation7 + $0xa60] sm:$0xf]  ;;  %v8573_v35 = vor.u32 %v10548_v24, %v8572_v23 }
 0x11c   :  { %2348 = vmatpush.bf16.msrb.mxu1 %v7753_v11  ;;  %v1137_v3 = vadd.f32 %v1136_v59, %v1118_v31  ;;  %v8461_v8 = vor.u32 %v10520_v49, %v8460_v45  ;;  %v8444_v11 = vld [vmem:[#allocation7 + $0xa80] sm:$0xf]  ;;  %v10512_v31 = vld [vmem:[#allocation7 + $0xa6c] sm:$0xf0] }
 0x11d   :  { %2367 = vmatpush.bf16.msrb.mxu2 %v7881_v4  ;;  %v8172_v36 = vld [vmem:[#allocation7 + $0x860] sm:$0xf]  ;;  %v10480_v49 = vld [vmem:[#allocation7 + $0x96c] sm:$0xf0] }
 0x11e   :  { %2329 = vmatpush.bf16.msrb.mxu0 %v7625_v5  ;;  %2386 = vmatpush.bf16.msrb.mxu3 %v8009_v12  ;;  %v1155_v61 = vpop.f32.mrf.mxu3  ;;  %v1167_v4 = vpop.f32.mrf.mxu0  ;;  %v10516_v12 = vld [vmem:[#allocation7 + $0xa8c] sm:$0xf0]  ;;  %v8556_v52 = vld [vmem:[#allocation7 + $0xb60] sm:$0xf] }
 0x11f   :  { %v1186_v5 = vpop.f32.mrf.mxu1  ;;  %v1156_v14 = vadd.f32 %v1155_v61, %v1137_v3  ;;  %2349 = vmatmul.bf16.vlgmr.msrb.gmra.mxu1 %v11204_v53  ;;  %v8445_v28 = vor.u32 %v10516_v12, %v8444_v11  ;;  %v10544_v55 = vld [vmem:[#allocation7 + $0xb6c] sm:$0xf0]  ;;  %v8412_v3 = vld [vmem:[#allocation7 + $0xa40] sm:$0xf] }
 0x120   :  { %3202 = vmatpush.bf16.msra.mxu1 %v8365_v26  ;;  %v1187_v6 = vadd.f32 %v1186_v5, %v1167_v4  ;;  %v1266_v26 = vrot.slane %v11314_v38, 7  ;;  %2368 = vmatmul.bf16.vlgmr.msrb.gmra.mxu2 %v11206_v54  ;;  %v10508_v4 = vld [vmem:[#allocation7 + $0xa4c] sm:$0xf0]  ;;  %v8156_v11 = vld [vmem:[#allocation7 + $0x840] sm:$0xf] }
 0x121   :  { %3221 = vmatpush.bf16.msra.mxu2 %v8493_v17  ;;  %v8589_v17 = vor.u32 %v10552_v2, %v8588_v1  ;;  %2330 = vmatmul.bf16.vlgmr.msrb.gmra.mxu0 %v11202_v48  ;;  %v8429_v1 = vor.u32 %v10512_v31, %v8428_v30  ;;  %v10444_v12 = vld [vmem:[#allocation7 + $0x84c] sm:$0xf0]  ;;  %v8396_v20 = vld [vmem:[#allocation7 + $0xa20] sm:$0xf] }
 0x122   :  { %3183 = vmatpush.bf16.msra.mxu0 %v8237_v18  ;;  %3240 = vmatpush.bf16.msra.mxu3 %v8621_v27  ;;  %v8188_v18 = vld [vmem:[#allocation7 + $0x880] sm:$0xf]  ;;  %v1272_v27 = vrot.slane %v1156_v14, 7  ;;  %v10504_v22 = vld [vmem:[#allocation7 + $0xa2c] sm:$0xf0] }
 0x123   :  { %2387 = vmatmul.bf16.vlgmr.msrb.gmra.mxu3 %v11208_v57  ;;  %v8189_v29 = vor.u32 %v10452_v19, %v8188_v18  ;;  %v8284_v14 = vld [vmem:[#allocation7 + $0x940] sm:$0xf]  ;;  %v8413_v18 = vor.u32 %v10508_v4, %v8412_v3  ;;  %v8157_v19 = vor.u32 %v10444_v12, %v8156_v11  ;;  %v10526_v11 = vld [vmem:[#allocation7 + $0xae4] sm:$0xf]  ;;  %v8494_v12 = vld [vmem:[#allocation7 + $0xaf0] sm:$0xf0] }
 0x124   :  { %3203 = vmatpush.bf16.msra.mxu1 %v8349_v40  ;;  %v11324_v40 = vsel %vm1251_vm0, %v1266_v26, %v1272_v27  ;;  %v8140_v27 = vld [vmem:[#allocation7 + $0x820] sm:$0xf] }
 0x125   :  { %3222 = vmatpush.bf16.msra.mxu2 %v8477_v34  ;;  %v10448_v34 = vld [vmem:[#allocation7 + $0x86c] sm:$0xf0] }
 0x126   :  { %3184 = vmatpush.bf16.msra.mxu0 %v8221_v39  ;;  %3241 = vmatpush.bf16.msra.mxu3 %v8605_v43  ;;  %v8300_v39 = vld [vmem:[#allocation7 + $0x960] sm:$0xf]  ;;  %v1205_v43 = vpop.f32.mrf.mxu2  ;;  %v1224_v45 = vpop.f32.mrf.mxu3  ;;  %v8173_v2 = vor.u32 %v10448_v34, %v8172_v36  ;;  %v10536_v36 = vld [vmem:[#allocation7 + $0xb2c] sm:$0xf0] }
 0x127   :  { %v1206_v58 = vadd.f32 %v1205_v43, %v1187_v6  ;;  %v1169_v59 = vpop.f32.mrf.mxu0  ;;  %v1188_v61 = vpop.f32.mrf.mxu1  ;;  %v8540_v6 = vld [vmem:[#allocation7 + $0xb40] sm:$0xf] }
 0x128   :  { %3204 = vmatpush.bf16.msra.mxu1 %v8333_v15  ;;  %v1189_v62 = vadd.f32 %v1188_v61, %v1169_v59  ;;  %v10476_v15 = vld [vmem:[#allocation7 + $0x94c] sm:$0xf0]  ;;  %v8124_v59 = vld [vmem:[#allocation7 + $0x800] sm:$0xf] }
 0x129   :  { %3223 = vmatpush.bf16.msra.mxu2 %v8461_v8  ;;  %v11326_v5 = vadd.f32 %v1224_v45, %v1206_v58  ;;  %v8301_v8 = vor.u32 %v10480_v49, %v8300_v39  ;;  %v8285_v23 = vor.u32 %v10476_v15, %v8284_v14  ;;  %v8380_v45 = vld [vmem:[#allocation7 + $0xa00] sm:$0xf]  ;;  %v10500_v49 = vld [vmem:[#allocation7 + $0xa0c] sm:$0xf0]  ;;  %v10462_v14 = vld [vmem:[#allocation7 + $0x8e4] sm:$0xf] }
 0x12a   :  { %3185 = vmatpush.bf16.msra.mxu0 %v8205_v10  ;;  %3242 = vmatpush.bf16.msra.mxu3 %v8589_v17  ;;  %v8557_v10 = vor.u32 %v10544_v55, %v8556_v52  ;;  %v10540_v17 = vld [vmem:[#allocation7 + $0xb4c] sm:$0xf0]  ;;  %v8397_v55 = vor.u32 %v10504_v22, %v8396_v20  ;;  %v8366_v22 = vld [vmem:[#allocation7 + $0x9f0] sm:$0xf0] }
 0x12b   :  { %v8541_v24 = vor.u32 %v10540_v17, %v8540_v6  ;;  %v10436_v61 = vld [vmem:[#allocation7 + $0x80c] sm:$0xf0]  ;;  %v1255_v15 = vrot.slane %v11326_v5, 7  ;;  %v8238_v17 = vld [vmem:[#allocation7 + $0x8f0] sm:$0xf0] }
 0x12c   :  { %3205 = vmatpush.bf16.msra.mxu1 %v8317_v32  ;;  %v10472_v32 = vld [vmem:[#allocation7 + $0x92c] sm:$0xf0]  ;;  %v8125_v20 = vor.u32 %v10436_v61, %v8124_v59  ;;  %v8222_v59 = vld [vmem:[#allocation7 + $0x8d0] sm:$0xf0]  ;;  %v10490_v61 = vld [vmem:[#allocation7 + $0x9c4] sm:$0xf] }
 0x12d   :  { %3224 = vmatpush.bf16.msra.mxu2 %v8445_v28  ;;  %v10440_v28 = vld [vmem:[#allocation7 + $0x82c] sm:$0xf0] }
 0x12e   :  { %3186 = vmatpush.bf16.msra.mxu0 %v8189_v29  ;;  %3243 = vmatpush.bf16.msra.mxu3 %v8573_v35  ;;  %v8268_v29 = vld [vmem:[#allocation7 + $0x920] sm:$0xf]  ;;  %v1207_v30 = vpop.f32.mrf.mxu2  ;;  %v1226_v31 = vpop.f32.mrf.mxu3  ;;  %v8141_v58 = vor.u32 %v10440_v28, %v8140_v27 }
 0x12f   :  { %v8524_v35 = vld [vmem:[#allocation7 + $0xb20] sm:$0xf]  ;;  %v1208_v34 = vadd.f32 %v1207_v30, %v1189_v62  ;;  %v1172_v39 = vpop.f32.mrf.mxu0  ;;  %v1191_v43 = vpop.f32.mrf.mxu1  ;;  %v8269_v3 = vor.u32 %v10472_v32, %v8268_v29  ;;  %v10532_v62 = vld [vmem:[#allocation7 + $0xb0c] sm:$0xf0]  ;;  %2354 = vmatmul.bf16.gmra.mxu1 %v11216_v50  ;;  %v8497_v32 = vor.u32 %v10526_v11, %v8494_v12  ;;  %v10518_v12 = vld [vmem:[#allocation7 + $0xaa4] sm:$0xf] }
 0x130   :  { %3206 = vmatpush.bf16.msra.mxu1 %v8301_v8  ;;  %v1192_v52 = vadd.f32 %v1191_v43, %v1172_v39  ;;  %v8525_v4 = vor.u32 %v10536_v36, %v8524_v35  ;;  %v10468_v8 = vld [vmem:[#allocation7 + $0x90c] sm:$0xf0]  ;;  %2373 = vmatmul.bf16.gmra.mxu2 %v11218_v51  ;;  %v8241_v35 = vor.u32 %v10462_v14, %v8238_v17  ;;  %v10522_v36 = vld [vmem:[#allocation7 + $0xac4] sm:$0xf]  ;;  %v8462_v14 = vld [vmem:[#allocation7 + $0xab0] sm:$0xf0] }
 0x131   :  { %3225 = vmatpush.bf16.msra.mxu2 %v8429_v1  ;;  %v8252_v1 = vld [vmem:[#allocation7 + $0x900] sm:$0xf]  ;;  %2335 = vmatmul.bf16.gmra.mxu0 %v11214_v44  ;;  %v8206_v17 = vld [vmem:[#allocation7 + $0x8b0] sm:$0xf0] }
 0x132   :  { %3187 = vmatpush.bf16.msra.mxu0 %v8173_v2  ;;  %3244 = vmatpush.bf16.msra.mxu3 %v8557_v10  ;;  %v1227_v2 = vadd.f32 %v1226_v31, %v1208_v34  ;;  %v8508_v10 = vld [vmem:[#allocation7 + $0xb00] sm:$0xf]  ;;  %v8253_v27 = vor.u32 %v10468_v8, %v8252_v1  ;;  %v8478_v34 = vld [vmem:[#allocation7 + $0xad0] sm:$0xf0] }
 0x133   :  { %2392 = vmatmul.bf16.gmra.mxu3 %v11220_v56  ;;  %v8509_v28 = vor.u32 %v10532_v62, %v8508_v10 }
 0x134   :  { %3207 = vmatpush.bf16.msra.mxu1 %v8285_v23  ;;  %v1262_v6 = vrot.slane %v1227_v2, 7  ;;  %v10558_v23 = vld [vmem:[#allocation7 + $0xbe4] sm:$0xf]  ;;  %v8350_v2 = vld [vmem:[#allocation7 + $0x9d0] sm:$0xf0] }
 0x135   :  { %3226 = vmatpush.bf16.msra.mxu2 %v8413_v18  ;;  %v10494_v18 = vld [vmem:[#allocation7 + $0x9e4] sm:$0xf]  ;;  %v8353_v62 = vor.u32 %v10490_v61, %v8350_v2  ;;  %v8318_v61 = vld [vmem:[#allocation7 + $0x990] sm:$0xf0] }
 0x136   :  { %3188 = vmatpush.bf16.msra.mxu0 %v8157_v19  ;;  %3245 = vmatpush.bf16.msra.mxu3 %v8541_v24  ;;  %v8381_v19 = vor.u32 %v10500_v49, %v8380_v45  ;;  %v8622_v24 = vld [vmem:[#allocation7 + $0xbf0] sm:$0xf0]  ;;  %v11336_v29 = vsel %vm1251_vm0, %v1255_v15, %v1262_v6  ;;  %v1210_v30 = vpop.f32.mrf.mxu2  ;;  %v1229_v31 = vpop.f32.mrf.mxu3  ;;  %v8369_v49 = vor.u32 %v10494_v18, %v8366_v22  ;;  %v10454_v6 = vld [vmem:[#allocation7 + $0x8a4] sm:$0xf] }
 0x137   :  { %v1211_v39 = vadd.f32 %v1210_v30, %v1192_v52  ;;  %v1174_v43 = vpop.f32.mrf.mxu0  ;;  %v1193_v45 = vpop.f32.mrf.mxu1  ;;  %v8481_v52 = vor.u32 %v10522_v36, %v8478_v34  ;;  %v10486_v18 = vld [vmem:[#allocation7 + $0x9a4] sm:$0xf]  ;;  %v8334_v22 = vld [vmem:[#allocation7 + $0x9b0] sm:$0xf0]  ;;  %v8209_v36 = vor.u32 %v10454_v6, %v8206_v17 }
 0x138   :  { %3208 = vmatpush.bf16.msra.mxu1 %v8269_v3  ;;  %v1194_v1 = vadd.f32 %v1193_v45, %v1174_v43  ;;  %v10554_v3 = vld [vmem:[#allocation7 + $0xbc4] sm:$0xf]  ;;  %v8337_v45 = vor.u32 %v10486_v18, %v8334_v22  ;;  %v8574_v2 = vld [vmem:[#allocation7 + $0xb90] sm:$0xf0] }
 0x139   :  { %3227 = vmatpush.bf16.msra.mxu2 %v8397_v55  ;;  %v8625_v55 = vor.u32 %v10558_v23, %v8622_v24  ;;  %v11338_v8 = vadd.f32 %v1229_v31, %v1211_v39  ;;  %v10550_v23 = vld [vmem:[#allocation7 + $0xba4] sm:$0xf]  ;;  %v8590_v24 = vld [vmem:[#allocation7 + $0xbb0] sm:$0xf0]  ;;  %v11340_v31 = vld [vmem:[#allocation8] sm:$0xf] }
 0x13a   :  { %3189 = vmatpush.bf16.msra.mxu0 %v8141_v58  ;;  %3246 = vmatpush.bf16.msra.mxu3 %v8525_v4  ;;  %v10458_v58 = vld [vmem:[#allocation7 + $0x8c4] sm:$0xf]  ;;  %v8606_v4 = vld [vmem:[#allocation7 + $0xbd0] sm:$0xf0] }
 0x13b   :  { %v8225_v10 = vor.u32 %v10458_v58, %v8222_v59  ;;  %v8609_v11 = vor.u32 %v10554_v3, %v8606_v4  ;;  %v10514_v34 = vld [vmem:[#allocation7 + $0xa84] sm:$0xf]  ;;  %v8446_v39 = vld [vmem:[#allocation7 + $0xa90] sm:$0xf0]  ;;  %v11345_v3 = vperm.slane %v11340_v31, 0  ;;  %v12083_v4 = vrot.slane %v11338_v8, 7 }
 0x13c   :  { %3209 = vmatpush.bf16.msra.mxu1 %v8253_v27  ;;  %v8190_v58 = vld [vmem:[#allocation7 + $0x890] sm:$0xf0]  ;;  %v10482_v59 = vld [vmem:[#allocation7 + $0x984] sm:$0xf] }
 0x13d   :  { %3228 = vmatpush.bf16.msra.mxu2 %v8381_v19  ;;  %v8321_v6 = vor.u32 %v10482_v59, %v8318_v61  ;;  %v10446_v18 = vld [vmem:[#allocation7 + $0x864] sm:$0xf] }
 0x13e   :  { %3190 = vmatpush.bf16.msra.mxu0 %v8125_v20  ;;  %3247 = vmatpush.bf16.msra.mxu3 %v8509_v28  ;;  %v1212_v19 = vpop.f32.mrf.mxu2  ;;  %v1231_v20 = vpop.f32.mrf.mxu3  ;;  %v10442_v61 = vld [vmem:[#allocation7 + $0x844] sm:$0xf] }
 0x13f   :  { %v1213_v27 = vadd.f32 %v1212_v19, %v1194_v1  ;;  %v2103_v28 = vpop.f32.mrf.mxu0  ;;  %v2122_v30 = vpop.f32.mrf.mxu1  ;;  %3210 = vmatmul.bf16.vlgmr.msra.gmra.mxu1 %v11204_v53  ;;  %v10546_v1 = vld [vmem:[#allocation7 + $0xb84] sm:$0xf]  ;;  %v8174_v19 = vld [vmem:[#allocation7 + $0x870] sm:$0xf0] }
 0x140   :  { %3278 = vmatpush.bf16.msrb.mxu1 %v8369_v49  ;;  %v8593_v49 = vor.u32 %v10550_v23, %v8590_v24  ;;  %3229 = vmatmul.bf16.vlgmr.msra.gmra.mxu2 %v11206_v54  ;;  %v8577_v17 = vor.u32 %v10546_v1, %v8574_v2  ;;  %v8302_v23 = vld [vmem:[#allocation7 + $0x970] sm:$0xf0]  ;;  %v10542_v24 = vld [vmem:[#allocation7 + $0xb64] sm:$0xf] }
 0x141   :  { %3297 = vmatpush.bf16.msrb.mxu2 %v8497_v32  ;;  %v2123_v32 = vadd.f32 %v2122_v30, %v2103_v28  ;;  %v1232_v43 = vadd.f32 %v1231_v20, %v1213_v27  ;;  %3191 = vmatmul.bf16.vlgmr.msra.gmra.mxu0 %v11202_v48  ;;  %v10478_v20 = vld [vmem:[#allocation7 + $0x964] sm:$0xf]  ;;  %v8558_v27 = vld [vmem:[#allocation7 + $0xb70] sm:$0xf0] }
 0x142   :  { %3259 = vmatpush.bf16.msrb.mxu0 %v8241_v35  ;;  %3316 = vmatpush.bf16.msrb.mxu3 %v8625_v55  ;;  %v8465_v35 = vor.u32 %v10518_v12, %v8462_v14  ;;  %v10450_v55 = vld [vmem:[#allocation7 + $0x884] sm:$0xf]  ;;  %v8430_v14 = vld [vmem:[#allocation7 + $0xa70] sm:$0xf0]  ;;  %v8561_v59 = vor.u32 %v10542_v24, %v8558_v27 }
 0x143   :  { %3248 = vmatmul.bf16.vlgmr.msra.gmra.mxu3 %v11208_v57  ;;  %v10510_v12 = vld [vmem:[#allocation7 + $0xa64] sm:$0xf]  ;;  %v8158_v1 = vld [vmem:[#allocation7 + $0x850] sm:$0xf0] }
 0x144   :  { %3279 = vmatpush.bf16.msrb.mxu1 %v8353_v62  ;;  %v8449_v62 = vor.u32 %v10514_v34, %v8446_v39  ;;  %v8433_v39 = vor.u32 %v10510_v12, %v8430_v14  ;;  %v10474_v2 = vld [vmem:[#allocation7 + $0x944] sm:$0xf]  ;;  %v8398_v14 = vld [vmem:[#allocation7 + $0xa30] sm:$0xf0] }
 0x145   :  { %3298 = vmatpush.bf16.msrb.mxu2 %v8481_v52  ;;  %v1274_v52 = vrot.slane %v1232_v43, 7  ;;  %v8177_v43 = vor.u32 %v10446_v18, %v8174_v19  ;;  %v10502_v12 = vld [vmem:[#allocation7 + $0xa24] sm:$0xf]  ;;  %v8142_v19 = vld [vmem:[#allocation7 + $0x830] sm:$0xf0] }
 0x146   :  { %3260 = vmatpush.bf16.msrb.mxu0 %v8225_v10  ;;  %3317 = vmatpush.bf16.msrb.mxu3 %v8609_v11  ;;  %v1292_v10 = vsel %vm1251_vm0, 0.0, %v1252_v33  ;;  %v8193_v11 = vor.u32 %v10450_v55, %v8190_v58  ;;  %v2141_v46 = vpop.f32.mrf.mxu2  ;;  %v2160_v33 = vpop.f32.mrf.mxu3  ;;  %v8305_v58 = vor.u32 %v10478_v20, %v8302_v23  ;;  %v10438_v18 = vld [vmem:[#allocation7 + $0x824] sm:$0xf]  ;;  %v8270_v24 = vld [vmem:[#allocation7 + $0x930] sm:$0xf0] }
 0x147   :  { %v11356_v22 = vsel %vm1251_vm0, %v12083_v4, %v1274_v52  ;;  %v1309_v28 = vadd.f32 %v11345_v3, %v1292_v10  ;;  %v2142_v30 = vadd.f32 %v2141_v46, %v2123_v32  ;;  %v8286_v52 = vld [vmem:[#allocation7 + $0x950] sm:$0xf0]  ;;  %v10538_v10 = vld [vmem:[#allocation7 + $0xb44] sm:$0xf]  ;;  %v8228_v4 = vld [vmem:[#allocation7 + $0x8c8] sm:$0xf] }
 0x148   :  { %3280 = vmatpush.bf16.msrb.mxu1 %v8337_v45  ;;  %v10506_v45 = vld [vmem:[#allocation7 + $0xa44] sm:$0xf]  ;;  %v8542_v32 = vld [vmem:[#allocation7 + $0xb50] sm:$0xf0] }
 0x149   :  { %3299 = vmatpush.bf16.msrb.mxu2 %v8465_v35  ;;  %v2105_v35 = vpop.f32.mrf.mxu0  ;;  %v2161_v55 = vadd.f32 %v2160_v33, %v2142_v30  ;;  %v10470_v20 = vld [vmem:[#allocation7 + $0x924] sm:$0xf]  ;;  %v8526_v30 = vld [vmem:[#allocation7 + $0xb30] sm:$0xf0] }
 0x14a   :  { %3261 = vmatpush.bf16.msrb.mxu0 %v8209_v36  ;;  %3318 = vmatpush.bf16.msrb.mxu3 %v8593_v49  ;;  %v2124_v36 = vpop.f32.mrf.mxu1  ;;  %v8414_v49 = vld [vmem:[#allocation7 + $0xa50] sm:$0xf0]  ;;  %v10534_v27 = vld [vmem:[#allocation7 + $0xb24] sm:$0xf] }
 0x14b   :  { %v2125_v34 = vadd.f32 %v2124_v36, %v2105_v35  ;;  %v11359_v46 = vadd.f32 %v2161_v55, %v1309_v28  ;;  %v1313_v35 = vadd.f32 %v11345_v3, %v11264_v47  ;;  %v8145_v55 = vor.u32 %v10438_v18, %v8142_v19  ;;  %v8510_v47 = vld [vmem:[#allocation7 + $0xb10] sm:$0xf0] }
 0x14c   :  { %3281 = vmatpush.bf16.msrb.mxu1 %v8321_v6  ;;  %v8289_v6 = vor.u32 %v10474_v2, %v8286_v52  ;;  %v8273_v2 = vor.u32 %v10470_v20, %v8270_v24  ;;  %v8529_v52 = vor.u32 %v10534_v27, %v8526_v30  ;;  %v10497_v20 = vld [vmem:[#allocation7 + $0x9f4] sm:$0xf0]  ;;  %v1296_v30 = vsel %vm1251_vm0, 0.0, %v1264_v42 }
 0x14d   :  { %3300 = vmatpush.bf16.msrb.mxu2 %v8449_v62  ;;  %v8417_v62 = vor.u32 %v10506_v45, %v8414_v49  ;;  %v8401_v49 = vor.u32 %v10502_v12, %v8398_v14  ;;  %v8244_v14 = vld [vmem:[#allocation7 + $0x8e8] sm:$0xf]  ;;  %v10557_v42 = vld [vmem:[#allocation7 + $0xbd4] sm:$0xf0] }
 0x14e   :  { %3262 = vmatpush.bf16.msrb.mxu0 %v8193_v11  ;;  %3319 = vmatpush.bf16.msrb.mxu3 %v8577_v17  ;;  %v8161_v11 = vor.u32 %v10442_v61, %v8158_v1  ;;  %v8545_v17 = vor.u32 %v10538_v10, %v8542_v32  ;;  %v2143_v33 = vpop.f32.mrf.mxu2  ;;  %v2162_v23 = vpop.f32.mrf.mxu3  ;;  %v8126_v61 = vld [vmem:[#allocation7 + $0x810] sm:$0xf0]  ;;  %v10530_v32 = vld [vmem:[#allocation7 + $0xb04] sm:$0xf] }
 0x14f   :  { %v2144_v28 = vadd.f32 %v2143_v33, %v2125_v34  ;;  %v10466_v34 = vld [vmem:[#allocation7 + $0x904] sm:$0xf]  ;;  %v8254_v10 = vld [vmem:[#allocation7 + $0x910] sm:$0xf0]  ;;  %3215 = vmatmul.bf16.gmra.mxu1 %v11216_v50  ;;  %v8628_v33 = vld [vmem:[#allocation7 + $0xbe8] sm:$0xf]  ;;  %v8513_v27 = vor.u32 %v10530_v32, %v8510_v47  ;;  %v1317_v32 = vadd.f32 %v11345_v3, %v1296_v30 }
 0x150   :  { %3282 = vmatpush.bf16.msrb.mxu1 %v8305_v58  ;;  %v8382_v58 = vld [vmem:[#allocation7 + $0xa10] sm:$0xf0]  ;;  %3234 = vmatmul.bf16.gmra.mxu2 %v11218_v51  ;;  %v8257_v24 = vor.u32 %v10466_v34, %v8254_v10  ;;  %v8612_v10 = vld [vmem:[#allocation7 + $0xbc8] sm:$0xf] }
 0x151   :  { %3301 = vmatpush.bf16.msrb.mxu2 %v8433_v39  ;;  %v2108_v36 = vpop.f32.mrf.mxu0  ;;  %v2163_v1 = vadd.f32 %v2162_v23, %v2144_v28  ;;  %3196 = vmatmul.bf16.gmra.mxu0 %v11214_v44  ;;  %v10561_v23 = vld [vmem:[#allocation7 + $0xbf4] sm:$0xf0] }
 0x152   :  { %3263 = vmatpush.bf16.msrb.mxu0 %v8177_v43  ;;  %3320 = vmatpush.bf16.msrb.mxu3 %v8561_v59  ;;  %v2127_v39 = vpop.f32.mrf.mxu1  ;;  %v10498_v43 = vld [vmem:[#allocation7 + $0xa04] sm:$0xf] }
 0x153   :  { %v2128_v45 = vadd.f32 %v2127_v39, %v2108_v36  ;;  %v10434_v59 = vld [vmem:[#allocation7 + $0x804] sm:$0xf]  ;;  %v11365_v12 = vadd.f32 %v2163_v1, %v1313_v35  ;;  %3253 = vmatmul.bf16.gmra.mxu3 %v11220_v56  ;;  %v8385_v18 = vor.u32 %v10498_v43, %v8382_v58  ;;  %v8484_v1 = vld [vmem:[#allocation7 + $0xac8] sm:$0xf] }
 0x154   :  { %3283 = vmatpush.bf16.msrb.mxu1 %v8289_v6  ;;  %v10465_v6 = vld [vmem:[#allocation7 + $0x8f4] sm:$0xf0]  ;;  %v8129_v19 = vor.u32 %v10434_v59, %v8126_v61  ;;  %v8629_v61 = vor.u32 %v10561_v23, %v8628_v33  ;;  %v8340_v33 = vld [vmem:[#allocation7 + $0x9a8] sm:$0xf] }
 0x155   :  { %3302 = vmatpush.bf16.msrb.mxu2 %v8417_v62  ;;  %v8500_v62 = vld [vmem:[#allocation7 + $0xae8] sm:$0xf]  ;;  %v8245_v39 = vor.u32 %v10465_v6, %v8244_v14  ;;  %v8613_v6 = vor.u32 %v10557_v42, %v8612_v10 }
 0x156   :  { %3264 = vmatpush.bf16.msrb.mxu0 %v8161_v11  ;;  %3321 = vmatpush.bf16.msrb.mxu3 %v8545_v17  ;;  %v10529_v11 = vld [vmem:[#allocation7 + $0xaf4] sm:$0xf0]  ;;  %v8372_v17 = vld [vmem:[#allocation7 + $0x9e8] sm:$0xf]  ;;  %v2146_v28 = vpop.f32.mrf.mxu2  ;;  %v2165_v35 = vpop.f32.mrf.mxu3 }
 0x157   :  { %v8501_v36 = vor.u32 %v10529_v11, %v8500_v62  ;;  %v8373_v59 = vor.u32 %v10497_v20, %v8372_v17  ;;  %v8468_v17 = vld [vmem:[#allocation7 + $0xaa8] sm:$0xf]  ;;  %v10457_v20 = vld [vmem:[#allocation7 + $0x8b4] sm:$0xf0] }
 0x158   :  { %3284 = vmatpush.bf16.msrb.mxu1 %v8273_v2  ;;  %v10461_v2 = vld [vmem:[#allocation7 + $0x8d4] sm:$0xf0]  ;;  %v8324_v10 = vld [vmem:[#allocation7 + $0x988] sm:$0xf] }
 0x159   :  { %3303 = vmatpush.bf16.msrb.mxu2 %v8401_v49  ;;  %v10525_v49 = vld [vmem:[#allocation7 + $0xad4] sm:$0xf0]  ;;  %v2110_v43 = vpop.f32.mrf.mxu0  ;;  %v8229_v62 = vor.u32 %v10461_v2, %v8228_v4  ;;  %v8580_v42 = vld [vmem:[#allocation7 + $0xb88] sm:$0xf] }
 0x15a   :  { %3265 = vmatpush.bf16.msrb.mxu0 %v8145_v55  ;;  %3322 = vmatpush.bf16.msrb.mxu3 %v8529_v52  ;;  %v2147_v55 = vadd.f32 %v2146_v28, %v2128_v45  ;;  %v2129_v58 = vpop.f32.mrf.mxu1  ;;  %v8356_v52 = vld [vmem:[#allocation7 + $0x9c8] sm:$0xf]  ;;  %v8485_v45 = vor.u32 %v10525_v49, %v8484_v1  ;;  %v10553_v28 = vld [vmem:[#allocation7 + $0xbb4] sm:$0xf0] }
 0x15b   :  { %v2130_v34 = vadd.f32 %v2129_v58, %v2110_v43  ;;  %v8357_v14 = vor.u32 %v10493_v7, %v8356_v52  ;;  %v10517_v43 = vld [vmem:[#allocation7 + $0xa94] sm:$0xf0]  ;;  %v1321_v58 = vadd.f32 %v11345_v3, %v11276_v60  ;;  %v8196_v52 = vld [vmem:[#allocation7 + $0x888] sm:$0xf]  ;;  %v1293_v60 = vsel %vm1251_vm0, 0.0, %v1253_v9 }
 0x15c   :  { %v2166_v47 = vadd.f32 %v2165_v35, %v2147_v55  ;;  %3285 = vmatpush.bf16.msrb.mxu1 %v8257_v24  ;;  %v10489_v24 = vld [vmem:[#allocation7 + $0x9b4] sm:$0xf0]  ;;  %v8452_v55 = vld [vmem:[#allocation7 + $0xa88] sm:$0xf] }
 0x15d   :  { %3304 = vmatpush.bf16.msrb.mxu2 %v8385_v18  ;;  %v10521_v18 = vld [vmem:[#allocation7 + $0xab4] sm:$0xf0]  ;;  %v8453_v3 = vor.u32 %v10517_v43, %v8452_v55  ;;  %v8420_v55 = vld [vmem:[#allocation7 + $0xa48] sm:$0xf] }
 0x15e   :  { %3266 = vmatpush.bf16.msrb.mxu0 %v8129_v19  ;;  %3323 = vmatpush.bf16.msrb.mxu3 %v8513_v27  ;;  %v11373_v11 = vadd.f32 %v2166_v47, %v1317_v32  ;;  %v8212_v19 = vld [vmem:[#allocation7 + $0x8a8] sm:$0xf]  ;;  %v2148_v23 = vpop.f32.mrf.mxu2  ;;  %v2167_v30 = vpop.f32.mrf.mxu3  ;;  %v8469_v1 = vor.u32 %v10521_v18, %v8468_v17  ;;  %v10453_v7 = vld [vmem:[#allocation7 + $0x894] sm:$0xf0]  ;;  %v11380_v47 = vperm.slane %v11340_v31, 1 }
 0x15f   :  { %v8596_v27 = vld [vmem:[#allocation7 + $0xba8] sm:$0xf]  ;;  %v2149_v35 = vadd.f32 %v2148_v23, %v2130_v34  ;;  %v8213_v49 = vor.u32 %v10457_v20, %v8212_v19  ;;  %3286 = vmatmul.bf16.vlgmr.msrb.gmra.mxu1 %v11204_v53  ;;  %v10485_v34 = vld [vmem:[#allocation7 + $0x994] sm:$0xf0] }
 0x160   :  { %3354 = vmatpush.bf16.msra.mxu1 %v8373_v59  ;;  %v8597_v2 = vor.u32 %v10553_v28, %v8596_v27  ;;  %v10549_v32 = vld [vmem:[#allocation7 + $0xb94] sm:$0xf0]  ;;  %3305 = vmatmul.bf16.vlgmr.msrb.gmra.mxu2 %v11206_v54  ;;  %v8325_v17 = vor.u32 %v10485_v34, %v8324_v10  ;;  %v8180_v19 = vld [vmem:[#allocation7 + $0x868] sm:$0xf]  ;;  %v1310_v9 = vadd.f32 %v11380_v47, %v1293_v60 }
 0x161   :  { %3373 = vmatpush.bf16.msra.mxu2 %v8501_v36  ;;  %v2179_v4 = vpop.f32.mrf.mxu0  ;;  %v2168_v59 = vadd.f32 %v2167_v30, %v2149_v35  ;;  %3267 = vmatmul.bf16.vlgmr.msrb.gmra.mxu0 %v11202_v48  ;;  %v8581_v18 = vor.u32 %v10549_v32, %v8580_v42  ;;  %v10449_v20 = vld [vmem:[#allocation7 + $0x874] sm:$0xf0]  ;;  %v8564_v27 = vld [vmem:[#allocation7 + $0xb68] sm:$0xf] }
 0x162   :  { %3335 = vmatpush.bf16.msra.mxu0 %v8245_v39  ;;  %3392 = vmatpush.bf16.msra.mxu3 %v8629_v61  ;;  %v2198_v36 = vpop.f32.mrf.mxu1  ;;  %v8341_v61 = vor.u32 %v10489_v24, %v8340_v33  ;;  %v8308_v33 = vld [vmem:[#allocation7 + $0x968] sm:$0xf]  ;;  %v10481_v24 = vld [vmem:[#allocation7 + $0x974] sm:$0xf0] }
 0x163   :  { %v2199_v39 = vadd.f32 %v2198_v36, %v2179_v4  ;;  %3324 = vmatmul.bf16.vlgmr.msrb.gmra.mxu3 %v11208_v57  ;;  %v10509_v43 = vld [vmem:[#allocation7 + $0xa54] sm:$0xf0]  ;;  %v8548_v34 = vld [vmem:[#allocation7 + $0xb48] sm:$0xf] }
 0x164   :  { %3355 = vmatpush.bf16.msra.mxu1 %v8357_v14  ;;  %v8436_v14 = vld [vmem:[#allocation7 + $0xa68] sm:$0xf]  ;;  %v10477_v10 = vld [vmem:[#allocation7 + $0x954] sm:$0xf0]  ;;  %v8421_v32 = vor.u32 %v10509_v43, %v8420_v55 }
 0x165   :  { %3374 = vmatpush.bf16.msra.mxu2 %v8485_v45  ;;  %v11382_v45 = vadd.f32 %v2168_v59, %v1321_v58  ;;  %v8309_v59 = vor.u32 %v10481_v24, %v8308_v33  ;;  %v10537_v24 = vld [vmem:[#allocation7 + $0xb34] sm:$0xf0]  ;;  %v8132_v43 = vld [vmem:[#allocation7 + $0x808] sm:$0xf] }
 0x166   :  { %3336 = vmatpush.bf16.msra.mxu0 %v8229_v62  ;;  %3393 = vmatpush.bf16.msra.mxu3 %v8613_v6  ;;  %v8197_v62 = vor.u32 %v10453_v7, %v8196_v52  ;;  %v10513_v6 = vld [vmem:[#allocation7 + $0xa74] sm:$0xf0]  ;;  %v2217_v23 = vpop.f32.mrf.mxu2  ;;  %v2236_v30 = vpop.f32.mrf.mxu3  ;;  %v8292_v7 = vld [vmem:[#allocation7 + $0x948] sm:$0xf] }
 0x167   :  { %v2218_v28 = vadd.f32 %v2217_v23, %v2199_v39  ;;  %v10445_v52 = vld [vmem:[#allocation7 + $0x854] sm:$0xf0] }
 0x168   :  { %3356 = vmatpush.bf16.msra.mxu1 %v8341_v61  ;;  %v8565_v61 = vor.u32 %v10545_v16, %v8564_v27  ;;  %v10541_v39 = vld [vmem:[#allocation7 + $0xb54] sm:$0xf0]  ;;  %v1314_v16 = vadd.f32 %v11380_v47, %v11288_v21 }
 0x169   :  { %3375 = vmatpush.bf16.msra.mxu2 %v8469_v1  ;;  %v2181_v35 = vpop.f32.mrf.mxu0  ;;  %v8437_v1 = vor.u32 %v10513_v6, %v8436_v14  ;;  %v2237_v58 = vadd.f32 %v2236_v30, %v2218_v28  ;;  %v8293_v14 = vor.u32 %v10477_v10, %v8292_v7  ;;  %v8549_v6 = vor.u32 %v10541_v39, %v8548_v34  ;;  %v10473_v23 = vld [vmem:[#allocation7 + $0x934] sm:$0xf0]  ;;  %v8532_v30 = vld [vmem:[#allocation7 + $0xb28] sm:$0xf]  ;;  %v10527_v10 = vld [vmem:[#allocation7 + $0xaec] sm:$0xf] }
 0x16a   :  { %3337 = vmatpush.bf16.msra.mxu0 %v8213_v49  ;;  %3394 = vmatpush.bf16.msra.mxu3 %v8597_v2  ;;  %v2200_v4 = vpop.f32.mrf.mxu1  ;;  %v8181_v49 = vor.u32 %v10449_v20, %v8180_v19  ;;  %v8164_v2 = vld [vmem:[#allocation7 + $0x848] sm:$0xf]  ;;  %v10501_v55 = vld [vmem:[#allocation7 + $0xa14] sm:$0xf0]  ;;  %v8502_v34 = vld [vmem:[#allocation7 + $0xaf8] sm:$0xf0] }
 0x16b   :  { %v2201_v36 = vadd.f32 %v2200_v4, %v2181_v35  ;;  %v11390_v42 = vadd.f32 %v2237_v58, %v1310_v9  ;;  %v8165_v60 = vor.u32 %v10445_v52, %v8164_v2  ;;  %v8276_v19 = vld [vmem:[#allocation7 + $0x928] sm:$0xf]  ;;  %v10437_v58 = vld [vmem:[#allocation7 + $0x814] sm:$0xf0]  ;;  %v8533_v2 = vor.u32 %v10537_v24, %v8532_v30 }
 0x16c   :  { %3357 = vmatpush.bf16.msra.mxu1 %v8325_v17  ;;  %v8148_v17 = vld [vmem:[#allocation7 + $0x828] sm:$0xf]  ;;  %v10469_v52 = vld [vmem:[#allocation7 + $0x914] sm:$0xf0]  ;;  %v8505_v24 = vor.u32 %v10527_v10, %v8502_v34 }
 0x16d   :  { %3376 = vmatpush.bf16.msra.mxu2 %v8453_v3  ;;  %v8404_v3 = vld [vmem:[#allocation7 + $0xa28] sm:$0xf]  ;;  %v10533_v21 = vld [vmem:[#allocation7 + $0xb14] sm:$0xf0] }
 0x16e   :  { %3338 = vmatpush.bf16.msra.mxu0 %v8197_v62  ;;  %3395 = vmatpush.bf16.msra.mxu3 %v8581_v18  ;;  %v10505_v62 = vld [vmem:[#allocation7 + $0xa34] sm:$0xf0]  ;;  %v2219_v20 = vpop.f32.mrf.mxu2  ;;  %v2238_v33 = vpop.f32.mrf.mxu3  ;;  %v8388_v35 = vld [vmem:[#allocation7 + $0xa08] sm:$0xf] }
 0x16f   :  { %v10441_v18 = vld [vmem:[#allocation7 + $0x834] sm:$0xf0]  ;;  %v2220_v27 = vadd.f32 %v2219_v20, %v2201_v36  ;;  %v8260_v36 = vld [vmem:[#allocation7 + $0x908] sm:$0xf]  ;;  %3291 = vmatmul.bf16.gmra.mxu1 %v11216_v50 }
 0x170   :  { %3358 = vmatpush.bf16.msra.mxu1 %v8309_v59  ;;  %v8516_v7 = vld [vmem:[#allocation7 + $0xb08] sm:$0xf]  ;;  %3310 = vmatmul.bf16.gmra.mxu2 %v11218_v51 }
 0x171   :  { %3377 = vmatpush.bf16.msra.mxu2 %v8437_v1  ;;  %v2184_v9 = vpop.f32.mrf.mxu0  ;;  %v8405_v1 = vor.u32 %v10505_v62, %v8404_v3  ;;  %v2239_v59 = vadd.f32 %v2238_v33, %v2220_v27  ;;  %3272 = vmatmul.bf16.gmra.mxu0 %v11214_v44  ;;  %v10495_v3 = vld [vmem:[#allocation7 + $0x9ec] sm:$0xf]  ;;  %v8389_v62 = vor.u32 %v10501_v55, %v8388_v35  ;;  %v1297_v33 = vsel %vm1251_vm0, 0.0, %v1265_v25  ;;  %v8614_v25 = vld [vmem:[#allocation7 + $0xbd8] sm:$0xf0] }
 0x172   :  { %3339 = vmatpush.bf16.msra.mxu0 %v8181_v49  ;;  %3396 = vmatpush.bf16.msra.mxu3 %v8565_v61  ;;  %v2203_v28 = vpop.f32.mrf.mxu1  ;;  %v8149_v49 = vor.u32 %v10441_v18, %v8148_v17  ;;  %v8277_v61 = vor.u32 %v10473_v23, %v8276_v19  ;;  %v10559_v17 = vld [vmem:[#allocation7 + $0xbec] sm:$0xf]  ;;  %v8630_v18 = vld [vmem:[#allocation7 + $0xbf8] sm:$0xf0]  ;;  %v8261_v19 = vor.u32 %v10469_v52, %v8260_v36 }
 0x173   :  { %v2204_v4 = vadd.f32 %v2203_v28, %v2184_v9  ;;  %v11396_v39 = vadd.f32 %v2239_v59, %v1314_v16  ;;  %3329 = vmatmul.bf16.gmra.mxu3 %v11220_v56  ;;  %v8517_v20 = vor.u32 %v10533_v21, %v8516_v7  ;;  %v10523_v16 = vld [vmem:[#allocation7 + $0xacc] sm:$0xf]  ;;  %v8486_v9 = vld [vmem:[#allocation7 + $0xad8] sm:$0xf0]  ;;  %v8633_v55 = vor.u32 %v10559_v17, %v8630_v18 }
 0x174   :  { %3359 = vmatpush.bf16.msra.mxu1 %v8293_v14  ;;  %v8133_v14 = vor.u32 %v10437_v58, %v8132_v43  ;;  %v10459_v43 = vld [vmem:[#allocation7 + $0x8cc] sm:$0xf]  ;;  %v8230_v58 = vld [vmem:[#allocation7 + $0x8d8] sm:$0xf0]  ;;  %v1318_v36 = vadd.f32 %v11380_v47, %v1297_v33 }
 0x175   :  { %3378 = vmatpush.bf16.msra.mxu2 %v8421_v32  ;;  %v10463_v32 = vld [vmem:[#allocation7 + $0x8ec] sm:$0xf]  ;;  %v8233_v7 = vor.u32 %v10459_v43, %v8230_v58  ;;  %v8342_v18 = vld [vmem:[#allocation7 + $0x9b8] sm:$0xf0] }
 0x176   :  { %3340 = vmatpush.bf16.msra.mxu0 %v8165_v60  ;;  %3397 = vmatpush.bf16.msra.mxu3 %v8549_v6  ;;  %v8246_v60 = vld [vmem:[#allocation7 + $0x8f8] sm:$0xf0]  ;;  %v2222_v23 = vpop.f32.mrf.mxu2  ;;  %v2241_v30 = vpop.f32.mrf.mxu3  ;;  %v10491_v59 = vld [vmem:[#allocation7 + $0x9cc] sm:$0xf] }
 0x177   :  { %v8374_v6 = vld [vmem:[#allocation7 + $0x9f8] sm:$0xf0]  ;;  %v8249_v27 = vor.u32 %v10463_v32, %v8246_v60  ;;  %v2223_v28 = vadd.f32 %v2222_v23, %v2204_v4  ;;  %v8489_v4 = vor.u32 %v10523_v16, %v8486_v9  ;;  %v8361_v10 = vor.u32 %v10491_v59, %v8358_v41  ;;  %v10519_v32 = vld [vmem:[#allocation7 + $0xaac] sm:$0xf] }
 0x178   :  { %3360 = vmatpush.bf16.msra.mxu1 %v8277_v61  ;;  %v8470_v60 = vld [vmem:[#allocation7 + $0xab8] sm:$0xf0]  ;;  %v10515_v9 = vld [vmem:[#allocation7 + $0xa8c] sm:$0xf] }
 0x179   :  { %3379 = vmatpush.bf16.msra.mxu2 %v8405_v1  ;;  %v2186_v35 = vpop.f32.mrf.mxu0  ;;  %v2242_v52 = vadd.f32 %v2241_v30, %v2223_v28  ;;  %v8454_v28 = vld [vmem:[#allocation7 + $0xa98] sm:$0xf0]  ;;  %v10451_v43 = vld [vmem:[#allocation7 + $0x88c] sm:$0xf] }
 0x17a   :  { %3341 = vmatpush.bf16.msra.mxu0 %v8149_v49  ;;  %3398 = vmatpush.bf16.msra.mxu3 %v8533_v2  ;;  %v2205_v1 = vpop.f32.mrf.mxu1  ;;  %v8377_v49 = vor.u32 %v10495_v3, %v8374_v6  ;;  %v10555_v2 = vld [vmem:[#allocation7 + $0xbcc] sm:$0xf]  ;;  %v8198_v58 = vld [vmem:[#allocation7 + $0x898] sm:$0xf0] }
 0x17b   :  { %v2206_v61 = vadd.f32 %v2205_v1, %v2186_v35  ;;  %v11404_v21 = vadd.f32 %v2242_v52, %v1318_v36  ;;  %v8617_v34 = vor.u32 %v10555_v2, %v8614_v25  ;;  %v10455_v3 = vld [vmem:[#allocation7 + $0x8ac] sm:$0xf]  ;;  %v1322_v35 = vadd.f32 %v11380_v47, %v11300_v37  ;;  %v8582_v2 = vld [vmem:[#allocation7 + $0xb98] sm:$0xf0] }
 0x17c   :  { %3361 = vmatpush.bf16.msra.mxu1 %v8261_v19  ;;  %v10551_v19 = vld [vmem:[#allocation7 + $0xbac] sm:$0xf]  ;;  %v1294_v37 = vsel %vm1251_vm0, 0.0, %v1254_v63  ;;  %v11418_v47 = vperm.slane %v11340_v31, 2  ;;  %v8457_v36 = vor.u32 %v10515_v9, %v8454_v28  ;;  %v8201_v52 = vor.u32 %v10451_v43, %v8198_v58  ;;  %v8550_v43 = vld [vmem:[#allocation7 + $0xb58] sm:$0xf0] }
 0x17d   :  { %3380 = vmatpush.bf16.msra.mxu2 %v8389_v62  ;;  %v8214_v62 = vld [vmem:[#allocation7 + $0x8b8] sm:$0xf0]  ;;  %v10483_v59 = vld [vmem:[#allocation7 + $0x98c] sm:$0xf] }
 0x17e   :  { %3342 = vmatpush.bf16.msra.mxu0 %v8133_v14  ;;  %3399 = vmatpush.bf16.msra.mxu3 %v8517_v20  ;;  %v10487_v14 = vld [vmem:[#allocation7 + $0x9ac] sm:$0xf]  ;;  %v2224_v6 = vpop.f32.mrf.mxu2  ;;  %v2243_v17 = vpop.f32.mrf.mxu3  ;;  %v8598_v20 = vld [vmem:[#allocation7 + $0xbb8] sm:$0xf0]  ;;  %v8217_v16 = vor.u32 %v10455_v3, %v8214_v62 }
 0x17f   :  { %v2225_v33 = vadd.f32 %v2224_v6, %v2206_v61  ;;  %3362 = vmatmul.bf16.vlgmr.msra.gmra.mxu1 %v11204_v53  ;;  %v8326_v61 = vld [vmem:[#allocation7 + $0x998] sm:$0xf0]  ;;  %v10547_v41 = vld [vmem:[#allocation7 + $0xb8c] sm:$0xf] }
 0x180   :  { %3430 = vmatpush.bf16.msrb.mxu1 %v8377_v49  ;;  %v8345_v49 = vor.u32 %v10487_v14, %v8342_v18  ;;  %3381 = vmatmul.bf16.vlgmr.msra.gmra.mxu2 %v11206_v54  ;;  %v10479_v3 = vld [vmem:[#allocation7 + $0x96c] sm:$0xf]  ;;  %v8310_v14 = vld [vmem:[#allocation7 + $0x978] sm:$0xf0] }
 0x181   :  { %3449 = vmatpush.bf16.msrb.mxu2 %v8505_v24  ;;  %v2255_v23 = vpop.f32.mrf.mxu0  ;;  %v2244_v1 = vadd.f32 %v2243_v17, %v2225_v33  ;;  %3343 = vmatmul.bf16.vlgmr.msra.gmra.mxu0 %v11202_v48  ;;  %v10543_v63 = vld [vmem:[#allocation7 + $0xb6c] sm:$0xf]  ;;  %v8566_v6 = vld [vmem:[#allocation7 + $0xb78] sm:$0xf0]  ;;  %v8313_v9 = vor.u32 %v10479_v3, %v8310_v14 }
 0x182   :  { %3411 = vmatpush.bf16.msrb.mxu0 %v8249_v27  ;;  %3468 = vmatpush.bf16.msrb.mxu3 %v8633_v55  ;;  %v2274_v30 = vpop.f32.mrf.mxu1  ;;  %v8473_v27 = vor.u32 %v10519_v32, %v8470_v60  ;;  %v8601_v55 = vor.u32 %v10551_v19, %v8598_v20  ;;  %v10447_v32 = vld [vmem:[#allocation7 + $0x86c] sm:$0xf]  ;;  %v8182_v60 = vld [vmem:[#allocation7 + $0x878] sm:$0xf0]  ;;  %v1311_v20 = vadd.f32 %v11418_v47, %v1294_v37 }
 0x183   :  { %v2275_v24 = vadd.f32 %v2274_v30, %v2255_v23  ;;  %v11410_v25 = vadd.f32 %v2244_v1, %v1322_v35  ;;  %3400 = vmatmul.bf16.vlgmr.msra.gmra.mxu3 %v11208_v57  ;;  %v8185_v23 = vor.u32 %v10447_v32, %v8182_v60  ;;  %v10507_v30 = vld [vmem:[#allocation7 + $0xa4c] sm:$0xf]  ;;  %v8569_v28 = vor.u32 %v10543_v63, %v8566_v6  ;;  %v8166_v1 = vld [vmem:[#allocation7 + $0x858] sm:$0xf0] }
 0x184   :  { %3431 = vmatpush.bf16.msrb.mxu1 %v8361_v10  ;;  %v8329_v10 = vor.u32 %v10483_v59, %v8326_v61  ;;  %v10443_v35 = vld [vmem:[#allocation7 + $0x84c] sm:$0xf]  ;;  %v8278_v32 = vld [vmem:[#allocation7 + $0x938] sm:$0xf0] }
 0x185   :  { %3450 = vmatpush.bf16.msrb.mxu2 %v8489_v4  ;;  %v10511_v4 = vld [vmem:[#allocation7 + $0xa6c] sm:$0xf]  ;;  %v8169_v61 = vor.u32 %v10443_v35, %v8166_v1  ;;  %v8534_v3 = vld [vmem:[#allocation7 + $0xb38] sm:$0xf0] }
 0x186   :  { %3412 = vmatpush.bf16.msrb.mxu0 %v8233_v7  ;;  %3469 = vmatpush.bf16.msrb.mxu3 %v8617_v34  ;;  %v8438_v7 = vld [vmem:[#allocation7 + $0xa78] sm:$0xf0]  ;;  %v8585_v34 = vor.u32 %v10547_v41, %v8582_v2  ;;  %v2293_v62 = vpop.f32.mrf.mxu2  ;;  %v2312_v0 = vpop.f32.mrf.mxu3  ;;  %v10503_v41 = vld [vmem:[#allocation7 + $0xa2c] sm:$0xf] }
 0x187   :  { %v2294_v17 = vadd.f32 %v2293_v62, %v2275_v24  ;;  %v8441_v33 = vor.u32 %v10511_v4, %v8438_v7  ;;  %v10475_v24 = vld [vmem:[#allocation7 + $0x94c] sm:$0xf]  ;;  %v8406_v2 = vld [vmem:[#allocation7 + $0xa38] sm:$0xf0] }
 0x188   :  { %3432 = vmatpush.bf16.msrb.mxu1 %v8345_v49  ;;  %v8294_v49 = vld [vmem:[#allocation7 + $0x958] sm:$0xf0]  ;;  %v10471_v7 = vld [vmem:[#allocation7 + $0x92c] sm:$0xf]  ;;  %v8409_v63 = vor.u32 %v10503_v41, %v8406_v2 }
 0x189   :  { %3451 = vmatpush.bf16.msrb.mxu2 %v8473_v27  ;;  %v11420_v18 = vpop.f32.mrf.mxu0  ;;  %v8422_v27 = vld [vmem:[#allocation7 + $0xa58] sm:$0xf0]  ;;  %v8297_v37 = vor.u32 %v10475_v24, %v8294_v49  ;;  %v10535_v60 = vld [vmem:[#allocation7 + $0xb2c] sm:$0xf] }
 0x18a   :  { %3413 = vmatpush.bf16.msrb.mxu0 %v8217_v16  ;;  %3470 = vmatpush.bf16.msrb.mxu3 %v8601_v55  ;;  %v11422_v19 = vpop.f32.mrf.mxu1  ;;  %v2313_v16 = vadd.f32 %v2312_v0, %v2294_v17  ;;  %v10539_v55 = vld [vmem:[#allocation7 + $0xb4c] sm:$0xf]  ;;  %v8425_v59 = vor.u32 %v10507_v30, %v8422_v27  ;;  %v8150_v4 = vld [vmem:[#allocation7 + $0x838] sm:$0xf0] }
 0x18b   :  { %v10499_v17 = vld [vmem:[#allocation7 + $0xa0c] sm:$0xf]  ;;  %v8134_v27 = vld [vmem:[#allocation7 + $0x818] sm:$0xf0] }
 0x18c   :  { %3433 = vmatpush.bf16.msrb.mxu1 %v8329_v10  ;;  %v11425_v58 = vadd.f32 %v2313_v16, %v1311_v20  ;;  %v8390_v20 = vld [vmem:[#allocation7 + $0xa18] sm:$0xf0]  ;;  %v10435_v30 = vld [vmem:[#allocation7 + $0x80c] sm:$0xf] }
 0x18d   :  { %3452 = vmatpush.bf16.msrb.mxu2 %v8457_v36  ;;  %v8553_v36 = vor.u32 %v10539_v55, %v8550_v43  ;;  %v10467_v16 = vld [vmem:[#allocation7 + $0x90c] sm:$0xf]  ;;  %v8518_v35 = vld [vmem:[#allocation7 + $0xb18] sm:$0xf0]  ;;  %v8393_v1 = vor.u32 %v10499_v17, %v8390_v20  ;;  %v8137_v24 = vor.u32 %v10435_v30, %v8134_v27  ;;  %v1298_v43 = vsel %vm1251_vm0, 0.0, %v1266_v26 }
 0x18e   :  { %3414 = vmatpush.bf16.msrb.mxu0 %v8201_v52  ;;  %3471 = vmatpush.bf16.msrb.mxu3 %v8585_v34  ;;  %v10439_v52 = vld [vmem:[#allocation7 + $0x82c] sm:$0xf]  ;;  %v11427_v10 = vpop.f32.mrf.mxu2  ;;  %v11429_v34 = vpop.f32.mrf.mxu3  ;;  %v8716_v17 = vld [vmem:[#allocation10 + $0xa0] sm:$0xf]  ;;  %v10584_v20 = vld [vmem:[#allocation10 + $0xac] sm:$0xf0] }
 0x18f   :  { %v8153_v6 = vor.u32 %v10439_v52, %v8150_v4  ;;  %3367 = vmatmul.bf16.gmra.mxu1 %v11216_v50  ;;  %v8748_v4 = vld [vmem:[#allocation10 + $0xe0] sm:$0xf]  ;;  %v1295_v30 = vsel %vm1251_vm0, 0.0, %v1255_v15 }
 0x190   :  { %3434 = vmatpush.bf16.msrb.mxu1 %v8313_v9  ;;  %v8262_v9 = vld [vmem:[#allocation7 + $0x918] sm:$0xf0]  ;;  %3386 = vmatmul.bf16.gmra.mxu2 %v11218_v51 }
 0x191   :  { %3453 = vmatpush.bf16.msrb.mxu2 %v8441_v33  ;;  %v2260_v62 = vpop.f32.mrf.mxu0  ;;  %v8281_v33 = vor.u32 %v10471_v7, %v8278_v32  ;;  %3348 = vmatmul.bf16.gmra.mxu0 %v11214_v44  ;;  %v8265_v49 = vor.u32 %v10467_v16, %v8262_v9  ;;  %v10592_v7 = vld [vmem:[#allocation10 + $0xec] sm:$0xf0] }
 0x192   :  { %3415 = vmatpush.bf16.msrb.mxu0 %v8185_v23  ;;  %3472 = vmatpush.bf16.msrb.mxu3 %v8569_v28  ;;  %v2279_v0 = vpop.f32.mrf.mxu1  ;;  %v8537_v23 = vor.u32 %v10535_v60, %v8534_v3  ;;  %v10531_v28 = vld [vmem:[#allocation7 + $0xb0c] sm:$0xf]  ;;  %v8749_v38 = vor.u32 %v10592_v7, %v8748_v4  ;;  %v8732_v3 = vld [vmem:[#allocation10 + $0xc0] sm:$0xf]  ;;  %v10580_v9 = vld [vmem:[#allocation10 + $0x8c] sm:$0xf0] }
 0x193   :  { %v2280_v14 = vadd.f32 %v2279_v0, %v2260_v62  ;;  %3405 = vmatmul.bf16.gmra.mxu3 %v11220_v56  ;;  %v8521_v55 = vor.u32 %v10531_v28, %v8518_v35  ;;  %v10588_v62 = vld [vmem:[#allocation10 + $0xcc] sm:$0xf0]  ;;  %v8652_v4 = vld [vmem:[#allocation10 + $0x20] sm:$0xf] }
 0x194   :  { %3435 = vmatpush.bf16.msrb.mxu1 %v8297_v37  ;;  %v10568_v7 = vld [vmem:[#allocation10 + $0x2c] sm:$0xf0] }
 0x195   :  { %3454 = vmatpush.bf16.msrb.mxu2 %v8425_v59 }
 0x196   :  { %3416 = vmatpush.bf16.msrb.mxu0 %v8169_v61  ;;  %3473 = vmatpush.bf16.msrb.mxu3 %v8553_v36  ;;  %v2298_v59 = vpop.f32.mrf.mxu2  ;;  %v2317_v61 = vpop.f32.mrf.mxu3  ;;  %v1319_v36 = vadd.f32 %v11418_v47, %v1298_v43  ;;  %v8668_v43 = vld [vmem:[#allocation10 + $0x40] sm:$0xf] }
 0x197   :  { %v2299_v41 = vadd.f32 %v2298_v59, %v2280_v14  ;;  %v10572_v59 = vld [vmem:[#allocation10 + $0x4c] sm:$0xf0] }
 0x198   :  { %3436 = vmatpush.bf16.msrb.mxu1 %v8281_v33  ;;  %v8717_v33 = vor.u32 %v10584_v20, %v8716_v17 }
 0x199   :  { %3455 = vmatpush.bf16.msrb.mxu2 %v8409_v63  ;;  %v11438_v2 = vpop.f32.mrf.mxu0  ;;  %v2318_v52 = vadd.f32 %v2317_v61, %v2299_v41  ;;  %v8733_v63 = vor.u32 %v10588_v62, %v8732_v3  ;;  %v12084_v3 = vrot.slane %v11338_v8, 7 }
 0x19a   :  { %3417 = vmatpush.bf16.msrb.mxu0 %v8153_v6  ;;  %3474 = vmatpush.bf16.msrb.mxu3 %v8537_v23  ;;  %v11440_v37 = vpop.f32.mrf.mxu1  ;;  %v11454_v23 = vperm.slane %v11340_v31, 3  ;;  %v8684_v31 = vld [vmem:[#allocation10 + $0x60] sm:$0xf] }
 0x19b   :  { %v11443_v32 = vadd.f32 %v2318_v52, %v1319_v36  ;;  %v8669_v36 = vor.u32 %v10572_v59, %v8668_v43  ;;  %v1299_v62 = vsel %vm1251_vm0, 0.0, %v12084_v3  ;;  %v8734_v59 = vld [vmem:[#allocation10 + $0xd0] sm:$0xf0] }
 0x19c   :  { %3437 = vmatpush.bf16.msrb.mxu1 %v8265_v49 }
 0x19d   :  { %3456 = vmatpush.bf16.msrb.mxu2 %v8393_v1 }
 0x19e   :  { %3418 = vmatpush.bf16.msrb.mxu0 %v8137_v24  ;;  %3475 = vmatpush.bf16.msrb.mxu3 %v8521_v55  ;;  %v11445_v26 = vpop.f32.mrf.mxu2  ;;  %v11447_v60 = vpop.f32.mrf.mxu3  ;;  %v10576_v24 = vld [vmem:[#allocation10 + $0x6c] sm:$0xf0] }
 0x19f   :  { %3438 = vmatmul.bf16.vlgmr.msrb.gmra.mxu1 %v11204_v53  ;;  %v8685_v5 = vor.u32 %v10576_v24, %v8684_v31  ;;  %v10586_v31 = vld [vmem:[#allocation10 + $0xc4] sm:$0xf] }
 0x1a0   :  { %3457 = vmatmul.bf16.vlgmr.msrb.gmra.mxu2 %v11206_v54 }
 0x1a1   :  { %v2331_v0 = vpop.f32.mrf.mxu0  ;;  %3419 = vmatmul.bf16.vlgmr.msrb.gmra.mxu0 %v11202_v48  ;;  %v8700_v48 = vld [vmem:[#allocation10 + $0x80] sm:$0xf] }
 0x1a2   :  { %4360 = vmatpush.bf16.msra.mxu0 %v8749_v38  ;;  %v2350_v14 = vpop.f32.mrf.mxu1  ;;  %v8701_v54 = vor.u32 %v10580_v9, %v8700_v48  ;;  %v8653_v38 = vor.u32 %v10568_v7, %v8652_v4  ;;  %v8750_v48 = vld [vmem:[#allocation10 + $0xf0] sm:$0xf0] }
 0x1a3   :  { %v2351_v6 = vadd.f32 %v2350_v14, %v2331_v0  ;;  %3476 = vmatmul.bf16.vlgmr.msrb.gmra.mxu3 %v11208_v57  ;;  %v1312_v57 = vadd.f32 %v11454_v23, %v1295_v30  ;;  %v10624_v30 = vld [vmem:[#allocation10 + $0x1ec] sm:$0xf0]  ;;  %v8718_v7 = vld [vmem:[#allocation10 + $0xb0] sm:$0xf0] }
 0x1a6   :  { %4361 = vmatpush.bf16.msra.mxu0 %v8733_v63  ;;  %v2369_v27 = vpop.f32.mrf.mxu2  ;;  %v2388_v16 = vpop.f32.mrf.mxu3  ;;  %v8636_v63 = vld [vmem:[#allocation10] sm:$0xf] }
 0x1a7   :  { %v2370_v53 = vadd.f32 %v2369_v27, %v2351_v6  ;;  %v10564_v6 = vld [vmem:[#allocation10 + $0xc] sm:$0xf0]  ;;  %v10590_v27 = vld [vmem:[#allocation10 + $0xe4] sm:$0xf] }
 0x1a8   :  { %v8637_v20 = vor.u32 %v10564_v6, %v8636_v63  ;;  %v8753_v9 = vor.u32 %v10590_v27, %v8750_v48  ;;  %v10578_v63 = vld [vmem:[#allocation10 + $0x84] sm:$0xf]  ;;  %v10608_v27 = vld [vmem:[#allocation10 + $0x16c] sm:$0xf0] }
 0x1a9   :  { %v11459_v28 = vpop.f32.mrf.mxu0  ;;  %v2389_v1 = vadd.f32 %v2388_v16, %v2370_v53 }
 0x1aa   :  { %4362 = vmatpush.bf16.msra.mxu0 %v8717_v33  ;;  %v11461_v35 = vpop.f32.mrf.mxu1 }
 0x1ab   :  { %v11464_v49 = vadd.f32 %v2389_v1, %v1312_v57  ;;  %v8860_v57 = vld [vmem:[#allocation10 + $0x1c0] sm:$0xf]  ;;  %v10620_v1 = vld [vmem:[#allocation10 + $0x1cc] sm:$0xf0] }
 0x1ac   :  { %v8861_v43 = vor.u32 %v10620_v1, %v8860_v57  ;;  %v8686_v57 = vld [vmem:[#allocation10 + $0x70] sm:$0xf0] }
 0x1ae   :  { %4363 = vmatpush.bf16.msra.mxu0 %v8701_v54  ;;  %v11466_v15 = vpop.f32.mrf.mxu2  ;;  %v11468_v55 = vpop.f32.mrf.mxu3 }
 0x1af   :  { %3443 = vmatmul.bf16.gmra.mxu1 %v11216_v50 }
 0x1b0   :  { %3462 = vmatmul.bf16.gmra.mxu2 %v11218_v51  ;;  %v1320_v51 = vadd.f32 %v11454_v23, %v1299_v62 }
 0x1b1   :  { %v2336_v61 = vpop.f32.mrf.mxu0  ;;  %3424 = vmatmul.bf16.gmra.mxu0 %v11214_v44 }
 0x1b2   :  { %4364 = vmatpush.bf16.msra.mxu0 %v8685_v5  ;;  %v2355_v41 = vpop.f32.mrf.mxu1 }
 0x1b3   :  { %v2356_v52 = vadd.f32 %v2355_v41, %v2336_v61  ;;  %3481 = vmatmul.bf16.gmra.mxu3 %v11220_v56  ;;  %v8876_v56 = vld [vmem:[#allocation10 + $0x1e0] sm:$0xf]  ;;  %v8737_v61 = vor.u32 %v10586_v31, %v8734_v59 }
 0x1b4   :  { %v8877_v16 = vor.u32 %v10624_v30, %v8876_v56  ;;  %v8844_v41 = vld [vmem:[#allocation10 + $0x1a0] sm:$0xf] }
 0x1b5   :  { %v8812_v30 = vld [vmem:[#allocation10 + $0x160] sm:$0xf] }
 0x1b6   :  { %4365 = vmatpush.bf16.msra.mxu0 %v8669_v36  ;;  %v2374_v0 = vpop.f32.mrf.mxu2  ;;  %v2393_v14 = vpop.f32.mrf.mxu3  ;;  %4379 = vmatpush.bf16.msra.mxu1 %v8877_v16  ;;  %v10616_v36 = vld [vmem:[#allocation10 + $0x1ac] sm:$0xf0]  ;;  %v10574_v16 = vld [vmem:[#allocation10 + $0x64] sm:$0xf] }
 0x1b7   :  { %v2375_v17 = vadd.f32 %v2374_v0, %v2356_v52  ;;  %v10582_v52 = vld [vmem:[#allocation10 + $0xa4] sm:$0xf]  ;;  %v8845_v4 = vor.u32 %v10616_v36, %v8844_v41  ;;  %v8828_v0 = vld [vmem:[#allocation10 + $0x180] sm:$0xf]  ;;  %v8689_v1 = vor.u32 %v10574_v16, %v8686_v57 }
 0x1b8   :  { %v8764_v57 = vld [vmem:[#allocation10 + $0x100] sm:$0xf] }
 0x1b9   :  { %v11477_v44 = vpop.f32.mrf.mxu0  ;;  %v2394_v33 = vadd.f32 %v2393_v14, %v2375_v17  ;;  %v10612_v14 = vld [vmem:[#allocation10 + $0x18c] sm:$0xf0] }
 0x1ba   :  { %4366 = vmatpush.bf16.msra.mxu0 %v8653_v38  ;;  %v11479_v50 = vpop.f32.mrf.mxu1  ;;  %4380 = vmatpush.bf16.msra.mxu1 %v8861_v43  ;;  %v8721_v38 = vor.u32 %v10582_v52, %v8718_v7 }
 0x1bb   :  { %v11482_v8 = vadd.f32 %v2394_v33, %v1320_v51  ;;  %v8829_v51 = vor.u32 %v10612_v14, %v8828_v0  ;;  %v8702_v33 = vld [vmem:[#allocation10 + $0x90] sm:$0xf0] }
 0x1bc   :  { %v8705_v56 = vor.u32 %v10578_v63, %v8702_v33  ;;  %v10600_v63 = vld [vmem:[#allocation10 + $0x12c] sm:$0xf0]  ;;  %v8654_v33 = vld [vmem:[#allocation10 + $0x30] sm:$0xf0] }
 0x1be   :  { %4367 = vmatpush.bf16.msra.mxu0 %v8637_v20  ;;  %v11484_v53 = vpop.f32.mrf.mxu2  ;;  %v11486_v54 = vpop.f32.mrf.mxu3  ;;  %4381 = vmatpush.bf16.msra.mxu1 %v8845_v4 }
 0x1c1   :  { %v3192_v24 = vpop.f32.mrf.mxu0 }
 0x1c2   :  { %4436 = vmatpush.bf16.msrb.mxu0 %v8753_v9  ;;  %v3211_v5 = vpop.f32.mrf.mxu1  ;;  %4382 = vmatpush.bf16.msra.mxu1 %v8829_v51  ;;  %v8813_v9 = vor.u32 %v10608_v27, %v8812_v30 }
 0x1c3   :  { %v3212_v6 = vadd.f32 %v3211_v5, %v3192_v24  ;;  %v8796_v24 = vld [vmem:[#allocation10 + $0x140] sm:$0xf]  ;;  %v10604_v5 = vld [vmem:[#allocation10 + $0x14c] sm:$0xf0] }
 0x1c4   :  { %v8797_v7 = vor.u32 %v10604_v5, %v8796_v24 }
 0x1c6   :  { %4437 = vmatpush.bf16.msrb.mxu0 %v8737_v61  ;;  %v3230_v3 = vpop.f32.mrf.mxu2  ;;  %v3249_v62 = vpop.f32.mrf.mxu3  ;;  %4383 = vmatpush.bf16.msra.mxu1 %v8813_v9  ;;  %v10570_v61 = vld [vmem:[#allocation10 + $0x44] sm:$0xf] }
 0x1c7   :  { %v3231_v48 = vadd.f32 %v3230_v3, %v3212_v6  ;;  %v8780_v3 = vld [vmem:[#allocation10 + $0x120] sm:$0xf]  ;;  %v10566_v6 = vld [vmem:[#allocation10 + $0x24] sm:$0xf] }
 0x1c8   :  { %v8781_v51 = vor.u32 %v10600_v63, %v8780_v3  ;;  %v8878_v63 = vld [vmem:[#allocation10 + $0x1f0] sm:$0xf0] }
 0x1c9   :  { %v3194_v17 = vpop.f32.mrf.mxu0  ;;  %v3250_v41 = vadd.f32 %v3249_v62, %v3231_v48 }
 0x1ca   :  { %4438 = vmatpush.bf16.msrb.mxu0 %v8721_v38  ;;  %v3213_v20 = vpop.f32.mrf.mxu1  ;;  %v8670_v38 = vld [vmem:[#allocation10 + $0x50] sm:$0xf0]  ;;  %4384 = vmatpush.bf16.msra.mxu1 %v8797_v7 }
 0x1cb   :  { %v3214_v31 = vadd.f32 %v3213_v20, %v3194_v17  ;;  %v8673_v0 = vor.u32 %v10570_v61, %v8670_v38  ;;  %v3504_v17 = vrot.slane %v3250_v41, 1  ;;  %v8638_v61 = vld [vmem:[#allocation10 + $0x10] sm:$0xf0] }
 0x1ce   :  { %4439 = vmatpush.bf16.msrb.mxu0 %v8705_v56  ;;  %v3232_v43 = vpop.f32.mrf.mxu2  ;;  %v3251_v59 = vpop.f32.mrf.mxu3  ;;  %v8657_v56 = vor.u32 %v10566_v6, %v8654_v33  ;;  %4385 = vmatpush.bf16.msra.mxu1 %v8781_v51  ;;  %v8756_v6 = vld [vmem:[#allocation10 + $0xe8] sm:$0xf] }
 0x1cf   :  { %v3233_v36 = vadd.f32 %v3232_v43, %v3214_v31  ;;  %v10562_v31 = vld [vmem:[#allocation10 + $0x4] sm:$0xf] }
 0x1d0   :  { %v8641_v7 = vor.u32 %v10562_v31, %v8638_v61  ;;  %v8862_v31 = vld [vmem:[#allocation10 + $0x1d0] sm:$0xf0] }
 0x1d1   :  { %v3197_v52 = vpop.f32.mrf.mxu0  ;;  %v3252_v14 = vadd.f32 %v3251_v59, %v3233_v36 }
 0x1d2   :  { %4440 = vmatpush.bf16.msrb.mxu0 %v8689_v1  ;;  %v3216_v4 = vpop.f32.mrf.mxu1  ;;  %v10596_v1 = vld [vmem:[#allocation10 + $0x10c] sm:$0xf0] }
 0x1d3   :  { %v3505_v20 = vrot.slane %v3252_v14, 1  ;;  %v3217_v43 = vadd.f32 %v3216_v4, %v3197_v52  ;;  %v8765_v5 = vor.u32 %v10596_v1, %v8764_v57  ;;  %v10593_v4 = vld [vmem:[#allocation10 + $0xf4] sm:$0xf0] }
 0x1d5   :  { %v3506_v62 = vsel %vm3503_vm1, %v3504_v17, %v3505_v20  ;;  %v3544_v30 = vsel %vm3503_vm1, %v3505_v20, 0.0  ;;  %4386 = vmatpush.bf16.msra.mxu1 %v8765_v5  ;;  %v8757_v20 = vor.u32 %v10593_v4, %v8756_v6  ;;  %v10589_v5 = vld [vmem:[#allocation10 + $0xd4] sm:$0xf0] }
 0x1d6   :  { %4441 = vmatpush.bf16.msrb.mxu0 %v8673_v0  ;;  %v3552_v27 = vadd.f32 %v3506_v62, %v11359_v46  ;;  %v3556_v16 = vadd.f32 %v3544_v30, %v11365_v12  ;;  %v3235_v48 = vpop.f32.mrf.mxu2  ;;  %v3254_v9 = vpop.f32.mrf.mxu3  ;;  %v9004_v46 = vld [vmem:[#allocation10 + $0x2e0] sm:$0xf]  ;;  %v10656_v12 = vld [vmem:[#allocation10 + $0x2ec] sm:$0xf0]  ;;  %v10622_v0 = vld [vmem:[#allocation10 + $0x1e4] sm:$0xf] }
 0x1d7   :  { %v3236_v14 = vadd.f32 %v3235_v48, %v3217_v43  ;;  %v9005_v3 = vor.u32 %v10656_v12, %v9004_v46  ;;  %v8881_v52 = vor.u32 %v10622_v0, %v8878_v63  ;;  %v10652_v62 = vld [vmem:[#allocation10 + $0x2cc] sm:$0xf0]  ;;  %v10618_v30 = vld [vmem:[#allocation10 + $0x1c4] sm:$0xf]  ;;  %v8740_v43 = vld [vmem:[#allocation10 + $0xc8] sm:$0xf] }
 0x1d8   :  { %v3568_v41 = vmax.f32 %v3552_v27, 0.0  ;;  %v3572_v36 = vmax.f32 %v3556_v16, 0.0  ;;  %v8865_v61 = vor.u32 %v10618_v30, %v8862_v31  ;;  %v8846_v0 = vld [vmem:[#allocation10 + $0x1b0] sm:$0xf0]  ;;  %v10585_v63 = vld [vmem:[#allocation10 + $0xb4] sm:$0xf0] }
 0x1d9   :  { %v3199_v59 = vpop.f32.mrf.mxu0  ;;  %4398 = vmatpush.bf16.msra.mxu2 %v9005_v3  ;;  %4455 = vmatpush.bf16.msrb.mxu1 %v8881_v52  ;;  %v3255_v27 = vadd.f32 %v3254_v9, %v3236_v14  ;;  %v8724_v14 = vld [vmem:[#allocation10 + $0xa8] sm:$0xf]  ;;  %v10610_v30 = vld [vmem:[#allocation10 + $0x184] sm:$0xf] }
 0x1da   :  { %4442 = vmatpush.bf16.msrb.mxu0 %v8657_v56  ;;  %v3218_v24 = vpop.f32.mrf.mxu1  ;;  %v11492_v38 = vpack.c.bf16 %v3572_v36, %v3568_v41  ;;  %v8988_v56 = vld [vmem:[#allocation10 + $0x2c0] sm:$0xf]  ;;  %v8741_v41 = vor.u32 %v10589_v5, %v8740_v43  ;;  %v10648_v36 = vld [vmem:[#allocation10 + $0x2ac] sm:$0xf0]  ;;  %v8725_v4 = vor.u32 %v10585_v63, %v8724_v14  ;;  %v8830_v43 = vld [vmem:[#allocation10 + $0x190] sm:$0xf0] }
 0x1db   :  { %v3219_v17 = vadd.f32 %v3218_v24, %v3199_v59  ;;  %v8989_v1 = vor.u32 %v10652_v62, %v8988_v56  ;;  %v8972_v24 = vld [vmem:[#allocation10 + $0x2a0] sm:$0xf]  ;;  %v3516_v46 = vrot.slane %v3255_v27, 1  ;;  %v10644_v62 = vld [vmem:[#allocation10 + $0x28c] sm:$0xf0] }
 0x1dc   :  { %4368 = vmatmul.bf16.vlgmr.msra.gmra.mxu0 %v11492_v38  ;;  %v8973_v9 = vor.u32 %v10648_v36, %v8972_v24  ;;  %v8956_v56 = vld [vmem:[#allocation10 + $0x280] sm:$0xf]  ;;  %v8708_v5 = vld [vmem:[#allocation10 + $0x88] sm:$0xf]  ;;  %v8833_v24 = vor.u32 %v10610_v30, %v8830_v43  ;;  %v10577_v14 = vld [vmem:[#allocation10 + $0x74] sm:$0xf0] }
 0x1dd   :  { %4399 = vmatpush.bf16.msra.mxu2 %v8989_v1  ;;  %4456 = vmatpush.bf16.msrb.mxu1 %v8865_v61  ;;  %v8957_v31 = vor.u32 %v10644_v62, %v8956_v56  ;;  %v10581_v61 = vld [vmem:[#allocation10 + $0x94] sm:$0xf0]  ;;  %v8940_v36 = vld [vmem:[#allocation10 + $0x260] sm:$0xf]  ;;  %v8676_v43 = vld [vmem:[#allocation10 + $0x48] sm:$0xf] }
 0x1de   :  { %4443 = vmatpush.bf16.msrb.mxu0 %v8641_v7  ;;  %v3237_v51 = vpop.f32.mrf.mxu2  ;;  %v3256_v33 = vpop.f32.mrf.mxu3  ;;  %v10614_v7 = vld [vmem:[#allocation10 + $0x1a4] sm:$0xf] }
 0x1df   :  { %v3238_v16 = vadd.f32 %v3237_v51, %v3219_v17  ;;  %v8849_v3 = vor.u32 %v10614_v7, %v8846_v0  ;;  %v10640_v7 = vld [vmem:[#allocation10 + $0x26c] sm:$0xf0] }
 0x1e1   :  { %v3268_v57 = vpop.f32.mrf.mxu0  ;;  %v3257_v59 = vadd.f32 %v3256_v33, %v3238_v16  ;;  %4400 = vmatpush.bf16.msra.mxu2 %v8973_v9  ;;  %4457 = vmatpush.bf16.msrb.mxu1 %v8849_v3  ;;  %v8692_v9 = vld [vmem:[#allocation10 + $0x68] sm:$0xf] }
 0x1e2   :  { %v3287_v48 = vpop.f32.mrf.mxu1  ;;  %4512 = vmatpush.bf16.msra.mxu0 %v8757_v20  ;;  %v8693_v63 = vor.u32 %v10577_v14, %v8692_v9 }
 0x1e3   :  { %v3517_v12 = vrot.slane %v3257_v59, 1  ;;  %v3288_v27 = vadd.f32 %v3287_v48, %v3268_v57  ;;  %v8941_v57 = vor.u32 %v10640_v7, %v8940_v36  ;;  %v8814_v48 = vld [vmem:[#allocation10 + $0x170] sm:$0xf0] }
 0x1e4   :  { %v8782_v7 = vld [vmem:[#allocation10 + $0x130] sm:$0xf0] }
 0x1e5   :  { %v3518_v6 = vsel %vm3503_vm1, %v3516_v46, %v3517_v12  ;;  %v3548_v52 = vsel %vm3503_vm1, %v3517_v12, 0.0  ;;  %4401 = vmatpush.bf16.msra.mxu2 %v8957_v31  ;;  %4458 = vmatpush.bf16.msrb.mxu1 %v8833_v24  ;;  %v10606_v46 = vld [vmem:[#allocation10 + $0x164] sm:$0xf]  ;;  %v8798_v31 = vld [vmem:[#allocation10 + $0x150] sm:$0xf0] }
 0x1e6   :  { %4513 = vmatpush.bf16.msra.mxu0 %v8741_v41  ;;  %v3560_v17 = vadd.f32 %v3518_v6, %v11373_v11  ;;  %v3564_v20 = vadd.f32 %v3548_v52, %v11382_v45  ;;  %v3306_v51 = vpop.f32.mrf.mxu2  ;;  %v3325_v33 = vpop.f32.mrf.mxu3  ;;  %v8709_v11 = vor.u32 %v10581_v61, %v8708_v5  ;;  %v8817_v0 = vor.u32 %v10606_v46, %v8814_v48  ;;  %v10573_v5 = vld [vmem:[#allocation10 + $0x54] sm:$0xf0]  ;;  %v10598_v24 = vld [vmem:[#allocation10 + $0x124] sm:$0xf]  ;;  %v8660_v46 = vld [vmem:[#allocation10 + $0x28] sm:$0xf] }
 0x1e7   :  { %v3307_v12 = vadd.f32 %v3306_v51, %v3288_v27 }
 0x1e8   :  { %v3576_v41 = vmax.f32 %v3560_v17, 0.0  ;;  %v3580_v59 = vmax.f32 %v3564_v20, 0.0  ;;  %v10636_v17 = vld [vmem:[#allocation10 + $0x24c] sm:$0xf0]  ;;  %v10602_v20 = vld [vmem:[#allocation10 + $0x144] sm:$0xf] }
 0x1e9   :  { %v3270_v16 = vpop.f32.mrf.mxu0  ;;  %4402 = vmatpush.bf16.msra.mxu2 %v8941_v57  ;;  %4459 = vmatpush.bf16.msrb.mxu1 %v8817_v0  ;;  %v3326_v56 = vadd.f32 %v3325_v33, %v3307_v12  ;;  %v8801_v61 = vor.u32 %v10602_v20, %v8798_v31  ;;  %v8785_v12 = vor.u32 %v10598_v24, %v8782_v7  ;;  %v10569_v57 = vld [vmem:[#allocation10 + $0x34] sm:$0xf0]  ;;  %v8766_v31 = vld [vmem:[#allocation10 + $0x110] sm:$0xf0] }
 0x1ea   :  { %v3289_v1 = vpop.f32.mrf.mxu1  ;;  %4514 = vmatpush.bf16.msra.mxu0 %v8725_v4  ;;  %v11499_v45 = vpack.c.bf16 %v3580_v59, %v3576_v41  ;;  %v8924_v4 = vld [vmem:[#allocation10 + $0x240] sm:$0xf]  ;;  %v8677_v41 = vor.u32 %v10573_v5, %v8676_v43  ;;  %v10632_v59 = vld [vmem:[#allocation10 + $0x22c] sm:$0xf0]  ;;  %v8661_v0 = vor.u32 %v10569_v57, %v8660_v46  ;;  %v8644_v43 = vld [vmem:[#allocation10 + $0x8] sm:$0xf] }
 0x1eb   :  { %v3290_v3 = vadd.f32 %v3289_v1, %v3270_v16  ;;  %v8925_v27 = vor.u32 %v10636_v17, %v8924_v4  ;;  %v8908_v1 = vld [vmem:[#allocation10 + $0x220] sm:$0xf]  ;;  %v10628_v4 = vld [vmem:[#allocation10 + $0x20c] sm:$0xf0]  ;;  %v10594_v17 = vld [vmem:[#allocation10 + $0x104] sm:$0xf] }
 0x1ec   :  { %4373 = vmatmul.bf16.gmra.mxu0 %v11499_v45  ;;  %v8909_v33 = vor.u32 %v10632_v59, %v8908_v1  ;;  %v10565_v5 = vld [vmem:[#allocation10 + $0x14] sm:$0xf0]  ;;  %v9132_v1 = vld [vmem:[#allocation10 + $0x3e0] sm:$0xf]  ;;  %v10688_v59 = vld [vmem:[#allocation10 + $0x3ec] sm:$0xf0] }
 0x1ed   :  { %4403 = vmatpush.bf16.msra.mxu2 %v8925_v27  ;;  %4460 = vmatpush.bf16.msrb.mxu1 %v8801_v61  ;;  %v10625_v7 = vld [vmem:[#allocation10 + $0x1f4] sm:$0xf0]  ;;  %v10591_v46 = vld [vmem:[#allocation10 + $0xec] sm:$0xf] }
 0x1ee   :  { %4515 = vmatpush.bf16.msra.mxu0 %v8709_v11  ;;  %v3308_v6 = vpop.f32.mrf.mxu2  ;;  %v3327_v52 = vpop.f32.mrf.mxu3  ;;  %v3507_v11 = vrot.slane %v3326_v56, 1 }
 0x1ef   :  { %v3309_v62 = vadd.f32 %v3308_v6, %v3290_v3 }
 0x1f1   :  { %v3273_v51 = vpop.f32.mrf.mxu0  ;;  %v3328_v16 = vadd.f32 %v3327_v52, %v3309_v62  ;;  %4404 = vmatpush.bf16.msra.mxu2 %v8909_v33  ;;  %4461 = vmatpush.bf16.msrb.mxu1 %v8785_v12  ;;  %v8892_v52 = vld [vmem:[#allocation10 + $0x200] sm:$0xf]  ;;  %v8884_v33 = vld [vmem:[#allocation10 + $0x1e8] sm:$0xf] }
 0x1f2   :  { %v3292_v30 = vpop.f32.mrf.mxu1  ;;  %4516 = vmatpush.bf16.msra.mxu0 %v8693_v63  ;;  %v8893_v27 = vor.u32 %v10628_v4, %v8892_v52  ;;  %v8885_v57 = vor.u32 %v10625_v7, %v8884_v33  ;;  %v8852_v33 = vld [vmem:[#allocation10 + $0x1a8] sm:$0xf] }
 0x1f3   :  { %v3508_v36 = vrot.slane %v3328_v16, 1  ;;  %v3293_v20 = vadd.f32 %v3292_v30, %v3273_v51  ;;  %v8769_v16 = vor.u32 %v10594_v17, %v8766_v31  ;;  %v9133_v51 = vor.u32 %v10688_v59, %v9132_v1  ;;  %v10654_v30 = vld [vmem:[#allocation10 + $0x2e4] sm:$0xf]  ;;  %v9116_v17 = vld [vmem:[#allocation10 + $0x3c0] sm:$0xf] }
 0x1f5   :  { %v3509_v48 = vsel %vm3503_vm1, %v3507_v11, %v3508_v36  ;;  %v3545_v9 = vsel %vm3503_vm1, %v3508_v36, 0.0  ;;  %4405 = vmatpush.bf16.msra.mxu2 %v8893_v27  ;;  %4462 = vmatpush.bf16.msrb.mxu1 %v8769_v16  ;;  %v9006_v11 = vld [vmem:[#allocation10 + $0x2f0] sm:$0xf0]  ;;  %v10650_v27 = vld [vmem:[#allocation10 + $0x2c4] sm:$0xf] }
 0x1f6   :  { %4517 = vmatpush.bf16.msra.mxu0 %v8677_v41  ;;  %v3553_v14 = vadd.f32 %v3509_v48, %v11390_v42  ;;  %v3557_v3 = vadd.f32 %v3545_v9, %v11396_v39  ;;  %v3311_v63 = vpop.f32.mrf.mxu2  ;;  %v3330_v6 = vpop.f32.mrf.mxu3  ;;  %v8645_v42 = vor.u32 %v10565_v5, %v8644_v43  ;;  %v9009_v36 = vor.u32 %v10654_v30, %v9006_v11  ;;  %v8758_v48 = vld [vmem:[#allocation10 + $0xf8] sm:$0xf0]  ;;  %v8990_v43 = vld [vmem:[#allocation10 + $0x2d0] sm:$0xf0]  ;;  %v8868_v5 = vld [vmem:[#allocation10 + $0x1c8] sm:$0xf] }
 0x1f7   :  { %v3312_v24 = vadd.f32 %v3311_v63, %v3293_v20  ;;  %4417 = vmatpush.bf16.msra.mxu3 %v9133_v51  ;;  %v10684_v20 = vld [vmem:[#allocation10 + $0x3cc] sm:$0xf0]  ;;  %v10587_v16 = vld [vmem:[#allocation10 + $0xcc] sm:$0xf]  ;;  %v10646_v11 = vld [vmem:[#allocation10 + $0x2a4] sm:$0xf] }
 0x1f8   :  { %v3569_v61 = vmax.f32 %v3553_v14, 0.0  ;;  %v3573_v41 = vmax.f32 %v3557_v3, 0.0  ;;  %v8761_v14 = vor.u32 %v10591_v46, %v8758_v48  ;;  %v9117_v31 = vor.u32 %v10684_v20, %v9116_v17  ;;  %v10680_v51 = vld [vmem:[#allocation10 + $0x3ac] sm:$0xf0]  ;;  %v10583_v48 = vld [vmem:[#allocation10 + $0xac] sm:$0xf] }
 0x1f9   :  { %v3275_v56 = vpop.f32.mrf.mxu0  ;;  %4474 = vmatpush.bf16.msrb.mxu2 %v9009_v36  ;;  %v3331_v3 = vadd.f32 %v3330_v6, %v3312_v24  ;;  %v9100_v24 = vld [vmem:[#allocation10 + $0x3a0] sm:$0xf]  ;;  %v8974_v36 = vld [vmem:[#allocation10 + $0x2b0] sm:$0xf0]  ;;  %v8726_v17 = vld [vmem:[#allocation10 + $0xb8] sm:$0xf0] }
 0x1fa   :  { %v3294_v62 = vpop.f32.mrf.mxu1  ;;  %4518 = vmatpush.bf16.msra.mxu0 %v8661_v0  ;;  %v11506_v39 = vpack.c.bf16 %v3573_v41, %v3569_v61  ;;  %v8993_v61 = vor.u32 %v10650_v27, %v8990_v43  ;;  %v9101_v30 = vor.u32 %v10680_v51, %v9100_v24  ;;  %v8729_v43 = vor.u32 %v10583_v48, %v8726_v17  ;;  %v10609_v48 = vld [vmem:[#allocation10 + $0x174] sm:$0xf0] }
 0x1fb   :  { %v3295_v12 = vadd.f32 %v3294_v62, %v3275_v56  ;;  %v10621_v56 = vld [vmem:[#allocation10 + $0x1d4] sm:$0xf0]  ;;  %4418 = vmatpush.bf16.msra.mxu3 %v9117_v31  ;;  %v3519_v6 = vrot.slane %v3331_v3, 1 }
 0x1fc   :  { %4387 = vmatmul.bf16.vlgmr.msra.gmra.mxu1 %v11506_v39  ;;  %4444 = vmatmul.bf16.vlgmr.msrb.gmra.mxu0 %v11492_v38  ;;  %v8869_v41 = vor.u32 %v10621_v56, %v8868_v5  ;;  %v9084_v5 = vld [vmem:[#allocation10 + $0x380] sm:$0xf]  ;;  %v10676_v56 = vld [vmem:[#allocation10 + $0x38c] sm:$0xf0] }
 0x1fd   :  { %4531 = vmatpush.bf16.msra.mxu1 %v8885_v57  ;;  %4475 = vmatpush.bf16.msrb.mxu2 %v8993_v61  ;;  %v10617_v57 = vld [vmem:[#allocation10 + $0x1b4] sm:$0xf0] }
 0x1fe   :  { %4519 = vmatpush.bf16.msra.mxu0 %v8645_v42  ;;  %v3313_v9 = vpop.f32.mrf.mxu2  ;;  %v3332_v0 = vpop.f32.mrf.mxu3  ;;  %v8742_v42 = vld [vmem:[#allocation10 + $0xd8] sm:$0xf0] }
 0x1ff   :  { %v3314_v63 = vadd.f32 %v3313_v9, %v3295_v12  ;;  %v8745_v1 = vor.u32 %v10587_v16, %v8742_v42  ;;  %v8977_v12 = vor.u32 %v10646_v11, %v8974_v36  ;;  %4419 = vmatpush.bf16.msra.mxu3 %v9101_v30  ;;  %v9085_v16 = vor.u32 %v10676_v56, %v9084_v5  ;;  %v8836_v42 = vld [vmem:[#allocation10 + $0x188] sm:$0xf]  ;;  %v9068_v11 = vld [vmem:[#allocation10 + $0x360] sm:$0xf]  ;;  %v10672_v36 = vld [vmem:[#allocation10 + $0x36c] sm:$0xf0] }
 0x201   :  { %v3344_v52 = vpop.f32.mrf.mxu0  ;;  %v3333_v62 = vadd.f32 %v3332_v0, %v3314_v63  ;;  %4532 = vmatpush.bf16.msra.mxu1 %v8869_v41  ;;  %v8853_v63 = vor.u32 %v10617_v57, %v8852_v33  ;;  %4476 = vmatpush.bf16.msrb.mxu2 %v8977_v12  ;;  %v8942_v12 = vld [vmem:[#allocation10 + $0x270] sm:$0xf0]  ;;  %v8820_v57 = vld [vmem:[#allocation10 + $0x168] sm:$0xf] }
 0x202   :  { %v3363_v4 = vpop.f32.mrf.mxu1  ;;  %4588 = vmatpush.bf16.msrb.mxu0 %v8761_v14  ;;  %v8821_v17 = vor.u32 %v10609_v48, %v8820_v57  ;;  %v10567_v48 = vld [vmem:[#allocation10 + $0x2c] sm:$0xf] }
 0x203   :  { %v3520_v59 = vrot.slane %v3333_v62, 1  ;;  %v3364_v20 = vadd.f32 %v3363_v4, %v3344_v52  ;;  %v10642_v62 = vld [vmem:[#allocation10 + $0x284] sm:$0xf]  ;;  %v2277_v52 = vadd.f32 %v11422_v19, %v11420_v18  ;;  %4420 = vmatpush.bf16.msra.mxu3 %v9085_v16  ;;  %v8926_v16 = vld [vmem:[#allocation10 + $0x250] sm:$0xf0] }
 0x205   :  { %v3521_v7 = vsel %vm3503_vm1, %v3519_v6, %v3520_v59  ;;  %v3549_v46 = vsel %vm3503_vm1, %v3520_v59, 0.0  ;;  %4533 = vmatpush.bf16.msra.mxu1 %v8853_v63  ;;  %v10579_v6 = vld [vmem:[#allocation10 + $0x8c] sm:$0xf]  ;;  %v8710_v59 = vld [vmem:[#allocation10 + $0x98] sm:$0xf0]  ;;  %v2296_v33 = vadd.f32 %v11427_v10, %v2277_v52  ;;  %v1315_v52 = vadd.f32 %v11418_v47, %v11312_v13 }
 0x206   :  { %4589 = vmatpush.bf16.msrb.mxu0 %v8745_v1  ;;  %v3561_v9 = vadd.f32 %v3521_v7, %v11404_v21  ;;  %v3565_v0 = vadd.f32 %v3549_v46, %v11410_v25  ;;  %v3382_v14 = vpop.f32.mrf.mxu2  ;;  %v3401_v3 = vpop.f32.mrf.mxu3  ;;  %v8958_v21 = vld [vmem:[#allocation10 + $0x290] sm:$0xf0]  ;;  %v10613_v1 = vld [vmem:[#allocation10 + $0x194] sm:$0xf0]  ;;  %v8713_v51 = vor.u32 %v10579_v6, %v8710_v59  ;;  %v9069_v7 = vor.u32 %v10672_v36, %v9068_v11  ;;  %v10638_v46 = vld [vmem:[#allocation10 + $0x264] sm:$0xf] }
 0x207   :  { %v8961_v25 = vor.u32 %v10642_v62, %v8958_v21  ;;  %v8837_v24 = vor.u32 %v10613_v1, %v8836_v42  ;;  %v3383_v30 = vadd.f32 %v3382_v14, %v3364_v20  ;;  %v8945_v19 = vor.u32 %v10638_v46, %v8942_v12  ;;  %v9052_v62 = vld [vmem:[#allocation10 + $0x340] sm:$0xf]  ;;  %v8804_v21 = vld [vmem:[#allocation10 + $0x148] sm:$0xf]  ;;  %v10605_v42 = vld [vmem:[#allocation10 + $0x154] sm:$0xf0] }
 0x208   :  { %v3577_v61 = vmax.f32 %v3561_v9, 0.0  ;;  %v3581_v41 = vmax.f32 %v3565_v0, 0.0  ;;  %v10575_v9 = vld [vmem:[#allocation10 + $0x6c] sm:$0xf]  ;;  %v8694_v0 = vld [vmem:[#allocation10 + $0x78] sm:$0xf0]  ;;  %4421 = vmatpush.bf16.msra.mxu3 %v9069_v7  ;;  %v8805_v6 = vor.u32 %v10605_v42, %v8804_v21 }
 0x209   :  { %v3346_v27 = vpop.f32.mrf.mxu0  ;;  %4477 = vmatpush.bf16.msrb.mxu2 %v8961_v25  ;;  %4534 = vmatpush.bf16.msra.mxu1 %v8837_v24  ;;  %v8697_v10 = vor.u32 %v10575_v9, %v8694_v0  ;;  %v3402_v20 = vadd.f32 %v3401_v3, %v3383_v30  ;;  %v10571_v59 = vld [vmem:[#allocation10 + $0x4c] sm:$0xf]  ;;  %v8678_v3 = vld [vmem:[#allocation10 + $0x58] sm:$0xf0]  ;;  %v10664_v11 = vld [vmem:[#allocation10 + $0x32c] sm:$0xf0] }
 0x20a   :  { %v3365_v31 = vpop.f32.mrf.mxu1  ;;  %4590 = vmatpush.bf16.msrb.mxu0 %v8729_v43  ;;  %v11516_v4 = vpack.c.bf16 %v3581_v41, %v3577_v61  ;;  %v10668_v61 = vld [vmem:[#allocation10 + $0x34c] sm:$0xf0]  ;;  %v10634_v41 = vld [vmem:[#allocation10 + $0x244] sm:$0xf]  ;;  %v8681_v24 = vor.u32 %v10571_v59, %v8678_v3  ;;  %v8910_v46 = vld [vmem:[#allocation10 + $0x230] sm:$0xf0] }
 0x20b   :  { %v3366_v18 = vadd.f32 %v3365_v31, %v3346_v27  ;;  %v2315_v27 = vadd.f32 %v11429_v34, %v2296_v33  ;;  %v9053_v31 = vor.u32 %v10668_v61, %v9052_v62  ;;  %v8929_v1 = vor.u32 %v10634_v41, %v8926_v16  ;;  %v9036_v34 = vld [vmem:[#allocation10 + $0x320] sm:$0xf]  ;;  %v10630_v7 = vld [vmem:[#allocation10 + $0x224] sm:$0xf]  ;;  %v8788_v12 = vld [vmem:[#allocation10 + $0x128] sm:$0xf] }
 0x20c   :  { %4392 = vmatmul.bf16.gmra.mxu1 %v11516_v4  ;;  %4449 = vmatmul.bf16.gmra.mxu0 %v11499_v45  ;;  %v9037_v33 = vor.u32 %v10664_v11, %v9036_v34  ;;  %v10601_v13 = vld [vmem:[#allocation10 + $0x134] sm:$0xf0]  ;;  %v9020_v41 = vld [vmem:[#allocation10 + $0x300] sm:$0xf]  ;;  %v10563_v59 = vld [vmem:[#allocation10 + $0xc] sm:$0xf] }
 0x20d   :  { %4478 = vmatpush.bf16.msrb.mxu2 %v8945_v19  ;;  %4535 = vmatpush.bf16.msra.mxu1 %v8821_v17  ;;  %v2404_v36 = vadd.f32 %v2315_v27, %v1315_v52  ;;  %v8913_v19 = vor.u32 %v10630_v7, %v8910_v46  ;;  %v8789_v17 = vor.u32 %v10601_v13, %v8788_v12  ;;  %v10660_v27 = vld [vmem:[#allocation10 + $0x30c] sm:$0xf0]  ;;  %v8646_v3 = vld [vmem:[#allocation10 + $0x18] sm:$0xf0]  ;;  %v9134_v34 = vld [vmem:[#allocation10 + $0x3f0] sm:$0xf0] }
 0x20e   :  { %4591 = vmatpush.bf16.msrb.mxu0 %v8713_v51  ;;  %v3384_v14 = vpop.f32.mrf.mxu2  ;;  %v3403_v63 = vpop.f32.mrf.mxu3  ;;  %4422 = vmatpush.bf16.msra.mxu3 %v9053_v31  ;;  %v3510_v51 = vrot.slane %v3402_v20, 1  ;;  %v10626_v31 = vld [vmem:[#allocation10 + $0x204] sm:$0xf]  ;;  %v9021_v42 = vor.u32 %v10660_v27, %v9020_v41  ;;  %v10657_v7 = vld [vmem:[#allocation10 + $0x2f4] sm:$0xf0] }
 0x20f   :  { %v3385_v43 = vadd.f32 %v3384_v14, %v3366_v18  ;;  %v10623_v46 = vld [vmem:[#allocation10 + $0x1ec] sm:$0xf]  ;;  %v8886_v12 = vld [vmem:[#allocation10 + $0x1f8] sm:$0xf0]  ;;  %v10653_v41 = vld [vmem:[#allocation10 + $0x2d4] sm:$0xf0] }
 0x210   :  { %v10619_v27 = vld [vmem:[#allocation10 + $0x1cc] sm:$0xf] }
 0x211   :  { %v3349_v5 = vpop.f32.mrf.mxu0  ;;  %v3404_v25 = vadd.f32 %v3403_v63, %v3385_v43  ;;  %4479 = vmatpush.bf16.msrb.mxu2 %v8929_v1  ;;  %4536 = vmatpush.bf16.msra.mxu1 %v8805_v6  ;;  %v8772_v1 = vld [vmem:[#allocation10 + $0x108] sm:$0xf]  ;;  %v10597_v6 = vld [vmem:[#allocation10 + $0x114] sm:$0xf0] }
 0x212   :  { %v3368_v56 = vpop.f32.mrf.mxu1  ;;  %4592 = vmatpush.bf16.msrb.mxu0 %v8697_v10  ;;  %4423 = vmatpush.bf16.msra.mxu3 %v9037_v33  ;;  %v8662_v10 = vld [vmem:[#allocation10 + $0x38] sm:$0xf0]  ;;  %v8773_v52 = vor.u32 %v10597_v6, %v8772_v1  ;;  %v9012_v33 = vld [vmem:[#allocation10 + $0x2e8] sm:$0xf]  ;;  %v1323_v1 = vadd.f32 %v11418_v47, %v11324_v40  ;;  %v9228_v47 = vld [vmem:[#allocation10 + $0x4a0] sm:$0xf] }
 0x213   :  { %v3511_v30 = vrot.slane %v3404_v25, 1  ;;  %v3369_v20 = vadd.f32 %v3368_v56, %v3349_v5  ;;  %v8665_v61 = vor.u32 %v10567_v48, %v8662_v10  ;;  %v8894_v25 = vld [vmem:[#allocation10 + $0x210] sm:$0xf0]  ;;  %v2282_v5 = vadd.f32 %v11440_v37, %v11438_v2  ;;  %v10682_v10 = vld [vmem:[#allocation10 + $0x3c4] sm:$0xf] }
 0x214   :  { %v9013_v37 = vor.u32 %v10657_v7, %v9012_v33  ;;  %v8854_v40 = vld [vmem:[#allocation10 + $0x1b8] sm:$0xf0] }
 0x215   :  { %v3512_v57 = vsel %vm3503_vm1, %v3510_v51, %v3511_v30  ;;  %v3546_v18 = vsel %vm3503_vm1, %v3511_v30, 0.0  ;;  %4480 = vmatpush.bf16.msrb.mxu2 %v8913_v19  ;;  %4537 = vmatpush.bf16.msra.mxu1 %v8789_v17  ;;  %v10686_v30 = vld [vmem:[#allocation10 + $0x3e4] sm:$0xf]  ;;  %v2301_v11 = vadd.f32 %v11445_v26, %v2282_v5  ;;  %v8889_v26 = vor.u32 %v10623_v46, %v8886_v12  ;;  %v10712_v12 = vld [vmem:[#allocation10 + $0x4ac] sm:$0xf0] }
 0x216   :  { %4593 = vmatpush.bf16.msrb.mxu0 %v8681_v24  ;;  %v3554_v9 = vadd.f32 %v3512_v57, %v11425_v58  ;;  %v3558_v0 = vadd.f32 %v3546_v18, %v2404_v36  ;;  %v3387_v14 = vpop.f32.mrf.mxu2  ;;  %v3406_v63 = vpop.f32.mrf.mxu3  ;;  %v8897_v58 = vor.u32 %v10626_v31, %v8894_v25  ;;  %4424 = vmatpush.bf16.msra.mxu3 %v9021_v42  ;;  %v9260_v57 = vld [vmem:[#allocation10 + $0x4e0] sm:$0xf]  ;;  %v10720_v18 = vld [vmem:[#allocation10 + $0x4ec] sm:$0xf0]  ;;  %v8870_v31 = vld [vmem:[#allocation10 + $0x1d8] sm:$0xf0] }
 0x217   :  { %v8649_v24 = vor.u32 %v10563_v59, %v8646_v3  ;;  %v3388_v51 = vadd.f32 %v3387_v14, %v3369_v20  ;;  %v9137_v36 = vor.u32 %v10686_v30, %v9134_v34  ;;  %v9261_v48 = vor.u32 %v10720_v18, %v9260_v57  ;;  %v9118_v20 = vld [vmem:[#allocation10 + $0x3d0] sm:$0xf0]  ;;  %v9244_v25 = vld [vmem:[#allocation10 + $0x4c0] sm:$0xf]  ;;  %v10615_v30 = vld [vmem:[#allocation10 + $0x1ac] sm:$0xf] }
 0x218   :  { %v3570_v16 = vmax.f32 %v3554_v9, 0.0  ;;  %v3574_v21 = vmax.f32 %v3558_v0, 0.0  ;;  %v8873_v42 = vor.u32 %v10619_v27, %v8870_v31  ;;  %v9102_v3 = vld [vmem:[#allocation10 + $0x3b0] sm:$0xf0]  ;;  %v10708_v27 = vld [vmem:[#allocation10 + $0x48c] sm:$0xf0] }
 0x219   :  { %v3351_v43 = vpop.f32.mrf.mxu0  ;;  %4481 = vmatpush.bf16.msrb.mxu2 %v8897_v58  ;;  %4538 = vmatpush.bf16.msra.mxu1 %v8773_v52  ;;  %v3407_v9 = vadd.f32 %v3406_v63, %v3388_v51  ;;  %v10716_v63 = vld [vmem:[#allocation10 + $0x4cc] sm:$0xf0]  ;;  %v10649_v51 = vld [vmem:[#allocation10 + $0x2b4] sm:$0xf0] }
 0x21a   :  { %v3370_v62 = vpop.f32.mrf.mxu1  ;;  %4594 = vmatpush.bf16.msrb.mxu0 %v8665_v61  ;;  %v11529_v56 = vpack.c.bf16 %v3574_v21, %v3570_v16  ;;  %4493 = vmatpush.bf16.msrb.mxu3 %v9137_v36  ;;  %v9121_v61 = vor.u32 %v10682_v10, %v9118_v20  ;;  %v9245_v58 = vor.u32 %v10716_v63, %v9244_v25  ;;  %v9070_v25 = vld [vmem:[#allocation10 + $0x370] sm:$0xf0] }
 0x21b   :  { %v3371_v2 = vadd.f32 %v3370_v62, %v3351_v43  ;;  %v8996_v43 = vld [vmem:[#allocation10 + $0x2c8] sm:$0xf]  ;;  %v2320_v62 = vadd.f32 %v11447_v60, %v2301_v11  ;;  %v3522_v6 = vrot.slane %v3407_v9, 1  ;;  %v10678_v60 = vld [vmem:[#allocation10 + $0x3a4] sm:$0xf] }
 0x21c   :  { %4406 = vmatmul.bf16.vlgmr.msra.gmra.mxu2 %v11529_v56  ;;  %4463 = vmatmul.bf16.vlgmr.msrb.gmra.mxu1 %v11506_v39  ;;  %v8997_v21 = vor.u32 %v10653_v41, %v8996_v43  ;;  %v9105_v52 = vor.u32 %v10678_v60, %v9102_v3  ;;  %v8964_v9 = vld [vmem:[#allocation10 + $0x288] sm:$0xf]  ;;  %v10645_v43 = vld [vmem:[#allocation10 + $0x294] sm:$0xf0]  ;;  %v9212_v41 = vld [vmem:[#allocation10 + $0x480] sm:$0xf] }
 0x21d   :  { %4520 = vmatmul.bf16.vlgmr.msra.gmra.mxu0 %v11492_v38  ;;  %4550 = vmatpush.bf16.msra.mxu2 %v9013_v37  ;;  %v2412_v5 = vadd.f32 %v2320_v62, %v1323_v1  ;;  %v8857_v37 = vor.u32 %v10615_v30, %v8854_v40  ;;  %v8965_v62 = vor.u32 %v10645_v43, %v8964_v9  ;;  %v8822_v60 = vld [vmem:[#allocation10 + $0x178] sm:$0xf0]  ;;  %v9196_v3 = vld [vmem:[#allocation10 + $0x460] sm:$0xf]  ;;  %v10666_v30 = vld [vmem:[#allocation10 + $0x344] sm:$0xf] }
 0x21e   :  { %v3389_v19 = vpop.f32.mrf.mxu2  ;;  %v3408_v13 = vpop.f32.mrf.mxu3  ;;  %4595 = vmatpush.bf16.msrb.mxu0 %v8649_v24  ;;  %4607 = vmatpush.bf16.msrb.mxu1 %v8889_v26  ;;  %v8980_v24 = vld [vmem:[#allocation10 + $0x2a8] sm:$0xf]  ;;  %v10674_v26 = vld [vmem:[#allocation10 + $0x384] sm:$0xf] }
 0x21f   :  { %v3390_v0 = vadd.f32 %v3389_v19, %v3371_v2  ;;  %4494 = vmatpush.bf16.msrb.mxu3 %v9121_v61  ;;  %v8981_v36 = vor.u32 %v10649_v51, %v8980_v24  ;;  %v8838_v61 = vld [vmem:[#allocation10 + $0x198] sm:$0xf0] }
 0x221   :  { %v3420_v14 = vpop.f32.mrf.mxu0  ;;  %v3409_v16 = vadd.f32 %v3408_v13, %v3390_v0  ;;  %4551 = vmatpush.bf16.msra.mxu2 %v8997_v21  ;;  %v9229_v13 = vor.u32 %v10712_v12, %v9228_v47 }
 0x222   :  { %v3439_v17 = vpop.f32.mrf.mxu1  ;;  %5523 = vmatpush.bf16.msra.mxu0 %v9261_v48  ;;  %4608 = vmatpush.bf16.msrb.mxu1 %v8873_v42  ;;  %v9086_v48 = vld [vmem:[#allocation10 + $0x390] sm:$0xf0]  ;;  %v10670_v42 = vld [vmem:[#allocation10 + $0x364] sm:$0xf] }
 0x223   :  { %v3523_v59 = vrot.slane %v3409_v16, 1  ;;  %4495 = vmatpush.bf16.msrb.mxu3 %v9105_v52  ;;  %v3440_v57 = vadd.f32 %v3439_v17, %v3420_v14  ;;  %v9089_v20 = vor.u32 %v10674_v26, %v9086_v48  ;;  %v2353_v14 = vadd.f32 %v11461_v35, %v11459_v28  ;;  %v10662_v26 = vld [vmem:[#allocation10 + $0x324] sm:$0xf] }
 0x224   :  { %v9213_v16 = vor.u32 %v10708_v27, %v9212_v41  ;;  %v9073_v1 = vor.u32 %v10670_v42, %v9070_v25  ;;  %v9022_v42 = vld [vmem:[#allocation10 + $0x310] sm:$0xf0] }
 0x225   :  { %v3524_v34 = vsel %vm3503_vm1, %v3522_v6, %v3523_v59  ;;  %v3550_v11 = vsel %vm3503_vm1, %v3523_v59, 0.0  ;;  %4552 = vmatpush.bf16.msra.mxu2 %v8981_v36  ;;  %v2372_v63 = vadd.f32 %v11466_v15, %v2353_v14  ;;  %v10641_v6 = vld [vmem:[#allocation10 + $0x274] sm:$0xf0]  ;;  %v10607_v59 = vld [vmem:[#allocation10 + $0x16c] sm:$0xf] }
 0x226   :  { %5524 = vmatpush.bf16.msra.mxu0 %v9245_v58  ;;  %v3562_v33 = vadd.f32 %v3524_v34, %v11443_v32  ;;  %v3566_v7 = vadd.f32 %v3550_v11, %v2412_v5  ;;  %v3458_v46 = vpop.f32.mrf.mxu2  ;;  %v3477_v2 = vpop.f32.mrf.mxu3  ;;  %4609 = vmatpush.bf16.msrb.mxu1 %v8857_v37  ;;  %v10611_v32 = vld [vmem:[#allocation10 + $0x18c] sm:$0xf]  ;;  %v8948_v58 = vld [vmem:[#allocation10 + $0x268] sm:$0xf]  ;;  %v10704_v5 = vld [vmem:[#allocation10 + $0x46c] sm:$0xf0]  ;;  %v8825_v15 = vor.u32 %v10607_v59, %v8822_v60 }
 0x227   :  { %4496 = vmatpush.bf16.msrb.mxu3 %v9089_v20  ;;  %v8841_v31 = vor.u32 %v10611_v32, %v8838_v61  ;;  %v3459_v21 = vadd.f32 %v3458_v46, %v3440_v57  ;;  %v8949_v35 = vor.u32 %v10641_v6, %v8948_v58  ;;  %v9197_v51 = vor.u32 %v10704_v5, %v9196_v3  ;;  %v9054_v34 = vld [vmem:[#allocation10 + $0x350] sm:$0xf0]  ;;  %v8932_v11 = vld [vmem:[#allocation10 + $0x248] sm:$0xf]  ;;  %v8806_v46 = vld [vmem:[#allocation10 + $0x158] sm:$0xf0] }
 0x228   :  { %v3578_v0 = vmax.f32 %v3562_v33, 0.0  ;;  %v3582_v10 = vmax.f32 %v3566_v7, 0.0  ;;  %v9057_v47 = vor.u32 %v10666_v30, %v9054_v34  ;;  %v10637_v33 = vld [vmem:[#allocation10 + $0x254] sm:$0xf0]  ;;  %v10603_v7 = vld [vmem:[#allocation10 + $0x14c] sm:$0xf]  ;;  %v2391_v37 = vadd.f32 %v11468_v55, %v2372_v63 }
 0x229   :  { %v3422_v18 = vpop.f32.mrf.mxu0  ;;  %4553 = vmatpush.bf16.msra.mxu2 %v8965_v62  ;;  %v3478_v36 = vadd.f32 %v3477_v2, %v3459_v21  ;;  %v8809_v9 = vor.u32 %v10603_v7, %v8806_v46  ;;  %v10633_v2 = vld [vmem:[#allocation10 + $0x234] sm:$0xf0]  ;;  %v1316_v20 = vadd.f32 %v11454_v23, %v11336_v29  ;;  %v10599_v55 = vld [vmem:[#allocation10 + $0x12c] sm:$0xf]  ;;  %v8790_v62 = vld [vmem:[#allocation10 + $0x138] sm:$0xf0] }
 0x22a   :  { %v3441_v19 = vpop.f32.mrf.mxu1  ;;  %5525 = vmatpush.bf16.msra.mxu0 %v9229_v13  ;;  %v11543_v17 = vpack.c.bf16 %v3582_v10, %v3578_v0  ;;  %4610 = vmatpush.bf16.msrb.mxu1 %v8841_v31  ;;  %v10700_v13 = vld [vmem:[#allocation10 + $0x44c] sm:$0xf0]  ;;  %v9038_v0 = vld [vmem:[#allocation10 + $0x330] sm:$0xf0]  ;;  %v8916_v10 = vld [vmem:[#allocation10 + $0x228] sm:$0xf]  ;;  %v8793_v29 = vor.u32 %v10599_v55, %v8790_v62 }
 0x22b   :  { %v3442_v28 = vadd.f32 %v3441_v19, %v3422_v18  ;;  %4497 = vmatpush.bf16.msrb.mxu3 %v9073_v1  ;;  %v8933_v18 = vor.u32 %v10637_v33, %v8932_v11  ;;  %v9180_v19 = vld [vmem:[#allocation10 + $0x440] sm:$0xf]  ;;  %v9041_v32 = vor.u32 %v10662_v26, %v9038_v0  ;;  %v3513_v41 = vrot.slane %v3478_v36, 1  ;;  %v10696_v31 = vld [vmem:[#allocation10 + $0x42c] sm:$0xf0] }
 0x22c   :  { %4411 = vmatmul.bf16.gmra.mxu2 %v11543_v17  ;;  %4468 = vmatmul.bf16.gmra.mxu1 %v11516_v4  ;;  %v9181_v43 = vor.u32 %v10700_v13, %v9180_v19  ;;  %v9164_v61 = vld [vmem:[#allocation10 + $0x420] sm:$0xf]  ;;  %v8917_v14 = vor.u32 %v10633_v2, %v8916_v10  ;;  %v2405_v21 = vadd.f32 %v2391_v37, %v1316_v20  ;;  %v8900_v3 = vld [vmem:[#allocation10 + $0x208] sm:$0xf]  ;;  %v10629_v5 = vld [vmem:[#allocation10 + $0x214] sm:$0xf0] }
 0x22d   :  { %4525 = vmatmul.bf16.gmra.mxu0 %v11499_v45  ;;  %4554 = vmatpush.bf16.msra.mxu2 %v8949_v35  ;;  %v9165_v1 = vor.u32 %v10696_v31, %v9164_v61  ;;  %v8774_v30 = vld [vmem:[#allocation10 + $0x118] sm:$0xf0]  ;;  %v9148_v34 = vld [vmem:[#allocation10 + $0x400] sm:$0xf]  ;;  %v2358_v11 = vadd.f32 %v11479_v50, %v11477_v44  ;;  %v9140_v37 = vld [vmem:[#allocation10 + $0x3e8] sm:$0xf] }
 0x22e   :  { %v3460_v52 = vpop.f32.mrf.mxu2  ;;  %v3479_v24 = vpop.f32.mrf.mxu3  ;;  %5526 = vmatpush.bf16.msra.mxu0 %v9213_v16  ;;  %4611 = vmatpush.bf16.msrb.mxu1 %v8825_v15  ;;  %v10658_v16 = vld [vmem:[#allocation10 + $0x304] sm:$0xf]  ;;  %v10655_v50 = vld [vmem:[#allocation10 + $0x2ec] sm:$0xf]  ;;  %v9388_v19 = vld [vmem:[#allocation10 + $0x5e0] sm:$0xf] }
 0x22f   :  { %v3461_v40 = vadd.f32 %v3460_v52, %v3442_v28  ;;  %4498 = vmatpush.bf16.msrb.mxu3 %v9057_v47  ;;  %v9025_v35 = vor.u32 %v10658_v16, %v9022_v42  ;;  %v10595_v52 = vld [vmem:[#allocation10 + $0x10c] sm:$0xf]  ;;  %v9262_v0 = vld [vmem:[#allocation10 + $0x4f0] sm:$0xf0]  ;;  %v9124_v20 = vld [vmem:[#allocation10 + $0x3c8] sm:$0xf] }
 0x230   :  { %v8777_v33 = vor.u32 %v10595_v52, %v8774_v30  ;;  %v10651_v61 = vld [vmem:[#allocation10 + $0x2cc] sm:$0xf]  ;;  %v10714_v42 = vld [vmem:[#allocation10 + $0x4c4] sm:$0xf] }
 0x231   :  { %v3425_v12 = vpop.f32.mrf.mxu0  ;;  %v3480_v48 = vadd.f32 %v3479_v24, %v3461_v40  ;;  %4555 = vmatpush.bf16.msra.mxu2 %v8933_v18  ;;  %v9014_v18 = vld [vmem:[#allocation10 + $0x2f8] sm:$0xf0] }
 0x232   :  { %v3444_v57 = vpop.f32.mrf.mxu1  ;;  %5527 = vmatpush.bf16.msra.mxu0 %v9197_v51  ;;  %4612 = vmatpush.bf16.msrb.mxu1 %v8809_v9  ;;  %v8901_v51 = vor.u32 %v10629_v5, %v8900_v3  ;;  %v9017_v26 = vor.u32 %v10655_v50, %v9014_v18  ;;  %v10718_v9 = vld [vmem:[#allocation10 + $0x4e4] sm:$0xf]  ;;  %v10744_v3 = vld [vmem:[#allocation10 + $0x5ac] sm:$0xf0] }
 0x233   :  { %v3514_v27 = vrot.slane %v3480_v48, 1  ;;  %4499 = vmatpush.bf16.msrb.mxu3 %v9041_v32  ;;  %v3445_v60 = vadd.f32 %v3444_v57, %v3425_v12  ;;  %v10689_v12 = vld [vmem:[#allocation10 + $0x3f4] sm:$0xf0]  ;;  %v2377_v57 = vadd.f32 %v11484_v53, %v2358_v11  ;;  %v10752_v48 = vld [vmem:[#allocation10 + $0x5ec] sm:$0xf0]  ;;  %v9265_v2 = vor.u32 %v10718_v9, %v9262_v0 }
 0x234   :  { %v9141_v44 = vor.u32 %v10689_v12, %v9140_v37  ;;  %v9389_v53 = vor.u32 %v10752_v48, %v9388_v19  ;;  %v8966_v37 = vld [vmem:[#allocation10 + $0x298] sm:$0xf0]  ;;  %v9340_v12 = vld [vmem:[#allocation10 + $0x580] sm:$0xf]  ;;  %v10740_v18 = vld [vmem:[#allocation10 + $0x58c] sm:$0xf0] }
 0x235   :  { %v3515_v25 = vsel %vm3503_vm1, %v3513_v41, %v3514_v27  ;;  %v3547_v63 = vsel %vm3503_vm1, %v3514_v27, 0.0  ;;  %4556 = vmatpush.bf16.msra.mxu2 %v8917_v14  ;;  %v8998_v41 = vld [vmem:[#allocation10 + $0x2d8] sm:$0xf0]  ;;  %v9372_v27 = vld [vmem:[#allocation10 + $0x5c0] sm:$0xf]  ;;  %v2396_v14 = vadd.f32 %v11486_v54, %v2377_v57  ;;  %v9341_v48 = vor.u32 %v10740_v18, %v9340_v12 }
 0x236   :  { %v3555_v58 = vadd.f32 %v3515_v25, %v11464_v49  ;;  %v3559_v6 = vadd.f32 %v3547_v63, %v2405_v21  ;;  %v3463_v59 = vpop.f32.mrf.mxu2  ;;  %v3482_v28 = vpop.f32.mrf.mxu3  ;;  %5528 = vmatpush.bf16.msra.mxu0 %v9181_v43  ;;  %4613 = vmatpush.bf16.msrb.mxu1 %v8793_v29  ;;  %v10692_v49 = vld [vmem:[#allocation10 + $0x40c] sm:$0xf0]  ;;  %v10685_v43 = vld [vmem:[#allocation10 + $0x3d4] sm:$0xf0]  ;;  %v9001_v16 = vor.u32 %v10651_v61, %v8998_v41  ;;  %v9246_v25 = vld [vmem:[#allocation10 + $0x4d0] sm:$0xf0] }
 0x237   :  { %4500 = vmatpush.bf16.msrb.mxu3 %v9025_v35  ;;  %v9149_v7 = vor.u32 %v10692_v49, %v9148_v34  ;;  %v3464_v46 = vadd.f32 %v3463_v59, %v3445_v60  ;;  %v9125_v62 = vor.u32 %v10685_v43, %v9124_v20  ;;  %v10748_v21 = vld [vmem:[#allocation10 + $0x5cc] sm:$0xf0]  ;;  %v10647_v59 = vld [vmem:[#allocation10 + $0x2ac] sm:$0xf]  ;;  %v8982_v35 = vld [vmem:[#allocation10 + $0x2b8] sm:$0xf0] }
 0x238   :  { %v3571_v24 = vmax.f32 %v3555_v58, 0.0  ;;  %v3575_v15 = vmax.f32 %v3559_v6, 0.0  ;;  %v9373_v29 = vor.u32 %v10748_v21, %v9372_v27  ;;  %v9108_v58 = vld [vmem:[#allocation10 + $0x3a8] sm:$0xf]  ;;  %v10681_v6 = vld [vmem:[#allocation10 + $0x3b4] sm:$0xf0] }
 0x239   :  { %v3427_v40 = vpop.f32.mrf.mxu0  ;;  %4557 = vmatpush.bf16.msra.mxu2 %v8901_v51  ;;  %v3483_v32 = vadd.f32 %v3482_v28, %v3464_v46  ;;  %v1324_v28 = vadd.f32 %v11454_v23, %v11356_v22  ;;  %v9356_v60 = vld [vmem:[#allocation10 + $0x5a0] sm:$0xf]  ;;  %v9109_v52 = vor.u32 %v10681_v6, %v9108_v58  ;;  %v9230_v51 = vld [vmem:[#allocation10 + $0x4b0] sm:$0xf0]  ;;  %v9092_v49 = vld [vmem:[#allocation10 + $0x388] sm:$0xf] }
 0x23a   :  { %v11557_v36 = vpack.c.bf16 %v3575_v15, %v3571_v24  ;;  %v3446_v47 = vpop.f32.mrf.mxu1  ;;  %5529 = vmatpush.bf16.msra.mxu0 %v9165_v1  ;;  %4614 = vmatpush.bf16.msrb.mxu1 %v8777_v33  ;;  %v9249_v1 = vor.u32 %v10714_v42, %v9246_v25  ;;  %v8985_v24 = vor.u32 %v10647_v59, %v8982_v35  ;;  %v10710_v15 = vld [vmem:[#allocation10 + $0x4a4] sm:$0xf]  ;;  %v10643_v46 = vld [vmem:[#allocation10 + $0x28c] sm:$0xf]  ;;  %v10673_v0 = vld [vmem:[#allocation10 + $0x374] sm:$0xf0] }
 0x23b   :  { %v3447_v13 = vadd.f32 %v3446_v47, %v3427_v40  ;;  %v3525_v54 = vrot.slane %v3483_v32, 1  ;;  %v2413_v30 = vadd.f32 %v2396_v14, %v1324_v28  ;;  %v9357_v34 = vor.u32 %v10744_v3, %v9356_v60  ;;  %v10677_v40 = vld [vmem:[#allocation10 + $0x394] sm:$0xf0]  ;;  %v10706_v19 = vld [vmem:[#allocation10 + $0x484] sm:$0xf] }
 0x23c   :  { %4425 = vmatmul.bf16.vlgmr.msra.gmra.mxu3 %v11557_v36  ;;  %4482 = vmatmul.bf16.vlgmr.msrb.gmra.mxu2 %v11529_v56  ;;  %v9233_v11 = vor.u32 %v10710_v15, %v9230_v51  ;;  %v8969_v50 = vor.u32 %v10643_v46, %v8966_v37  ;;  %v9324_v20 = vld [vmem:[#allocation10 + $0x560] sm:$0xf]  ;;  %v10736_v43 = vld [vmem:[#allocation10 + $0x56c] sm:$0xf0]  ;;  %v9060_v61 = vld [vmem:[#allocation10 + $0x348] sm:$0xf] }
 0x23d   :  { %4539 = vmatmul.bf16.vlgmr.msra.gmra.mxu1 %v11506_v39  ;;  %4596 = vmatmul.bf16.vlgmr.msrb.gmra.mxu0 %v11492_v38  ;;  %v9325_v41 = vor.u32 %v10736_v43, %v9324_v20  ;;  %v10669_v14 = vld [vmem:[#allocation10 + $0x354] sm:$0xf0]  ;;  %v8934_v21 = vld [vmem:[#allocation10 + $0x258] sm:$0xf0]  ;;  %v9308_v42 = vld [vmem:[#allocation10 + $0x540] sm:$0xf] }
 0x23e   :  { %v3465_v10 = vpop.f32.mrf.mxu2  ;;  %5530 = vmatpush.bf16.msra.mxu0 %v9149_v7  ;;  %4569 = vmatpush.bf16.msra.mxu3 %v9141_v44  ;;  %v3484_v31 = vpop.f32.mrf.mxu3  ;;  %v9093_v7 = vor.u32 %v10677_v40, %v9092_v49  ;;  %v9044_v58 = vld [vmem:[#allocation10 + $0x328] sm:$0xf]  ;;  %v10665_v6 = vld [vmem:[#allocation10 + $0x334] sm:$0xf0]  ;;  %v10631_v59 = vld [vmem:[#allocation10 + $0x22c] sm:$0xf] }
 0x23f   :  { %v3466_v55 = vadd.f32 %v3465_v10, %v3447_v13  ;;  %4626 = vmatpush.bf16.msrb.mxu2 %v9017_v26  ;;  %5542 = vmatpush.bf16.msra.mxu1 %v9389_v53  ;;  %v9214_v13 = vld [vmem:[#allocation10 + $0x490] sm:$0xf0]  ;;  %v10639_v10 = vld [vmem:[#allocation10 + $0x26c] sm:$0xf]  ;;  %v8918_v60 = vld [vmem:[#allocation10 + $0x238] sm:$0xf0] }
 0x240   :  { %v9217_v9 = vor.u32 %v10706_v19, %v9214_v13  ;;  %v9292_v3 = vld [vmem:[#allocation10 + $0x520] sm:$0xf]  ;;  %v9166_v15 = vld [vmem:[#allocation10 + $0x430] sm:$0xf0]  ;;  %v9028_v51 = vld [vmem:[#allocation10 + $0x308] sm:$0xf] }
 0x241   :  { %v3485_v63 = vadd.f32 %v3484_v31, %v3466_v55  ;;  %v10702_v55 = vld [vmem:[#allocation10 + $0x464] sm:$0xf]  ;;  %v9061_v31 = vor.u32 %v10669_v14, %v9060_v61  ;;  %v10627_v40 = vld [vmem:[#allocation10 + $0x20c] sm:$0xf]  ;;  %v9150_v46 = vld [vmem:[#allocation10 + $0x410] sm:$0xf0] }
 0x242   :  { %5599 = vmatpush.bf16.msrb.mxu0 %v9265_v2  ;;  %4570 = vmatpush.bf16.msra.mxu3 %v9125_v62  ;;  %v8950_v2 = vld [vmem:[#allocation10 + $0x278] sm:$0xf0]  ;;  %v9198_v62 = vld [vmem:[#allocation10 + $0x470] sm:$0xf0]  ;;  %v9516_v18 = vld [vmem:[#allocation10 + $0x6e0] sm:$0xf] }
 0x243   :  { %v3526_v5 = vrot.slane %v3485_v63, 1  ;;  %4627 = vmatpush.bf16.msrb.mxu2 %v9001_v16  ;;  %5543 = vmatpush.bf16.msra.mxu1 %v9373_v29  ;;  %v8953_v32 = vor.u32 %v10639_v10, %v8950_v2  ;;  %v9201_v27 = vor.u32 %v10702_v55, %v9198_v62  ;;  %v10635_v16 = vld [vmem:[#allocation10 + $0x24c] sm:$0xf]  ;;  %v10732_v63 = vld [vmem:[#allocation10 + $0x54c] sm:$0xf0] }
 0x244   :  { %v8937_v25 = vor.u32 %v10635_v16, %v8934_v21  ;;  %v10698_v29 = vld [vmem:[#allocation10 + $0x444] sm:$0xf]  ;;  %v9309_v28 = vor.u32 %v10732_v63, %v9308_v42  ;;  %v10784_v13 = vld [vmem:[#allocation10 + $0x6ec] sm:$0xf0]  ;;  %v9268_v10 = vld [vmem:[#allocation10 + $0x4e8] sm:$0xf] }
 0x245   :  { %v3527_v22 = vsel %vm3503_vm1, %v3525_v54, %v3526_v5  ;;  %v3551_v23 = vsel %vm3503_vm1, %v3526_v5, 0.0  ;;  %v9045_v54 = vor.u32 %v10665_v6, %v9044_v58  ;;  %v8921_v5 = vor.u32 %v10631_v59, %v8918_v60  ;;  %v10683_v2 = vld [vmem:[#allocation10 + $0x3cc] sm:$0xf]  ;;  %v9126_v43 = vld [vmem:[#allocation10 + $0x3d8] sm:$0xf0] }
 0x246   :  { %5600 = vmatpush.bf16.msrb.mxu0 %v9249_v1  ;;  %v3563_v47 = vadd.f32 %v3527_v22, %v11482_v8  ;;  %v3567_v33 = vadd.f32 %v3551_v23, %v2413_v30  ;;  %4571 = vmatpush.bf16.msra.mxu3 %v9109_v52  ;;  %v9076_v8 = vld [vmem:[#allocation10 + $0x368] sm:$0xf]  ;;  %v9182_v1 = vld [vmem:[#allocation10 + $0x450] sm:$0xf0]  ;;  %v10728_v52 = vld [vmem:[#allocation10 + $0x52c] sm:$0xf0] }
 0x247   :  { %4628 = vmatpush.bf16.msrb.mxu2 %v8985_v24  ;;  %5544 = vmatpush.bf16.msra.mxu1 %v9357_v34  ;;  %v9077_v53 = vor.u32 %v10673_v0, %v9076_v8  ;;  %v9185_v35 = vor.u32 %v10698_v29, %v9182_v1  ;;  %v10694_v24 = vld [vmem:[#allocation10 + $0x424] sm:$0xf]  ;;  %v10661_v30 = vld [vmem:[#allocation10 + $0x314] sm:$0xf0]  ;;  %v9293_v34 = vor.u32 %v10728_v52, %v9292_v3  ;;  %v8902_v22 = vld [vmem:[#allocation10 + $0x218] sm:$0xf0] }
 0x248   :  { %v3579_v57 = vmax.f32 %v3563_v47, 0.0  ;;  %v3583_v44 = vmax.f32 %v3567_v33, 0.0  ;;  %v9029_v49 = vor.u32 %v10661_v30, %v9028_v51  ;;  %v9276_v23 = vld [vmem:[#allocation10 + $0x500] sm:$0xf]  ;;  %v8905_v47 = vor.u32 %v10627_v40, %v8902_v22  ;;  %v10724_v33 = vld [vmem:[#allocation10 + $0x50c] sm:$0xf0] }
 0x249   :  { %v9277_v12 = vor.u32 %v10724_v33, %v9276_v23  ;;  %v9517_v8 = vor.u32 %v10784_v13, %v9516_v18  ;;  %v9500_v55 = vld [vmem:[#allocation10 + $0x6c0] sm:$0xf]  ;;  %v10780_v62 = vld [vmem:[#allocation10 + $0x6cc] sm:$0xf0]  ;;  %v10746_v61 = vld [vmem:[#allocation10 + $0x5c4] sm:$0xf] }
 0x24a   :  { %5601 = vmatpush.bf16.msrb.mxu0 %v9233_v11  ;;  %v11570_v26 = vpack.c.bf16 %v3583_v44, %v3579_v57  ;;  %4572 = vmatpush.bf16.msra.mxu3 %v9093_v7  ;;  %v9169_v11 = vor.u32 %v10694_v24, %v9166_v15  ;;  %v10690_v7 = vld [vmem:[#allocation10 + $0x404] sm:$0xf]  ;;  %v10687_v44 = vld [vmem:[#allocation10 + $0x3ec] sm:$0xf]  ;;  %v9252_v14 = vld [vmem:[#allocation10 + $0x4c8] sm:$0xf] }
 0x24b   :  { %4629 = vmatpush.bf16.msrb.mxu2 %v8969_v50  ;;  %5545 = vmatpush.bf16.msra.mxu1 %v9341_v48  ;;  %v9153_v57 = vor.u32 %v10690_v7, %v9150_v46  ;;  %v9142_v50 = vld [vmem:[#allocation10 + $0x3f8] sm:$0xf0]  ;;  %v10750_v48 = vld [vmem:[#allocation10 + $0x5e4] sm:$0xf]  ;;  %v9484_v29 = vld [vmem:[#allocation10 + $0x6a0] sm:$0xf] }
 0x24c   :  { %4430 = vmatmul.bf16.gmra.mxu3 %v11570_v26  ;;  %4487 = vmatmul.bf16.gmra.mxu2 %v11543_v17  ;;  %v9145_v19 = vor.u32 %v10687_v44, %v9142_v50  ;;  %v9110_v63 = vld [vmem:[#allocation10 + $0x3b8] sm:$0xf0]  ;;  %v10776_v58 = vld [vmem:[#allocation10 + $0x6ac] sm:$0xf0]  ;;  %v10742_v6 = vld [vmem:[#allocation10 + $0x5a4] sm:$0xf] }
 0x24d   :  { %4544 = vmatmul.bf16.gmra.mxu1 %v11516_v4  ;;  %4601 = vmatmul.bf16.gmra.mxu0 %v11499_v45  ;;  %v9358_v59 = vld [vmem:[#allocation10 + $0x5b0] sm:$0xf0]  ;;  %v9236_v60 = vld [vmem:[#allocation10 + $0x4a8] sm:$0xf]  ;;  %v10713_v3 = vld [vmem:[#allocation10 + $0x4b4] sm:$0xf0] }
 0x24e   :  { %5602 = vmatpush.bf16.msrb.mxu0 %v9217_v9  ;;  %4573 = vmatpush.bf16.msra.mxu3 %v9077_v53  ;;  %v9390_v9 = vld [vmem:[#allocation10 + $0x5f0] sm:$0xf0]  ;;  %v10721_v53 = vld [vmem:[#allocation10 + $0x4f4] sm:$0xf0]  ;;  %v9094_v52 = vld [vmem:[#allocation10 + $0x398] sm:$0xf0] }
 0x24f   :  { %4630 = vmatpush.bf16.msrb.mxu2 %v8953_v32  ;;  %5546 = vmatpush.bf16.msra.mxu1 %v9325_v41  ;;  %v9393_v0 = vor.u32 %v10750_v48, %v9390_v9  ;;  %v9269_v20 = vor.u32 %v10721_v53, %v9268_v10  ;;  %v9129_v32 = vor.u32 %v10683_v2, %v9126_v43  ;;  %v9468_v15 = vld [vmem:[#allocation10 + $0x680] sm:$0xf]  ;;  %v10772_v51 = vld [vmem:[#allocation10 + $0x68c] sm:$0xf0]  ;;  %v10738_v30 = vld [vmem:[#allocation10 + $0x584] sm:$0xf] }
 0x250   :  { %v9501_v41 = vor.u32 %v10780_v62, %v9500_v55  ;;  %v10709_v40 = vld [vmem:[#allocation10 + $0x494] sm:$0xf0]  ;;  %v10671_v33 = vld [vmem:[#allocation10 + $0x36c] sm:$0xf]  ;;  %v9078_v7 = vld [vmem:[#allocation10 + $0x378] sm:$0xf0] }
 0x251   :  { %v9452_v46 = vld [vmem:[#allocation10 + $0x660] sm:$0xf]  ;;  %v10734_v44 = vld [vmem:[#allocation10 + $0x564] sm:$0xf]  ;;  %v9326_v50 = vld [vmem:[#allocation10 + $0x570] sm:$0xf0] }
 0x252   :  { %5603 = vmatpush.bf16.msrb.mxu0 %v9201_v27  ;;  %4574 = vmatpush.bf16.msra.mxu3 %v9061_v31  ;;  %v9374_v27 = vld [vmem:[#allocation10 + $0x5d0] sm:$0xf0]  ;;  %v10717_v31 = vld [vmem:[#allocation10 + $0x4d4] sm:$0xf0]  ;;  %v10667_v48 = vld [vmem:[#allocation10 + $0x34c] sm:$0xf]  ;;  %v9329_v9 = vor.u32 %v10734_v44, %v9326_v50 }
 0x253   :  { %4631 = vmatpush.bf16.msrb.mxu2 %v8937_v25  ;;  %5547 = vmatpush.bf16.msra.mxu1 %v9309_v28  ;;  %v9377_v21 = vor.u32 %v10746_v61, %v9374_v27  ;;  %v9253_v42 = vor.u32 %v10717_v31, %v9252_v14  ;;  %v10679_v25 = vld [vmem:[#allocation10 + $0x3ac] sm:$0xf]  ;;  %v9485_v28 = vor.u32 %v10776_v58, %v9484_v29  ;;  %v10705_v13 = vld [vmem:[#allocation10 + $0x474] sm:$0xf0]  ;;  %v9436_v53 = vld [vmem:[#allocation10 + $0x640] sm:$0xf] }
 0x254   :  { %v9113_v1 = vor.u32 %v10679_v25, %v9110_v63  ;;  %v10764_v2 = vld [vmem:[#allocation10 + $0x64c] sm:$0xf0]  ;;  %v9188_v55 = vld [vmem:[#allocation10 + $0x448] sm:$0xf]  ;;  %v10701_v62 = vld [vmem:[#allocation10 + $0x454] sm:$0xf0] }
 0x255   :  { %v9437_v43 = vor.u32 %v10764_v2, %v9436_v53  ;;  %v9189_v27 = vor.u32 %v10701_v62, %v9188_v55  ;;  %v10663_v14 = vld [vmem:[#allocation10 + $0x32c] sm:$0xf]  ;;  %v9046_v31 = vld [vmem:[#allocation10 + $0x338] sm:$0xf0]  ;;  %v10760_v25 = vld [vmem:[#allocation10 + $0x62c] sm:$0xf0] }
 0x256   :  { %5604 = vmatpush.bf16.msrb.mxu0 %v9185_v35  ;;  %4575 = vmatpush.bf16.msra.mxu3 %v9045_v54  ;;  %v9361_v35 = vor.u32 %v10742_v6, %v9358_v59  ;;  %v10675_v54 = vld [vmem:[#allocation10 + $0x38c] sm:$0xf]  ;;  %v10726_v63 = vld [vmem:[#allocation10 + $0x524] sm:$0xf]  ;;  %v9294_v29 = vld [vmem:[#allocation10 + $0x530] sm:$0xf0] }
 0x257   :  { %4632 = vmatpush.bf16.msrb.mxu2 %v8921_v5  ;;  %5548 = vmatpush.bf16.msra.mxu1 %v9293_v34  ;;  %v9237_v5 = vor.u32 %v10713_v3, %v9236_v60  ;;  %v9097_v24 = vor.u32 %v10675_v54, %v9094_v52  ;;  %v9469_v34 = vor.u32 %v10772_v51, %v9468_v15  ;;  %v9172_v58 = vld [vmem:[#allocation10 + $0x428] sm:$0xf]  ;;  %v10697_v6 = vld [vmem:[#allocation10 + $0x434] sm:$0xf0]  ;;  %v10659_v59 = vld [vmem:[#allocation10 + $0x30c] sm:$0xf] }
 0x258   :  { %v9173_v60 = vor.u32 %v10697_v6, %v9172_v58  ;;  %v9404_v54 = vld [vmem:[#allocation10 + $0x600] sm:$0xf]  ;;  %v10722_v52 = vld [vmem:[#allocation10 + $0x504] sm:$0xf]  ;;  %v9278_v15 = vld [vmem:[#allocation10 + $0x510] sm:$0xf0] }
 0x259   :  { %v11576_v37 = vpop.f32.mrf.mxu0  ;;  %v9156_v51 = vld [vmem:[#allocation10 + $0x408] sm:$0xf]  ;;  %v10753_v44 = vld [vmem:[#allocation10 + $0x5f4] sm:$0xf0]  ;;  %v10715_v62 = vld [vmem:[#allocation10 + $0x4cc] sm:$0xf] }
 0x25a   :  { %5605 = vmatpush.bf16.msrb.mxu0 %v9169_v11  ;;  %4576 = vmatpush.bf16.msra.mxu3 %v9029_v49  ;;  %v9342_v11 = vld [vmem:[#allocation10 + $0x590] sm:$0xf0]  ;;  %v9220_v49 = vld [vmem:[#allocation10 + $0x488] sm:$0xf]  ;;  %v10749_v2 = vld [vmem:[#allocation10 + $0x5d4] sm:$0xf0] }
 0x25b   :  { %4633 = vmatpush.bf16.msrb.mxu2 %v8905_v47  ;;  %5549 = vmatpush.bf16.msra.mxu1 %v9277_v12  ;;  %v9345_v23 = vor.u32 %v10738_v30, %v9342_v11  ;;  %v9221_v47 = vor.u32 %v10709_v40, %v9220_v49  ;;  %v9081_v12 = vor.u32 %v10671_v33, %v9078_v7  ;;  %v10693_v30 = vld [vmem:[#allocation10 + $0x414] sm:$0xf0]  ;;  %v10816_v33 = vld [vmem:[#allocation10 + $0x7ec] sm:$0xf0]  ;;  %v10782_v7 = vld [vmem:[#allocation10 + $0x6e4] sm:$0xf] }
 0x25c   :  { %4501 = vmatmul.bf16.vlgmr.msrb.gmra.mxu3 %v11557_v36  ;;  %4558 = vmatmul.bf16.vlgmr.msra.gmra.mxu2 %v11529_v56  ;;  %v9281_v40 = vor.u32 %v10722_v52, %v9278_v15  ;;  %v9380_v53 = vld [vmem:[#allocation10 + $0x5c8] sm:$0xf] }
 0x25d   :  { %4615 = vmatmul.bf16.vlgmr.msrb.gmra.mxu1 %v11506_v39  ;;  %5531 = vmatmul.bf16.vlgmr.msra.gmra.mxu0 %v11492_v38  ;;  %v9381_v55 = vor.u32 %v10749_v2, %v9380_v53  ;;  %v9348_v52 = vld [vmem:[#allocation10 + $0x588] sm:$0xf]  ;;  %v9438_v53 = vld [vmem:[#allocation10 + $0x650] sm:$0xf0] }
 0x25e   :  { %5606 = vmatpush.bf16.msrb.mxu0 %v9153_v57  ;;  %4645 = vmatpush.bf16.msrb.mxu3 %v9145_v19  ;;  %v10768_v57 = vld [vmem:[#allocation10 + $0x66c] sm:$0xf0]  ;;  %v9204_v19 = vld [vmem:[#allocation10 + $0x468] sm:$0xf] }
 0x25f   :  { %5561 = vmatpush.bf16.msra.mxu2 %v9517_v8  ;;  %5618 = vmatpush.bf16.msrb.mxu1 %v9393_v0  ;;  %v9453_v18 = vor.u32 %v10768_v57, %v9452_v46  ;;  %v9205_v8 = vor.u32 %v10705_v13, %v9204_v19  ;;  %v9062_v0 = vld [vmem:[#allocation10 + $0x358] sm:$0xf0]  ;;  %v9396_v57 = vld [vmem:[#allocation10 + $0x5e8] sm:$0xf] }
 0x260   :  { %v9065_v10 = vor.u32 %v10667_v48, %v9062_v0  ;;  %v9397_v50 = vor.u32 %v10753_v44, %v9396_v57  ;;  %v9270_v19 = vld [vmem:[#allocation10 + $0x4f8] sm:$0xf0]  ;;  %v9628_v48 = vld [vmem:[#allocation10 + $0x7c0] sm:$0xf]  ;;  %v9454_v44 = vld [vmem:[#allocation10 + $0x670] sm:$0xf0] }
 0x261   :  { %v11582_v16 = vpop.f32.mrf.mxu0  ;;  %v9316_v2 = vld [vmem:[#allocation10 + $0x548] sm:$0xf] }
 0x262   :  { %5675 = vmatpush.bf16.msra.mxu0 %v9269_v20  ;;  %4646 = vmatpush.bf16.msrb.mxu3 %v9129_v32  ;;  %v10730_v20 = vld [vmem:[#allocation10 + $0x544] sm:$0xf]  ;;  %v9310_v32 = vld [vmem:[#allocation10 + $0x550] sm:$0xf0] }
 0x263   :  { %5562 = vmatpush.bf16.msra.mxu2 %v9501_v41  ;;  %5619 = vmatpush.bf16.msrb.mxu1 %v9377_v21  ;;  %v9313_v41 = vor.u32 %v10730_v20, %v9310_v32  ;;  %v9420_v21 = vld [vmem:[#allocation10 + $0x620] sm:$0xf] }
 0x266   :  { %5676 = vmatpush.bf16.msra.mxu0 %v9253_v42  ;;  %4647 = vmatpush.bf16.msrb.mxu3 %v9113_v1  ;;  %v9049_v42 = vor.u32 %v10663_v14, %v9046_v31  ;;  %v9421_v1 = vor.u32 %v10760_v25, %v9420_v21  ;;  %v9612_v31 = vld [vmem:[#allocation10 + $0x7a0] sm:$0xf]  ;;  %v10808_v21 = vld [vmem:[#allocation10 + $0x7ac] sm:$0xf0] }
 0x267   :  { %5563 = vmatpush.bf16.msra.mxu2 %v9485_v28  ;;  %5620 = vmatpush.bf16.msrb.mxu1 %v9361_v35  ;;  %v9030_v28 = vld [vmem:[#allocation10 + $0x318] sm:$0xf0]  ;;  %v9297_v35 = vor.u32 %v10726_v63, %v9294_v29  ;;  %v9613_v25 = vor.u32 %v10808_v21, %v9612_v31  ;;  %v9486_v63 = vld [vmem:[#allocation10 + $0x6b0] sm:$0xf0]  ;;  %v9364_v29 = vld [vmem:[#allocation10 + $0x5a8] sm:$0xf] }
 0x268   :  { %v9033_v3 = vor.u32 %v10659_v59, %v9030_v28  ;;  %v10711_v59 = vld [vmem:[#allocation10 + $0x4ac] sm:$0xf]  ;;  %v9238_v28 = vld [vmem:[#allocation10 + $0x4b8] sm:$0xf0] }
 0x269   :  { %v11584_v22 = vpop.f32.mrf.mxu0 }
 0x26a   :  { %5677 = vmatpush.bf16.msra.mxu0 %v9237_v5  ;;  %4648 = vmatpush.bf16.msrb.mxu3 %v9097_v24  ;;  %v10756_v5 = vld [vmem:[#allocation10 + $0x60c] sm:$0xf0] }
 0x26b   :  { %5564 = vmatpush.bf16.msra.mxu2 %v9469_v34  ;;  %5621 = vmatpush.bf16.msrb.mxu1 %v9345_v23  ;;  %v9405_v24 = vor.u32 %v10756_v5, %v9404_v54  ;;  %v9157_v23 = vor.u32 %v10693_v30, %v9156_v51  ;;  %v9470_v5 = vld [vmem:[#allocation10 + $0x690] sm:$0xf0] }
 0x26c   :  { %4506 = vmatmul.bf16.gmra.mxu3 %v11570_v26  ;;  %4563 = vmatmul.bf16.gmra.mxu2 %v11543_v17 }
 0x26d   :  { %4620 = vmatmul.bf16.gmra.mxu1 %v11516_v4  ;;  %5536 = vmatmul.bf16.gmra.mxu0 %v11499_v45 }
 0x26e   :  { %5678 = vmatpush.bf16.msra.mxu0 %v9221_v47  ;;  %4649 = vmatpush.bf16.msrb.mxu3 %v9081_v12  ;;  %v9644_v47 = vld [vmem:[#allocation10 + $0x7e0] sm:$0xf]  ;;  %v9518_v12 = vld [vmem:[#allocation10 + $0x6f0] sm:$0xf0] }
 0x26f   :  { %5565 = vmatpush.bf16.msra.mxu2 %v9453_v18  ;;  %5622 = vmatpush.bf16.msrb.mxu1 %v9329_v9  ;;  %v9645_v46 = vor.u32 %v10816_v33, %v9644_v47  ;;  %v10719_v18 = vld [vmem:[#allocation10 + $0x4ec] sm:$0xf]  ;;  %v10812_v9 = vld [vmem:[#allocation10 + $0x7cc] sm:$0xf0] }
 0x270   :  { %v9273_v13 = vor.u32 %v10719_v18, %v9270_v19  ;;  %v9629_v0 = vor.u32 %v10812_v9, %v9628_v48  ;;  %v10703_v18 = vld [vmem:[#allocation10 + $0x46c] sm:$0xf]  ;;  %v9206_v19 = vld [vmem:[#allocation10 + $0x478] sm:$0xf0]  ;;  %v9564_v9 = vld [vmem:[#allocation10 + $0x740] sm:$0xf] }
 0x271   :  { %v11590_v61 = vpop.f32.mrf.mxu0  ;;  %v9209_v48 = vor.u32 %v10703_v18, %v9206_v19  ;;  %v10785_v18 = vld [vmem:[#allocation10 + $0x6f4] sm:$0xf0]  ;;  %v10751_v19 = vld [vmem:[#allocation10 + $0x5ec] sm:$0xf] }
 0x272   :  { %5679 = vmatpush.bf16.msra.mxu0 %v9205_v8  ;;  %4650 = vmatpush.bf16.msrb.mxu3 %v9065_v10  ;;  %v10778_v8 = vld [vmem:[#allocation10 + $0x6c4] sm:$0xf]  ;;  %v9502_v10 = vld [vmem:[#allocation10 + $0x6d0] sm:$0xf0] }
 0x273   :  { %5566 = vmatpush.bf16.msra.mxu2 %v9437_v43  ;;  %5623 = vmatpush.bf16.msrb.mxu1 %v9313_v41  ;;  %v9505_v32 = vor.u32 %v10778_v8, %v9502_v10  ;;  %v9254_v41 = vld [vmem:[#allocation10 + $0x4d8] sm:$0xf0]  ;;  %v10796_v8 = vld [vmem:[#allocation10 + $0x74c] sm:$0xf0] }
 0x274   :  { %v9257_v14 = vor.u32 %v10715_v62, %v9254_v41  ;;  %v9565_v10 = vor.u32 %v10796_v8, %v9564_v9  ;;  %v10699_v41 = vld [vmem:[#allocation10 + $0x44c] sm:$0xf]  ;;  %v9772_v9 = vld [vmem:[#allocation10 + $0x8e0] sm:$0xf]  ;;  %v10848_v8 = vld [vmem:[#allocation10 + $0x8ec] sm:$0xf0] }
 0x276   :  { %5680 = vmatpush.bf16.msra.mxu0 %v9189_v27  ;;  %4651 = vmatpush.bf16.msrb.mxu3 %v9049_v42  ;;  %v10774_v42 = vld [vmem:[#allocation10 + $0x6a4] sm:$0xf] }
 0x277   :  { %5567 = vmatpush.bf16.msra.mxu2 %v9421_v1  ;;  %5624 = vmatpush.bf16.msrb.mxu1 %v9297_v35  ;;  %v10745_v1 = vld [vmem:[#allocation10 + $0x5b4] sm:$0xf0]  ;;  %v9489_v58 = vor.u32 %v10774_v42, %v9486_v63  ;;  %v9241_v35 = vor.u32 %v10711_v59, %v9238_v28  ;;  %v10792_v63 = vld [vmem:[#allocation10 + $0x72c] sm:$0xf0] }
 0x278   :  { %v9365_v6 = vor.u32 %v10745_v1, %v9364_v29  ;;  %v10758_v29 = vld [vmem:[#allocation10 + $0x624] sm:$0xf]  ;;  %v10729_v59 = vld [vmem:[#allocation10 + $0x534] sm:$0xf0] }
 0x279   :  { %v4388_v34 = vpop.f32.mrf.mxu1  ;;  %v11592_v11 = vpop.f32.mrf.mxu0 }
 0x27a   :  { %v11595_v49 = vadd.f32 %v4388_v34, %v11576_v37  ;;  %5681 = vmatpush.bf16.msra.mxu0 %v9173_v60  ;;  %4652 = vmatpush.bf16.msrb.mxu3 %v9033_v3  ;;  %v9521_v37 = vor.u32 %v10782_v7, %v9518_v12  ;;  %v10804_v60 = vld [vmem:[#allocation10 + $0x78c] sm:$0xf0]  ;;  %v10770_v3 = vld [vmem:[#allocation10 + $0x684] sm:$0xf]  ;;  %v10707_v34 = vld [vmem:[#allocation10 + $0x48c] sm:$0xf] }
 0x27b   :  { %5568 = vmatpush.bf16.msra.mxu2 %v9405_v24  ;;  %5625 = vmatpush.bf16.msrb.mxu1 %v9281_v40  ;;  %v10741_v24 = vld [vmem:[#allocation10 + $0x594] sm:$0xf0]  ;;  %v9473_v30 = vor.u32 %v10770_v3, %v9470_v5  ;;  %v9222_v40 = vld [vmem:[#allocation10 + $0x498] sm:$0xf0]  ;;  %v9580_v7 = vld [vmem:[#allocation10 + $0x760] sm:$0xf] }
 0x27c   :  { %4577 = vmatmul.bf16.vlgmr.msra.gmra.mxu3 %v11557_v36  ;;  %4634 = vmatmul.bf16.vlgmr.msrb.gmra.mxu2 %v11529_v56  ;;  %v9349_v47 = vor.u32 %v10741_v24, %v9348_v52  ;;  %v9225_v33 = vor.u32 %v10707_v34, %v9222_v40  ;;  %v10766_v12 = vld [vmem:[#allocation10 + $0x664] sm:$0xf]  ;;  %v9532_v3 = vld [vmem:[#allocation10 + $0x700] sm:$0xf]  ;;  %v9406_v24 = vld [vmem:[#allocation10 + $0x610] sm:$0xf0] }
 0x27d   :  { %5550 = vmatmul.bf16.vlgmr.msra.gmra.mxu1 %v11506_v39  ;;  %5607 = vmatmul.bf16.vlgmr.msrb.gmra.mxu0 %v11492_v38  ;;  %v10754_v5 = vld [vmem:[#allocation10 + $0x604] sm:$0xf] }
 0x27e   :  { %5682 = vmatpush.bf16.msra.mxu0 %v9157_v23  ;;  %5580 = vmatpush.bf16.msra.mxu3 %v9645_v46  ;;  %v10800_v46 = vld [vmem:[#allocation10 + $0x76c] sm:$0xf0]  ;;  %v9409_v40 = vor.u32 %v10754_v5, %v9406_v24  ;;  %v9740_v5 = vld [vmem:[#allocation10 + $0x8a0] sm:$0xf] }
 0x27f   :  { %5637 = vmatpush.bf16.msrb.mxu2 %v9521_v37  ;;  %5694 = vmatpush.bf16.msra.mxu1 %v9397_v50  ;;  %v9581_v57 = vor.u32 %v10800_v46, %v9580_v7  ;;  %v9332_v37 = vld [vmem:[#allocation10 + $0x568] sm:$0xf]  ;;  %v10737_v50 = vld [vmem:[#allocation10 + $0x574] sm:$0xf0] }
 0x281   :  { %v4390_v20 = vpop.f32.mrf.mxu1  ;;  %v11601_v43 = vpop.f32.mrf.mxu0 }
 0x282   :  { %5751 = vmatpush.bf16.msrb.mxu0 %v9273_v13  ;;  %v11604_v27 = vadd.f32 %v4390_v20, %v11582_v16  ;;  %5581 = vmatpush.bf16.msra.mxu3 %v9629_v0  ;;  %v9596_v16 = vld [vmem:[#allocation10 + $0x780] sm:$0xf]  ;;  %v9333_v13 = vor.u32 %v10737_v50, %v9332_v37  ;;  %v10762_v0 = vld [vmem:[#allocation10 + $0x644] sm:$0xf]  ;;  %v10733_v20 = vld [vmem:[#allocation10 + $0x554] sm:$0xf0] }
 0x283   :  { %5638 = vmatpush.bf16.msrb.mxu2 %v9505_v32  ;;  %5695 = vmatpush.bf16.msra.mxu1 %v9381_v55  ;;  %v9597_v54 = vor.u32 %v10804_v60, %v9596_v16  ;;  %v9441_v62 = vor.u32 %v10762_v0, %v9438_v53  ;;  %v9317_v21 = vor.u32 %v10733_v20, %v9316_v2  ;;  %v9174_v16 = vld [vmem:[#allocation10 + $0x438] sm:$0xf0]  ;;  %v9646_v37 = vld [vmem:[#allocation10 + $0x7f0] sm:$0xf0]  ;;  %v9524_v50 = vld [vmem:[#allocation10 + $0x6e8] sm:$0xf] }
 0x284   :  { %v9773_v0 = vor.u32 %v10848_v8, %v9772_v9  ;;  %v10810_v53 = vld [vmem:[#allocation10 + $0x7c4] sm:$0xf]  ;;  %v9630_v2 = vld [vmem:[#allocation10 + $0x7d0] sm:$0xf0]  ;;  %v9508_v20 = vld [vmem:[#allocation10 + $0x6c8] sm:$0xf] }
 0x285   :  { %v9582_v9 = vld [vmem:[#allocation10 + $0x770] sm:$0xf0]  ;;  %v9460_v8 = vld [vmem:[#allocation10 + $0x668] sm:$0xf] }
 0x286   :  { %5752 = vmatpush.bf16.msrb.mxu0 %v9257_v14  ;;  %5582 = vmatpush.bf16.msra.mxu3 %v9613_v25  ;;  %v9190_v14 = vld [vmem:[#allocation10 + $0x458] sm:$0xf0]  ;;  %v9548_v25 = vld [vmem:[#allocation10 + $0x720] sm:$0xf] }
 0x287   :  { %5639 = vmatpush.bf16.msrb.mxu2 %v9489_v58  ;;  %5696 = vmatpush.bf16.msra.mxu1 %v9365_v6  ;;  %v9193_v42 = vor.u32 %v10699_v41, %v9190_v14  ;;  %v9549_v1 = vor.u32 %v10792_v63, %v9548_v25  ;;  %v9422_v58 = vld [vmem:[#allocation10 + $0x630] sm:$0xf0]  ;;  %v9300_v6 = vld [vmem:[#allocation10 + $0x528] sm:$0xf]  ;;  %v10781_v41 = vld [vmem:[#allocation10 + $0x6d4] sm:$0xf0] }
 0x288   :  { %v9425_v28 = vor.u32 %v10758_v29, %v9422_v58  ;;  %v10747_v14 = vld [vmem:[#allocation10 + $0x5cc] sm:$0xf]  ;;  %v9382_v25 = vld [vmem:[#allocation10 + $0x5d8] sm:$0xf0]  ;;  %v9756_v63 = vld [vmem:[#allocation10 + $0x8c0] sm:$0xf] }
 0x289   :  { %v4393_v15 = vpop.f32.mrf.mxu1  ;;  %v11606_v51 = vpop.f32.mrf.mxu0  ;;  %v10844_v29 = vld [vmem:[#allocation10 + $0x8cc] sm:$0xf0] }
 0x28a   :  { %5753 = vmatpush.bf16.msrb.mxu0 %v9241_v35  ;;  %v11609_v23 = vadd.f32 %v4393_v15, %v11584_v22  ;;  %5583 = vmatpush.bf16.msra.mxu3 %v9597_v54  ;;  %v9457_v22 = vor.u32 %v10766_v12, %v9454_v44  ;;  %v10695_v35 = vld [vmem:[#allocation10 + $0x42c] sm:$0xf]  ;;  %v10788_v54 = vld [vmem:[#allocation10 + $0x70c] sm:$0xf0]  ;;  %v9284_v15 = vld [vmem:[#allocation10 + $0x508] sm:$0xf] }
 0x28b   :  { %5640 = vmatpush.bf16.msrb.mxu2 %v9473_v30  ;;  %5697 = vmatpush.bf16.msra.mxu1 %v9349_v47  ;;  %v9177_v60 = vor.u32 %v10695_v35, %v9174_v16  ;;  %v9533_v52 = vor.u32 %v10788_v54, %v9532_v3  ;;  %v10725_v30 = vld [vmem:[#allocation10 + $0x514] sm:$0xf0]  ;;  %v10691_v47 = vld [vmem:[#allocation10 + $0x40c] sm:$0xf]  ;;  %v10814_v44 = vld [vmem:[#allocation10 + $0x7e4] sm:$0xf] }
 0x28c   :  { %4582 = vmatmul.bf16.gmra.mxu3 %v11570_v26  ;;  %4639 = vmatmul.bf16.gmra.mxu2 %v11543_v17  ;;  %v9285_v12 = vor.u32 %v10725_v30, %v9284_v15  ;;  %v9492_v35 = vld [vmem:[#allocation10 + $0x6a8] sm:$0xf]  ;;  %v9366_v54 = vld [vmem:[#allocation10 + $0x5b8] sm:$0xf0]  ;;  %v10802_v30 = vld [vmem:[#allocation10 + $0x784] sm:$0xf] }
 0x28d   :  { %5555 = vmatmul.bf16.gmra.mxu1 %v11516_v4  ;;  %5612 = vmatmul.bf16.gmra.mxu0 %v11499_v45 }
 0x28e   :  { %5754 = vmatpush.bf16.msrb.mxu0 %v9225_v33  ;;  %5584 = vmatpush.bf16.msra.mxu3 %v9581_v57  ;;  %v9158_v33 = vld [vmem:[#allocation10 + $0x418] sm:$0xf0] }
 0x28f   :  { %5641 = vmatpush.bf16.msrb.mxu2 %v9457_v22  ;;  %5698 = vmatpush.bf16.msra.mxu1 %v9333_v13  ;;  %v9161_v57 = vor.u32 %v10691_v47, %v9158_v33  ;;  %v9649_v22 = vor.u32 %v10814_v44, %v9646_v37  ;;  %v9525_v13 = vor.u32 %v10785_v18, %v9524_v50  ;;  %v9350_v44 = vld [vmem:[#allocation10 + $0x598] sm:$0xf0]  ;;  %v10836_v18 = vld [vmem:[#allocation10 + $0x88c] sm:$0xf0] }
 0x291   :  { %v4395_v32 = vpop.f32.mrf.mxu1  ;;  %v11615_v55 = vpop.f32.mrf.mxu0 }
 0x292   :  { %v11618_v31 = vadd.f32 %v4395_v32, %v11590_v61  ;;  %5755 = vmatpush.bf16.msrb.mxu0 %v9209_v48  ;;  %5585 = vmatpush.bf16.msra.mxu3 %v9565_v10  ;;  %v9301_v61 = vor.u32 %v10729_v59, %v9300_v6  ;;  %v9385_v6 = vor.u32 %v10747_v14, %v9382_v25  ;;  %v9566_v25 = vld [vmem:[#allocation10 + $0x750] sm:$0xf0] }
 0x293   :  { %5642 = vmatpush.bf16.msrb.mxu2 %v9441_v62  ;;  %5699 = vmatpush.bf16.msra.mxu1 %v9317_v21  ;;  %v9633_v62 = vor.u32 %v10810_v53, %v9630_v2  ;;  %v9757_v59 = vor.u32 %v10844_v29, %v9756_v63  ;;  %v10735_v53 = vld [vmem:[#allocation10 + $0x56c] sm:$0xf]  ;;  %v9334_v2 = vld [vmem:[#allocation10 + $0x578] sm:$0xf0]  ;;  %v9444_v63 = vld [vmem:[#allocation10 + $0x648] sm:$0xf] }
 0x296   :  { %5756 = vmatpush.bf16.msrb.mxu0 %v9193_v42  ;;  %5586 = vmatpush.bf16.msra.mxu3 %v9549_v1  ;;  %v9509_v42 = vor.u32 %v10781_v41, %v9508_v20  ;;  %v9708_v20 = vld [vmem:[#allocation10 + $0x860] sm:$0xf]  ;;  %v9337_v41 = vor.u32 %v10735_v53, %v9334_v2  ;;  %v10820_v53 = vld [vmem:[#allocation10 + $0x80c] sm:$0xf0] }
 0x297   :  { %5643 = vmatpush.bf16.msrb.mxu2 %v9425_v28  ;;  %5700 = vmatpush.bf16.msra.mxu1 %v9301_v61  ;;  %v9614_v28 = vld [vmem:[#allocation10 + $0x7b0] sm:$0xf0]  ;;  %v10777_v61 = vld [vmem:[#allocation10 + $0x6b4] sm:$0xf0] }
 0x298   :  { %v9493_v3 = vor.u32 %v10777_v61, %v9492_v35  ;;  %v9692_v61 = vld [vmem:[#allocation10 + $0x840] sm:$0xf] }
 0x299   :  { %v4464_v34 = vpop.f32.mrf.mxu1 }
 0x29a   :  { %v11621_v7 = vadd.f32 %v4464_v34, %v11592_v11  ;;  %v11623_v46 = vpop.f32.mrf.mxu0  ;;  %5757 = vmatpush.bf16.msrb.mxu0 %v9177_v60  ;;  %5587 = vmatpush.bf16.msra.mxu3 %v9533_v52  ;;  %v9398_v11 = vld [vmem:[#allocation10 + $0x5f8] sm:$0xf0]  ;;  %v10743_v60 = vld [vmem:[#allocation10 + $0x5ac] sm:$0xf]  ;;  %v10840_v52 = vld [vmem:[#allocation10 + $0x8ac] sm:$0xf0] }
 0x29b   :  { %5644 = vmatpush.bf16.msrb.mxu2 %v9409_v40  ;;  %v9401_v48 = vor.u32 %v10751_v19, %v9398_v11  ;;  %5701 = vmatpush.bf16.msra.mxu1 %v9285_v12  ;;  %v9741_v24 = vor.u32 %v10840_v52, %v9740_v5  ;;  %v9598_v34 = vld [vmem:[#allocation10 + $0x790] sm:$0xf0]  ;;  %v9476_v40 = vld [vmem:[#allocation10 + $0x688] sm:$0xf]  ;;  %v10773_v12 = vld [vmem:[#allocation10 + $0x694] sm:$0xf0] }
 0x29c   :  { %4653 = vmatmul.bf16.vlgmr.msrb.gmra.mxu3 %v11557_v36  ;;  %5569 = vmatmul.bf16.vlgmr.msra.gmra.mxu2 %v11529_v56  ;;  %v9601_v33 = vor.u32 %v10802_v30, %v9598_v34  ;;  %v9477_v50 = vor.u32 %v10773_v12, %v9476_v40  ;;  %v10761_v30 = vld [vmem:[#allocation10 + $0x634] sm:$0xf0]  ;;  %v10727_v34 = vld [vmem:[#allocation10 + $0x52c] sm:$0xf]  ;;  %v9302_v40 = vld [vmem:[#allocation10 + $0x538] sm:$0xf0] }
 0x29d   :  { %5626 = vmatmul.bf16.vlgmr.msrb.gmra.mxu1 %v11506_v39  ;;  %5683 = vmatmul.bf16.vlgmr.msra.gmra.mxu0 %v11492_v38  ;;  %v9676_v12 = vld [vmem:[#allocation10 + $0x820] sm:$0xf] }
 0x29e   :  { %5758 = vmatpush.bf16.msrb.mxu0 %v9161_v57  ;;  %5656 = vmatpush.bf16.msrb.mxu3 %v9649_v22  ;;  %v10739_v57 = vld [vmem:[#allocation10 + $0x58c] sm:$0xf]  ;;  %v9724_v22 = vld [vmem:[#allocation10 + $0x880] sm:$0xf] }
 0x29f   :  { %v4407_v10 = vpop.f32.mrf.mxu2  ;;  %5713 = vmatpush.bf16.msra.mxu2 %v9525_v13  ;;  %5770 = vmatpush.bf16.msrb.mxu1 %v9401_v48  ;;  %v9353_v13 = vor.u32 %v10739_v57, %v9350_v44  ;;  %v9725_v48 = vor.u32 %v10836_v18, %v9724_v22  ;;  %v10824_v57 = vld [vmem:[#allocation10 + $0x82c] sm:$0xf0]  ;;  %v9534_v22 = vld [vmem:[#allocation10 + $0x710] sm:$0xf0]  ;;  %v9412_v18 = vld [vmem:[#allocation10 + $0x608] sm:$0xf] }
 0x2a0   :  { %v11630_v32 = vadd.f32 %v4407_v10, %v11595_v49  ;;  %v10806_v49 = vld [vmem:[#allocation10 + $0x7a4] sm:$0xf]  ;;  %v10769_v10 = vld [vmem:[#allocation10 + $0x674] sm:$0xf0]  ;;  %v9677_v44 = vor.u32 %v10824_v57, %v9676_v12  ;;  %v9758_v57 = vld [vmem:[#allocation10 + $0x8d0] sm:$0xf0] }
 0x2a1   :  { %v4466_v21 = vpop.f32.mrf.mxu1  ;;  %v9617_v16 = vor.u32 %v10806_v49, %v9614_v28  ;;  %v10731_v49 = vld [vmem:[#allocation10 + $0x54c] sm:$0xf]  ;;  %v9318_v28 = vld [vmem:[#allocation10 + $0x558] sm:$0xf0]  ;;  %v10842_v12 = vld [vmem:[#allocation10 + $0x8c4] sm:$0xf] }
 0x2a2   :  { %6612 = vmatpush.bf16.msra.mxu0 %v9773_v0  ;;  %v11633_v1 = vadd.f32 %v4466_v21, %v11601_v43  ;;  %v11635_v58 = vpop.f32.mrf.mxu0  ;;  %5657 = vmatpush.bf16.msrb.mxu3 %v9633_v62  ;;  %v9369_v43 = vor.u32 %v10743_v60, %v9366_v54  ;;  %v10832_v62 = vld [vmem:[#allocation10 + $0x86c] sm:$0xf0]  ;;  %v9321_v5 = vor.u32 %v10731_v49, %v9318_v28  ;;  %v10846_v49 = vld [vmem:[#allocation10 + $0x8e4] sm:$0xf]  ;;  %v9774_v28 = vld [vmem:[#allocation10 + $0x8f0] sm:$0xf0] }
 0x2a3   :  { %5714 = vmatpush.bf16.msra.mxu2 %v9509_v42  ;;  %5771 = vmatpush.bf16.msrb.mxu1 %v9385_v6  ;;  %v9709_v14 = vor.u32 %v10832_v62, %v9708_v20  ;;  %v10794_v42 = vld [vmem:[#allocation10 + $0x744] sm:$0xf]  ;;  %v10828_v60 = vld [vmem:[#allocation10 + $0x84c] sm:$0xf0] }
 0x2a4   :  { %v9569_v6 = vor.u32 %v10794_v42, %v9566_v25  ;;  %v9693_v52 = vor.u32 %v10828_v60, %v9692_v61  ;;  %v9526_v25 = vld [vmem:[#allocation10 + $0x6f8] sm:$0xf0]  ;;  %v9636_v60 = vld [vmem:[#allocation10 + $0x7c8] sm:$0xf] }
 0x2a6   :  { %6613 = vmatpush.bf16.msra.mxu0 %v9757_v59  ;;  %5658 = vmatpush.bf16.msrb.mxu3 %v9617_v16  ;;  %v10765_v59 = vld [vmem:[#allocation10 + $0x654] sm:$0xf0] }
 0x2a7   :  { %v4409_v15 = vpop.f32.mrf.mxu2  ;;  %5715 = vmatpush.bf16.msra.mxu2 %v9493_v3  ;;  %5772 = vmatpush.bf16.msrb.mxu1 %v9369_v43  ;;  %v9445_v16 = vor.u32 %v10765_v59, %v9444_v63  ;;  %v9550_v43 = vld [vmem:[#allocation10 + $0x730] sm:$0xf0]  ;;  %v9900_v63 = vld [vmem:[#allocation10 + $0x9e0] sm:$0xf] }
 0x2a8   :  { %v11638_v47 = vadd.f32 %v4409_v15, %v11604_v27  ;;  %v10798_v27 = vld [vmem:[#allocation10 + $0x764] sm:$0xf] }
 0x2a9   :  { %v4469_v37 = vpop.f32.mrf.mxu1  ;;  %v9585_v0 = vor.u32 %v10798_v27, %v9582_v9  ;;  %v10757_v27 = vld [vmem:[#allocation10 + $0x614] sm:$0xf0]  ;;  %v10723_v9 = vld [vmem:[#allocation10 + $0x50c] sm:$0xf] }
 0x2aa   :  { %6614 = vmatpush.bf16.msra.mxu0 %v9741_v24  ;;  %v11641_v19 = vadd.f32 %v4469_v37, %v11606_v51  ;;  %v11643_v11 = vpop.f32.mrf.mxu0  ;;  %5659 = vmatpush.bf16.msrb.mxu3 %v9601_v33  ;;  %v9461_v51 = vor.u32 %v10769_v10, %v9460_v8  ;;  %v9428_v24 = vld [vmem:[#allocation10 + $0x628] sm:$0xf]  ;;  %v9286_v8 = vld [vmem:[#allocation10 + $0x518] sm:$0xf0]  ;;  %v9660_v10 = vld [vmem:[#allocation10 + $0x800] sm:$0xf] }
 0x2ab   :  { %5716 = vmatpush.bf16.msra.mxu2 %v9477_v50  ;;  %5773 = vmatpush.bf16.msrb.mxu1 %v9353_v13  ;;  %v9429_v33 = vor.u32 %v10761_v30, %v9428_v24  ;;  %v10786_v50 = vld [vmem:[#allocation10 + $0x704] sm:$0xf]  ;;  %v9289_v20 = vor.u32 %v10723_v9, %v9286_v8  ;;  %v9661_v62 = vor.u32 %v10820_v53, %v9660_v10  ;;  %v9884_v30 = vld [vmem:[#allocation10 + $0x9c0] sm:$0xf]  ;;  %v10872_v8 = vld [vmem:[#allocation10 + $0x9ac] sm:$0xf0] }
 0x2ac   :  { %4658 = vmatmul.bf16.gmra.mxu3 %v11570_v26  ;;  %5574 = vmatmul.bf16.gmra.mxu2 %v11543_v17  ;;  %v9742_v10 = vld [vmem:[#allocation10 + $0x8b0] sm:$0xf0] }
 0x2ad   :  { %5631 = vmatmul.bf16.gmra.mxu1 %v11516_v4  ;;  %5688 = vmatmul.bf16.gmra.mxu0 %v11499_v45 }
 0x2ae   :  { %6615 = vmatpush.bf16.msra.mxu0 %v9725_v48  ;;  %5660 = vmatpush.bf16.msrb.mxu3 %v9585_v0  ;;  %v9537_v48 = vor.u32 %v10786_v50, %v9534_v22  ;;  %v9413_v0 = vor.u32 %v10757_v27, %v9412_v18  ;;  %v10809_v50 = vld [vmem:[#allocation10 + $0x7b4] sm:$0xf0]  ;;  %v10775_v22 = vld [vmem:[#allocation10 + $0x6ac] sm:$0xf]  ;;  %v9868_v27 = vld [vmem:[#allocation10 + $0x9a0] sm:$0xf] }
 0x2af   :  { %v4412_v21 = vpop.f32.mrf.mxu2  ;;  %5717 = vmatpush.bf16.msra.mxu2 %v9461_v51  ;;  %5774 = vmatpush.bf16.msrb.mxu1 %v9337_v41  ;;  %v9869_v53 = vor.u32 %v10872_v8, %v9868_v27  ;;  %v10763_v27 = vld [vmem:[#allocation10 + $0x64c] sm:$0xf] }
 0x2b0   :  { %v11650_v29 = vadd.f32 %v4412_v21, %v11609_v23  ;;  %v10790_v23 = vld [vmem:[#allocation10 + $0x724] sm:$0xf]  ;;  %v10783_v21 = vld [vmem:[#allocation10 + $0x6ec] sm:$0xf] }
 0x2b1   :  { %v4471_v35 = vpop.f32.mrf.mxu1  ;;  %v9553_v15 = vor.u32 %v10790_v23, %v9550_v43  ;;  %v9529_v59 = vor.u32 %v10783_v21, %v9526_v25 }
 0x2b2   :  { %v11653_v3 = vadd.f32 %v4471_v35, %v11615_v55  ;;  %v11655_v54 = vpop.f32.mrf.mxu0  ;;  %6616 = vmatpush.bf16.msra.mxu0 %v9709_v14  ;;  %5661 = vmatpush.bf16.msrb.mxu3 %v9569_v6  ;;  %v9305_v55 = vor.u32 %v10727_v34, %v9302_v40  ;;  %v10817_v14 = vld [vmem:[#allocation10 + $0x7f4] sm:$0xf0]  ;;  %v10880_v6 = vld [vmem:[#allocation10 + $0x9ec] sm:$0xf0]  ;;  %v9777_v35 = vor.u32 %v10846_v49, %v9774_v28  ;;  %v10834_v49 = vld [vmem:[#allocation10 + $0x884] sm:$0xf] }
 0x2b3   :  { %5718 = vmatpush.bf16.msra.mxu2 %v9445_v16  ;;  %5775 = vmatpush.bf16.msrb.mxu1 %v9321_v5  ;;  %v10813_v5 = vld [vmem:[#allocation10 + $0x7d4] sm:$0xf0]  ;;  %v10876_v34 = vld [vmem:[#allocation10 + $0x9cc] sm:$0xf0]  ;;  %v9726_v28 = vld [vmem:[#allocation10 + $0x890] sm:$0xf0] }
 0x2b4   :  { %v9637_v24 = vor.u32 %v10813_v5, %v9636_v60 }
 0x2b6   :  { %6617 = vmatpush.bf16.msra.mxu0 %v9693_v52  ;;  %5662 = vmatpush.bf16.msrb.mxu3 %v9553_v15  ;;  %v10779_v52 = vld [vmem:[#allocation10 + $0x6cc] sm:$0xf]  ;;  %v9510_v15 = vld [vmem:[#allocation10 + $0x6d8] sm:$0xf0] }
 0x2b7   :  { %v4414_v37 = vpop.f32.mrf.mxu2  ;;  %5719 = vmatpush.bf16.msra.mxu2 %v9429_v33  ;;  %5776 = vmatpush.bf16.msrb.mxu1 %v9305_v55  ;;  %v9513_v40 = vor.u32 %v10779_v52, %v9510_v15  ;;  %v9885_v33 = vor.u32 %v10876_v34, %v9884_v30  ;;  %v9588_v52 = vld [vmem:[#allocation10 + $0x768] sm:$0xf]  ;;  %v10767_v15 = vld [vmem:[#allocation10 + $0x66c] sm:$0xf]  ;;  %v9462_v34 = vld [vmem:[#allocation10 + $0x678] sm:$0xf0] }
 0x2b8   :  { %v11658_v13 = vadd.f32 %v4414_v37, %v11618_v31  ;;  %v9652_v31 = vld [vmem:[#allocation10 + $0x7e8] sm:$0xf]  ;;  %v9761_v37 = vor.u32 %v10842_v12, %v9758_v57  ;;  %v10830_v57 = vld [vmem:[#allocation10 + $0x864] sm:$0xf] }
 0x2b9   :  { %v9653_v42 = vor.u32 %v10817_v14, %v9652_v31  ;;  %v10805_v31 = vld [vmem:[#allocation10 + $0x794] sm:$0xf0]  ;;  %v10771_v14 = vld [vmem:[#allocation10 + $0x68c] sm:$0xf] }
 0x2ba   :  { %v4540_v2 = vpop.f32.mrf.mxu1  ;;  %v11660_v51 = vpop.f32.mrf.mxu0  ;;  %6618 = vmatpush.bf16.msra.mxu0 %v9677_v44  ;;  %5663 = vmatpush.bf16.msrb.mxu3 %v9537_v48  ;;  %v9494_v48 = vld [vmem:[#allocation10 + $0x6b8] sm:$0xf0] }
 0x2bb   :  { %v11663_v41 = vadd.f32 %v4540_v2, %v11623_v46  ;;  %5720 = vmatpush.bf16.msra.mxu2 %v9413_v0  ;;  %v9901_v46 = vor.u32 %v10880_v6, %v9900_v63  ;;  %5777 = vmatpush.bf16.msrb.mxu1 %v9289_v20  ;;  %v9497_v9 = vor.u32 %v10775_v22, %v9494_v48  ;;  %v10838_v0 = vld [vmem:[#allocation10 + $0x8a4] sm:$0xf]  ;;  %v9478_v63 = vld [vmem:[#allocation10 + $0x698] sm:$0xf0]  ;;  %v9852_v6 = vld [vmem:[#allocation10 + $0x980] sm:$0xf] }
 0x2bc   :  { %5588 = vmatmul.bf16.vlgmr.msra.gmra.mxu3 %v11557_v36  ;;  %5645 = vmatmul.bf16.vlgmr.msrb.gmra.mxu2 %v11529_v56  ;;  %v9745_v2 = vor.u32 %v10838_v0, %v9742_v10  ;;  %v10797_v48 = vld [vmem:[#allocation10 + $0x754] sm:$0xf0]  ;;  %v9446_v10 = vld [vmem:[#allocation10 + $0x658] sm:$0xf0] }
 0x2bd   :  { %5702 = vmatmul.bf16.vlgmr.msra.gmra.mxu1 %v11506_v39  ;;  %5759 = vmatmul.bf16.vlgmr.msrb.gmra.mxu0 %v11492_v38 }
 0x2be   :  { %6619 = vmatpush.bf16.msra.mxu0 %v9661_v62  ;;  %5732 = vmatpush.bf16.msra.mxu3 %v9653_v42 }
 0x2bf   :  { %v4426_v16 = vpop.f32.mrf.mxu3  ;;  %v4483_v61 = vpop.f32.mrf.mxu2  ;;  %5789 = vmatpush.bf16.msrb.mxu2 %v9529_v59  ;;  %6631 = vmatpush.bf16.msra.mxu1 %v9901_v46  ;;  %v10868_v59 = vld [vmem:[#allocation10 + $0x98c] sm:$0xf0]  ;;  %v9481_v46 = vor.u32 %v10771_v14, %v9478_v63  ;;  %v10793_v63 = vld [vmem:[#allocation10 + $0x734] sm:$0xf0] }
 0x2c0   :  { %v11670_v23 = vadd.f32 %v4426_v16, %v11630_v32  ;;  %v11673_v43 = vadd.f32 %v4483_v61, %v11621_v7  ;;  %v9620_v7 = vld [vmem:[#allocation10 + $0x7a8] sm:$0xf]  ;;  %v9853_v5 = vor.u32 %v10868_v59, %v9852_v6  ;;  %v10759_v6 = vld [vmem:[#allocation10 + $0x62c] sm:$0xf] }
 0x2c1   :  { %v9621_v18 = vor.u32 %v10809_v50, %v9620_v7 }
 0x2c2   :  { %6688 = vmatpush.bf16.msrb.mxu0 %v9777_v35  ;;  %v4542_v55 = vpop.f32.mrf.mxu1  ;;  %v11675_v44 = vpop.f32.mrf.mxu0  ;;  %5733 = vmatpush.bf16.msra.mxu3 %v9637_v24  ;;  %v4681_v35 = vrot.slane %v11670_v23, 7  ;;  %v10801_v24 = vld [vmem:[#allocation10 + $0x774] sm:$0xf0] }
 0x2c3   :  { %v11678_v32 = vadd.f32 %v4542_v55, %v11635_v58  ;;  %5790 = vmatpush.bf16.msrb.mxu2 %v9513_v40  ;;  %6632 = vmatpush.bf16.msra.mxu1 %v9885_v33  ;;  %v9604_v58 = vld [vmem:[#allocation10 + $0x788] sm:$0xf]  ;;  %v9589_v30 = vor.u32 %v10801_v24, %v9588_v52  ;;  %v9836_v40 = vld [vmem:[#allocation10 + $0x960] sm:$0xf]  ;;  %v10864_v33 = vld [vmem:[#allocation10 + $0x96c] sm:$0xf0] }
 0x2c4   :  { %v9605_v25 = vor.u32 %v10805_v31, %v9604_v58  ;;  %v9710_v55 = vld [vmem:[#allocation10 + $0x870] sm:$0xf0] }
 0x2c5   :  { %v9713_v7 = vor.u32 %v10830_v57, %v9710_v55  ;;  %v9694_v58 = vld [vmem:[#allocation10 + $0x850] sm:$0xf0]  ;;  %v9414_v57 = vld [vmem:[#allocation10 + $0x618] sm:$0xf0]  ;;  %v9788_v55 = vld [vmem:[#allocation10 + $0x900] sm:$0xf] }
 0x2c6   :  { %6689 = vmatpush.bf16.msrb.mxu0 %v9761_v37  ;;  %5734 = vmatpush.bf16.msra.mxu3 %v9621_v18  ;;  %v9837_v37 = vor.u32 %v10864_v33, %v9836_v40  ;;  %v9572_v18 = vld [vmem:[#allocation10 + $0x748] sm:$0xf] }
 0x2c7   :  { %v4428_v20 = vpop.f32.mrf.mxu3  ;;  %v4485_v62 = vpop.f32.mrf.mxu2  ;;  %5791 = vmatpush.bf16.msrb.mxu2 %v9497_v9  ;;  %6633 = vmatpush.bf16.msra.mxu1 %v9869_v53  ;;  %v9573_v0 = vor.u32 %v10797_v48, %v9572_v18  ;;  %v9820_v53 = vld [vmem:[#allocation10 + $0x940] sm:$0xf] }
 0x2c8   :  { %v4429_v21 = vadd.f32 %v4428_v20, %v11638_v47  ;;  %v11682_v42 = vadd.f32 %v4485_v62, %v11633_v1  ;;  %v9729_v47 = vor.u32 %v10834_v49, %v9726_v28  ;;  %v9449_v20 = vor.u32 %v10763_v27, %v9446_v10  ;;  %v10826_v62 = vld [vmem:[#allocation10 + $0x844] sm:$0xf]  ;;  %v9804_v49 = vld [vmem:[#allocation10 + $0x920] sm:$0xf] }
 0x2ca   :  { %6690 = vmatpush.bf16.msrb.mxu0 %v9745_v2  ;;  %v4685_v16 = vrot.slane %v4429_v21, 7  ;;  %v4545_v61 = vpop.f32.mrf.mxu1  ;;  %v11685_v60 = vpop.f32.mrf.mxu0  ;;  %5735 = vmatpush.bf16.msra.mxu3 %v9605_v25  ;;  %v10860_v2 = vld [vmem:[#allocation10 + $0x94c] sm:$0xf0]  ;;  %v9697_v25 = vor.u32 %v10826_v62, %v9694_v58 }
 0x2cb   :  { %v11688_v1 = vadd.f32 %v4545_v61, %v11643_v11  ;;  %5792 = vmatpush.bf16.msrb.mxu2 %v9481_v46  ;;  %v9465_v11 = vor.u32 %v10767_v15, %v9462_v34  ;;  %6634 = vmatpush.bf16.msra.mxu1 %v9853_v5  ;;  %v9821_v21 = vor.u32 %v10860_v2, %v9820_v53  ;;  %v9430_v46 = vld [vmem:[#allocation10 + $0x638] sm:$0xf0]  ;;  %v10822_v61 = vld [vmem:[#allocation10 + $0x824] sm:$0xf]  ;;  %v9678_v5 = vld [vmem:[#allocation10 + $0x830] sm:$0xf0] }
 0x2cc   :  { %5593 = vmatmul.bf16.gmra.mxu3 %v11570_v26  ;;  %5650 = vmatmul.bf16.gmra.mxu2 %v11543_v17  ;;  %v11695_v12 = vsel %vm1251_vm0, %v4681_v35, %v4685_v16  ;;  %v9433_v28 = vor.u32 %v10759_v6, %v9430_v46  ;;  %v10856_v16 = vld [vmem:[#allocation10 + $0x92c] sm:$0xf0]  ;;  %v9681_v52 = vor.u32 %v10822_v61, %v9678_v5  ;;  %v10755_v34 = vld [vmem:[#allocation10 + $0x60c] sm:$0xf]  ;;  %v9654_v53 = vld [vmem:[#allocation10 + $0x7f8] sm:$0xf0] }
 0x2cd   :  { %5707 = vmatmul.bf16.gmra.mxu1 %v11516_v4  ;;  %5764 = vmatmul.bf16.gmra.mxu0 %v11499_v45  ;;  %v10028_v2 = vld [vmem:[#allocation10 + $0xae0] sm:$0xf]  ;;  %v10912_v58 = vld [vmem:[#allocation10 + $0xaec] sm:$0xf0]  ;;  %v10849_v6 = vld [vmem:[#allocation10 + $0x8f4] sm:$0xf0] }
 0x2ce   :  { %6691 = vmatpush.bf16.msrb.mxu0 %v9729_v47  ;;  %5736 = vmatpush.bf16.msra.mxu3 %v9589_v30  ;;  %v9805_v47 = vor.u32 %v10856_v16, %v9804_v49  ;;  %v10789_v30 = vld [vmem:[#allocation10 + $0x714] sm:$0xf0]  ;;  %v9638_v16 = vld [vmem:[#allocation10 + $0x7d8] sm:$0xf0]  ;;  %v10012_v61 = vld [vmem:[#allocation10 + $0xac0] sm:$0xf] }
 0x2cf   :  { %v4431_v50 = vpop.f32.mrf.mxu3  ;;  %v4488_v22 = vpop.f32.mrf.mxu2  ;;  %5793 = vmatpush.bf16.msrb.mxu2 %v9465_v11  ;;  %6635 = vmatpush.bf16.msra.mxu1 %v9837_v37  ;;  %v10852_v37 = vld [vmem:[#allocation10 + $0x90c] sm:$0xf0] }
 0x2d0   :  { %v11700_v9 = vadd.f32 %v4431_v50, %v11650_v29  ;;  %v11703_v8 = vadd.f32 %v4488_v22, %v11641_v19  ;;  %v9556_v19 = vld [vmem:[#allocation10 + $0x728] sm:$0xf]  ;;  %v10818_v50 = vld [vmem:[#allocation10 + $0x804] sm:$0xf]  ;;  %v9662_v22 = vld [vmem:[#allocation10 + $0x810] sm:$0xf0] }
 0x2d1   :  { %v9557_v59 = vor.u32 %v10793_v63, %v9556_v19  ;;  %v9665_v10 = vor.u32 %v10818_v50, %v9662_v22  ;;  %v9780_v63 = vld [vmem:[#allocation10 + $0x8e8] sm:$0xf]  ;;  %v10904_v22 = vld [vmem:[#allocation10 + $0xaac] sm:$0xf0] }
 0x2d2   :  { %v4547_v31 = vpop.f32.mrf.mxu1  ;;  %v11705_v14 = vpop.f32.mrf.mxu0  ;;  %6692 = vmatpush.bf16.msrb.mxu0 %v9713_v7  ;;  %5737 = vmatpush.bf16.msra.mxu3 %v9573_v0  ;;  %v9417_v7 = vor.u32 %v10755_v34, %v9414_v57  ;;  %v4693_v18 = vrot.slane %v11700_v9, 7  ;;  %v9789_v0 = vor.u32 %v10852_v37, %v9788_v55 }
 0x2d3   :  { %v11708_v29 = vadd.f32 %v4547_v31, %v11655_v54  ;;  %5794 = vmatpush.bf16.msrb.mxu2 %v9449_v20  ;;  %6636 = vmatpush.bf16.msra.mxu1 %v9821_v21  ;;  %v9540_v54 = vld [vmem:[#allocation10 + $0x708] sm:$0xf]  ;;  %v10878_v31 = vld [vmem:[#allocation10 + $0x9e4] sm:$0xf]  ;;  %v9902_v21 = vld [vmem:[#allocation10 + $0x9f0] sm:$0xf0] }
 0x2d4   :  { %v9541_v11 = vor.u32 %v10789_v30, %v9540_v54  ;;  %v9905_v19 = vor.u32 %v10878_v31, %v9902_v21  ;;  %v9886_v54 = vld [vmem:[#allocation10 + $0x9d0] sm:$0xf0]  ;;  %v10803_v31 = vld [vmem:[#allocation10 + $0x78c] sm:$0xf]  ;;  %v9606_v21 = vld [vmem:[#allocation10 + $0x798] sm:$0xf0] }
 0x2d6   :  { %6693 = vmatpush.bf16.msrb.mxu0 %v9697_v25  ;;  %5738 = vmatpush.bf16.msra.mxu3 %v9557_v59  ;;  %v10029_v25 = vor.u32 %v10912_v58, %v10028_v2  ;;  %v9781_v59 = vor.u32 %v10849_v6, %v9780_v63  ;;  %v9609_v6 = vor.u32 %v10803_v31, %v9606_v21  ;;  %v10892_v21 = vld [vmem:[#allocation10 + $0xa4c] sm:$0xf0] }
 0x2d7   :  { %v4433_v24 = vpop.f32.mrf.mxu3  ;;  %v4490_v15 = vpop.f32.mrf.mxu2  ;;  %5795 = vmatpush.bf16.msrb.mxu2 %v9433_v28  ;;  %6637 = vmatpush.bf16.msra.mxu1 %v9805_v47  ;;  %v10811_v28 = vld [vmem:[#allocation10 + $0x7cc] sm:$0xf] }
 0x2d8   :  { %v4434_v40 = vadd.f32 %v4433_v24, %v11658_v13  ;;  %v11712_v33 = vadd.f32 %v4490_v15, %v11653_v3  ;;  %v10815_v3 = vld [vmem:[#allocation10 + $0x7ec] sm:$0xf]  ;;  %v10908_v24 = vld [vmem:[#allocation10 + $0xacc] sm:$0xf0]  ;;  %v10874_v15 = vld [vmem:[#allocation10 + $0x9c4] sm:$0xf] }
 0x2d9   :  { %v9657_v62 = vor.u32 %v10815_v3, %v9654_v53  ;;  %v10013_v30 = vor.u32 %v10908_v24, %v10012_v61  ;;  %v9889_v34 = vor.u32 %v10874_v15, %v9886_v54  ;;  %v10841_v3 = vld [vmem:[#allocation10 + $0x8b4] sm:$0xf0] }
 0x2da   :  { %v4697_v48 = vrot.slane %v4434_v40, 7  ;;  %v4616_v27 = vpop.f32.mrf.mxu1  ;;  %6694 = vmatpush.bf16.msrb.mxu0 %v9681_v52  ;;  %5739 = vmatpush.bf16.msra.mxu3 %v9541_v11  ;;  %v11718_v20 = vpop.f32.mrf.mxu0  ;;  %v9641_v52 = vor.u32 %v10811_v28, %v9638_v16  ;;  %v9764_v40 = vld [vmem:[#allocation10 + $0x8c8] sm:$0xf]  ;;  %v10845_v11 = vld [vmem:[#allocation10 + $0x8d4] sm:$0xf0] }
 0x2db   :  { %v11716_v13 = vadd.f32 %v4616_v27, %v11660_v51  ;;  %5796 = vmatpush.bf16.msrb.mxu2 %v9417_v7  ;;  %6638 = vmatpush.bf16.msra.mxu1 %v9789_v0  ;;  %v9765_v55 = vor.u32 %v10845_v11, %v9764_v40  ;;  %v9996_v7 = vld [vmem:[#allocation10 + $0xaa0] sm:$0xf]  ;;  %v9870_v0 = vld [vmem:[#allocation10 + $0x9b0] sm:$0xf0]  ;;  %v9732_v16 = vld [vmem:[#allocation10 + $0x888] sm:$0xf] }
 0x2dc   :  { %5664 = vmatmul.bf16.vlgmr.msrb.gmra.mxu3 %v11557_v36  ;;  %5721 = vmatmul.bf16.vlgmr.msra.gmra.mxu2 %v11529_v56  ;;  %v11725_v51 = vsel %vm1251_vm0, %v4693_v18, %v4697_v48  ;;  %v10870_v48 = vld [vmem:[#allocation10 + $0x9a4] sm:$0xf]  ;;  %v9997_v27 = vor.u32 %v10904_v22, %v9996_v7  ;;  %v10837_v61 = vld [vmem:[#allocation10 + $0x894] sm:$0xf0]  ;;  %v9964_v40 = vld [vmem:[#allocation10 + $0xa60] sm:$0xf] }
 0x2dd   :  { %5778 = vmatmul.bf16.vlgmr.msrb.gmra.mxu1 %v11506_v39  ;;  %6620 = vmatmul.bf16.vlgmr.msra.gmra.mxu0 %v11492_v38  ;;  %v9873_v2 = vor.u32 %v10870_v48, %v9870_v0  ;;  %v9716_v7 = vld [vmem:[#allocation10 + $0x868] sm:$0xf] }
 0x2de   :  { %6695 = vmatpush.bf16.msrb.mxu0 %v9665_v10  ;;  %5808 = vmatpush.bf16.msrb.mxu3 %v9657_v62  ;;  %v9748_v10 = vld [vmem:[#allocation10 + $0x8a8] sm:$0xf] }
 0x2df   :  { %v4502_v46 = vpop.f32.mrf.mxu3  ;;  %v4559_v49 = vpop.f32.mrf.mxu2  ;;  %6650 = vmatpush.bf16.msra.mxu2 %v10029_v25  ;;  %6707 = vmatpush.bf16.msrb.mxu1 %v9905_v19  ;;  %v9749_v62 = vor.u32 %v10841_v3, %v9748_v10  ;;  %v9980_v25 = vld [vmem:[#allocation10 + $0xa80] sm:$0xf]  ;;  %v10795_v10 = vld [vmem:[#allocation10 + $0x74c] sm:$0xf]  ;;  %v9574_v3 = vld [vmem:[#allocation10 + $0x758] sm:$0xf0] }
 0x2e0   :  { %v11730_v5 = vadd.f32 %v4502_v46, %v11673_v43  ;;  %v11733_v47 = vadd.f32 %v4559_v49, %v11663_v41  ;;  %v10807_v43 = vld [vmem:[#allocation10 + $0x7ac] sm:$0xf]  ;;  %v9622_v41 = vld [vmem:[#allocation10 + $0x7b8] sm:$0xf0]  ;;  %v10866_v46 = vld [vmem:[#allocation10 + $0x984] sm:$0xf]  ;;  %v9577_v31 = vor.u32 %v10795_v10, %v9574_v3 }
 0x2e1   :  { %v9625_v50 = vor.u32 %v10807_v43, %v9622_v41  ;;  %v9854_v49 = vld [vmem:[#allocation10 + $0x990] sm:$0xf0]  ;;  %v10850_v10 = vld [vmem:[#allocation10 + $0x904] sm:$0xf] }
 0x2e2   :  { %6764 = vmatpush.bf16.msra.mxu0 %v9781_v59  ;;  %v4618_v57 = vpop.f32.mrf.mxu1  ;;  %5809 = vmatpush.bf16.msrb.mxu3 %v9641_v52  ;;  %v11738_v53 = vpop.f32.mrf.mxu0  ;;  %v10900_v59 = vld [vmem:[#allocation10 + $0xa8c] sm:$0xf0]  ;;  %v4682_v52 = vrot.slane %v11730_v5, 7  ;;  %v9857_v54 = vor.u32 %v10866_v46, %v9854_v49  ;;  %v9838_v43 = vld [vmem:[#allocation10 + $0x970] sm:$0xf0] }
 0x2e3   :  { %v11736_v37 = vadd.f32 %v4618_v57, %v11675_v44  ;;  %6651 = vmatpush.bf16.msra.mxu2 %v10013_v30  ;;  %6708 = vmatpush.bf16.msrb.mxu1 %v9889_v34  ;;  %v9981_v28 = vor.u32 %v10900_v59, %v9980_v25  ;;  %v9733_v30 = vor.u32 %v10837_v61, %v9732_v16  ;;  %v9590_v34 = vld [vmem:[#allocation10 + $0x778] sm:$0xf0]  ;;  %v10896_v57 = vld [vmem:[#allocation10 + $0xa6c] sm:$0xf0]  ;;  %v10858_v25 = vld [vmem:[#allocation10 + $0x944] sm:$0xf] }
 0x2e4   :  { %v9700_v59 = vld [vmem:[#allocation10 + $0x848] sm:$0xf]  ;;  %v10829_v46 = vld [vmem:[#allocation10 + $0x854] sm:$0xf0]  ;;  %v9790_v3 = vld [vmem:[#allocation10 + $0x910] sm:$0xf0] }
 0x2e5   :  { %v9701_v16 = vor.u32 %v10829_v46, %v9700_v59  ;;  %v9793_v46 = vor.u32 %v10850_v10, %v9790_v3 }
 0x2e6   :  { %6765 = vmatpush.bf16.msra.mxu0 %v9765_v55  ;;  %5810 = vmatpush.bf16.msrb.mxu3 %v9625_v50  ;;  %v10862_v55 = vld [vmem:[#allocation10 + $0x964] sm:$0xf]  ;;  %v10833_v50 = vld [vmem:[#allocation10 + $0x874] sm:$0xf0] }
 0x2e7   :  { %v4504_v44 = vpop.f32.mrf.mxu3  ;;  %v4561_v58 = vpop.f32.mrf.mxu2  ;;  %6652 = vmatpush.bf16.msra.mxu2 %v9997_v27  ;;  %6709 = vmatpush.bf16.msrb.mxu1 %v9873_v2  ;;  %v9841_v22 = vor.u32 %v10862_v55, %v9838_v43  ;;  %v9717_v48 = vor.u32 %v10833_v50, %v9716_v7  ;;  %v9948_v2 = vld [vmem:[#allocation10 + $0xa40] sm:$0xf]  ;;  %v9542_v7 = vld [vmem:[#allocation10 + $0x718] sm:$0xf0] }
 0x2e8   :  { %v4505_v19 = vadd.f32 %v4504_v44, %v11682_v42  ;;  %v11742_v63 = vadd.f32 %v4561_v58, %v11678_v32  ;;  %v10799_v32 = vld [vmem:[#allocation10 + $0x76c] sm:$0xf]  ;;  %v9916_v50 = vld [vmem:[#allocation10 + $0xa00] sm:$0xf] }
 0x2e9   :  { %v9593_v11 = vor.u32 %v10799_v32, %v9590_v34  ;;  %v9806_v34 = vld [vmem:[#allocation10 + $0x930] sm:$0xf0] }
 0x2ea   :  { %6766 = vmatpush.bf16.msra.mxu0 %v9749_v62  ;;  %v4687_v24 = vrot.slane %v4505_v19, 7  ;;  %v4621_v15 = vpop.f32.mrf.mxu1  ;;  %5811 = vmatpush.bf16.msrb.mxu3 %v9609_v6  ;;  %v11757_v62 = vpop.f32.mrf.mxu0  ;;  %v9822_v19 = vld [vmem:[#allocation10 + $0x950] sm:$0xf0]  ;;  %v9949_v6 = vor.u32 %v10892_v21, %v9948_v2  ;;  %v10821_v21 = vld [vmem:[#allocation10 + $0x814] sm:$0xf0] }
 0x2eb   :  { %v11746_v42 = vadd.f32 %v4621_v15, %v11685_v60  ;;  %6653 = vmatpush.bf16.msra.mxu2 %v9981_v28  ;;  %v9965_v60 = vor.u32 %v10896_v57, %v9964_v40  ;;  %6710 = vmatpush.bf16.msrb.mxu1 %v9857_v54  ;;  %v9825_v28 = vor.u32 %v10858_v25, %v9822_v19  ;;  %v10888_v54 = vld [vmem:[#allocation10 + $0xa2c] sm:$0xf0]  ;;  %v9684_v40 = vld [vmem:[#allocation10 + $0x828] sm:$0xf] }
 0x2ec   :  { %5669 = vmatmul.bf16.gmra.mxu3 %v11570_v26  ;;  %5726 = vmatmul.bf16.gmra.mxu2 %v11543_v17  ;;  %v11753_v41 = vsel %vm1251_vm0, %v4682_v52, %v4687_v24  ;;  %v9932_v24 = vld [vmem:[#allocation10 + $0xa20] sm:$0xf] }
 0x2ed   :  { %5783 = vmatmul.bf16.gmra.mxu1 %v11516_v4  ;;  %6625 = vmatmul.bf16.gmra.mxu0 %v11499_v45  ;;  %v9933_v32 = vor.u32 %v10888_v54, %v9932_v24  ;;  %v9908_v24 = vld [vmem:[#allocation10 + $0x9e8] sm:$0xf] }
 0x2ee   :  { %6767 = vmatpush.bf16.msra.mxu0 %v9733_v30  ;;  %5812 = vmatpush.bf16.msrb.mxu3 %v9593_v11  ;;  %v10854_v30 = vld [vmem:[#allocation10 + $0x924] sm:$0xf]  ;;  %v10825_v11 = vld [vmem:[#allocation10 + $0x834] sm:$0xf0] }
 0x2ef   :  { %v4507_v27 = vpop.f32.mrf.mxu3  ;;  %v4564_v0 = vpop.f32.mrf.mxu2  ;;  %6654 = vmatpush.bf16.msra.mxu2 %v9965_v60  ;;  %6711 = vmatpush.bf16.msrb.mxu1 %v9841_v22  ;;  %v9809_v57 = vor.u32 %v10854_v30, %v9806_v34  ;;  %v9685_v55 = vor.u32 %v10825_v11, %v9684_v40  ;;  %v9782_v34 = vld [vmem:[#allocation10 + $0x8f8] sm:$0xf0] }
 0x2f0   :  { %v11760_v44 = vadd.f32 %v4507_v27, %v11703_v8  ;;  %v11763_v58 = vadd.f32 %v4564_v0, %v11688_v1  ;;  %v10791_v8 = vld [vmem:[#allocation10 + $0x72c] sm:$0xf]  ;;  %v9558_v1 = vld [vmem:[#allocation10 + $0x738] sm:$0xf0]  ;;  %v10884_v0 = vld [vmem:[#allocation10 + $0xa0c] sm:$0xf0] }
 0x2f1   :  { %v9561_v15 = vor.u32 %v10791_v8, %v9558_v1  ;;  %v9917_v2 = vor.u32 %v10884_v0, %v9916_v50  ;;  %v10030_v1 = vld [vmem:[#allocation10 + $0xaf0] sm:$0xf0]  ;;  %v10877_v0 = vld [vmem:[#allocation10 + $0x9d4] sm:$0xf0] }
 0x2f2   :  { %v4623_v49 = vpop.f32.mrf.mxu1  ;;  %6768 = vmatpush.bf16.msra.mxu0 %v9717_v48  ;;  %5813 = vmatpush.bf16.msrb.mxu3 %v9577_v31  ;;  %v9668_v31 = vld [vmem:[#allocation10 + $0x808] sm:$0xf]  ;;  %v4694_v25 = vrot.slane %v11760_v44, 7  ;;  %v11773_v19 = vpop.f32.mrf.mxu0 }
 0x2f3   :  { %v11766_v61 = vadd.f32 %v4623_v49, %v11705_v14  ;;  %6655 = vmatpush.bf16.msra.mxu2 %v9949_v6  ;;  %6712 = vmatpush.bf16.msrb.mxu1 %v9825_v28  ;;  %v10787_v14 = vld [vmem:[#allocation10 + $0x70c] sm:$0xf]  ;;  %v10156_v49 = vld [vmem:[#allocation10 + $0xbe0] sm:$0xf]  ;;  %v10944_v28 = vld [vmem:[#allocation10 + $0xbec] sm:$0xf0] }
 0x2f4   :  { %v9545_v27 = vor.u32 %v10787_v14, %v9542_v7  ;;  %v10157_v8 = vor.u32 %v10944_v28, %v10156_v49  ;;  %v9998_v28 = vld [vmem:[#allocation10 + $0xab0] sm:$0xf0] }
 0x2f6   :  { %6769 = vmatpush.bf16.msra.mxu0 %v9701_v16  ;;  %5814 = vmatpush.bf16.msrb.mxu3 %v9561_v15  ;;  %v10910_v16 = vld [vmem:[#allocation10 + $0xae4] sm:$0xf]  ;;  %v10881_v15 = vld [vmem:[#allocation10 + $0x9f4] sm:$0xf0] }
 0x2f7   :  { %v4509_v43 = vpop.f32.mrf.mxu3  ;;  %v4566_v60 = vpop.f32.mrf.mxu2  ;;  %6656 = vmatpush.bf16.msra.mxu2 %v9933_v32  ;;  %6713 = vmatpush.bf16.msrb.mxu1 %v9809_v57  ;;  %v9909_v30 = vor.u32 %v10881_v15, %v9908_v24  ;;  %v10847_v32 = vld [vmem:[#allocation10 + $0x8ec] sm:$0xf]  ;;  %v9750_v15 = vld [vmem:[#allocation10 + $0x8b8] sm:$0xf0] }
 0x2f8   :  { %v4510_v22 = vadd.f32 %v4509_v43, %v11712_v33  ;;  %v11770_v48 = vadd.f32 %v4566_v60, %v11708_v29  ;;  %v9669_v33 = vor.u32 %v10821_v21, %v9668_v31  ;;  %v9785_v40 = vor.u32 %v10847_v32, %v9782_v34  ;;  %v10940_v43 = vld [vmem:[#allocation10 + $0xbcc] sm:$0xf0]  ;;  %v10906_v60 = vld [vmem:[#allocation10 + $0xac4] sm:$0xf]  ;;  %v9766_v31 = vld [vmem:[#allocation10 + $0x8d8] sm:$0xf0] }
 0x2f9   :  { %v10839_v24 = vld [vmem:[#allocation10 + $0x8ac] sm:$0xf]  ;;  %v10108_v34 = vld [vmem:[#allocation10 + $0xb80] sm:$0xf] }
 0x2fa   :  { %v4699_v6 = vrot.slane %v4510_v22, 7  ;;  %v5551_v59 = vpop.f32.mrf.mxu1  ;;  %6770 = vmatpush.bf16.msra.mxu0 %v9685_v55  ;;  %5815 = vmatpush.bf16.msrb.mxu3 %v9545_v27  ;;  %v10140_v55 = vld [vmem:[#allocation10 + $0xbc0] sm:$0xf]  ;;  %v10014_v22 = vld [vmem:[#allocation10 + $0xad0] sm:$0xf0] }
 0x2fb   :  { %v11776_v29 = vadd.f32 %v5551_v59, %v11718_v20  ;;  %6657 = vmatpush.bf16.msra.mxu2 %v9917_v2  ;;  %v10033_v20 = vor.u32 %v10910_v16, %v10030_v1  ;;  %6714 = vmatpush.bf16.msrb.mxu1 %v9793_v46  ;;  %v10141_v50 = vor.u32 %v10940_v43, %v10140_v55  ;;  %v9892_v27 = vld [vmem:[#allocation10 + $0x9c8] sm:$0xf]  ;;  %v10843_v2 = vld [vmem:[#allocation10 + $0x8cc] sm:$0xf]  ;;  %v10902_v46 = vld [vmem:[#allocation10 + $0xaa4] sm:$0xf] }
 0x2fc   :  { %5740 = vmatmul.bf16.vlgmr.msra.gmra.mxu3 %v11557_v36  ;;  %5797 = vmatmul.bf16.vlgmr.msrb.gmra.mxu2 %v11529_v56  ;;  %v11783_v54 = vsel %vm1251_vm0, %v4694_v25, %v4699_v6  ;;  %v10017_v10 = vor.u32 %v10906_v60, %v10014_v22  ;;  %v9893_v3 = vor.u32 %v10877_v0, %v9892_v27  ;;  %v9876_v16 = vld [vmem:[#allocation10 + $0x9a8] sm:$0xf]  ;;  %v10873_v1 = vld [vmem:[#allocation10 + $0x9b4] sm:$0xf0]  ;;  %v9982_v60 = vld [vmem:[#allocation10 + $0xa90] sm:$0xf0] }
 0x2fd   :  { %6639 = vmatmul.bf16.vlgmr.msra.gmra.mxu1 %v11506_v39  ;;  %6696 = vmatmul.bf16.vlgmr.msrb.gmra.mxu0 %v11492_v38  ;;  %v9769_v6 = vor.u32 %v10843_v2, %v9766_v31  ;;  %v10869_v22 = vld [vmem:[#allocation10 + $0x994] sm:$0xf0]  ;;  %v10835_v0 = vld [vmem:[#allocation10 + $0x88c] sm:$0xf] }
 0x2fe   :  { %6771 = vmatpush.bf16.msra.mxu0 %v9669_v33  ;;  %6669 = vmatpush.bf16.msra.mxu3 %v10157_v8  ;;  %v11796_v33 = vpop.f32.mrf.mxu0  ;;  %v10001_v8 = vor.u32 %v10902_v46, %v9998_v28  ;;  %v9844_v28 = vld [vmem:[#allocation10 + $0x968] sm:$0xf] }
 0x2ff   :  { %v4578_v11 = vpop.f32.mrf.mxu3  ;;  %v4635_v57 = vpop.f32.mrf.mxu2  ;;  %6726 = vmatpush.bf16.msrb.mxu2 %v10033_v20  ;;  %6783 = vmatpush.bf16.msra.mxu1 %v9909_v30  ;;  %v9877_v20 = vor.u32 %v10873_v1, %v9876_v16  ;;  %v9753_v30 = vor.u32 %v10839_v24, %v9750_v15  ;;  %v10865_v16 = vld [vmem:[#allocation10 + $0x974] sm:$0xf0]  ;;  %v10831_v1 = vld [vmem:[#allocation10 + $0x86c] sm:$0xf]  ;;  %v9718_v24 = vld [vmem:[#allocation10 + $0x878] sm:$0xf0] }
 0x300   :  { %v11788_v14 = vadd.f32 %v4578_v11, %v11733_v47  ;;  %v11791_v7 = vadd.f32 %v4635_v57, %v11716_v13  ;;  %v10124_v47 = vld [vmem:[#allocation10 + $0xba0] sm:$0xf]  ;;  %v10936_v13 = vld [vmem:[#allocation10 + $0xbac] sm:$0xf0]  ;;  %v10898_v11 = vld [vmem:[#allocation10 + $0xa84] sm:$0xf] }
 0x301   :  { %v10125_v49 = vor.u32 %v10936_v13, %v10124_v47  ;;  %v9985_v27 = vor.u32 %v10898_v11, %v9982_v60  ;;  %v10928_v47 = vld [vmem:[#allocation10 + $0xb6c] sm:$0xf0]  ;;  %v10894_v13 = vld [vmem:[#allocation10 + $0xa64] sm:$0xf] }
 0x302   :  { %6840 = vmatpush.bf16.msrb.mxu0 %v9785_v40  ;;  %v5553_v21 = vpop.f32.mrf.mxu1  ;;  %6670 = vmatpush.bf16.msra.mxu3 %v10141_v50  ;;  %v10932_v40 = vld [vmem:[#allocation10 + $0xb8c] sm:$0xf0]  ;;  %v9860_v50 = vld [vmem:[#allocation10 + $0x988] sm:$0xf]  ;;  %v10890_v11 = vld [vmem:[#allocation10 + $0xa44] sm:$0xf] }
 0x303   :  { %v11794_v59 = vadd.f32 %v5553_v21, %v11738_v53  ;;  %6727 = vmatpush.bf16.msrb.mxu2 %v10017_v10  ;;  %6784 = vmatpush.bf16.msra.mxu1 %v9893_v3  ;;  %v10109_v43 = vor.u32 %v10932_v40, %v10108_v34  ;;  %v9734_v10 = vld [vmem:[#allocation10 + $0x898] sm:$0xf0]  ;;  %v4683_v3 = vrot.slane %v11788_v14, 7  ;;  %v9861_v21 = vor.u32 %v10869_v22, %v9860_v50  ;;  %v10076_v34 = vld [vmem:[#allocation10 + $0xb40] sm:$0xf] }
 0x304   :  { %v10924_v40 = vld [vmem:[#allocation10 + $0xb4c] sm:$0xf0]  ;;  %v9950_v50 = vld [vmem:[#allocation10 + $0xa50] sm:$0xf0]  ;;  %v9828_v22 = vld [vmem:[#allocation10 + $0x948] sm:$0xf] }
 0x305   :  { %v10077_v60 = vor.u32 %v10924_v40, %v10076_v34  ;;  %v10882_v34 = vld [vmem:[#allocation10 + $0xa04] sm:$0xf] }
 0x306   :  { %6841 = vmatpush.bf16.msrb.mxu0 %v9769_v6  ;;  %6671 = vmatpush.bf16.msra.mxu3 %v10125_v49  ;;  %v9737_v6 = vor.u32 %v10835_v0, %v9734_v10  ;;  %v9966_v49 = vld [vmem:[#allocation10 + $0xa70] sm:$0xf0]  ;;  %v11815_v15 = vpop.f32.mrf.mxu0  ;;  %v9953_v0 = vor.u32 %v10890_v11, %v9950_v50  ;;  %v10827_v10 = vld [vmem:[#allocation10 + $0x84c] sm:$0xf] }
 0x307   :  { %v4580_v53 = vpop.f32.mrf.mxu3  ;;  %v4637_v32 = vpop.f32.mrf.mxu2  ;;  %6728 = vmatpush.bf16.msrb.mxu2 %v10001_v8  ;;  %6785 = vmatpush.bf16.msra.mxu1 %v9877_v20  ;;  %v9845_v20 = vor.u32 %v10865_v16, %v9844_v28  ;;  %v10857_v16 = vld [vmem:[#allocation10 + $0x934] sm:$0xf0] }
 0x308   :  { %v4581_v57 = vadd.f32 %v4580_v53, %v11742_v63  ;;  %v11800_v55 = vadd.f32 %v4637_v32, %v11736_v37  ;;  %v10092_v37 = vld [vmem:[#allocation10 + $0xb60] sm:$0xf] }
 0x309   :  { %v10093_v46 = vor.u32 %v10928_v47, %v10092_v37  ;;  %v10886_v47 = vld [vmem:[#allocation10 + $0xa24] sm:$0xf] }
 0x30a   :  { %6842 = vmatpush.bf16.msrb.mxu0 %v9753_v30  ;;  %v4689_v2 = vrot.slane %v4581_v57, 7  ;;  %v5556_v31 = vpop.f32.mrf.mxu1  ;;  %6672 = vmatpush.bf16.msra.mxu3 %v10109_v43  ;;  %v9721_v30 = vor.u32 %v10831_v1, %v9718_v24  ;;  %v9686_v1 = vld [vmem:[#allocation10 + $0x838] sm:$0xf0] }
 0x30b   :  { %v11804_v63 = vadd.f32 %v5556_v31, %v11757_v62  ;;  %6729 = vmatpush.bf16.msrb.mxu2 %v9985_v27  ;;  %v9969_v62 = vor.u32 %v10894_v13, %v9966_v49  ;;  %6786 = vmatpush.bf16.msra.mxu1 %v9861_v21  ;;  %v10861_v27 = vld [vmem:[#allocation10 + $0x954] sm:$0xf0]  ;;  %v9812_v49 = vld [vmem:[#allocation10 + $0x928] sm:$0xf] }
 0x30c   :  { %5745 = vmatmul.bf16.gmra.mxu3 %v11570_v26  ;;  %5802 = vmatmul.bf16.gmra.mxu2 %v11543_v17  ;;  %v11811_v8 = vsel %vm1251_vm0, %v4683_v3, %v4689_v2  ;;  %v9702_v2 = vld [vmem:[#allocation10 + $0x858] sm:$0xf0]  ;;  %v9829_v21 = vor.u32 %v10861_v27, %v9828_v22  ;;  %v9813_v24 = vor.u32 %v10857_v16, %v9812_v49  ;;  %v9918_v22 = vld [vmem:[#allocation10 + $0xa10] sm:$0xf0]  ;;  %v9796_v27 = vld [vmem:[#allocation10 + $0x908] sm:$0xf] }
 0x30d   :  { %6644 = vmatmul.bf16.gmra.mxu1 %v11516_v4  ;;  %6701 = vmatmul.bf16.gmra.mxu0 %v11499_v45  ;;  %v10879_v16 = vld [vmem:[#allocation10 + $0x9ec] sm:$0xf] }
 0x30e   :  { %6843 = vmatpush.bf16.msrb.mxu0 %v9737_v6  ;;  %6673 = vmatpush.bf16.msra.mxu3 %v10093_v46  ;;  %v9705_v6 = vor.u32 %v10827_v10, %v9702_v2  ;;  %v9934_v46 = vld [vmem:[#allocation10 + $0xa30] sm:$0xf0]  ;;  %v11826_v40 = vpop.f32.mrf.mxu0  ;;  %v9921_v10 = vor.u32 %v10882_v34, %v9918_v22  ;;  %v10819_v2 = vld [vmem:[#allocation10 + $0x80c] sm:$0xf]  ;;  %v10909_v22 = vld [vmem:[#allocation10 + $0xad4] sm:$0xf0] }
 0x30f   :  { %v4583_v53 = vpop.f32.mrf.mxu3  ;;  %v4640_v32 = vpop.f32.mrf.mxu2  ;;  %6730 = vmatpush.bf16.msrb.mxu2 %v9969_v62  ;;  %6787 = vmatpush.bf16.msra.mxu1 %v9845_v20  ;;  %v9937_v28 = vor.u32 %v10886_v47, %v9934_v46  ;;  %v10823_v62 = vld [vmem:[#allocation10 + $0x82c] sm:$0xf]  ;;  %v10036_v46 = vld [vmem:[#allocation10 + $0xae8] sm:$0xf] }
 0x310   :  { %v11818_v57 = vadd.f32 %v4583_v53, %v11763_v58  ;;  %v11821_v43 = vadd.f32 %v4640_v32, %v11746_v42  ;;  %v10060_v58 = vld [vmem:[#allocation10 + $0xb20] sm:$0xf]  ;;  %v10920_v42 = vld [vmem:[#allocation10 + $0xb2c] sm:$0xf0]  ;;  %v9689_v20 = vor.u32 %v10823_v62, %v9686_v1  ;;  %v9910_v62 = vld [vmem:[#allocation10 + $0x9f8] sm:$0xf0] }
 0x311   :  { %v10061_v13 = vor.u32 %v10920_v42, %v10060_v58  ;;  %v10916_v32 = vld [vmem:[#allocation10 + $0xb0c] sm:$0xf0] }
 0x312   :  { %v5558_v31 = vpop.f32.mrf.mxu1  ;;  %6844 = vmatpush.bf16.msrb.mxu0 %v9721_v30  ;;  %6674 = vmatpush.bf16.msra.mxu3 %v10077_v60 }
 0x313   :  { %v11824_v37 = vadd.f32 %v5558_v31, %v11773_v19  ;;  %6731 = vmatpush.bf16.msrb.mxu2 %v9953_v0  ;;  %6788 = vmatpush.bf16.msra.mxu1 %v9829_v21  ;;  %v10044_v19 = vld [vmem:[#allocation10 + $0xb00] sm:$0xf]  ;;  %v10853_v0 = vld [vmem:[#allocation10 + $0x914] sm:$0xf0]  ;;  %v9670_v31 = vld [vmem:[#allocation10 + $0x818] sm:$0xf0] }
 0x314   :  { %v10045_v50 = vor.u32 %v10916_v32, %v10044_v19  ;;  %v4695_v21 = vrot.slane %v11818_v57, 7  ;;  %v9797_v42 = vor.u32 %v10853_v0, %v9796_v27  ;;  %v9673_v47 = vor.u32 %v10819_v2, %v9670_v31  ;;  %v10142_v19 = vld [vmem:[#allocation10 + $0xbd0] sm:$0xf0]  ;;  %v10020_v32 = vld [vmem:[#allocation10 + $0xac8] sm:$0xf] }
 0x315   :  { %v10875_v27 = vld [vmem:[#allocation10 + $0x9cc] sm:$0xf]  ;;  %v9894_v0 = vld [vmem:[#allocation10 + $0x9d8] sm:$0xf0] }
 0x316   :  { %6845 = vmatpush.bf16.msrb.mxu0 %v9705_v6  ;;  %6675 = vmatpush.bf16.msra.mxu3 %v10061_v13  ;;  %v10158_v13 = vld [vmem:[#allocation10 + $0xbf0] sm:$0xf0]  ;;  %v9897_v2 = vor.u32 %v10875_v27, %v9894_v0  ;;  %v11851_v31 = vpop.f32.mrf.mxu0  ;;  %v4727_v14 = vsel %vm1251_vm0, 0.0, %v4695_v21 }
 0x317   :  { %v4585_v30 = vpop.f32.mrf.mxu3  ;;  %v4642_v53 = vpop.f32.mrf.mxu2  ;;  %6732 = vmatpush.bf16.msrb.mxu2 %v9937_v28  ;;  %6789 = vmatpush.bf16.msra.mxu1 %v9813_v24  ;;  %v10913_v28 = vld [vmem:[#allocation10 + $0xaf4] sm:$0xf0]  ;;  %v9913_v24 = vor.u32 %v10879_v16, %v9910_v62 }
 0x318   :  { %v4586_v11 = vadd.f32 %v4585_v30, %v11770_v48  ;;  %v11830_v60 = vadd.f32 %v4642_v53, %v11766_v61  ;;  %v10942_v61 = vld [vmem:[#allocation10 + $0xbe4] sm:$0xf] }
 0x319   :  { %v10161_v49 = vor.u32 %v10942_v61, %v10158_v13  ;;  %v10938_v53 = vld [vmem:[#allocation10 + $0xbc4] sm:$0xf]  ;;  %v10905_v61 = vld [vmem:[#allocation10 + $0xab4] sm:$0xf0]  ;;  %v10871_v13 = vld [vmem:[#allocation10 + $0x9ac] sm:$0xf] }
 0x31a   :  { %v4701_v6 = vrot.slane %v4586_v11, 7  ;;  %v5627_v58 = vpop.f32.mrf.mxu1  ;;  %6846 = vmatpush.bf16.msrb.mxu0 %v9689_v20  ;;  %6676 = vmatpush.bf16.msra.mxu3 %v10045_v50  ;;  %v10145_v50 = vor.u32 %v10938_v53, %v10142_v19  ;;  %v10901_v19 = vld [vmem:[#allocation10 + $0xa94] sm:$0xf0] }
 0x31b   :  { %v11834_v48 = vadd.f32 %v5627_v58, %v11796_v33  ;;  %6733 = vmatpush.bf16.msrb.mxu2 %v9921_v10  ;;  %v10037_v33 = vor.u32 %v10913_v28, %v10036_v46  ;;  %6790 = vmatpush.bf16.msra.mxu1 %v9797_v42  ;;  %v10021_v10 = vor.u32 %v10909_v22, %v10020_v32  ;;  %v10126_v42 = vld [vmem:[#allocation10 + $0xbb0] sm:$0xf0]  ;;  %v10867_v32 = vld [vmem:[#allocation10 + $0x98c] sm:$0xf] }
 0x31c   :  { %5816 = vmatmul.bf16.vlgmr.msrb.gmra.mxu3 %v11557_v36  ;;  %6658 = vmatmul.bf16.vlgmr.msra.gmra.mxu2 %v11529_v56  ;;  %v11841_v1 = vsel %vm1251_vm0, %v4695_v21, %v4701_v6 }
 0x31d   :  { %6715 = vmatmul.bf16.vlgmr.msrb.gmra.mxu1 %v11506_v39  ;;  %6772 = vmatmul.bf16.vlgmr.msra.gmra.mxu0 %v11492_v38 }
 0x31e   :  { %6847 = vmatpush.bf16.msrb.mxu0 %v9673_v47  ;;  %6745 = vmatpush.bf16.msrb.mxu3 %v10161_v49  ;;  %v10004_v47 = vld [vmem:[#allocation10 + $0xaa8] sm:$0xf]  ;;  %v9878_v49 = vld [vmem:[#allocation10 + $0x9b8] sm:$0xf0] }
 0x31f   :  { %v4654_v20 = vpop.f32.mrf.mxu3  ;;  %v5570_v30 = vpop.f32.mrf.mxu2  ;;  %6802 = vmatpush.bf16.msra.mxu2 %v10037_v33  ;;  %6859 = vmatpush.bf16.msrb.mxu1 %v9913_v24  ;;  %v10005_v46 = vor.u32 %v10905_v61, %v10004_v47  ;;  %v9881_v28 = vor.u32 %v10871_v13, %v9878_v49  ;;  %v10930_v33 = vld [vmem:[#allocation10 + $0xb84] sm:$0xf]  ;;  %v10110_v24 = vld [vmem:[#allocation10 + $0xb90] sm:$0xf0]  ;;  %v10863_v61 = vld [vmem:[#allocation10 + $0x96c] sm:$0xf] }
 0x320   :  { %v11846_v34 = vadd.f32 %v4654_v20, %v11791_v7  ;;  %v11849_v11 = vadd.f32 %v5570_v30, %v11776_v29  ;;  %v10934_v7 = vld [vmem:[#allocation10 + $0xba4] sm:$0xf]  ;;  %v10113_v53 = vor.u32 %v10930_v33, %v10110_v24  ;;  %v9846_v13 = vld [vmem:[#allocation10 + $0x978] sm:$0xf0]  ;;  %v10078_v33 = vld [vmem:[#allocation10 + $0xb50] sm:$0xf0] }
 0x321   :  { %v10129_v29 = vor.u32 %v10934_v7, %v10126_v42  ;;  %v10094_v7 = vld [vmem:[#allocation10 + $0xb70] sm:$0xf0]  ;;  %v11864_v42 = vpop.f32.mrf.mxu0  ;;  %v9849_v49 = vor.u32 %v10863_v61, %v9846_v13  ;;  %v9956_v24 = vld [vmem:[#allocation10 + $0xa48] sm:$0xf]  ;;  %v9814_v61 = vld [vmem:[#allocation10 + $0x938] sm:$0xf0] }
 0x322   :  { %v5629_v6 = vpop.f32.mrf.mxu1  ;;  %6746 = vmatpush.bf16.msrb.mxu3 %v10145_v50  ;;  %v9862_v50 = vld [vmem:[#allocation10 + $0x998] sm:$0xf0]  ;;  %v4684_v27 = vrot.slane %v11846_v34, 7 }
 0x323   :  { %v11854_v58 = vadd.f32 %v5629_v6, %v11815_v15  ;;  %6803 = vmatpush.bf16.msra.mxu2 %v10021_v10  ;;  %6860 = vmatpush.bf16.msrb.mxu1 %v9897_v2  ;;  %v9988_v15 = vld [vmem:[#allocation10 + $0xa88] sm:$0xf]  ;;  %v9865_v2 = vor.u32 %v10867_v32, %v9862_v50  ;;  %v10859_v32 = vld [vmem:[#allocation10 + $0x94c] sm:$0xf]  ;;  %v9830_v50 = vld [vmem:[#allocation10 + $0x958] sm:$0xf0] }
 0x324   :  { %v9989_v22 = vor.u32 %v10901_v19, %v9988_v15  ;;  %v10893_v19 = vld [vmem:[#allocation10 + $0xa54] sm:$0xf0]  ;;  %v4724_v21 = vsel %vm1251_vm0, 0.0, %v4684_v27 }
 0x326   :  { %6747 = vmatpush.bf16.msrb.mxu3 %v10129_v29  ;;  %v10897_v29 = vld [vmem:[#allocation10 + $0xa74] sm:$0xf0] }
 0x327   :  { %v4656_v16 = vpop.f32.mrf.mxu3  ;;  %v5572_v62 = vpop.f32.mrf.mxu2  ;;  %6804 = vmatpush.bf16.msra.mxu2 %v10005_v46  ;;  %6861 = vmatpush.bf16.msrb.mxu1 %v9881_v28 }
 0x328   :  { %v4657_v20 = vadd.f32 %v4656_v16, %v11800_v55  ;;  %v11858_v30 = vadd.f32 %v5572_v62, %v11794_v59  ;;  %v10926_v55 = vld [vmem:[#allocation10 + $0xb64] sm:$0xf]  ;;  %v9972_v59 = vld [vmem:[#allocation10 + $0xa68] sm:$0xf] }
 0x329   :  { %v10097_v47 = vor.u32 %v10926_v55, %v10094_v7  ;;  %v9973_v46 = vor.u32 %v10897_v29, %v9972_v59  ;;  %v10922_v62 = vld [vmem:[#allocation10 + $0xb44] sm:$0xf]  ;;  %v10062_v7 = vld [vmem:[#allocation10 + $0xb30] sm:$0xf0]  ;;  %v5686_v13 = vpop.f32.mrf.mxu0 }
 0x32a   :  { %v4691_v0 = vrot.slane %v4657_v20, 7  ;;  %v5632_v10 = vpop.f32.mrf.mxu1  ;;  %6748 = vmatpush.bf16.msrb.mxu3 %v10113_v53  ;;  %v10081_v53 = vor.u32 %v10922_v62, %v10078_v33  ;;  %v10918_v55 = vld [vmem:[#allocation10 + $0xb24] sm:$0xf]  ;;  %v9924_v62 = vld [vmem:[#allocation10 + $0xa08] sm:$0xf] }
 0x32b   :  { %v11862_v6 = vadd.f32 %v5632_v10, %v11826_v40  ;;  %6805 = vmatpush.bf16.msra.mxu2 %v9989_v22  ;;  %6862 = vmatpush.bf16.msrb.mxu1 %v9865_v2  ;;  %v9957_v22 = vor.u32 %v10893_v19, %v9956_v24  ;;  %v9833_v10 = vor.u32 %v10859_v32, %v9830_v50  ;;  %v10885_v19 = vld [vmem:[#allocation10 + $0xa14] sm:$0xf0]  ;;  %v10851_v32 = vld [vmem:[#allocation10 + $0x90c] sm:$0xf]  ;;  %v9798_v50 = vld [vmem:[#allocation10 + $0x918] sm:$0xf0] }
 0x32c   :  { %5821 = vmatmul.bf16.gmra.mxu3 %v11570_v26  ;;  %6663 = vmatmul.bf16.gmra.mxu2 %v11543_v17  ;;  %v11871_v40 = vsel %vm1251_vm0, %v4684_v27, %v4691_v0  ;;  %v10065_v59 = vor.u32 %v10918_v55, %v10062_v7 }
 0x32d   :  { %6720 = vmatmul.bf16.gmra.mxu1 %v11516_v4  ;;  %6777 = vmatmul.bf16.gmra.mxu0 %v11499_v45 }
 0x32e   :  { %6749 = vmatpush.bf16.msrb.mxu3 %v10097_v47  ;;  %v10889_v47 = vld [vmem:[#allocation10 + $0xa34] sm:$0xf0] }
 0x32f   :  { %v4659_v28 = vpop.f32.mrf.mxu3  ;;  %v5575_v16 = vpop.f32.mrf.mxu2  ;;  %6806 = vmatpush.bf16.msra.mxu2 %v9973_v46  ;;  %6863 = vmatpush.bf16.msrb.mxu1 %v9849_v49  ;;  %v10914_v49 = vld [vmem:[#allocation10 + $0xb04] sm:$0xf] }
 0x330   :  { %v11876_v15 = vadd.f32 %v4659_v28, %v11821_v43  ;;  %v11879_v20 = vadd.f32 %v5575_v16, %v11804_v63  ;;  %v9940_v43 = vld [vmem:[#allocation10 + $0xa28] sm:$0xf]  ;;  %v10855_v63 = vld [vmem:[#allocation10 + $0x92c] sm:$0xf] }
 0x331   :  { %v9941_v29 = vor.u32 %v10889_v47, %v9940_v43  ;;  %v9817_v46 = vor.u32 %v10855_v63, %v9814_v61  ;;  %v9801_v43 = vor.u32 %v10851_v32, %v9798_v50  ;;  %v10911_v47 = vld [vmem:[#allocation10 + $0xaec] sm:$0xf]  ;;  %v10038_v61 = vld [vmem:[#allocation10 + $0xaf8] sm:$0xf0] }
 0x332   :  { %v5634_v0 = vpop.f32.mrf.mxu1  ;;  %6750 = vmatpush.bf16.msrb.mxu3 %v10081_v53  ;;  %v10022_v50 = vld [vmem:[#allocation10 + $0xad8] sm:$0xf0] }
 0x333   :  { %v11882_v2 = vadd.f32 %v5634_v0, %v11851_v31  ;;  %6807 = vmatpush.bf16.msra.mxu2 %v9957_v22  ;;  %6864 = vmatpush.bf16.msrb.mxu1 %v9833_v10  ;;  %v10046_v31 = vld [vmem:[#allocation10 + $0xb10] sm:$0xf0]  ;;  %v11888_v22 = vld [vmem:[#allocation11] sm:$0xf]  ;;  %v9925_v0 = vor.u32 %v10885_v19, %v9924_v62  ;;  %v4696_v10 = vrot.slane %v11876_v15, 7  ;;  %v5689_v19 = vpop.f32.mrf.mxu0 }
 0x334   :  { %v10049_v53 = vor.u32 %v10914_v49, %v10046_v31  ;;  %v11895_v63 = vperm.slane %v11888_v22, 0  ;;  %v10148_v31 = vld [vmem:[#allocation10 + $0xbc8] sm:$0xf]  ;;  %v10941_v62 = vld [vmem:[#allocation10 + $0xbd4] sm:$0xf0]  ;;  %v4733_v57 = vperm.slane %v11888_v22, 3 }
 0x335   :  { %v10149_v32 = vor.u32 %v10941_v62, %v10148_v31 }
 0x336   :  { %6751 = vmatpush.bf16.msrb.mxu3 %v10065_v59 }
 0x337   :  { %v4661_v28 = vpop.f32.mrf.mxu3  ;;  %v5577_v16 = vpop.f32.mrf.mxu2  ;;  %6808 = vmatpush.bf16.msra.mxu2 %v9941_v29  ;;  %6865 = vmatpush.bf16.msrb.mxu1 %v9817_v46 }
 0x338   :  { %v4662_v33 = vadd.f32 %v4661_v28, %v11830_v60  ;;  %v11886_v24 = vadd.f32 %v5577_v16, %v11824_v37  ;;  %v10164_v37 = vld [vmem:[#allocation10 + $0xbe8] sm:$0xf]  ;;  %v10945_v60 = vld [vmem:[#allocation10 + $0xbf4] sm:$0xf0]  ;;  %v10041_v28 = vor.u32 %v10911_v47, %v10038_v61 }
 0x339   :  { %v10165_v29 = vor.u32 %v10945_v60, %v10164_v37  ;;  %v10937_v37 = vld [vmem:[#allocation10 + $0xbb4] sm:$0xf0]  ;;  %v10903_v60 = vld [vmem:[#allocation10 + $0xaac] sm:$0xf] }
 0x33a   :  { %v4703_v55 = vrot.slane %v4662_v33, 7  ;;  %v5703_v7 = vpop.f32.mrf.mxu1  ;;  %6752 = vmatpush.bf16.msrb.mxu3 %v10049_v53  ;;  %v10907_v33 = vld [vmem:[#allocation10 + $0xacc] sm:$0xf] }
 0x33b   :  { %v11892_v59 = vadd.f32 %v5703_v7, %v11864_v42  ;;  %6809 = vmatpush.bf16.msra.mxu2 %v9925_v0  ;;  %v4721_v42 = vsel %vm1251_vm0, 0.0, %v4681_v35  ;;  %6866 = vmatpush.bf16.msrb.mxu1 %v9801_v43  ;;  %v10132_v43 = vld [vmem:[#allocation10 + $0xba8] sm:$0xf] }
 0x33c   :  { %6677 = vmatmul.bf16.vlgmr.msra.gmra.mxu3 %v11557_v36  ;;  %6734 = vmatmul.bf16.vlgmr.msrb.gmra.mxu2 %v11529_v56  ;;  %v11902_v46 = vsel %vm1251_vm0, %v4696_v10, %v4703_v55  ;;  %v4738_v53 = vadd.f32 %v11895_v63, %v4721_v42  ;;  %v10133_v47 = vor.u32 %v10937_v37, %v10132_v43  ;;  %v10116_v42 = vld [vmem:[#allocation10 + $0xb88] sm:$0xf]  ;;  %v10929_v43 = vld [vmem:[#allocation10 + $0xb74] sm:$0xf0]  ;;  %v10895_v37 = vld [vmem:[#allocation10 + $0xa6c] sm:$0xf] }
 0x33d   :  { %6791 = vmatmul.bf16.vlgmr.msra.gmra.mxu1 %v11506_v39  ;;  %6848 = vmatmul.bf16.vlgmr.msrb.gmra.mxu0 %v11492_v38  ;;  %v10025_v38 = vor.u32 %v10907_v33, %v10022_v50  ;;  %v9990_v33 = vld [vmem:[#allocation10 + $0xa98] sm:$0xf0] }
 0x33e   :  { %6821 = vmatpush.bf16.msra.mxu3 %v10165_v29  ;;  %v10006_v29 = vld [vmem:[#allocation10 + $0xab8] sm:$0xf0] }
 0x33f   :  { %v5589_v16 = vpop.f32.mrf.mxu3  ;;  %v5646_v49 = vpop.f32.mrf.mxu2  ;;  %6878 = vmatpush.bf16.msrb.mxu2 %v10041_v28  ;;  %v10009_v61 = vor.u32 %v10903_v60, %v10006_v29  ;;  %v10933_v28 = vld [vmem:[#allocation10 + $0xb94] sm:$0xf0]  ;;  %v10084_v29 = vld [vmem:[#allocation10 + $0xb48] sm:$0xf] }
 0x340   :  { %v5590_v23 = vadd.f32 %v5589_v16, %v11849_v11  ;;  %v11912_v35 = vadd.f32 %v5646_v49, %v11834_v48  ;;  %v10899_v16 = vld [vmem:[#allocation10 + $0xa8c] sm:$0xf]  ;;  %v4742_v49 = vadd.f32 %v11895_v63, %v11695_v12  ;;  %v10117_v62 = vor.u32 %v10933_v28, %v10116_v42  ;;  %v9958_v28 = vld [vmem:[#allocation10 + $0xa58] sm:$0xf0] }
 0x342   :  { %v11914_v0 = vadd.f32 %v5590_v23, %v4738_v53  ;;  %v5705_v55 = vpop.f32.mrf.mxu1  ;;  %6822 = vmatpush.bf16.msra.mxu3 %v10149_v32  ;;  %v9993_v53 = vor.u32 %v10899_v16, %v9990_v33  ;;  %v5691_v23 = vpop.f32.mrf.mxu0  ;;  %v10921_v33 = vld [vmem:[#allocation10 + $0xb34] sm:$0xf0] }
 0x343   :  { %v11916_v7 = vadd.f32 %v5705_v55, %v5686_v13  ;;  %6879 = vmatpush.bf16.msrb.mxu2 %v10025_v38  ;;  %v10100_v55 = vld [vmem:[#allocation10 + $0xb68] sm:$0xf] }
 0x344   :  { %v10101_v12 = vor.u32 %v10929_v43, %v10100_v55  ;;  %v9942_v43 = vld [vmem:[#allocation10 + $0xa38] sm:$0xf0] }
 0x346   :  { %6823 = vmatpush.bf16.msra.mxu3 %v10133_v47 }
 0x347   :  { %v5591_v11 = vpop.f32.mrf.mxu3  ;;  %v5648_v48 = vpop.f32.mrf.mxu2  ;;  %6880 = vmatpush.bf16.msrb.mxu2 %v10009_v61  ;;  %v10925_v61 = vld [vmem:[#allocation10 + $0xb54] sm:$0xf0] }
 0x348   :  { %v5592_v13 = vadd.f32 %v5591_v11, %v11858_v30  ;;  %v11922_v31 = vadd.f32 %v5648_v48, %v11854_v58  ;;  %v9974_v58 = vld [vmem:[#allocation10 + $0xa78] sm:$0xf0]  ;;  %v4725_v30 = vsel %vm1251_vm0, 0.0, %v4693_v18  ;;  %v10891_v11 = vld [vmem:[#allocation10 + $0xa4c] sm:$0xf]  ;;  %v10085_v18 = vor.u32 %v10925_v61, %v10084_v29 }
 0x349   :  { %v4746_v48 = vadd.f32 %v11895_v63, %v4725_v30  ;;  %v9961_v16 = vor.u32 %v10891_v11, %v9958_v28  ;;  %v10883_v30 = vld [vmem:[#allocation10 + $0xa0c] sm:$0xf]  ;;  %v9926_v29 = vld [vmem:[#allocation10 + $0xa18] sm:$0xf0] }
 0x34a   :  { %v11924_v32 = vadd.f32 %v5592_v13, %v4742_v49  ;;  %v5708_v50 = vpop.f32.mrf.mxu1  ;;  %6824 = vmatpush.bf16.msra.mxu3 %v10117_v62  ;;  %v10068_v62 = vld [vmem:[#allocation10 + $0xb28] sm:$0xf]  ;;  %v9929_v61 = vor.u32 %v10883_v30, %v9926_v29  ;;  %v10166_v28 = vld [vmem:[#allocation10 + $0xbf8] sm:$0xf0]  ;;  %v10931_v30 = vld [vmem:[#allocation10 + $0xb8c] sm:$0xf] }
 0x34b   :  { %v11926_v38 = vadd.f32 %v5708_v50, %v5689_v19  ;;  %6881 = vmatpush.bf16.msrb.mxu2 %v9993_v53  ;;  %v9977_v19 = vor.u32 %v10895_v37, %v9974_v58  ;;  %v10887_v53 = vld [vmem:[#allocation10 + $0xa2c] sm:$0xf]  ;;  %v5760_v50 = vpop.f32.mrf.mxu0  ;;  %v10069_v55 = vor.u32 %v10921_v33, %v10068_v62  ;;  %v10917_v58 = vld [vmem:[#allocation10 + $0xb14] sm:$0xf0]  ;;  %v10150_v33 = vld [vmem:[#allocation10 + $0xbd8] sm:$0xf0] }
 0x34c   :  { %6682 = vmatmul.bf16.gmra.mxu3 %v11570_v26  ;;  %6739 = vmatmul.bf16.gmra.mxu2 %v11543_v17  ;;  %v10939_v62 = vld [vmem:[#allocation10 + $0xbcc] sm:$0xf] }
 0x34d   :  { %6796 = vmatmul.bf16.gmra.mxu1 %v11516_v4  ;;  %6853 = vmatmul.bf16.gmra.mxu0 %v11499_v45 }
 0x34e   :  { %6825 = vmatpush.bf16.msra.mxu3 %v10101_v12  ;;  %v10052_v12 = vld [vmem:[#allocation10 + $0xb08] sm:$0xf] }
 0x34f   :  { %v5594_v60 = vpop.f32.mrf.mxu3  ;;  %v5651_v47 = vpop.f32.mrf.mxu2  ;;  %6882 = vmatpush.bf16.msrb.mxu2 %v9977_v19  ;;  %v4750_v19 = vadd.f32 %v11895_v63, %v11725_v51 }
 0x350   :  { %v5595_v42 = vadd.f32 %v5594_v60, %v11879_v20  ;;  %v11938_v9 = vadd.f32 %v5651_v47, %v11862_v6  ;;  %v9945_v20 = vor.u32 %v10887_v53, %v9942_v43  ;;  %v10053_v47 = vor.u32 %v10917_v58, %v10052_v12 }
 0x351   :  { %v10153_v43 = vor.u32 %v10939_v62, %v10150_v33 }
 0x352   :  { %v11940_v49 = vadd.f32 %v5595_v42, %v4746_v48  ;;  %v5710_v45 = vpop.f32.mrf.mxu1  ;;  %6826 = vmatpush.bf16.msra.mxu3 %v10085_v18  ;;  %v10943_v18 = vld [vmem:[#allocation10 + $0xbec] sm:$0xf] }
 0x353   :  { %v11942_v13 = vadd.f32 %v5710_v45, %v5691_v23  ;;  %6883 = vmatpush.bf16.msrb.mxu2 %v9961_v16  ;;  %v11955_v16 = vperm.slane %v11888_v22, 1  ;;  %v10169_v51 = vor.u32 %v10943_v18, %v10166_v28  ;;  %v10927_v28 = vld [vmem:[#allocation10 + $0xb6c] sm:$0xf] }
 0x356   :  { %6827 = vmatpush.bf16.msra.mxu3 %v10069_v55 }
 0x357   :  { %v5596_v6 = vpop.f32.mrf.mxu3  ;;  %v5653_v37 = vpop.f32.mrf.mxu2  ;;  %6884 = vmatpush.bf16.msrb.mxu2 %v9945_v20 }
 0x358   :  { %v5597_v23 = vadd.f32 %v5596_v6, %v11886_v24  ;;  %v11948_v60 = vadd.f32 %v5653_v37, %v11882_v2  ;;  %v4722_v2 = vsel %vm1251_vm0, 0.0, %v4682_v52  ;;  %v5762_v24 = vpop.f32.mrf.mxu0  ;;  %v10134_v6 = vld [vmem:[#allocation10 + $0xbb8] sm:$0xf0] }
 0x359   :  { %v4739_v53 = vadd.f32 %v11955_v16, %v4722_v2 }
 0x35a   :  { %v11950_v11 = vadd.f32 %v5597_v23, %v4750_v19  ;;  %v5779_v48 = vpop.f32.mrf.mxu1  ;;  %6828 = vmatpush.bf16.msra.mxu3 %v10053_v47  ;;  %v10118_v19 = vld [vmem:[#allocation10 + $0xb98] sm:$0xf0] }
 0x35b   :  { %v11952_v42 = vadd.f32 %v5779_v48, %v5760_v50  ;;  %6885 = vmatpush.bf16.msrb.mxu2 %v9929_v61  ;;  %v10121_v29 = vor.u32 %v10931_v30, %v10118_v19 }
 0x35c   :  { %6753 = vmatmul.bf16.vlgmr.msrb.gmra.mxu3 %v11557_v36  ;;  %6810 = vmatmul.bf16.vlgmr.msra.gmra.mxu2 %v11529_v56 }
 0x35d   :  { %6867 = vmatmul.bf16.vlgmr.msrb.gmra.mxu1 %v11506_v39  ;;  %v10935_v39 = vld [vmem:[#allocation10 + $0xbac] sm:$0xf] }
 0x35e   :  { %6897 = vmatpush.bf16.msrb.mxu3 %v10169_v51  ;;  %v10137_v37 = vor.u32 %v10935_v39, %v10134_v6  ;;  %v10102_v51 = vld [vmem:[#allocation10 + $0xb78] sm:$0xf0] }
 0x35f   :  { %v5665_v63 = vpop.f32.mrf.mxu3  ;;  %v5722_v45 = vpop.f32.mrf.mxu2  ;;  %v10105_v2 = vor.u32 %v10927_v28, %v10102_v51 }
 0x360   :  { %v5666_v50 = vadd.f32 %v5665_v63, %v11912_v35  ;;  %v11966_v55 = vadd.f32 %v5722_v45, %v11892_v59  ;;  %v5765_v23 = vpop.f32.mrf.mxu0  ;;  %v4743_v59 = vadd.f32 %v11955_v16, %v11753_v41  ;;  %v4726_v41 = vsel %vm1251_vm0, 0.0, %v4694_v25  ;;  %v10086_v63 = vld [vmem:[#allocation10 + $0xb58] sm:$0xf0] }
 0x361   :  { %v4747_v45 = vadd.f32 %v11955_v16, %v4726_v41 }
 0x362   :  { %v11968_v20 = vadd.f32 %v5666_v50, %v4739_v53  ;;  %v5781_v5 = vpop.f32.mrf.mxu1  ;;  %6898 = vmatpush.bf16.msrb.mxu3 %v10153_v43 }
 0x363   :  { %v11970_v52 = vadd.f32 %v5781_v5, %v5762_v24  ;;  %v10923_v24 = vld [vmem:[#allocation10 + $0xb4c] sm:$0xf] }
 0x364   :  { %v10089_v53 = vor.u32 %v10923_v24, %v10086_v63  ;;  %v10919_v5 = vld [vmem:[#allocation10 + $0xb2c] sm:$0xf] }
 0x366   :  { %6899 = vmatpush.bf16.msrb.mxu3 %v10137_v37 }
 0x367   :  { %v5667_v12 = vpop.f32.mrf.mxu3  ;;  %v5724_v58 = vpop.f32.mrf.mxu2 }
 0x368   :  { %v5668_v35 = vadd.f32 %v5667_v12, %v11922_v31  ;;  %v5725_v47 = vadd.f32 %v5724_v58, %v11916_v7  ;;  %v5767_v50 = vpop.f32.mrf.mxu0  ;;  %v10915_v12 = vld [vmem:[#allocation10 + $0xb0c] sm:$0xf]  ;;  %v10054_v58 = vld [vmem:[#allocation10 + $0xb18] sm:$0xf0] }
 0x369   :  { %v10057_v19 = vor.u32 %v10915_v12, %v10054_v58 }
 0x36a   :  { %v11976_v61 = vadd.f32 %v5668_v35, %v4743_v59  ;;  %v5784_v48 = vpop.f32.mrf.mxu1  ;;  %6900 = vmatpush.bf16.msrb.mxu3 %v10121_v29  ;;  %v4732_v59 = vperm.slane %v11888_v22, 2  ;;  %v4723_v35 = vsel %vm1251_vm0, 0.0, %v4683_v3 }
 0x36b   :  { %v5785_v18 = vadd.f32 %v5784_v48, %v5765_v23 }
 0x36c   :  { %6758 = vmatmul.bf16.gmra.mxu3 %v11570_v26  ;;  %6815 = vmatmul.bf16.gmra.mxu2 %v11543_v17 }
 0x36d   :  { %6872 = vmatmul.bf16.gmra.mxu1 %v11516_v4  ;;  %v10070_v4 = vld [vmem:[#allocation10 + $0xb38] sm:$0xf0] }
 0x36e   :  { %6901 = vmatpush.bf16.msrb.mxu3 %v10105_v2  ;;  %v10073_v39 = vor.u32 %v10919_v5, %v10070_v4  ;;  %v4744_v2 = vadd.f32 %v4732_v59, %v11811_v8 }
 0x36f   :  { %v5670_v7 = vpop.f32.mrf.mxu3  ;;  %v5727_v31 = vpop.f32.mrf.mxu2 }
 0x370   :  { %v5671_v62 = vadd.f32 %v5670_v7, %v11938_v9  ;;  %v5728_v33 = vadd.f32 %v5727_v31, %v11926_v38  ;;  %v4751_v9 = vadd.f32 %v11955_v16, %v11783_v54  ;;  %v4740_v16 = vadd.f32 %v4732_v59, %v4723_v35 }
 0x372   :  { %v11987_v43 = vadd.f32 %v5671_v62, %v4747_v45  ;;  %v5786_v44 = vpop.f32.mrf.mxu1  ;;  %6902 = vmatpush.bf16.msrb.mxu3 %v10089_v53 }
 0x373   :  { %v5787_v25 = vadd.f32 %v5786_v44, %v5767_v50  ;;  %v6621_v50 = vpop.f32.mrf.mxu0  ;;  %v4741_v44 = vadd.f32 %v4733_v57, %v4724_v21 }
 0x376   :  { %6903 = vmatpush.bf16.msrb.mxu3 %v10073_v39 }
 0x377   :  { %v5672_v6 = vpop.f32.mrf.mxu3  ;;  %v5729_v37 = vpop.f32.mrf.mxu2 }
 0x378   :  { %v5673_v38 = vadd.f32 %v5672_v6, %v11948_v60  ;;  %v5730_v30 = vadd.f32 %v5729_v37, %v11942_v13  ;;  %v4745_v37 = vadd.f32 %v4733_v57, %v11871_v40  ;;  %v4753_v40 = vadd.f32 %v4733_v57, %v11902_v46 }
 0x37a   :  { %v11993_v23 = vadd.f32 %v5673_v38, %v4751_v9  ;;  %6904 = vmatpush.bf16.msrb.mxu3 %v10057_v19 }
 0x37c   :  { %6829 = vmatmul.bf16.vlgmr.msra.gmra.mxu3 %v11557_v36  ;;  %6886 = vmatmul.bf16.vlgmr.msrb.gmra.mxu2 %v11529_v56 }
 0x37f   :  { %v5741_v29 = vpop.f32.mrf.mxu3  ;;  %v5798_v54 = vpop.f32.mrf.mxu2 }
 0x380   :  { %v5742_v60 = vadd.f32 %v5741_v29, %v11966_v55  ;;  %v5799_v13 = vadd.f32 %v5798_v54, %v11952_v42  ;;  %v4748_v55 = vadd.f32 %v4732_v59, %v4727_v14 }
 0x382   :  { %v12003_v48 = vadd.f32 %v5742_v60, %v4740_v16 }
 0x387   :  { %v5743_v28 = vpop.f32.mrf.mxu3  ;;  %v5800_v51 = vpop.f32.mrf.mxu2 }
 0x388   :  { %v5744_v41 = vadd.f32 %v5743_v28, %v5725_v47  ;;  %v5801_v56 = vadd.f32 %v5800_v51, %v11970_v52  ;;  %v4752_v52 = vadd.f32 %v4732_v59, %v11841_v1 }
 0x38a   :  { %v12007_v7 = vadd.f32 %v5744_v41, %v4744_v2 }
 0x38c   :  { %6834 = vmatmul.bf16.gmra.mxu3 %v11570_v26  ;;  %6891 = vmatmul.bf16.gmra.mxu2 %v11543_v17  ;;  %v6640_v17 = vpop.f32.mrf.mxu1 }
 0x38d   :  { %v6641_v60 = vadd.f32 %v6640_v17, %v6621_v50 }
 0x38f   :  { %v5746_v3 = vpop.f32.mrf.mxu3  ;;  %v5803_v42 = vpop.f32.mrf.mxu2 }
 0x390   :  { %v5747_v31 = vadd.f32 %v5746_v3, %v5728_v33  ;;  %v5804_v24 = vadd.f32 %v5803_v42, %v5785_v18 }
 0x392   :  { %v12014_v63 = vadd.f32 %v5747_v31, %v4748_v55 }
 0x394   :  { %v6642_v1 = vpop.f32.mrf.mxu1 }
 0x397   :  { %v5748_v8 = vpop.f32.mrf.mxu3  ;;  %v5805_v47 = vpop.f32.mrf.mxu2 }
 0x398   :  { %v5749_v45 = vadd.f32 %v5748_v8, %v5730_v30  ;;  %v5806_v62 = vadd.f32 %v5805_v47, %v5787_v25  ;;  %v6623_v25 = vpop.f32.mrf.mxu0  ;;  %v7000_v8 = vld [vmem:[#allocation5 + $0x20] sm:$0xff] }
 0x399   :  { %v6643_v28 = vadd.f32 %v6642_v1, %v6623_v25 }
 0x39a   :  { %v12017_v53 = vadd.f32 %v5749_v45, %v4752_v52 }
 0x39c   :  { %6905 = vmatmul.bf16.vlgmr.msrb.gmra.mxu3 %v11557_v36  ;;  %v4728_v36 = vsel %vm1251_vm0, 0.0, %v4696_v10  ;;  %v6645_v34 = vpop.f32.mrf.mxu1 }
 0x39d   :  { %v4749_v58 = vadd.f32 %v4733_v57, %v4728_v36 }
 0x39f   :  { %v5817_v18 = vpop.f32.mrf.mxu3  ;;  %v6659_v33 = vpop.f32.mrf.mxu2 }
 0x3a0   :  { %v5818_v5 = vadd.f32 %v5817_v18, %v5799_v13  ;;  %v6626_v9 = vpop.f32.mrf.mxu0  ;;  %v6660_v51 = vadd.f32 %v6659_v33, %v6641_v60 }
 0x3a1   :  { %v6646_v18 = vadd.f32 %v6645_v34, %v6626_v9 }
 0x3a2   :  { %v12024_v4 = vadd.f32 %v5818_v5, %v4741_v44 }
 0x3a4   :  { %v6647_v29 = vpop.f32.mrf.mxu1 }
 0x3a7   :  { %v5819_v39 = vpop.f32.mrf.mxu3  ;;  %v6661_v6 = vpop.f32.mrf.mxu2 }
 0x3a8   :  { %v5820_v22 = vadd.f32 %v5819_v39, %v5801_v56  ;;  %v6628_v54 = vpop.f32.mrf.mxu0  ;;  %v6662_v41 = vadd.f32 %v6661_v6, %v6643_v28 }
 0x3a9   :  { %v6648_v33 = vadd.f32 %v6647_v29, %v6628_v54 }
 0x3aa   :  { %v12027_v12 = vadd.f32 %v5820_v22, %v4745_v37 }
 0x3ac   :  { %6910 = vmatmul.bf16.gmra.mxu3 %v11570_v26  ;;  %v6716_v10 = vpop.f32.mrf.mxu1 }
 0x3af   :  { %v5822_v27 = vpop.f32.mrf.mxu3  ;;  %v6664_v30 = vpop.f32.mrf.mxu2 }
 0x3b0   :  { %v5823_v38 = vadd.f32 %v5822_v27, %v5804_v24  ;;  %v6697_v13 = vpop.f32.mrf.mxu0  ;;  %v6996_v24 = vld [vmem:[#allocation5] sm:$0xff]  ;;  %v6665_v44 = vadd.f32 %v6664_v30, %v6646_v18 }
 0x3b1   :  { %v6717_v54 = vadd.f32 %v6716_v10, %v6697_v13 }
 0x3b2   :  { %v12033_v19 = vadd.f32 %v5823_v38, %v4749_v58  ;;  %v7004_v58 = vld [vmem:[#allocation5 + $0x40] sm:$0xff] }
 0x3b3   :  { %v7008_v38 = vld [vmem:[#allocation5 + $0x60] sm:$0xff] }
 0x3b4   :  { %v6718_v47 = vpop.f32.mrf.mxu1 }
 0x3b7   :  { %v5824_v59 = vpop.f32.mrf.mxu3  ;;  %v6666_v26 = vpop.f32.mrf.mxu2 }
 0x3b8   :  { %v5825_v35 = vadd.f32 %v5824_v59, %v5806_v62  ;;  %v6699_v62 = vpop.f32.mrf.mxu0  ;;  %v6667_v5 = vadd.f32 %v6666_v26, %v6648_v33 }
 0x3ba   :  { %v12036_v16 = vadd.f32 %v5825_v35, %v4753_v40 }
 0x3bc   :  { %v6721_v25 = vpop.f32.mrf.mxu1 }
 0x3bf   :  { %v6678_v15 = vpop.f32.mrf.mxu3  ;;  %v6735_v2 = vpop.f32.mrf.mxu2 }
 0x3c0   :  { %v6679_v56 = vadd.f32 %v6678_v15, %v6660_v51  ;;  %v6702_v6 = vpop.f32.mrf.mxu0  ;;  %v6719_v15 = vadd.f32 %v6718_v47, %v6699_v62  ;;  %v6736_v60 = vadd.f32 %v6735_v2, %v6717_v54 }
 0x3c2   :  { %v6932_v42 = vrot.slane %v6679_v56, 1 }
 0x3c4   :  { %v6723_v35 = vpop.f32.mrf.mxu1 }
 0x3c7   :  { %v6680_v14 = vpop.f32.mrf.mxu3  ;;  %v6737_v50 = vpop.f32.mrf.mxu2 }
 0x3c8   :  { %v6681_v3 = vadd.f32 %v6680_v14, %v6662_v41  ;;  %v6704_v29 = vpop.f32.mrf.mxu0  ;;  %v6738_v28 = vadd.f32 %v6737_v50, %v6719_v15 }
 0x3ca   :  { %v6933_v55 = vrot.slane %v6681_v3, 1 }
 0x3cc   :  { %v6934_v46 = vsel %vm3503_vm1, %v6932_v42, %v6933_v55  ;;  %v6972_v31 = vsel %vm3503_vm1, %v6933_v55, 0.0 }
 0x3cd   :  { %v6980_v52 = vadd.f32 %v6934_v46, %v11914_v0  ;;  %v6984_v45 = vadd.f32 %v6972_v31, %v11924_v32  ;;  %v6997_v46 = vld [vmem:[#allocation5 + $0x8] sm:$0xff] }
 0x3ce   :  { %v7001_v31 = vld [vmem:[#allocation5 + $0x28] sm:$0xff] }
 0x3cf   :  { %v7012_v17 = vadd.f32 %v6996_v24, %v6980_v52  ;;  %v7016_v57 = vadd.f32 %v7000_v8, %v6984_v45  ;;  %v6683_v21 = vpop.f32.mrf.mxu3  ;;  %v6740_v22 = vpop.f32.mrf.mxu2  ;;  %v6722_v52 = vadd.f32 %v6721_v25, %v6702_v6  ;;  %v6724_v45 = vadd.f32 %v6723_v35, %v6704_v29 }
 0x3d0   :  { %v6684_v1 = vadd.f32 %v6683_v21, %v6665_v44  ;;  %v6773_v42 = vpop.f32.mrf.mxu0 }
 0x3d1   :  { %7028 = vst [vmem:[#allocation13] sm:$0xff] %v7012_v17  ;;  %v6741_v62 = vadd.f32 %v6740_v22, %v6722_v52 }
 0x3d2   :  { %7032 = vst [vmem:[#allocation13 + $0x20] sm:$0xff] %v7016_v57  ;;  %v6944_v0 = vrot.slane %v6684_v1, 1 }
 0x3d7   :  { %v6685_v39 = vpop.f32.mrf.mxu3  ;;  %v6742_v26 = vpop.f32.mrf.mxu2 }
 0x3d8   :  { %v6686_v37 = vadd.f32 %v6685_v39, %v6667_v5  ;;  %v6775_v57 = vpop.f32.mrf.mxu0  ;;  %v6743_v50 = vadd.f32 %v6742_v26, %v6724_v45  ;;  %v7005_v39 = vld [vmem:[#allocation5 + $0x48] sm:$0xff]  ;;  %v7006_v45 = vld [vmem:[#allocation5 + $0x50] sm:$0xff] }
 0x3da   :  { %v6945_v36 = vrot.slane %v6686_v37, 1  ;;  %v7009_v37 = vld [vmem:[#allocation5 + $0x68] sm:$0xff] }
 0x3dc   :  { %v6946_v32 = vsel %vm3503_vm1, %v6944_v0, %v6945_v36  ;;  %v6976_v27 = vsel %vm3503_vm1, %v6945_v36, 0.0 }
 0x3dd   :  { %v6988_v34 = vadd.f32 %v6946_v32, %v11940_v49  ;;  %v6992_v9 = vadd.f32 %v6976_v27, %v11950_v11  ;;  %v6792_v49 = vpop.f32.mrf.mxu1 }
 0x3df   :  { %v7020_v30 = vadd.f32 %v7004_v58, %v6988_v34  ;;  %v7024_v59 = vadd.f32 %v7008_v38, %v6992_v9  ;;  %v6754_v40 = vpop.f32.mrf.mxu3  ;;  %v6811_v24 = vpop.f32.mrf.mxu2  ;;  %v6793_v38 = vadd.f32 %v6792_v49, %v6773_v42 }
 0x3e0   :  { %v6755_v51 = vadd.f32 %v6754_v40, %v6736_v60  ;;  %v6778_v27 = vpop.f32.mrf.mxu0 }
 0x3e1   :  { %7036 = vst [vmem:[#allocation13 + $0x40] sm:$0xff] %v7020_v30  ;;  %v6812_v9 = vadd.f32 %v6811_v24, %v6793_v38  ;;  %v7003_v38 = vld [vmem:[#allocation5 + $0x38] sm:$0xff] }
 0x3e2   :  { %7040 = vst [vmem:[#allocation13 + $0x60] sm:$0xff] %v7024_v59  ;;  %v6935_v14 = vrot.slane %v6755_v51, 1  ;;  %v7002_v51 = vld [vmem:[#allocation5 + $0x30] sm:$0xff] }
 0x3e5   :  { %v6794_v17 = vpop.f32.mrf.mxu1 }
 0x3e6   :  { %v6795_v34 = vadd.f32 %v6794_v17, %v6775_v57 }
 0x3e7   :  { %v6756_v41 = vpop.f32.mrf.mxu3  ;;  %v6813_v18 = vpop.f32.mrf.mxu2 }
 0x3e8   :  { %v6757_v56 = vadd.f32 %v6756_v41, %v6738_v28  ;;  %v6814_v30 = vadd.f32 %v6813_v18, %v6795_v34  ;;  %v6780_v54 = vpop.f32.mrf.mxu0  ;;  %v6998_v28 = vld [vmem:[#allocation5 + $0x10] sm:$0xff] }
 0x3ea   :  { %v6936_v3 = vrot.slane %v6757_v56, 1 }
 0x3ec   :  { %v6937_v11 = vsel %vm3503_vm1, %v6935_v14, %v6936_v3  ;;  %v6973_v55 = vsel %vm3503_vm1, %v6936_v3, 0.0 }
 0x3ed   :  { %v6981_v10 = vadd.f32 %v6937_v11, %v11968_v20  ;;  %v6985_v13 = vadd.f32 %v6973_v55, %v11976_v61  ;;  %v6797_v22 = vpop.f32.mrf.mxu1 }
 0x3ee   :  { %v6798_v42 = vadd.f32 %v6797_v22, %v6778_v27 }
 0x3ef   :  { %v7013_v2 = vadd.f32 %v6997_v46, %v6981_v10  ;;  %v7017_v8 = vadd.f32 %v7001_v31, %v6985_v13  ;;  %v6759_v47 = vpop.f32.mrf.mxu3  ;;  %v6816_v58 = vpop.f32.mrf.mxu2 }
 0x3f0   :  { %v6760_v21 = vadd.f32 %v6759_v47, %v6741_v62  ;;  %v6849_v55 = vpop.f32.mrf.mxu0  ;;  %v6817_v31 = vadd.f32 %v6816_v58, %v6798_v42  ;;  %v7010_v62 = vld [vmem:[#allocation5 + $0x70] sm:$0xff]  ;;  %v6999_v58 = vld [vmem:[#allocation5 + $0x18] sm:$0xff] }
 0x3f1   :  { %7029 = vst [vmem:[#allocation13 + $0x8] sm:$0xff] %v7013_v2 }
 0x3f2   :  { %7033 = vst [vmem:[#allocation13 + $0x28] sm:$0xff] %v7017_v8  ;;  %v6947_v5 = vrot.slane %v6760_v21, 1 }
 0x3f5   :  { %v6799_v29 = vpop.f32.mrf.mxu1 }
 0x3f6   :  { %v6800_v46 = vadd.f32 %v6799_v29, %v6780_v54 }
 0x3f7   :  { %v6761_v33 = vpop.f32.mrf.mxu3 }
 0x3f8   :  { %v6762_v44 = vadd.f32 %v6761_v33, %v6743_v50  ;;  %v6851_v21 = vpop.f32.mrf.mxu0 }
 0x3fa   :  { %v6948_v1 = vrot.slane %v6762_v44, 1 }
 0x3fc   :  { %v6949_v20 = vsel %vm3503_vm1, %v6947_v5, %v6948_v1  ;;  %v6977_v61 = vsel %vm3503_vm1, %v6948_v1, 0.0 }
 0x3fd   :  { %v6989_v25 = vadd.f32 %v6949_v20, %v11987_v43  ;;  %v6993_v6 = vadd.f32 %v6977_v61, %v11993_v23  ;;  %v6818_v23 = vpop.f32.mrf.mxu2  ;;  %v6868_v11 = vpop.f32.mrf.mxu1 }
 0x3fe   :  { %v6819_v10 = vadd.f32 %v6818_v23, %v6800_v46  ;;  %v6869_v1 = vadd.f32 %v6868_v11, %v6849_v55 }
 0x3ff   :  { %v7021_v0 = vadd.f32 %v7005_v39, %v6989_v25  ;;  %v7025_v36 = vadd.f32 %v7009_v37, %v6993_v6  ;;  %v6830_v32 = vpop.f32.mrf.mxu3 }
 0x400   :  { %v6831_v59 = vadd.f32 %v6830_v32, %v6812_v9 }
 0x401   :  { %7037 = vst [vmem:[#allocation13 + $0x48] sm:$0xff] %v7021_v0  ;;  %v6854_v0 = vpop.f32.mrf.mxu0 }
 0x402   :  { %7041 = vst [vmem:[#allocation13 + $0x68] sm:$0xff] %v7025_v36  ;;  %v6938_v43 = vrot.slane %v6831_v59, 1 }
 0x405   :  { %v6887_v24 = vpop.f32.mrf.mxu2  ;;  %v6870_v17 = vpop.f32.mrf.mxu1 }
 0x406   :  { %v6871_v20 = vadd.f32 %v6870_v17, %v6851_v21  ;;  %v6888_v61 = vadd.f32 %v6887_v24, %v6869_v1 }
 0x407   :  { %v6832_v40 = vpop.f32.mrf.mxu3 }
 0x408   :  { %v6833_v35 = vadd.f32 %v6832_v40, %v6814_v30 }
 0x409   :  { %v6856_v54 = vpop.f32.mrf.mxu0 }
 0x40a   :  { %v6939_v26 = vrot.slane %v6833_v35, 1 }
 0x40c   :  { %v6940_v15 = vsel %vm3503_vm1, %v6938_v43, %v6939_v26  ;;  %v6974_v60 = vsel %vm3503_vm1, %v6939_v26, 0.0 }
 0x40d   :  { %v6982_v41 = vadd.f32 %v6940_v15, %v12003_v48  ;;  %v6986_v56 = vadd.f32 %v6974_v60, %v12007_v7  ;;  %v6889_v18 = vpop.f32.mrf.mxu2  ;;  %v6873_v25 = vpop.f32.mrf.mxu1 }
 0x40e   :  { %v6890_v39 = vadd.f32 %v6889_v18, %v6871_v20  ;;  %v6874_v29 = vadd.f32 %v6873_v25, %v6854_v0 }
 0x40f   :  { %v7014_v14 = vadd.f32 %v6998_v28, %v6982_v41  ;;  %v7018_v3 = vadd.f32 %v7002_v51, %v6986_v56  ;;  %v6835_v49 = vpop.f32.mrf.mxu3 }
 0x410   :  { %v6836_v13 = vadd.f32 %v6835_v49, %v6817_v31 }
 0x411   :  { %7030 = vst [vmem:[#allocation13 + $0x10] sm:$0xff] %v7014_v14  ;;  %v7007_v14 = vld [vmem:[#allocation5 + $0x58] sm:$0xff] }
 0x412   :  { %7034 = vst [vmem:[#allocation13 + $0x30] sm:$0xff] %v7018_v3  ;;  %v6950_v47 = vrot.slane %v6836_v13, 1  ;;  %v7011_v3 = vld [vmem:[#allocation5 + $0x78] sm:$0xff] }
 0x415   :  { %v6892_v36 = vpop.f32.mrf.mxu2  ;;  %v6875_v35 = vpop.f32.mrf.mxu1 }
 0x416   :  { %v6876_v26 = vadd.f32 %v6875_v35, %v6856_v54  ;;  %v6893_v23 = vadd.f32 %v6892_v36, %v6874_v29 }
 0x417   :  { %v6837_v2 = vpop.f32.mrf.mxu3 }
 0x418   :  { %v6838_v8 = vadd.f32 %v6837_v2, %v6819_v10 }
 0x41a   :  { %v6951_v52 = vrot.slane %v6838_v8, 1 }
 0x41c   :  { %v6952_v48 = vsel %vm3503_vm1, %v6950_v47, %v6951_v52  ;;  %v6978_v7 = vsel %vm3503_vm1, %v6951_v52, 0.0 }
 0x41d   :  { %v6990_v57 = vadd.f32 %v6952_v48, %v12014_v63  ;;  %v6994_v50 = vadd.f32 %v6978_v7, %v12017_v53  ;;  %v6894_v43 = vpop.f32.mrf.mxu2 }
 0x41e   :  { %v6895_v15 = vadd.f32 %v6894_v43, %v6876_v26 }
 0x41f   :  { %v7022_v33 = vadd.f32 %v7006_v45, %v6990_v57  ;;  %v7026_v44 = vadd.f32 %v7010_v62, %v6994_v50  ;;  %v6906_v5 = vpop.f32.mrf.mxu3 }
 0x420   :  { %v6907_v37 = vadd.f32 %v6906_v5, %v6888_v61 }
 0x421   :  { %7038 = vst [vmem:[#allocation13 + $0x50] sm:$0xff] %v7022_v33 }
 0x422   :  { %7042 = vst [vmem:[#allocation13 + $0x70] sm:$0xff] %v7026_v44  ;;  %v6941_v63 = vrot.slane %v6907_v37, 1 }
 0x427   :  { %v6908_v6 = vpop.f32.mrf.mxu3 }
 0x428   :  { %v6909_v22 = vadd.f32 %v6908_v6, %v6890_v39 }
 0x42a   :  { %v6942_v32 = vrot.slane %v6909_v22, 1 }
 0x42c   :  { %v6943_v53 = vsel %vm3503_vm1, %v6941_v63, %v6942_v32  ;;  %v6975_v27 = vsel %vm3503_vm1, %v6942_v32, 0.0 }
 0x42d   :  { %v6983_v34 = vadd.f32 %v6943_v53, %v12024_v4  ;;  %v6987_v9 = vadd.f32 %v6975_v27, %v12027_v12 }
 0x42f   :  { %v7015_v30 = vadd.f32 %v6999_v58, %v6983_v34  ;;  %v7019_v59 = vadd.f32 %v7003_v38, %v6987_v9  ;;  %v6911_v40 = vpop.f32.mrf.mxu3 }
 0x430   :  { %v6912_v60 = vadd.f32 %v6911_v40, %v6893_v23 }
 0x431   :  { %7031 = vst [vmem:[#allocation13 + $0x18] sm:$0xff] %v7015_v30 }
 0x432   :  { %7035 = vst [vmem:[#allocation13 + $0x38] sm:$0xff] %v7019_v59  ;;  %v6953_v41 = vrot.slane %v6912_v60, 1 }
 0x437   :  { %v6913_v28 = vpop.f32.mrf.mxu3 }
 0x438   :  { %v6914_v51 = vadd.f32 %v6913_v28, %v6895_v15 }
 0x43a   :  { %v6954_v56 = vrot.slane %v6914_v51, 1 }
 0x43c   :  { %v6955_v4 = vsel %vm3503_vm1, %v6953_v41, %v6954_v56  ;;  %v6979_v12 = vsel %vm3503_vm1, %v6954_v56, 0.0 }
 0x43d   :  { %v6991_v49 = vadd.f32 %v6955_v4, %v12033_v19  ;;  %v6995_v42 = vadd.f32 %v6979_v12, %v12036_v16 }
 0x43f   :  { %v7023_v11 = vadd.f32 %v7007_v14, %v6991_v49  ;;  %v7027_v55 = vadd.f32 %v7011_v3, %v6995_v42 }
 0x441   :  { %7039 = vst [vmem:[#allocation13 + $0x58] sm:$0xff] %v7023_v11 }
 0x442   :  { %7043 = vst [vmem:[#allocation13 + $0x78] sm:$0xff] %v7027_v55 }
 0x443   :  { %7056 = dma.vmem_to_hbm [thread:$0]  %s7049_s5, 2048, %s7051_s7, [#allocation4], %s11136_s29, %s11136_s29, %s11137_s30  }
 0x444   :  { %11133 = dma.done.wait [#allocation4], 2048  }
 0x445   :  { %11134 = vsyncadd [#allocation4], 4294965248 }
 0x446   :  { %7061 = vsyncpa [#allocation3], 1 }
 0x447   :  { %7062 = vsyncpa [#allocation6], 1 }
 0x448   :  { %7063 = vsyncpa [#allocation9], 1 }
 0x449   :  { %7064 = vsyncpa [#allocation12], 1 }
 0x44a   :  { %7065 = vsyncpa [#allocation4], 1 }

</bundles_post_ra>
